<compile_context>
chip_gen: v6e
topology: v6e:2x2x1
jax: 0.10.0
libtpu: 0.0.40
codegen_flags: <defaults>
</compile_context>

<pallas_src>
import jax
import jax.numpy as jnp
from jax.experimental import pallas as pl
from jax.experimental.pallas import tpu as pltpu


def decoder_layer(x, params, head_dim, *, q_tile=None):
    """x: (B, T, E) float32. params: dict of per-head weights (see init_params)."""
    B, T, E = x.shape
    assert E % head_dim == 0
    n_heads = E // head_dim
    if q_tile is None:
        q_tile = T if T <= 512 else 256
    assert T % q_tile == 0
    num_q = T // q_tile

    f32, bf16 = jnp.float32, jnp.bfloat16
    eps = 1e-5
    scale = float(E) ** -0.5
    ff_dim = params["w1"].shape[1]

    # ---- host-side weight fusion (per-head -> MXU-wide slabs), one bf16 cast ----
    wq_f = jnp.transpose(params["wq"], (1, 0, 2)).reshape(E, n_heads * head_dim)
    wk_f = jnp.transpose(params["wk"], (1, 0, 2)).reshape(E, n_heads * head_dim)
    wv_f = jnp.transpose(params["wv"], (1, 0, 2)).reshape(E, n_heads * head_dim)
    wkv_f = jnp.concatenate([wk_f, wv_f], axis=1)            # (E, 2*E)
    wo_f = params["wo"].reshape(n_heads * head_dim, E)        # (E, E)

    weights = (
        wq_f.astype(bf16), wkv_f.astype(bf16), wo_f.astype(bf16),
        params["bo"], params["g1"], params["be1"], params["g2"], params["be2"],
        params["w1"].astype(bf16), params["bf1"],
        params["w2"].astype(bf16), params["bf2"],
    )

    def kernel(x_ref, wq_ref, wkv_ref, wo_ref, bo_ref, g1_ref, be1_ref,
               g2_ref, be2_ref, w1_ref, bf1_ref, w2_ref, bf2_ref,
               o_ref, k_cache, v_cache):
        neg_big = jnp.float32(-1e30)      # finite mask (diag guarantees a valid entry)
        qi = pl.program_id(1)

        def layer_norm(v, gamma, beta):
            mu = jnp.mean(v, axis=-1, keepdims=True)
            c = v - mu
            var = jnp.mean(c * c, axis=-1, keepdims=True)
            return c * jax.lax.rsqrt(var + eps) * gamma + beta

        g1, be1 = g1_ref[...], be1_ref[...]

        # ---- K/V cache: full-sequence LN + fused K|V projection, once per batch ----
        @pl.when(qi == 0)
        def _():
            xn_all = layer_norm(x_ref[...], g1, be1).astype(bf16)          # (T, E)
            kv = jnp.dot(xn_all, wkv_ref[...], preferred_element_type=f32)  # (T, 2E)
            k_cache[...] = kv[:, :E].astype(bf16)
            v_cache[...] = kv[:, E:].astype(bf16)

        # ---- query tile: slice rows out of the resident (T, E) slab ----
        row0 = pl.multiple_of(qi * q_tile, q_tile)
        x_q = x_ref[pl.ds(row0, q_tile), :]                                # (Tq, E) f32
        xq_n = layer_norm(x_q, g1, be1).astype(bf16)

        # fused Q projection; fold softmax scale into Q (Tq*E muls, not Tq*T)
        q_all = (jnp.dot(xq_n, wq_ref[...], preferred_element_type=f32)
                 * scale).astype(bf16)                                     # (Tq, E)
        k_all = k_cache[...]                                               # (T, E) bf16
        v_all = v_cache[...]                                               # (T, E) bf16

        # causal mask for this tile (shared across heads)
        row = jax.lax.broadcasted_iota(jnp.int32, (q_tile, T), 0) + row0
        col = jax.lax.broadcasted_iota(jnp.int32, (q_tile, T), 1)
        causal = row >= col

        # ---- per-head attention core; contexts lane-concatenated (no fp32 acc) ----
        ctxs = []
        for h in range(n_heads):
            lo, hi = h * head_dim, (h + 1) * head_dim
            s = jnp.einsum("qd,kd->qk", q_all[:, lo:hi], k_all[:, lo:hi],
                           preferred_element_type=f32)                    # (Tq, T)
            s = jnp.where(causal, s, neg_big)
            m = jnp.max(s, axis=-1, keepdims=True)
            p = jnp.exp(s - m)
            denom = jnp.sum(p, axis=-1, keepdims=True)
            p = p * pl.reciprocal(denom, approx=True)     # EUP slot, off the VALU
            # dropout(p) -> identity in eval mode
            ctx_h = jnp.dot(p.astype(bf16), v_all[:, lo:hi],
                            preferred_element_type=f32)                   # (Tq, D)
            ctxs.append(ctx_h.astype(bf16))
        ctx = jnp.concatenate(ctxs, axis=-1)                               # (Tq, E)

        # fused output projection (contraction depth E) + bias + residual 1
        attn = (jnp.dot(ctx, wo_ref[...], preferred_element_type=f32)
                + bo_ref[...] + x_q)

        # ---- feed forward (pre-norm) ----
        attn_n = layer_norm(attn, g2_ref[...], be2_ref[...]).astype(bf16)
        h1 = jnp.dot(attn_n, w1_ref[...], preferred_element_type=f32) + bf1_ref[...]
        h1 = jnp.maximum(h1, 0.0).astype(bf16)            # ReLU (dropout -> identity)
        ff = jnp.dot(h1, w2_ref[...], preferred_element_type=f32) + bf2_ref[...]

        o_ref[...] = (ff + attn).astype(o_ref.dtype)      # residual 2

    def const_spec(a):
        # Full-array block, constant index_map: fetched once, stays resident.
        nd = a.ndim
        return pl.BlockSpec(a.shape, lambda b, qi, _nd=nd: (0,) * _nd)

    x_spec = pl.BlockSpec((pl.Squeezed(), T, E), lambda b, qi: (b, 0, 0))
    out_spec = pl.BlockSpec((pl.Squeezed(), q_tile, E), lambda b, qi: (b, qi, 0))

    # ---- scoped-VMEM budget sized from actual buffers, capped at 48 MiB (v7x) ----
    weight_bytes = sum(int(w.size) * w.dtype.itemsize for w in weights)
    x_bytes = 4 * T * E
    kv_bytes = 2 * 2 * T * E                               # two bf16 caches
    inter_bytes = 4 * (q_tile * ff_dim + 2 * q_tile * T + 4 * q_tile * E) + 4 * T * 2 * E
    est = 2 * (weight_bytes + x_bytes + 4 * q_tile * E) + kv_bytes + inter_bytes
    vmem_limit = int(min(48 * 2**20, max(32 * 2**20, est * 3 // 2)))

    cost = pl.CostEstimate(
        flops=int(B * (2 * T * E * 2 * E            # fused K|V projection (once)
                       + 2 * T * E * E              # Q projection
                       + 4 * n_heads * T * T * head_dim   # scores + ctx
                       + 2 * T * E * E              # output projection
                       + 4 * T * E * ff_dim)),      # feed-forward
        transcendentals=int(B * n_heads * T * T),
        bytes_accessed=int(weight_bytes + 2 * x.size * 4),
    )

    return pl.pallas_call(
        kernel,
        out_shape=jax.ShapeDtypeStruct((B, T, E), jnp.float32),
        grid_spec=pltpu.PrefetchScalarGridSpec(
            num_scalar_prefetch=0,
            grid=(B, num_q),
            in_specs=[x_spec] + [const_spec(w) for w in weights],
            out_specs=out_spec,
            scratch_shapes=[pltpu.VMEM((T, E), bf16),     # K cache
                            pltpu.VMEM((T, E), bf16)],    # V cache
        ),
        compiler_params=pltpu.CompilerParams(
            # q-tile axis must be "arbitrary": the K/V scratch cache carries state
            # across tiles of the same batch; batch axis maps onto the v7x cores.
            dimension_semantics=("parallel", "arbitrary"),
            vmem_limit_bytes=vmem_limit,
        ),
        cost_estimate=cost,
    )(x, *weights)


def init_params(key, emb_dim, head_dim, ff_dim):
    """Deterministic synthetic parameters matching the torch module's shapes.

    Per-head Q/K/V weights stacked as (H, E, D); output projection split per head
    as (H, D, E) (equivalent to concat-then-Linear of the torch MultiAttention).
    """
    n_heads = emb_dim // head_dim
    keys = jax.random.split(key, 8)
    s = 0.05
    return {
        "wq": s * jax.random.normal(keys[0], (n_heads, emb_dim, head_dim), jnp.float32),
        "wk": s * jax.random.normal(keys[1], (n_heads, emb_dim, head_dim), jnp.float32),
        "wv": s * jax.random.normal(keys[2], (n_heads, emb_dim, head_dim), jnp.float32),
        "wo": s * jax.random.normal(keys[3], (n_heads, head_dim, emb_dim), jnp.float32),
        "bo": s * jax.random.normal(keys[4], (1, emb_dim), jnp.float32),
        "g1": jnp.ones((1, emb_dim), jnp.float32),
        "be1": jnp.zeros((1, emb_dim), jnp.float32),
        "g2": jnp.ones((1, emb_dim), jnp.float32),
        "be2": jnp.zeros((1, emb_dim), jnp.float32),
        "w1": s * jax.random.normal(keys[5], (emb_dim, ff_dim), jnp.float32),
        "bf1": s * jax.random.normal(keys[6], (1, ff_dim), jnp.float32),
        "w2": s * jax.random.normal(keys[7], (ff_dim, emb_dim), jnp.float32),
        "bf2": jnp.zeros((1, emb_dim), jnp.float32),
    }


def decoder_layer_ref(x, p, head_dim):
    """Pure-JAX fp32 reference (matches the torch DecoderLayer forward)."""
    B, T, E = x.shape
    n_heads = E // head_dim
    eps = 1e-5

    def ln(v, g, b):
        mu = jnp.mean(v, axis=-1, keepdims=True)
        var = jnp.mean((v - mu) ** 2, axis=-1, keepdims=True)
        return (v - mu) / jnp.sqrt(var + eps) * g + b

    xn = ln(x, p["g1"], p["be1"])
    scale = float(E) ** -0.5
    mask = jnp.tril(jnp.ones((T, T), bool))
    attn = jnp.zeros_like(x)
    for h in range(n_heads):
        q = xn @ p["wq"][h]
        k = xn @ p["wk"][h]
        v = xn @ p["wv"][h]
        s = jnp.einsum("btd,bsd->bts", q, k) * scale
        s = jnp.where(mask, s, -jnp.inf)
        a = jax.nn.softmax(s, axis=-1)
        attn = attn + jnp.einsum("bts,bsd->btd", a, v) @ p["wo"][h]
    attn = attn + p["bo"] + x
    an = ln(attn, p["g2"], p["be2"])
    ff = jnp.maximum(an @ p["w1"] + p["bf1"], 0.0) @ p["w2"] + p["bf2"]
    return ff + attn


if __name__ == "__main__":
    # Lane-aligned but still small: E=128 on lanes, T multiple of the 128 q-tile.
    B, T, EMB, HEAD, FF = 2, 256, 128, 32, 256      # 4 heads, context == T
    key = jax.random.PRNGKey(0)
    k_x, k_p = jax.random.split(key)
    x = jax.random.normal(k_x, (B, T, EMB), jnp.float32)
    params = init_params(k_p, EMB, HEAD, FF)

    ref = decoder_layer_ref(x, params, HEAD)

    # q_tile=128 exercises the cached-KV / multi-tile path (num_q = 2).
    out = jax.block_until_ready(decoder_layer(x, params, HEAD, q_tile=128))
    assert out.shape == (B, T, EMB)
    # bf16 MXU operands (fp32 accumulation) => tolerance loosened vs fp32 reference.
    assert jnp.allclose(out, ref, atol=5e-2, rtol=5e-2), "mismatch vs JAX reference (tiled)"

    # Default path: one query tile per batch (q_tile = T).
    out_full = jax.block_until_ready(decoder_layer(x, params, HEAD))
    assert jnp.allclose(out_full, ref, atol=5e-2, rtol=5e-2), "mismatch vs JAX reference (full)"

    print("KERNEL_OK")
</pallas_src>

<mosaic_0001>
module attributes {stable_mosaic.version = 11 : i64} {
  func.func @kernel(%arg0: i32, %arg1: i32, %arg2: memref<1x256x128xf32, #tpu.memory_space<vmem>>, %arg3: memref<128x128xbf16, #tpu.memory_space<vmem>>, %arg4: memref<128x256xbf16, #tpu.memory_space<vmem>>, %arg5: memref<128x128xbf16, #tpu.memory_space<vmem>>, %arg6: memref<1x128xf32, #tpu.memory_space<vmem>>, %arg7: memref<1x128xf32, #tpu.memory_space<vmem>>, %arg8: memref<1x128xf32, #tpu.memory_space<vmem>>, %arg9: memref<1x128xf32, #tpu.memory_space<vmem>>, %arg10: memref<1x128xf32, #tpu.memory_space<vmem>>, %arg11: memref<128x256xbf16, #tpu.memory_space<vmem>>, %arg12: memref<1x256xf32, #tpu.memory_space<vmem>>, %arg13: memref<256x128xbf16, #tpu.memory_space<vmem>>, %arg14: memref<1x128xf32, #tpu.memory_space<vmem>>, %arg15: memref<1x128x128xf32, #tpu.memory_space<vmem>>, %arg16: memref<256x128xbf16, #tpu.memory_space<vmem>>, %arg17: memref<256x128xbf16, #tpu.memory_space<vmem>>) attributes {dimension_semantics = [#tpu.dimension_semantics<parallel>, #tpu.dimension_semantics<arbitrary>], iteration_bounds = array<i64: 2, 2>, scalar_prefetch = 0 : i64, scratch_operands = 2 : i64, tpu.core_type = #tpu.core_type<tc>, window_params = [{transform_indices = @transform_0, window_bounds = array<i64: 1, 256, 128>}, {pipeline_mode = #tpu.pipeline_mode<synchronous>, transform_indices = @transform_1, window_bounds = array<i64: 128, 128>}, {pipeline_mode = #tpu.pipeline_mode<synchronous>, transform_indices = @transform_2, window_bounds = array<i64: 128, 256>}, {pipeline_mode = #tpu.pipeline_mode<synchronous>, transform_indices = @transform_3, window_bounds = array<i64: 128, 128>}, {pipeline_mode = #tpu.pipeline_mode<synchronous>, transform_indices = @transform_4, window_bounds = array<i64: 1, 128>}, {pipeline_mode = #tpu.pipeline_mode<synchronous>, transform_indices = @transform_5, window_bounds = array<i64: 1, 128>}, {pipeline_mode = #tpu.pipeline_mode<synchronous>, transform_indices = @transform_6, window_bounds = array<i64: 1, 128>}, {pipeline_mode = #tpu.pipeline_mode<synchronous>, transform_indices = @transform_7, window_bounds = array<i64: 1, 128>}, {pipeline_mode = #tpu.pipeline_mode<synchronous>, transform_indices = @transform_8, window_bounds = array<i64: 1, 128>}, {pipeline_mode = #tpu.pipeline_mode<synchronous>, transform_indices = @transform_9, window_bounds = array<i64: 128, 256>}, {pipeline_mode = #tpu.pipeline_mode<synchronous>, transform_indices = @transform_10, window_bounds = array<i64: 1, 256>}, {pipeline_mode = #tpu.pipeline_mode<synchronous>, transform_indices = @transform_11, window_bounds = array<i64: 256, 128>}, {pipeline_mode = #tpu.pipeline_mode<synchronous>, transform_indices = @transform_12, window_bounds = array<i64: 1, 128>}, {transform_indices = @transform_13, window_bounds = array<i64: 1, 128, 128>}]} {
    %c0 = arith.constant 0 : index
    %c0_0 = arith.constant 0 : index
    %0 = vector.load %arg7[%c0, %c0_0] : memref<1x128xf32, #tpu.memory_space<vmem>>, vector<1x128xf32>
    %c0_1 = arith.constant 0 : index
    %c0_2 = arith.constant 0 : index
    %1 = vector.load %arg8[%c0_1, %c0_2] : memref<1x128xf32, #tpu.memory_space<vmem>>, vector<1x128xf32>
    %c0_i32 = arith.constant 0 : i32
    %2 = arith.cmpi eq, %arg1, %c0_i32 : i32
    %3 = arith.extui %2 : i1 to i32
    %c0_i32_3 = arith.constant 0 : i32
    %4 = arith.cmpi ne, %3, %c0_i32_3 : i32
    scf.if %4 {
      %c0_66 = arith.constant 0 : index
      %c0_67 = arith.constant 0 : index
      %c0_68 = arith.constant 0 : index
      %166 = vector.load %arg2[%c0_66, %c0_67, %c0_68] : memref<1x256x128xf32, #tpu.memory_space<vmem>>, vector<1x256x128xf32>
      %167 = vector.shape_cast %166 : vector<1x256x128xf32> to vector<256x128xf32>
      %cst_69 = arith.constant dense<0.000000e+00> : vector<256xf32>
      %168 = vector.multi_reduction <add>, %167, %cst_69 [1] : vector<256x128xf32> to vector<256xf32>
      %169 = vector.shape_cast %168 : vector<256xf32> to vector<256x1xf32>
      %cst_70 = arith.constant 1.280000e+02 : f32
      %170 = vector.broadcast %cst_70 : f32 to vector<256x1xf32>
      %171 = arith.divf %169, %170 : vector<256x1xf32>
      %172 = vector.broadcast %171 : vector<256x1xf32> to vector<256x128xf32>
      %173 = arith.subf %167, %172 : vector<256x128xf32>
      %174 = arith.mulf %173, %173 : vector<256x128xf32>
      %cst_71 = arith.constant dense<0.000000e+00> : vector<256xf32>
      %175 = vector.multi_reduction <add>, %174, %cst_71 [1] : vector<256x128xf32> to vector<256xf32>
      %176 = vector.shape_cast %175 : vector<256xf32> to vector<256x1xf32>
      %cst_72 = arith.constant 1.280000e+02 : f32
      %177 = vector.broadcast %cst_72 : f32 to vector<256x1xf32>
      %178 = arith.divf %176, %177 : vector<256x1xf32>
      %cst_73 = arith.constant 9.99999974E-6 : f32
      %179 = vector.broadcast %cst_73 : f32 to vector<256x1xf32>
      %180 = arith.addf %178, %179 : vector<256x1xf32>
      %181 = math.rsqrt %180 : vector<256x1xf32>
      %182 = vector.broadcast %181 : vector<256x1xf32> to vector<256x128xf32>
      %183 = arith.mulf %173, %182 : vector<256x128xf32>
      %184 = vector.broadcast %0 : vector<1x128xf32> to vector<256x128xf32>
      %185 = arith.mulf %183, %184 : vector<256x128xf32>
      %186 = vector.broadcast %1 : vector<1x128xf32> to vector<256x128xf32>
      %187 = arith.addf %185, %186 : vector<256x128xf32>
      %188 = arith.truncf %187 : vector<256x128xf32> to vector<256x128xbf16>
      %c0_74 = arith.constant 0 : index
      %c0_75 = arith.constant 0 : index
      %189 = vector.load %arg4[%c0_74, %c0_75] : memref<128x256xbf16, #tpu.memory_space<vmem>>, vector<128x256xbf16>
      %cst_76 = arith.constant dense<0.000000e+00> : vector<256x256xf32>
      %190 = tpu.matmul %188, %189, %cst_76 {dimension_numbers = #tpu.dot_dimension_numbers<[1], [0], [0], [1], [0, 0, 1, 1], [], []>} : vector<256x128xbf16>, vector<128x256xbf16>, vector<256x256xf32> -> vector<256x256xf32>
      %191 = vector.extract_strided_slice %190 {offsets = [0, 0], sizes = [256, 128], strides = [1, 1]} : vector<256x256xf32> to vector<256x128xf32>
      %192 = arith.truncf %191 : vector<256x128xf32> to vector<256x128xbf16>
      %c0_77 = arith.constant 0 : index
      %c0_78 = arith.constant 0 : index
      %193 = vector.load %arg16[%c0_77, %c0_78] : memref<256x128xbf16, #tpu.memory_space<vmem>>, vector<256x128xbf16>
      tpu.vector_store %arg16[%c0_77, %c0_78], %192 {strides = array<i32>} : memref<256x128xbf16, #tpu.memory_space<vmem>>, vector<256x128xbf16>,
      %194 = vector.extract_strided_slice %190 {offsets = [0, 128], sizes = [256, 128], strides = [1, 1]} : vector<256x256xf32> to vector<256x128xf32>
      %195 = arith.truncf %194 : vector<256x128xf32> to vector<256x128xbf16>
      %c0_79 = arith.constant 0 : index
      %c0_80 = arith.constant 0 : index
      %196 = vector.load %arg17[%c0_79, %c0_80] : memref<256x128xbf16, #tpu.memory_space<vmem>>, vector<256x128xbf16>
      tpu.vector_store %arg17[%c0_79, %c0_80], %195 {strides = array<i32>} : memref<256x128xbf16, #tpu.memory_space<vmem>>, vector<256x128xbf16>,
    } else {
    }
    %c128_i32 = arith.constant 128 : i32
    %5 = arith.muli %arg1, %c128_i32 : i32
    %6 = tpu.assume_multiple %5, 128 : i32
    %c0_4 = arith.constant 0 : index
    %7 = arith.index_cast %6 : i32 to index
    %c0_5 = arith.constant 0 : index
    %8 = vector.load %arg2[%c0_4, %7, %c0_5] : memref<1x256x128xf32, #tpu.memory_space<vmem>>, vector<1x128x128xf32>
    %9 = vector.shape_cast %8 : vector<1x128x128xf32> to vector<128x128xf32>
    %cst = arith.constant dense<0.000000e+00> : vector<128xf32>
    %10 = vector.multi_reduction <add>, %9, %cst [1] : vector<128x128xf32> to vector<128xf32>
    %11 = vector.shape_cast %10 : vector<128xf32> to vector<128x1xf32>
    %cst_6 = arith.constant 1.280000e+02 : f32
    %12 = vector.broadcast %cst_6 : f32 to vector<128x1xf32>
    %13 = arith.divf %11, %12 : vector<128x1xf32>
    %14 = vector.broadcast %13 : vector<128x1xf32> to vector<128x128xf32>
    %15 = arith.subf %9, %14 : vector<128x128xf32>
    %16 = arith.mulf %15, %15 : vector<128x128xf32>
    %cst_7 = arith.constant dense<0.000000e+00> : vector<128xf32>
    %17 = vector.multi_reduction <add>, %16, %cst_7 [1] : vector<128x128xf32> to vector<128xf32>
    %18 = vector.shape_cast %17 : vector<128xf32> to vector<128x1xf32>
    %cst_8 = arith.constant 1.280000e+02 : f32
    %19 = vector.broadcast %cst_8 : f32 to vector<128x1xf32>
    %20 = arith.divf %18, %19 : vector<128x1xf32>
    %cst_9 = arith.constant 9.99999974E-6 : f32
    %21 = vector.broadcast %cst_9 : f32 to vector<128x1xf32>
    %22 = arith.addf %20, %21 : vector<128x1xf32>
    %23 = math.rsqrt %22 : vector<128x1xf32>
    %24 = vector.broadcast %23 : vector<128x1xf32> to vector<128x128xf32>
    %25 = arith.mulf %15, %24 : vector<128x128xf32>
    %26 = vector.broadcast %0 : vector<1x128xf32> to vector<128x128xf32>
    %27 = arith.mulf %25, %26 : vector<128x128xf32>
    %28 = vector.broadcast %1 : vector<1x128xf32> to vector<128x128xf32>
    %29 = arith.addf %27, %28 : vector<128x128xf32>
    %30 = arith.truncf %29 : vector<128x128xf32> to vector<128x128xbf16>
    %c0_10 = arith.constant 0 : index
    %c0_11 = arith.constant 0 : index
    %31 = vector.load %arg3[%c0_10, %c0_11] : memref<128x128xbf16, #tpu.memory_space<vmem>>, vector<128x128xbf16>
    %cst_12 = arith.constant dense<0.000000e+00> : vector<128x128xf32>
    %32 = tpu.matmul %30, %31, %cst_12 {dimension_numbers = #tpu.dot_dimension_numbers<[1], [0], [0], [1], [0, 0, 1, 1], [], []>} : vector<128x128xbf16>, vector<128x128xbf16>, vector<128x128xf32> -> vector<128x128xf32>
    %cst_13 = arith.constant 0.0883883461 : f32
    %33 = vector.broadcast %cst_13 : f32 to vector<128x128xf32>
    %34 = arith.mulf %32, %33 : vector<128x128xf32>
    %35 = arith.truncf %34 : vector<128x128xf32> to vector<128x128xbf16>
    %c0_14 = arith.constant 0 : index
    %c0_15 = arith.constant 0 : index
    %36 = vector.load %arg16[%c0_14, %c0_15] : memref<256x128xbf16, #tpu.memory_space<vmem>>, vector<256x128xbf16>
    %c0_16 = arith.constant 0 : index
    %c0_17 = arith.constant 0 : index
    %37 = vector.load %arg17[%c0_16, %c0_17] : memref<256x128xbf16, #tpu.memory_space<vmem>>, vector<256x128xbf16>
    %38 = tpu.iota {dimensions = array<i32: 0>} : vector<128x256xi32>
    %39 = vector.broadcast %6 : i32 to vector<128x256xi32>
    %40 = arith.addi %38, %39 : vector<128x256xi32>
    %41 = tpu.iota {dimensions = array<i32: 1>} : vector<128x256xi32>
    %42 = arith.cmpi sge, %40, %41 : vector<128x256xi32>
    %43 = vector.extract_strided_slice %35 {offsets = [0, 0], sizes = [128, 32], strides = [1, 1]} : vector<128x128xbf16> to vector<128x32xbf16>
    %44 = vector.extract_strided_slice %36 {offsets = [0, 0], sizes = [256, 32], strides = [1, 1]} : vector<256x128xbf16> to vector<256x32xbf16>
    "tpu.trace_start"() <{level = 10 : i32, message = "qd,kd->qk"}> : () -> ()
    %cst_18 = arith.constant dense<0.000000e+00> : vector<128x256xf32>
    %45 = tpu.matmul %43, %44, %cst_18 {dimension_numbers = #tpu.dot_dimension_numbers<[1], [1], [0], [0], [0, 0, 1, 0], [], []>} : vector<128x32xbf16>, vector<256x32xbf16>, vector<128x256xf32> -> vector<128x256xf32>
    %cst_19 = arith.constant -1.000000e+30 : f32
    "tpu.trace_stop"() : () -> ()
    %46 = vector.broadcast %cst_19 : f32 to vector<128x256xf32>
    %47 = arith.select %42, %45, %46 : vector<128x256xi1>, vector<128x256xf32>
    %cst_20 = arith.constant dense<0xFF800000> : vector<128xf32>
    %48 = vector.multi_reduction <maximumf>, %47, %cst_20 [1] : vector<128x256xf32> to vector<128xf32>
    %49 = vector.shape_cast %48 : vector<128xf32> to vector<128x1xf32>
    %50 = vector.broadcast %49 : vector<128x1xf32> to vector<128x256xf32>
    %51 = arith.subf %47, %50 : vector<128x256xf32>
    %52 = math.exp %51 : vector<128x256xf32>
    %cst_21 = arith.constant dense<0.000000e+00> : vector<128xf32>
    %53 = vector.multi_reduction <add>, %52, %cst_21 [1] : vector<128x256xf32> to vector<128xf32>
    %54 = vector.shape_cast %53 : vector<128xf32> to vector<128x1xf32>
    %55 = tpu.reciprocal %54 {approx = true} : vector<128x1xf32> -> vector<128x1xf32>
    %56 = vector.broadcast %55 : vector<128x1xf32> to vector<128x256xf32>
    %57 = arith.mulf %52, %56 : vector<128x256xf32>
    %58 = arith.truncf %57 : vector<128x256xf32> to vector<128x256xbf16>
    %59 = vector.extract_strided_slice %37 {offsets = [0, 0], sizes = [256, 32], strides = [1, 1]} : vector<256x128xbf16> to vector<256x32xbf16>
    %cst_22 = arith.constant dense<0.000000e+00> : vector<128x32xf32>
    %60 = tpu.matmul %58, %59, %cst_22 {dimension_numbers = #tpu.dot_dimension_numbers<[1], [0], [0], [1], [0, 0, 1, 1], [], []>} : vector<128x256xbf16>, vector<256x32xbf16>, vector<128x32xf32> -> vector<128x32xf32>
    %61 = arith.truncf %60 : vector<128x32xf32> to vector<128x32xbf16>
    %62 = vector.extract_strided_slice %35 {offsets = [0, 32], sizes = [128, 32], strides = [1, 1]} : vector<128x128xbf16> to vector<128x32xbf16>
    %63 = vector.extract_strided_slice %36 {offsets = [0, 32], sizes = [256, 32], strides = [1, 1]} : vector<256x128xbf16> to vector<256x32xbf16>
    "tpu.trace_start"() <{level = 10 : i32, message = "qd,kd->qk"}> : () -> ()
    %cst_23 = arith.constant dense<0.000000e+00> : vector<128x256xf32>
    %64 = tpu.matmul %62, %63, %cst_23 {dimension_numbers = #tpu.dot_dimension_numbers<[1], [1], [0], [0], [0, 0, 1, 0], [], []>} : vector<128x32xbf16>, vector<256x32xbf16>, vector<128x256xf32> -> vector<128x256xf32>
    %cst_24 = arith.constant -1.000000e+30 : f32
    "tpu.trace_stop"() : () -> ()
    %65 = vector.broadcast %cst_24 : f32 to vector<128x256xf32>
    %66 = arith.select %42, %64, %65 : vector<128x256xi1>, vector<128x256xf32>
    %cst_25 = arith.constant dense<0xFF800000> : vector<128xf32>
    %67 = vector.multi_reduction <maximumf>, %66, %cst_25 [1] : vector<128x256xf32> to vector<128xf32>
    %68 = vector.shape_cast %67 : vector<128xf32> to vector<128x1xf32>
    %69 = vector.broadcast %68 : vector<128x1xf32> to vector<128x256xf32>
    %70 = arith.subf %66, %69 : vector<128x256xf32>
    %71 = math.exp %70 : vector<128x256xf32>
    %cst_26 = arith.constant dense<0.000000e+00> : vector<128xf32>
    %72 = vector.multi_reduction <add>, %71, %cst_26 [1] : vector<128x256xf32> to vector<128xf32>
    %73 = vector.shape_cast %72 : vector<128xf32> to vector<128x1xf32>
    %74 = tpu.reciprocal %73 {approx = true} : vector<128x1xf32> -> vector<128x1xf32>
    %75 = vector.broadcast %74 : vector<128x1xf32> to vector<128x256xf32>
    %76 = arith.mulf %71, %75 : vector<128x256xf32>
    %77 = arith.truncf %76 : vector<128x256xf32> to vector<128x256xbf16>
    %78 = vector.extract_strided_slice %37 {offsets = [0, 32], sizes = [256, 32], strides = [1, 1]} : vector<256x128xbf16> to vector<256x32xbf16>
    %cst_27 = arith.constant dense<0.000000e+00> : vector<128x32xf32>
    %79 = tpu.matmul %77, %78, %cst_27 {dimension_numbers = #tpu.dot_dimension_numbers<[1], [0], [0], [1], [0, 0, 1, 1], [], []>} : vector<128x256xbf16>, vector<256x32xbf16>, vector<128x32xf32> -> vector<128x32xf32>
    %80 = arith.truncf %79 : vector<128x32xf32> to vector<128x32xbf16>
    %81 = vector.extract_strided_slice %35 {offsets = [0, 64], sizes = [128, 32], strides = [1, 1]} : vector<128x128xbf16> to vector<128x32xbf16>
    %82 = vector.extract_strided_slice %36 {offsets = [0, 64], sizes = [256, 32], strides = [1, 1]} : vector<256x128xbf16> to vector<256x32xbf16>
    "tpu.trace_start"() <{level = 10 : i32, message = "qd,kd->qk"}> : () -> ()
    %cst_28 = arith.constant dense<0.000000e+00> : vector<128x256xf32>
    %83 = tpu.matmul %81, %82, %cst_28 {dimension_numbers = #tpu.dot_dimension_numbers<[1], [1], [0], [0], [0, 0, 1, 0], [], []>} : vector<128x32xbf16>, vector<256x32xbf16>, vector<128x256xf32> -> vector<128x256xf32>
    %cst_29 = arith.constant -1.000000e+30 : f32
    "tpu.trace_stop"() : () -> ()
    %84 = vector.broadcast %cst_29 : f32 to vector<128x256xf32>
    %85 = arith.select %42, %83, %84 : vector<128x256xi1>, vector<128x256xf32>
    %cst_30 = arith.constant dense<0xFF800000> : vector<128xf32>
    %86 = vector.multi_reduction <maximumf>, %85, %cst_30 [1] : vector<128x256xf32> to vector<128xf32>
    %87 = vector.shape_cast %86 : vector<128xf32> to vector<128x1xf32>
    %88 = vector.broadcast %87 : vector<128x1xf32> to vector<128x256xf32>
    %89 = arith.subf %85, %88 : vector<128x256xf32>
    %90 = math.exp %89 : vector<128x256xf32>
    %cst_31 = arith.constant dense<0.000000e+00> : vector<128xf32>
    %91 = vector.multi_reduction <add>, %90, %cst_31 [1] : vector<128x256xf32> to vector<128xf32>
    %92 = vector.shape_cast %91 : vector<128xf32> to vector<128x1xf32>
    %93 = tpu.reciprocal %92 {approx = true} : vector<128x1xf32> -> vector<128x1xf32>
    %94 = vector.broadcast %93 : vector<128x1xf32> to vector<128x256xf32>
    %95 = arith.mulf %90, %94 : vector<128x256xf32>
    %96 = arith.truncf %95 : vector<128x256xf32> to vector<128x256xbf16>
    %97 = vector.extract_strided_slice %37 {offsets = [0, 64], sizes = [256, 32], strides = [1, 1]} : vector<256x128xbf16> to vector<256x32xbf16>
    %cst_32 = arith.constant dense<0.000000e+00> : vector<128x32xf32>
    %98 = tpu.matmul %96, %97, %cst_32 {dimension_numbers = #tpu.dot_dimension_numbers<[1], [0], [0], [1], [0, 0, 1, 1], [], []>} : vector<128x256xbf16>, vector<256x32xbf16>, vector<128x32xf32> -> vector<128x32xf32>
    %99 = arith.truncf %98 : vector<128x32xf32> to vector<128x32xbf16>
    %100 = vector.extract_strided_slice %35 {offsets = [0, 96], sizes = [128, 32], strides = [1, 1]} : vector<128x128xbf16> to vector<128x32xbf16>
    %101 = vector.extract_strided_slice %36 {offsets = [0, 96], sizes = [256, 32], strides = [1, 1]} : vector<256x128xbf16> to vector<256x32xbf16>
    "tpu.trace_start"() <{level = 10 : i32, message = "qd,kd->qk"}> : () -> ()
    %cst_33 = arith.constant dense<0.000000e+00> : vector<128x256xf32>
    %102 = tpu.matmul %100, %101, %cst_33 {dimension_numbers = #tpu.dot_dimension_numbers<[1], [1], [0], [0], [0, 0, 1, 0], [], []>} : vector<128x32xbf16>, vector<256x32xbf16>, vector<128x256xf32> -> vector<128x256xf32>
    %cst_34 = arith.constant -1.000000e+30 : f32
    "tpu.trace_stop"() : () -> ()
    %103 = vector.broadcast %cst_34 : f32 to vector<128x256xf32>
    %104 = arith.select %42, %102, %103 : vector<128x256xi1>, vector<128x256xf32>
    %cst_35 = arith.constant dense<0xFF800000> : vector<128xf32>
    %105 = vector.multi_reduction <maximumf>, %104, %cst_35 [1] : vector<128x256xf32> to vector<128xf32>
    %106 = vector.shape_cast %105 : vector<128xf32> to vector<128x1xf32>
    %107 = vector.broadcast %106 : vector<128x1xf32> to vector<128x256xf32>
    %108 = arith.subf %104, %107 : vector<128x256xf32>
    %109 = math.exp %108 : vector<128x256xf32>
    %cst_36 = arith.constant dense<0.000000e+00> : vector<128xf32>
    %110 = vector.multi_reduction <add>, %109, %cst_36 [1] : vector<128x256xf32> to vector<128xf32>
    %111 = vector.shape_cast %110 : vector<128xf32> to vector<128x1xf32>
    %112 = tpu.reciprocal %111 {approx = true} : vector<128x1xf32> -> vector<128x1xf32>
    %113 = vector.broadcast %112 : vector<128x1xf32> to vector<128x256xf32>
    %114 = arith.mulf %109, %113 : vector<128x256xf32>
    %115 = arith.truncf %114 : vector<128x256xf32> to vector<128x256xbf16>
    %116 = vector.extract_strided_slice %37 {offsets = [0, 96], sizes = [256, 32], strides = [1, 1]} : vector<256x128xbf16> to vector<256x32xbf16>
    %cst_37 = arith.constant dense<0.000000e+00> : vector<128x32xf32>
    %117 = tpu.matmul %115, %116, %cst_37 {dimension_numbers = #tpu.dot_dimension_numbers<[1], [0], [0], [1], [0, 0, 1, 1], [], []>} : vector<128x256xbf16>, vector<256x32xbf16>, vector<128x32xf32> -> vector<128x32xf32>
    %118 = arith.truncf %117 : vector<128x32xf32> to vector<128x32xbf16>
    %119 = tpu.concatenate %61, %80, %99, %118 in 1 : vector<128x32xbf16>, vector<128x32xbf16>, vector<128x32xbf16>, vector<128x32xbf16> -> vector<128x128xbf16>
    %c0_38 = arith.constant 0 : index
    %c0_39 = arith.constant 0 : index
    %120 = vector.load %arg5[%c0_38, %c0_39] : memref<128x128xbf16, #tpu.memory_space<vmem>>, vector<128x128xbf16>
    %cst_40 = arith.constant dense<0.000000e+00> : vector<128x128xf32>
    %121 = tpu.matmul %119, %120, %cst_40 {dimension_numbers = #tpu.dot_dimension_numbers<[1], [0], [0], [1], [0, 0, 1, 1], [], []>} : vector<128x128xbf16>, vector<128x128xbf16>, vector<128x128xf32> -> vector<128x128xf32>
    %c0_41 = arith.constant 0 : index
    %c0_42 = arith.constant 0 : index
    %122 = vector.load %arg6[%c0_41, %c0_42] : memref<1x128xf32, #tpu.memory_space<vmem>>, vector<1x128xf32>
    %123 = vector.broadcast %122 : vector<1x128xf32> to vector<128x128xf32>
    %124 = arith.addf %121, %123 : vector<128x128xf32>
    %125 = arith.addf %124, %9 : vector<128x128xf32>
    %c0_43 = arith.constant 0 : index
    %c0_44 = arith.constant 0 : index
    %126 = vector.load %arg9[%c0_43, %c0_44] : memref<1x128xf32, #tpu.memory_space<vmem>>, vector<1x128xf32>
    %c0_45 = arith.constant 0 : index
    %c0_46 = arith.constant 0 : index
    %127 = vector.load %arg10[%c0_45, %c0_46] : memref<1x128xf32, #tpu.memory_space<vmem>>, vector<1x128xf32>
    %cst_47 = arith.constant dense<0.000000e+00> : vector<128xf32>
    %128 = vector.multi_reduction <add>, %125, %cst_47 [1] : vector<128x128xf32> to vector<128xf32>
    %129 = vector.shape_cast %128 : vector<128xf32> to vector<128x1xf32>
    %cst_48 = arith.constant 1.280000e+02 : f32
    %130 = vector.broadcast %cst_48 : f32 to vector<128x1xf32>
    %131 = arith.divf %129, %130 : vector<128x1xf32>
    %132 = vector.broadcast %131 : vector<128x1xf32> to vector<128x128xf32>
    %133 = arith.subf %125, %132 : vector<128x128xf32>
    %134 = arith.mulf %133, %133 : vector<128x128xf32>
    %cst_49 = arith.constant dense<0.000000e+00> : vector<128xf32>
    %135 = vector.multi_reduction <add>, %134, %cst_49 [1] : vector<128x128xf32> to vector<128xf32>
    %136 = vector.shape_cast %135 : vector<128xf32> to vector<128x1xf32>
    %cst_50 = arith.constant 1.280000e+02 : f32
    %137 = vector.broadcast %cst_50 : f32 to vector<128x1xf32>
    %138 = arith.divf %136, %137 : vector<128x1xf32>
    %cst_51 = arith.constant 9.99999974E-6 : f32
    %139 = vector.broadcast %cst_51 : f32 to vector<128x1xf32>
    %140 = arith.addf %138, %139 : vector<128x1xf32>
    %141 = math.rsqrt %140 : vector<128x1xf32>
    %142 = vector.broadcast %141 : vector<128x1xf32> to vector<128x128xf32>
    %143 = arith.mulf %133, %142 : vector<128x128xf32>
    %144 = vector.broadcast %126 : vector<1x128xf32> to vector<128x128xf32>
    %145 = arith.mulf %143, %144 : vector<128x128xf32>
    %146 = vector.broadcast %127 : vector<1x128xf32> to vector<128x128xf32>
    %147 = arith.addf %145, %146 : vector<128x128xf32>
    %148 = arith.truncf %147 : vector<128x128xf32> to vector<128x128xbf16>
    %c0_52 = arith.constant 0 : index
    %c0_53 = arith.constant 0 : index
    %149 = vector.load %arg11[%c0_52, %c0_53] : memref<128x256xbf16, #tpu.memory_space<vmem>>, vector<128x256xbf16>
    %cst_54 = arith.constant dense<0.000000e+00> : vector<128x256xf32>
    %150 = tpu.matmul %148, %149, %cst_54 {dimension_numbers = #tpu.dot_dimension_numbers<[1], [0], [0], [1], [0, 0, 1, 1], [], []>} : vector<128x128xbf16>, vector<128x256xbf16>, vector<128x256xf32> -> vector<128x256xf32>
    %c0_55 = arith.constant 0 : index
    %c0_56 = arith.constant 0 : index
    %151 = vector.load %arg12[%c0_55, %c0_56] : memref<1x256xf32, #tpu.memory_space<vmem>>, vector<1x256xf32>
    %152 = vector.broadcast %151 : vector<1x256xf32> to vector<128x256xf32>
    %153 = arith.addf %150, %152 : vector<128x256xf32>
    %cst_57 = arith.constant 0.000000e+00 : f32
    %154 = vector.broadcast %cst_57 : f32 to vector<128x256xf32>
    %155 = arith.maximumf %153, %154 : vector<128x256xf32>
    %156 = arith.truncf %155 : vector<128x256xf32> to vector<128x256xbf16>
    %c0_58 = arith.constant 0 : index
    %c0_59 = arith.constant 0 : index
    %157 = vector.load %arg13[%c0_58, %c0_59] : memref<256x128xbf16, #tpu.memory_space<vmem>>, vector<256x128xbf16>
    %cst_60 = arith.constant dense<0.000000e+00> : vector<128x128xf32>
    %158 = tpu.matmul %156, %157, %cst_60 {dimension_numbers = #tpu.dot_dimension_numbers<[1], [0], [0], [1], [0, 0, 1, 1], [], []>} : vector<128x256xbf16>, vector<256x128xbf16>, vector<128x128xf32> -> vector<128x128xf32>
    %c0_61 = arith.constant 0 : index
    %c0_62 = arith.constant 0 : index
    %159 = vector.load %arg14[%c0_61, %c0_62] : memref<1x128xf32, #tpu.memory_space<vmem>>, vector<1x128xf32>
    %160 = vector.broadcast %159 : vector<1x128xf32> to vector<128x128xf32>
    %161 = arith.addf %158, %160 : vector<128x128xf32>
    %162 = arith.addf %161, %125 : vector<128x128xf32>
    %c0_63 = arith.constant 0 : index
    %c0_64 = arith.constant 0 : index
    %c0_65 = arith.constant 0 : index
    %163 = vector.load %arg15[%c0_63, %c0_64, %c0_65] : memref<1x128x128xf32, #tpu.memory_space<vmem>>, vector<1x128x128xf32>
    %164 = vector.shape_cast %163 : vector<1x128x128xf32> to vector<128x128xf32>
    %165 = vector.shape_cast %162 : vector<128x128xf32> to vector<1x128x128xf32>
    tpu.vector_store %arg15[%c0_63, %c0_64, %c0_65], %165 {strides = array<i32>} : memref<1x128x128xf32, #tpu.memory_space<vmem>>, vector<1x128x128xf32>,
    return
  }
  func.func @transform_0(%arg0: i32, %arg1: i32) -> (i32, i32, i32) {
    %c0_i32 = arith.constant 0 : i32
    %c0_i32_0 = arith.constant 0 : i32
    %c0_i32_1 = arith.constant 0 : i32
    return %arg0, %c0_i32, %c0_i32_0 : i32, i32, i32
  }
  func.func @transform_1(%arg0: i32, %arg1: i32) -> (i32, i32) {
    %c0_i32 = arith.constant 0 : i32
    %c0_i32_0 = arith.constant 0 : i32
    %c0_i32_1 = arith.constant 0 : i32
    return %c0_i32, %c0_i32_0 : i32, i32
  }
  func.func @transform_2(%arg0: i32, %arg1: i32) -> (i32, i32) {
    %c0_i32 = arith.constant 0 : i32
    %c0_i32_0 = arith.constant 0 : i32
    %c0_i32_1 = arith.constant 0 : i32
    return %c0_i32, %c0_i32_0 : i32, i32
  }
  func.func @transform_3(%arg0: i32, %arg1: i32) -> (i32, i32) {
    %c0_i32 = arith.constant 0 : i32
    %c0_i32_0 = arith.constant 0 : i32
    %c0_i32_1 = arith.constant 0 : i32
    return %c0_i32, %c0_i32_0 : i32, i32
  }
  func.func @transform_4(%arg0: i32, %arg1: i32) -> (i32, i32) {
    %c0_i32 = arith.constant 0 : i32
    %c0_i32_0 = arith.constant 0 : i32
    %c0_i32_1 = arith.constant 0 : i32
    return %c0_i32, %c0_i32_0 : i32, i32
  }
  func.func @transform_5(%arg0: i32, %arg1: i32) -> (i32, i32) {
    %c0_i32 = arith.constant 0 : i32
    %c0_i32_0 = arith.constant 0 : i32
    %c0_i32_1 = arith.constant 0 : i32
    return %c0_i32, %c0_i32_0 : i32, i32
  }
  func.func @transform_6(%arg0: i32, %arg1: i32) -> (i32, i32) {
    %c0_i32 = arith.constant 0 : i32
    %c0_i32_0 = arith.constant 0 : i32
    %c0_i32_1 = arith.constant 0 : i32
    return %c0_i32, %c0_i32_0 : i32, i32
  }
  func.func @transform_7(%arg0: i32, %arg1: i32) -> (i32, i32) {
    %c0_i32 = arith.constant 0 : i32
    %c0_i32_0 = arith.constant 0 : i32
    %c0_i32_1 = arith.constant 0 : i32
    return %c0_i32, %c0_i32_0 : i32, i32
  }
  func.func @transform_8(%arg0: i32, %arg1: i32) -> (i32, i32) {
    %c0_i32 = arith.constant 0 : i32
    %c0_i32_0 = arith.constant 0 : i32
    %c0_i32_1 = arith.constant 0 : i32
    return %c0_i32, %c0_i32_0 : i32, i32
  }
  func.func @transform_9(%arg0: i32, %arg1: i32) -> (i32, i32) {
    %c0_i32 = arith.constant 0 : i32
    %c0_i32_0 = arith.constant 0 : i32
    %c0_i32_1 = arith.constant 0 : i32
    return %c0_i32, %c0_i32_0 : i32, i32
  }
  func.func @transform_10(%arg0: i32, %arg1: i32) -> (i32, i32) {
    %c0_i32 = arith.constant 0 : i32
    %c0_i32_0 = arith.constant 0 : i32
    %c0_i32_1 = arith.constant 0 : i32
    return %c0_i32, %c0_i32_0 : i32, i32
  }
  func.func @transform_11(%arg0: i32, %arg1: i32) -> (i32, i32) {
    %c0_i32 = arith.constant 0 : i32
    %c0_i32_0 = arith.constant 0 : i32
    %c0_i32_1 = arith.constant 0 : i32
    return %c0_i32, %c0_i32_0 : i32, i32
  }
  func.func @transform_12(%arg0: i32, %arg1: i32) -> (i32, i32) {
    %c0_i32 = arith.constant 0 : i32
    %c0_i32_0 = arith.constant 0 : i32
    %c0_i32_1 = arith.constant 0 : i32
    return %c0_i32, %c0_i32_0 : i32, i32
  }
  func.func @transform_13(%arg0: i32, %arg1: i32) -> (i32, i32, i32) {
    %c0_i32 = arith.constant 0 : i32
    %c0_i32_0 = arith.constant 0 : i32
    return %arg0, %arg1, %c0_i32 : i32, i32, i32
  }
}

</mosaic_0001>

<bundles_post_ra>
// kernel: tpu_custom_call.1
= control target key start
LH: loop header
LB: loop body
LE: loop exit
PB: predicated region body
PF: predicated region fallthrough
CT: control target
= control target key end

     0   :  { %s12314_s0 = inlined_call_operand.hbm [shape: f32[2,256,128], index: 0, kind: input, shape index: {}]   ;;  %s12315_s1 = inlined_call_operand.hbm [shape: bf16[128,128], index: 1, kind: input, shape index: {}]   ;;  %s12316_s2 = inlined_call_operand.hbm [shape: bf16[128,256], index: 2, kind: input, shape index: {}]   ;;  %s12317_s3 = inlined_call_operand.hbm [shape: bf16[128,128], index: 3, kind: input, shape index: {}]   ;;  %s12318_s4 = inlined_call_operand.vmem [shape: f32[1,128], index: 4, kind: input, shape index: {}]   ;;  %s12319_s5 = inlined_call_operand.vmem [shape: f32[1,128], index: 5, kind: input, shape index: {}]   ;;  %s12320_s6 = inlined_call_operand.vmem [shape: f32[1,128], index: 6, kind: input, shape index: {}]   ;;  %s12321_s7 = inlined_call_operand.vmem [shape: f32[1,128], index: 7, kind: input, shape index: {}]   ;;  %s12322_s8 = inlined_call_operand.vmem [shape: f32[1,128], index: 8, kind: input, shape index: {}]   ;;  %s12323_s9 = inlined_call_operand.hbm [shape: bf16[128,256], index: 9, kind: input, shape index: {}]   ;;  %s12324_s10 = inlined_call_operand.vmem [shape: f32[1,256], index: 10, kind: input, shape index: {}]   ;;  %s12325_s11 = inlined_call_operand.hbm [shape: bf16[256,128], index: 11, kind: input, shape index: {}]   ;;  %s12326_s12 = inlined_call_operand.vmem [shape: f32[1,128], index: 12, kind: input, shape index: {}]   ;;  %s12327_s13 = inlined_call_operand.hbm [shape: f32[2,256,128], index: 13, kind: output, shape index: {}]  }
   0x1   :  { %12507 = sst [smem:[#allocation123_spill]] %s12315_s1 }
   0x2   :  { %12508 = sst [smem:[#allocation124_spill]] %s12316_s2 }
   0x3   :  { %12509 = sst [smem:[#allocation125_spill]] %s12317_s3 }
   0x4   :  { %12510 = sst [smem:[#allocation126_spill]] %s12318_s4 }
   0x5   :  { %12511 = sst [smem:[#allocation127_spill]] %s12321_s7 }
   0x6   :  { %12512 = sst [smem:[#allocation128_spill]] %s12322_s8 }
   0x7   :  { %12513 = sst [smem:[#allocation129_spill]] %s12323_s9 }
   0x8   :  { %12514 = sst [smem:[#allocation130_spill]] %s12324_s10 }
   0x9   :  { %12515 = sst [smem:[#allocation131_spill]] %s12325_s11 }
   0xa   :  { %12516 = sst [smem:[#allocation132_spill]] %s12326_s12 }
   0xb   :  { %12517 = sst [smem:[#allocation133_spill]] %s12327_s13 }
   0xc   :  { %18 = vsyncpa [#allocation5], 0 }
   0xd   :  { %20 = vsyncpa [#allocation5 + $0x1], 0 }
   0xe   :  { %21 = vsyncpa [#allocation8], 0 }
   0xf   :  { %22 = vsyncpa [#allocation11], 0 }
  0x10   :  { %23 = vsyncpa [#allocation14], 0 }
  0x11   :  { %24 = vsyncpa [#allocation6], 0 }
  0x12   :  { %26 = vsyncpa [#allocation6 + $0x1], 0  ;;  %s8535_s25 = smov 0   ;;  %s8537_s26 = smov 0  }
  0x13   :  { %s8539_s27 = smov 0   ;;  %s8541_s28 = smov 0  }
  0x14   :  { %s8543_s29 = smov 0   ;;  %s8545_s30 = smov 0  }
  0x15   :  { %s8547_s14 = smov 0   ;;  %s8549_s15 = smov 0  }
  0x16   :  { %s8551_s16 = smov 0   ;;  %s8553_s17 = smov 0  }
  0x17   :  { %s8555_s18 = smov 0  }
  0x18 LB: > { %12518 = sst [smem:[#allocation21_spill]] %s8429_s14  ;;  %s6228_s19 = sadd.s32 4294967295, %s8445_s18   ;;  %s8445_s18 = sphi %s8555_s18, %s32_s18   ;;  %s8441_s17 = sphi %s8553_s17, %s12941_s17   ;;  %s8437_s16 = sphi %s8551_s16, %s12949_s16   ;;  %s8433_s15 = sphi %s8549_s15, %s12939_s15   ;;  %s8429_s14 = sphi %s8547_s14, %s12948_s14   ;;  %s8425_s30 = sphi %s8545_s30, %s12947_s30   ;;  %s8421_s29 = sphi %s8543_s29, %s12946_s29   ;;  %s8417_s28 = sphi %s8541_s28, %s12945_s28   ;;  %s8413_s27 = sphi %s8539_s27, %s12944_s27   ;;  %s8409_s26 = sphi %s8537_s26, %s12943_s26   ;;  %s8405_s25 = sphi %s8535_s25, %s12942_s25  }
  0x19   : > { %12519 = sst [smem:[#allocation22_spill]] %s8433_s15  ;;  %p6230_p0 = scmp.ge.s32.totalorder %s8445_s18, 1 }
  0x1a   : > { %12520 = sst [smem:[#allocation23_spill]] %s8441_s17  ;;  %p8592_p1 = scmp.eq.s32.totalorder %s6228_s19, 0 }
  0x1b   : > { %p8596_p2 = scmp.eq.s32.totalorder %s6228_s19, 3  ;;  %p355_p3 = scmp.lt.s32.totalorder %s8445_s18, 5 }
  0x1c   : > { %s8447_s23 = smov [#allocation7]   ;;  %s8448_s19 = smov [#allocation10]  }
  0x1d   : > { %p8601_p4 = pnand %p6230_p0, %p355_p3  ;;  %s367_s24 = sshll.u32 %s8447_s23, 4  ;;  %s368_s24 = int_to_ptr.vmem [resolvable:$true] %s367_s24 }
  0x1e   : > { %s393_s15 = sshll.u32 %s8448_s19, 4  ;;  %s8449_s12 = smov [#allocation9]   ;;  %s8613_s15 = int_to_ptr.vmem [resolvable:$true] %s393_s15 }
  0x1f   : > { %s12523_s22 = scalar_select %p8601_p4, 1, 0 }
  0x20   : > { %p7339_p5 = pneg %p8601_p4  ;;  %s380_s10 = sshll.u32 %s8449_s12, 4  ;;  %s8615_s10 = int_to_ptr.vmem [resolvable:$true] %s380_s10 }
  0x21   : > { %s8166_s8 = scalar_lea.vmem %s368_s24, 1024  ;;  %p8174_p11 = scmp.lt.s32.totalorder %s368_s24, %s368_s24 }
  0x22   : > { %p8609_p6 = pnand %p7339_p5, %p8592_p1  ;;  %p8167_p8 = scmp.ne.s32.totalorder %s368_s24, %s8166_s8 }
  0x23   : > { %p8175_p12 = scmp.lt.s32.totalorder %s8166_s8, %s8166_s8 }
  0x24   : > { %p8619_p7 = pneg %p8609_p6 }
  0x25   : > { %p8176_p13 = por %p8175_p12, %p8174_p11 }
  0x26   : > { %p8169_p9 = pnand %p8167_p8, %p8619_p7 }
  0x28   : > { %p8170_p10 = pneg %p8169_p9 }
  0x2a   : > { %p8177_p0 = pnand %p8176_p13, %p8170_p10 }
  0x2c   : > { %8180 = shalt.err (!%p8177_p0)
}
  0x2d   : > { %s12330_s19 = smov 64   ;;  %s12331_s12 = smov 4  }
  0x2e   : > { %s12526_s1 = sld [smem:[#allocation123_spill]]  ;;  %s8192_s14 = scalar_lea.vmem %s8613_s15, 1024 }
  0x2f   : > { %p8193_p3 = scmp.ne.s32.totalorder %s8613_s15, %s8192_s14  ;;  %p8200_p9 = scmp.lt.s32.totalorder %s8613_s15, %s8613_s15 }
  0x30   : > { %p8201_p10 = scmp.lt.s32.totalorder %s8192_s14, %s8192_s14 }
  0x31   : > { %p8195_p5 = pnand %p8193_p3, %p8619_p7 }
  0x32   : > { %p8202_p11 = por %p8201_p10, %p8200_p9 }
  0x33   : > { %p8196_p8 = pneg %p8195_p5 }
  0x34   : > { %7342 = dma.hbm_to_vmem [thread:$0]  (!%p8609_p6), %s12526_s1, 1024, %s368_s24, [#allocation8], %s12330_s19, %s12330_s19, %s12331_s12  }
  0x35   : > { %p8203_p12 = pnand %p8202_p11, %p8196_p8 }
  0x37   : > { %8206 = shalt.err (!%p8203_p12)
}
  0x38   : > { %s12527_s3 = sld [smem:[#allocation125_spill]]  ;;  %s8218_s7 = scalar_lea.vmem %s8615_s10, 2048 }
  0x39   : > { %p8219_p13 = scmp.ne.s32.totalorder %s8615_s10, %s8218_s7  ;;  %p8226_p5 = scmp.lt.s32.totalorder %s8615_s10, %s8615_s10 }
  0x3a   : > { %p8227_p8 = scmp.lt.s32.totalorder %s8218_s7, %s8218_s7 }
  0x3b   : > { %p8221_p0 = pnand %p8219_p13, %p8619_p7 }
  0x3c   : > { %p8228_p9 = por %p8227_p8, %p8226_p5 }
  0x3d   : > { %p8222_p3 = pneg %p8221_p0 }
  0x3e   : > { %7348 = dma.hbm_to_vmem [thread:$0]  (!%p8609_p6), %s12527_s3, 1024, %s8613_s15, [#allocation11], %s12330_s19, %s12330_s19, %s12331_s12  }
  0x3f   : > { %p8229_p10 = pnand %p8228_p9, %p8222_p3 }
  0x41   : > { %8232 = shalt.err (!%p8229_p10)
}
  0x42   : > { %s12333_s14 = smov 128   ;;  %s12334_s24 = smov 8  }
  0x43   : > { %s12528_s2 = sld [smem:[#allocation124_spill]]  ;;  %s8454_s4 = smov [#allocation12]  }
  0x44   : > { %s421_s19 = sshll.u32 %s8454_s4, 4  ;;  %s8455_s12 = smov [#allocation13]   ;;  %s422_s19 = int_to_ptr.vmem [resolvable:$true] %s421_s19 }
  0x45   : > { %s437_s7 = sshll.u32 %s8455_s12, 4  ;;  %s8244_s1 = scalar_lea.vmem %s422_s19, 2048  ;;  %s438_s7 = int_to_ptr.vmem [resolvable:$true] %s437_s7 }
  0x46   : > { %p8245_p11 = scmp.ne.s32.totalorder %s422_s19, %s8244_s1  ;;  %p8252_p0 = scmp.lt.s32.totalorder %s422_s19, %s422_s19 }
  0x47   : > { %p8253_p3 = scmp.lt.s32.totalorder %s8244_s1, %s8244_s1 }
  0x48   : > { %p8247_p12 = pnand %p8245_p11, %p8619_p7 }
  0x49   : > { %7345 = dma.hbm_to_vmem [thread:$0]  (!%p8609_p6), %s12528_s2, 2048, %s8615_s10, [#allocation8], %s12333_s14, %s12333_s14, %s12334_s24  }
  0x4a   : > { %p8248_p13 = pneg %p8247_p12  ;;  %p8254_p5 = por %p8253_p3, %p8252_p0 }
  0x4c   : > { %p8255_p8 = pnand %p8254_p5, %p8248_p13 }
  0x4e   : > { %8258 = shalt.err (!%p8255_p8)
}
  0x4f   : > { %s12529_s9 = sld [smem:[#allocation129_spill]]  ;;  %s8270_s12 = scalar_lea.vmem %s438_s7, 2048 }
  0x50   : > { %p8271_p9 = scmp.ne.s32.totalorder %s438_s7, %s8270_s12  ;;  %p8278_p12 = scmp.lt.s32.totalorder %s438_s7, %s438_s7 }
  0x51   : > { %p8279_p4 = scmp.lt.s32.totalorder %s8270_s12, %s8270_s12 }
  0x52   : > { %p8273_p10 = pnand %p8271_p9, %p8619_p7 }
  0x53   : > { %p8280_p0 = por %p8279_p4, %p8278_p12 }
  0x54   : > { %p8274_p11 = pneg %p8273_p10 }
  0x55   : > { %7351 = dma.hbm_to_vmem [thread:$0]  (!%p8609_p6), %s12529_s9, 2048, %s422_s19, [#allocation11], %s12333_s14, %s12333_s14, %s12334_s24  }
  0x56   : > { %p8281_p13 = pnand %p8280_p0, %p8274_p11 }
  0x58   : > { %8284 = shalt.err (!%p8281_p13)
}
  0x59   : > { %s12530_s1 = smov 4   ;;  %s12531_s8 = smov 64  }
  0x5a   : > { %s12532_s11 = sld [smem:[#allocation131_spill]]  ;;  %s6229_s13 = sadd.s32 4294967294, %s8445_s18  }
  0x5b   : > { %s41_s23 = sadd.s32 1, %s8437_s16  ;;  %s44_s2 = sadd.s32 1, %s8441_s17 }
  0x5c   : > { %p42_p4 = scmp.ge.s32.totalorder %s41_s23, 2  ;;  %s51_s19 = sadd.s32 1, %s8425_s30 }
  0x5d   : > { %p58_p7 = scmp.ne.s32.totalorder %s8425_s30, %s8421_s29  ;;  %p59_p3 = scmp.eq.s32.totalorder %s8445_s18, 0 }
  0x5e   : > { %s12951_s23 = smov (%p42_p4, %s41_s23), 0  ;;  %s12953_s2 = smov (!%p42_p4, %s44_s2), %s8441_s17 }
  0x5f   : > { %12533 = sst [smem:[#allocation24_spill]] %s12951_s23  ;;  %p46_p5 = scmp.ge.s32.totalorder %s12953_s2, 2 }
  0x60   : > { %7354 = dma.hbm_to_vmem [thread:$0]  (!%p8609_p6), %s12532_s11, 2048, %s438_s7, [#allocation14], %s12531_s8, %s12531_s8, %s12530_s1  }
  0x61   : > { %p64_p6 = scmp.ne.s32.totalorder %s8421_s29, %s8417_s28  ;;  %s327_s7 = ssub.s32 %s8437_s16, %s12951_s23 }
  0x62   : > { %p8697_p8 = por %p59_p3, %p58_p7  ;;  %s12955_s2 = smov (%p46_p5, %s12953_s2), 0 }
  0x63   : > { %p8703_p9 = por %p8592_p1, %p64_p6  ;;  %12536 = sst [smem:[#allocation25_spill]] %s12955_s2 }
  0x64   : > { %s331_s12 = sadd.s32 1, %s8413_s27  ;;  %p341_p10 = scmp.ne.s32.totalorder %s8413_s27, %s8409_s26 }
  0x65   : > { %s48_s28 = ssub.s32 %s8441_s17, %s12955_s2  ;;  %p347_p11 = scmp.ne.s32.totalorder %s8409_s26, %s8405_s25 }
  0x66   : > { %p49_p12 = scmp.eq.s32.totalorder %s48_s28, 0  ;;  %s328_s1 = sor.u32 %s327_s7, %s48_s28 }
  0x67   : > { %p329_p0 = scmp.eq.s32.totalorder %s328_s1, 0  ;;  %p8718_p13 = por %p8596_p2, %p341_p10 }
  0x68   : > { %s8723_s4 = scalar_select %p49_p12, %s8425_s30, %s51_s19  }
  0x69   : > { %s8726_s14 = scalar_select %p329_p0, %s8413_s27, %s331_s12  }
  0x6a   : > { %p348_p4 = scmp.eq.s32.totalorder %s6229_s13, 3  ;;  %p7368_p7 = scmp.lt.s32.totalorder %s8445_s18, 4 }
  0x6b   : > { %s454_s24 = sand.u32 1, %s8425_s30   ;;  %s6452_s3 = sshll.u32 %s8441_s17, 12 }
  0x6c   : > { %p8731_p3 = por %p348_p4, %p347_p11  ;;  %s6237_s11 = sshll.u32 %s454_s24, 8 }
  0x6d   : > { %s464_s21 = scalar_lea.hbm %s12314_s0, %s6452_s3  ;;  %p8740_p2 = pnand %p7368_p7, %p8697_p8 }
  0x6e   : > { %s458_s19 = scalar_lea.vmem [#allocation4], %s6237_s11  ;;  %s455_s12 = scalar_lea.sflag [#allocation5], %s454_s24 }
  0x6f   : > { %s465_s13 = sshll.u32 %s458_s19, 4  ;;  %p8287_p6 = pneg %p8740_p2  ;;  %s466_s13 = int_to_ptr.vmem [resolvable:$true] %s465_s13 }
  0x70   : > { %s8298_s2 = scalar_lea.vmem %s466_s13, 4096  ;;  %s8456_s23 = smov [#allocation4]  }
  0x71   : > { %p8299_p5 = scmp.ne.s32.totalorder %s466_s13, %s8298_s2  ;;  %s8303_s17 = sshll.u32 %s8456_s23, 4  ;;  %s8304_s17 = int_to_ptr.vmem [resolvable:$false] %s8303_s17 }
  0x72   : > { %s8305_s3 = scalar_lea.vmem %s8304_s17, 8192  ;;  %p8306_p12 = scmp.lt.s32.totalorder %s466_s13, %s8304_s17 }
  0x73   : > { %p8301_p10 = pnand %p8299_p5, %p8287_p6  ;;  %p8307_p8 = scmp.lt.s32.totalorder %s8305_s3, %s8298_s2 }
  0x75   : > { %p8302_p11 = pneg %p8301_p10  ;;  %p8308_p0 = por %p8307_p8, %p8306_p12 }
  0x77   : > { %p8309_p4 = pnand %p8308_p0, %p8302_p11 }
  0x79   : > { %8312 = shalt.err (!%p8309_p4)
}
  0x7a   : > { %s12540_s11 = smov 8   ;;  %s12541_s10 = smov 128  }
  0x7b   : > { %7358 = dma.hbm_to_vmem [thread:$0]  (!%p8740_p2), %s464_s21, 4096, %s466_s13, %s455_s12, %s12541_s10, %s12541_s10, %s12540_s11  }
  0x7c   : > { %p12542_p7 = scmp.ne.s32.totalorder %s12523_s22, 0 }
  0x7e   : > { %477 = sbr.rel (%p12542_p7) target bundleno = 3902 (0xf3e), region = 72 }
  0x83   : > { %s479_s24 = sand.u32 1, %s8421_s29  }
  0x84   : > { %s6241_s23 = sshll.u32 %s479_s24, 8  ;;  %s480_s7 = scalar_lea.sflag [#allocation5], %s479_s24 }
  0x85   : > { %s8754_s28 = scalar_lea.vmem [#allocation4], %s6241_s23 }
  0x86   : > { %8384 = dma.done.wait (%p8703_p9), %s480_s7, 4096  }
  0x87   : > { %8386 = vsyncadd (%p8703_p9), %s480_s7, 4294963200 }
  0x88   : > { %8388 = dma.done.wait (%p8592_p1), [#allocation8], 3072  }
  0x89   : > { %8390 = vsyncadd (%p8592_p1), [#allocation8], 4294964224 }
  0x8a   : > { %8392 = dma.done.wait (%p8592_p1), [#allocation11], 3072  }
  0x8b   : > { %8394 = vsyncadd (%p8592_p1), [#allocation11], 4294964224 }
  0x8c   : > { %8396 = dma.done.wait (%p8592_p1), [#allocation14], 2048  }
  0x8d   : > { %8398 = vsyncadd (%p8592_p1), [#allocation14], 4294965248  ;;  %s543_s17 = sand.u32 1, %s8409_s26   ;;  %v8778_v0 = vld [vmem:[%s12319_s5] sm:$0x1]  ;;  %s12543_s13 = sld [smem:[#allocation21_spill]] }
  0x8e   : > { %s6247_s22 = sshll.u32 %s543_s17, 7  ;;  %v8783_v1 = vld [vmem:[%s12320_s6] sm:$0x1] }
  0x8f   : > { %s8785_s19 = scalar_lea.vmem [#allocation15], %s6247_s22 }
  0x93   : > { %p6248_p9 = scmp.ne.s32.totalorder %s12543_s13, 0 }
  0x95   : > { %553 = sbr.rel (%p6248_p9) target bundleno = 730 (0x2da), region = 100 }
  0x9a   : > { %v8789_v2 = vld [vmem:[%s8754_s28] sm:$0xff]  ;;  %v8797_v4 = vld [vmem:[%s8754_s28 + $0x8] sm:$0xff]  ;;  %v8805_v6 = vld [vmem:[%s8754_s28 + $0x10] sm:$0xff] }
  0x9b   : > { %v8792_v3 = vld [vmem:[%s8754_s28 + $0x80] sm:$0xff]  ;;  %586 = vadd.xlane.f32.xlu0 %v8789_v2  ;;  %v8800_v5 = vld [vmem:[%s8754_s28 + $0x88] sm:$0xff]  ;;  %v8808_v7 = vld [vmem:[%s8754_s28 + $0x18] sm:$0xff] }
  0x9c   : > { %618 = vadd.xlane.f32.xlu1 %v8792_v3  ;;  %v8813_v8 = vld [vmem:[%s8754_s28 + $0x90] sm:$0xff]  ;;  %v8816_v9 = vld [vmem:[%s8754_s28 + $0x98] sm:$0xff]  ;;  %v8819_v10 = vld [vmem:[%s8754_s28 + $0x20] sm:$0xff] }
  0x9d   : > { %v8822_v11 = vld [vmem:[%s8754_s28 + $0x28] sm:$0xff]  ;;  %v8829_v12 = vld [vmem:[%s8754_s28 + $0xa0] sm:$0xff]  ;;  %v8837_v14 = vld [vmem:[%s8754_s28 + $0x30] sm:$0xff] }
  0x9e   : > { %v8832_v13 = vld [vmem:[%s8754_s28 + $0xa8] sm:$0xff]  ;;  %v8840_v15 = vld [vmem:[%s8754_s28 + $0x38] sm:$0xff]  ;;  %v8845_v16 = vld [vmem:[%s8754_s28 + $0xb0] sm:$0xff] }
  0x9f   : > { %588 = vadd.xlane.f32.xlu0 %v8797_v4  ;;  %v8848_v17 = vld [vmem:[%s8754_s28 + $0xb8] sm:$0xff]  ;;  %v8853_v18 = vld [vmem:[%s8754_s28 + $0x40] sm:$0xff]  ;;  %v8856_v19 = vld [vmem:[%s8754_s28 + $0x48] sm:$0xff] }
  0xa0   : > { %620 = vadd.xlane.f32.xlu1 %v8800_v5  ;;  %v8861_v20 = vld [vmem:[%s8754_s28 + $0xc0] sm:$0xff]  ;;  %v8864_v21 = vld [vmem:[%s8754_s28 + $0xc8] sm:$0xff]  ;;  %v8869_v22 = vld [vmem:[%s8754_s28 + $0x50] sm:$0xff] }
  0xa1   : > { %v8872_v23 = vld [vmem:[%s8754_s28 + $0x58] sm:$0xff]  ;;  %v8877_v24 = vld [vmem:[%s8754_s28 + $0xd0] sm:$0xff]  ;;  %v8885_v26 = vld [vmem:[%s8754_s28 + $0x60] sm:$0xff] }
  0xa2   : > { %v8880_v25 = vld [vmem:[%s8754_s28 + $0xd8] sm:$0xff]  ;;  %v8888_v27 = vld [vmem:[%s8754_s28 + $0x68] sm:$0xff]  ;;  %v8893_v28 = vld [vmem:[%s8754_s28 + $0xe0] sm:$0xff] }
  0xa3   : > { %590 = vadd.xlane.f32.xlu0 %v8805_v6  ;;  %v8896_v29 = vld [vmem:[%s8754_s28 + $0xe8] sm:$0xff]  ;;  %v8901_v30 = vld [vmem:[%s8754_s28 + $0x70] sm:$0xff]  ;;  %v8904_v31 = vld [vmem:[%s8754_s28 + $0x78] sm:$0xff] }
  0xa4   : > { %592 = vadd.xlane.f32.xlu1 %v8808_v7  ;;  %v8909_v32 = vld [vmem:[%s8754_s28 + $0xf0] sm:$0xff]  ;;  %v8912_v33 = vld [vmem:[%s8754_s28 + $0xf8] sm:$0xff] }
  0xa5   : > { %v7479_v34 = vld [vmem:[#allocation9 + $0x74] ss:$8 sps:$4 sm:$0xff]   ;;  %v7481_v35 = vld [vmem:[#allocation9 + $0x70] ss:$8 sps:$4 sm:$0xff]  }
  0xa6   : > { %1127 = vmatprep.subr.bf16.mxu0 %v7479_v34  ;;  %7251 = vmatprep.subr.bf16.mxu1 %v7479_v34 }
  0xa7   : > { %622 = vadd.xlane.f32.xlu0 %v8813_v8  ;;  %1128 = vmatpush1.bf16.msra.mxu0 %v7481_v35 }
  0xa8   : > { %624 = vadd.xlane.f32.xlu1 %v8816_v9  ;;  %7259 = vmatpush1.bf16.msra.mxu1 %v7481_v35  ;;  %v7482_v35 = vld [vmem:[#allocation9 + $0x64] ss:$8 sps:$4 sm:$0xff]  }
  0xa9   : > { %1129 = vmatprep.subr.bf16.mxu0 %v7482_v35  ;;  %7252 = vmatprep.subr.bf16.mxu1 %v7482_v35 }
  0xab   : > { %594 = vadd.xlane.f32.xlu0 %v8819_v10 }
  0xac   : > { %596 = vadd.xlane.f32.xlu1 %v8822_v11 }
  0xaf   : > { %626 = vadd.xlane.f32.xlu0 %v8829_v12 }
  0xb0   : > { %628 = vadd.xlane.f32.xlu1 %v8832_v13 }
  0xb3   : > { %598 = vadd.xlane.f32.xlu0 %v8837_v14 }
  0xb4   : > { %600 = vadd.xlane.f32.xlu1 %v8840_v15 }
  0xb7   : > { %630 = vadd.xlane.f32.xlu0 %v8845_v16 }
  0xb8   : > { %632 = vadd.xlane.f32.xlu1 %v8848_v17 }
  0xbb   : > { %602 = vadd.xlane.f32.xlu0 %v8853_v18 }
  0xbc   : > { %604 = vadd.xlane.f32.xlu1 %v8856_v19 }
  0xbf   : > { %634 = vadd.xlane.f32.xlu0 %v8861_v20 }
  0xc0   : > { %636 = vadd.xlane.f32.xlu1 %v8864_v21 }
  0xc3   : > { %606 = vadd.xlane.f32.xlu0 %v8869_v22 }
  0xc4   : > { %608 = vadd.xlane.f32.xlu1 %v8872_v23 }
  0xc7   : > { %638 = vadd.xlane.f32.xlu0 %v8877_v24 }
  0xc8   : > { %640 = vadd.xlane.f32.xlu1 %v8880_v25 }
  0xcb   : > { %610 = vadd.xlane.f32.xlu0 %v8885_v26 }
  0xcc   : > { %612 = vadd.xlane.f32.xlu1 %v8888_v27 }
  0xcf   : > { %642 = vadd.xlane.f32.xlu0 %v8893_v28 }
  0xd0   : > { %644 = vadd.xlane.f32.xlu1 %v8896_v29 }
  0xd3   : > { %614 = vadd.xlane.f32.xlu0 %v8901_v30 }
  0xd4   : > { %616 = vadd.xlane.f32.xlu1 %v8904_v31 }
  0xd7   : > { %646 = vadd.xlane.f32.xlu0 %v8909_v32 }
  0xd8   : > { %648 = vadd.xlane.f32.xlu1 %v8912_v33 }
 0x124   : > { %v587_v36 = vpop.xlane.xlu0 %586 }
 0x125   : > { %v619_v37 = vpop.xlane.xlu1 %618  ;;  %v651_v38 = vmul.f32 0.0078125, %v587_v36  ;;  %v7484_v36 = vld [vmem:[#allocation9 + $0x60] ss:$8 sps:$4 sm:$0xff]  }
 0x126   : > { %v667_v39 = vmul.f32 0.0078125, %v619_v37  ;;  %1130 = vmatpush1.bf16.msra.mxu0 %v7484_v36  ;;  %7260 = vmatpush1.bf16.msra.mxu1 %v7484_v36 }
 0x127   : > { %v8917_v40 = vsub.f32 %v8789_v2, %v651_v38 }
 0x128   : > { %v8920_v41 = vsub.f32 %v8792_v3, %v667_v39  ;;  %v589_v42 = vpop.xlane.xlu0 %588 }
 0x129   : > { %v621_v43 = vpop.xlane.xlu1 %620  ;;  %v652_v44 = vmul.f32 0.0078125, %v589_v42  ;;  %v715_v45 = vmul.f32 %v8917_v40, %v8917_v40 }
 0x12a   : > { %v668_v46 = vmul.f32 0.0078125, %v621_v43  ;;  %v731_v49 = vmul.f32 %v8920_v41, %v8920_v41 }
 0x12b   : > { %v8925_v47 = vsub.f32 %v8797_v4, %v652_v44  ;;  %747 = vadd.xlane.f32.xlu0 %v715_v45 }
 0x12c   : > { %v8928_v48 = vsub.f32 %v8800_v5, %v668_v46  ;;  %v591_v50 = vpop.xlane.xlu0 %590 }
 0x12d   : > { %v593_v51 = vpop.xlane.xlu1 %592  ;;  %v653_v52 = vmul.f32 0.0078125, %v591_v50  ;;  %v716_v53 = vmul.f32 %v8925_v47, %v8925_v47 }
 0x12e   : > { %v654_v54 = vmul.f32 0.0078125, %v593_v51  ;;  %v732_v57 = vmul.f32 %v8928_v48, %v8928_v48 }
 0x12f   : > { %v8935_v55 = vsub.f32 %v8805_v6, %v653_v52  ;;  %779 = vadd.xlane.f32.xlu0 %v731_v49  ;;  %749 = vadd.xlane.f32.xlu1 %v716_v53  ;;  %v7487_v49 = vld [vmem:[#allocation9 + $0x50] ss:$8 sps:$4 sm:$0xff]  }
 0x130   : > { %v8938_v56 = vsub.f32 %v8808_v7, %v654_v54  ;;  %v623_v58 = vpop.xlane.xlu0 %622 }
 0x131   : > { %v625_v59 = vpop.xlane.xlu1 %624  ;;  %v669_v60 = vmul.f32 0.0078125, %v623_v58  ;;  %v717_v61 = vmul.f32 %v8935_v55, %v8935_v55 }
 0x132   : > { %v670_v62 = vmul.f32 0.0078125, %v625_v59  ;;  %v718_v3 = vmul.f32 %v8938_v56, %v8938_v56  ;;  %v7490_v59 = vld [vmem:[#allocation9 + $0x40] ss:$8 sps:$4 sm:$0xff]  }
 0x133   : > { %v8945_v63 = vsub.f32 %v8813_v8, %v669_v60  ;;  %781 = vadd.xlane.f32.xlu1 %v732_v57  ;;  %751 = vadd.xlane.f32.xlu0 %v717_v61 }
 0x134   : > { %v8948_v2 = vsub.f32 %v8816_v9, %v670_v62  ;;  %v595_v4 = vpop.xlane.xlu0 %594 }
 0x135   : > { %v597_v5 = vpop.xlane.xlu1 %596  ;;  %v655_v6 = vmul.f32 0.0078125, %v595_v4  ;;  %v733_v7 = vmul.f32 %v8945_v63, %v8945_v63 }
 0x136   : > { %v656_v34 = vmul.f32 0.0078125, %v597_v5  ;;  %v734_v37 = vmul.f32 %v8948_v2, %v8948_v2 }
 0x137   : > { %v8955_v8 = vsub.f32 %v8819_v10, %v655_v6  ;;  %753 = vadd.xlane.f32.xlu1 %v718_v3  ;;  %783 = vadd.xlane.f32.xlu0 %v733_v7  ;;  %v7485_v10 = vld [vmem:[#allocation9 + $0x54] ss:$8 sps:$4 sm:$0xff]   ;;  %v7493_v7 = vld [vmem:[#allocation9 + $0x30] ss:$8 sps:$4 sm:$0xff]  }
 0x138   : > { %v8958_v9 = vsub.f32 %v8822_v11, %v656_v34  ;;  %v627_v38 = vpop.xlane.xlu0 %626  ;;  %1131 = vmatprep.subr.bf16.mxu0 %v7485_v10  ;;  %7253 = vmatprep.subr.bf16.mxu1 %v7485_v10 }
 0x139   : > { %v629_v39 = vpop.xlane.xlu1 %628  ;;  %v671_v42 = vmul.f32 0.0078125, %v627_v38  ;;  %v719_v43 = vmul.f32 %v8955_v8, %v8955_v8  ;;  %1132 = vmatpush1.bf16.msra.mxu0 %v7487_v49  ;;  %7261 = vmatpush1.bf16.msra.mxu1 %v7487_v49 }
 0x13a   : > { %v672_v44 = vmul.f32 0.0078125, %v629_v39  ;;  %v720_v46 = vmul.f32 %v8958_v9, %v8958_v9 }
 0x13b   : > { %v8965_v45 = vsub.f32 %v8829_v12, %v671_v42  ;;  %785 = vadd.xlane.f32.xlu1 %v734_v37  ;;  %755 = vadd.xlane.f32.xlu0 %v719_v43  ;;  %v7488_v12 = vld [vmem:[#allocation9 + $0x44] ss:$8 sps:$4 sm:$0xff]   ;;  %v7496_v43 = vld [vmem:[#allocation9 + $0x20] ss:$8 sps:$4 sm:$0xff]  }
 0x13c   : > { %v8968_v11 = vsub.f32 %v8832_v13, %v672_v44  ;;  %v599_v50 = vpop.xlane.xlu0 %598  ;;  %1133 = vmatprep.subr.bf16.mxu0 %v7488_v12  ;;  %7254 = vmatprep.subr.bf16.mxu1 %v7488_v12 }
 0x13d   : > { %v601_v51 = vpop.xlane.xlu1 %600  ;;  %v657_v52 = vmul.f32 0.0078125, %v599_v50  ;;  %v735_v53 = vmul.f32 %v8965_v45, %v8965_v45  ;;  %1134 = vmatpush1.bf16.msra.mxu0 %v7490_v59  ;;  %7262 = vmatpush1.bf16.msra.mxu1 %v7490_v59 }
 0x13e   : > { %v658_v54 = vmul.f32 0.0078125, %v601_v51  ;;  %v736_v58 = vmul.f32 %v8968_v11, %v8968_v11 }
 0x13f   : > { %v8975_v57 = vsub.f32 %v8837_v14, %v657_v52  ;;  %757 = vadd.xlane.f32.xlu1 %v720_v46  ;;  %787 = vadd.xlane.f32.xlu0 %v735_v53  ;;  %v7491_v14 = vld [vmem:[#allocation9 + $0x34] ss:$8 sps:$4 sm:$0xff]   ;;  %v7499_v53 = vld [vmem:[#allocation9 + $0x10] ss:$8 sps:$4 sm:$0xff]  }
 0x140   : > { %v8978_v13 = vsub.f32 %v8840_v15, %v658_v54  ;;  %v631_v60 = vpop.xlane.xlu0 %630  ;;  %1135 = vmatprep.subr.bf16.mxu0 %v7491_v14  ;;  %7255 = vmatprep.subr.bf16.mxu1 %v7491_v14 }
 0x141   : > { %v633_v61 = vpop.xlane.xlu1 %632  ;;  %v673_v62 = vmul.f32 0.0078125, %v631_v60  ;;  %v721_v3 = vmul.f32 %v8975_v57, %v8975_v57  ;;  %1136 = vmatpush1.bf16.msra.mxu0 %v7493_v7  ;;  %7263 = vmatpush1.bf16.msra.mxu1 %v7493_v7 }
 0x142   : > { %v674_v4 = vmul.f32 0.0078125, %v633_v61  ;;  %v722_v6 = vmul.f32 %v8978_v13, %v8978_v13 }
 0x143   : > { %v8985_v5 = vsub.f32 %v8845_v16, %v673_v62  ;;  %789 = vadd.xlane.f32.xlu1 %v736_v58  ;;  %759 = vadd.xlane.f32.xlu0 %v721_v3  ;;  %v7494_v16 = vld [vmem:[#allocation9 + $0x24] ss:$8 sps:$4 sm:$0xff]   ;;  %v7502_v3 = vld [vmem:[#allocation9] ss:$8 sps:$4 sm:$0xff]  }
 0x144   : > { %v8988_v15 = vsub.f32 %v8848_v17, %v674_v4  ;;  %v603_v34 = vpop.xlane.xlu0 %602  ;;  %1137 = vmatprep.subr.bf16.mxu0 %v7494_v16  ;;  %7256 = vmatprep.subr.bf16.mxu1 %v7494_v16 }
 0x145   : > { %v605_v35 = vpop.xlane.xlu1 %604  ;;  %v659_v36 = vmul.f32 0.0078125, %v603_v34  ;;  %v737_v37 = vmul.f32 %v8985_v5, %v8985_v5  ;;  %1138 = vmatpush1.bf16.msra.mxu0 %v7496_v43  ;;  %7264 = vmatpush1.bf16.msra.mxu1 %v7496_v43 }
 0x146   : > { %v660_v38 = vmul.f32 0.0078125, %v605_v35  ;;  %v738_v42 = vmul.f32 %v8988_v15, %v8988_v15 }
 0x147   : > { %v8995_v39 = vsub.f32 %v8853_v18, %v659_v36  ;;  %761 = vadd.xlane.f32.xlu1 %v722_v6  ;;  %791 = vadd.xlane.f32.xlu0 %v737_v37  ;;  %v7497_v18 = vld [vmem:[#allocation9 + $0x14] ss:$8 sps:$4 sm:$0xff]  }
 0x148   : > { %v8998_v17 = vsub.f32 %v8856_v19, %v660_v38  ;;  %v635_v44 = vpop.xlane.xlu0 %634  ;;  %1139 = vmatprep.subr.bf16.mxu0 %v7497_v18  ;;  %7257 = vmatprep.subr.bf16.mxu1 %v7497_v18  ;;  %v8457_v38 = vmov 0  }
 0x149   : > { %v637_v10 = vpop.xlane.xlu1 %636  ;;  %v675_v46 = vmul.f32 0.0078125, %v635_v44  ;;  %v723_v49 = vmul.f32 %v8995_v39, %v8995_v39  ;;  %1140 = vmatpush1.bf16.msra.mxu0 %v7499_v53  ;;  %7265 = vmatpush1.bf16.msra.mxu1 %v7499_v53 }
 0x14a   : > { %v676_v50 = vmul.f32 0.0078125, %v637_v10  ;;  %v724_v52 = vmul.f32 %v8998_v17, %v8998_v17  ;;  %1159 = vmatprep.mubr.bf16.mxu0 %v8457_v38  ;;  %1239 = vmatprep.mubr.bf16.mxu1 %v8457_v38 }
 0x14b   : > { %v9005_v51 = vsub.f32 %v8861_v20, %v675_v46  ;;  %793 = vadd.xlane.f32.xlu1 %v738_v42  ;;  %763 = vadd.xlane.f32.xlu0 %v723_v49  ;;  %v7500_v20 = vld [vmem:[#allocation9 + $0x4] ss:$8 sps:$4 sm:$0xff]  }
 0x14c   : > { %v9008_v19 = vsub.f32 %v8864_v21, %v676_v50  ;;  %v607_v54 = vpop.xlane.xlu0 %606  ;;  %1141 = vmatprep.subr.bf16.mxu0 %v7500_v20  ;;  %7258 = vmatprep.subr.bf16.mxu1 %v7500_v20 }
 0x14d   : > { %v609_v12 = vpop.xlane.xlu1 %608  ;;  %v661_v58 = vmul.f32 0.0078125, %v607_v54  ;;  %v739_v59 = vmul.f32 %v9005_v51, %v9005_v51  ;;  %1142 = vmatpush1.bf16.msra.mxu0 %v7502_v3  ;;  %7266 = vmatpush1.bf16.msra.mxu1 %v7502_v3 }
 0x14e   : > { %v662_v60 = vmul.f32 0.0078125, %v609_v12  ;;  %v740_v62 = vmul.f32 %v9008_v19, %v9008_v19 }
 0x14f   : > { %v9015_v61 = vsub.f32 %v8869_v22, %v661_v58  ;;  %765 = vadd.xlane.f32.xlu1 %v724_v52  ;;  %795 = vadd.xlane.f32.xlu0 %v739_v59 }
 0x150   : > { %v9018_v21 = vsub.f32 %v8872_v23, %v662_v60  ;;  %v639_v4 = vpop.xlane.xlu0 %638 }
 0x151   : > { %v641_v14 = vpop.xlane.xlu1 %640  ;;  %v677_v6 = vmul.f32 0.0078125, %v639_v4  ;;  %v725_v7 = vmul.f32 %v9015_v61, %v9015_v61 }
 0x152   : > { %v678_v34 = vmul.f32 0.0078125, %v641_v14  ;;  %v726_v35 = vmul.f32 %v9018_v21, %v9018_v21 }
 0x153   : > { %v9025_v22 = vsub.f32 %v8877_v24, %v677_v6  ;;  %797 = vadd.xlane.f32.xlu1 %v740_v62  ;;  %767 = vadd.xlane.f32.xlu0 %v725_v7 }
 0x154   : > { %v9028_v23 = vsub.f32 %v8880_v25, %v678_v34  ;;  %v611_v36 = vpop.xlane.xlu0 %610 }
 0x155   : > { %v613_v37 = vpop.xlane.xlu1 %612  ;;  %v663_v16 = vmul.f32 0.0078125, %v611_v36  ;;  %v741_v24 = vmul.f32 %v9025_v22, %v9025_v22 }
 0x156   : > { %v664_v42 = vmul.f32 0.0078125, %v613_v37  ;;  %v742_v44 = vmul.f32 %v9028_v23, %v9028_v23 }
 0x157   : > { %v9037_v43 = vsub.f32 %v8885_v26, %v663_v16  ;;  %769 = vadd.xlane.f32.xlu1 %v726_v35  ;;  %799 = vadd.xlane.f32.xlu0 %v741_v24 }
 0x158   : > { %v9040_v25 = vsub.f32 %v8888_v27, %v664_v42  ;;  %v643_v10 = vpop.xlane.xlu0 %642  ;;  %v940_v42 = vlaneseq }
 0x159   : > { %v645_v46 = vpop.xlane.xlu1 %644  ;;  %v679_v49 = vmul.f32 0.0078125, %v643_v10  ;;  %v727_v50 = vmul.f32 %v9037_v43, %v9037_v43 }
 0x15a   : > { %v680_v18 = vmul.f32 0.0078125, %v645_v46  ;;  %v728_v27 = vmul.f32 %v9040_v25, %v9040_v25 }
 0x15b   : > { %v9047_v52 = vsub.f32 %v8893_v28, %v679_v49  ;;  %801 = vadd.xlane.f32.xlu1 %v742_v44  ;;  %771 = vadd.xlane.f32.xlu0 %v727_v50 }
 0x15c   : > { %v9050_v26 = vsub.f32 %v8896_v29, %v680_v18  ;;  %v615_v53 = vpop.xlane.xlu0 %614 }
 0x15d   : > { %v617_v54 = vpop.xlane.xlu1 %616  ;;  %v665_v12 = vmul.f32 0.0078125, %v615_v53  ;;  %v743_v58 = vmul.f32 %v9047_v52, %v9047_v52 }
 0x15e   : > { %v666_v59 = vmul.f32 0.0078125, %v617_v54  ;;  %v744_v29 = vmul.f32 %v9050_v26, %v9050_v26 }
 0x15f   : > { %v9057_v60 = vsub.f32 %v8901_v30, %v665_v12  ;;  %773 = vadd.xlane.f32.xlu1 %v728_v27  ;;  %803 = vadd.xlane.f32.xlu0 %v743_v58  ;;  %v941_v27 = vshrl.u32 %v940_v42, 7 }
 0x160   : > { %v9060_v28 = vsub.f32 %v8904_v31, %v666_v59  ;;  %v647_v20 = vpop.xlane.xlu0 %646 }
 0x161   : > { %v649_v62 = vpop.xlane.xlu1 %648  ;;  %v681_v3 = vmul.f32 0.0078125, %v647_v20  ;;  %v729_v4 = vmul.f32 %v9057_v60, %v9057_v60  ;;  %v942_v20 = vsub.s32 0, %v941_v27 }
 0x162   : > { %v682_v14 = vmul.f32 0.0078125, %v649_v62  ;;  %v730_v31 = vmul.f32 %v9060_v28, %v9060_v28 }
 0x163   : > { %v9067_v6 = vsub.f32 %v8909_v32, %v681_v3  ;;  %805 = vadd.xlane.f32.xlu1 %v744_v29  ;;  %775 = vadd.xlane.f32.xlu0 %v729_v4 }
 0x164   : > { %v9070_v30 = vsub.f32 %v8912_v33, %v682_v14 }
 0x165   : > { %v745_v7 = vmul.f32 %v9067_v6, %v9067_v6 }
 0x166   : > { %v746_v34 = vmul.f32 %v9070_v30, %v9070_v30 }
 0x167   : > { %777 = vadd.xlane.f32.xlu1 %v730_v31  ;;  %807 = vadd.xlane.f32.xlu0 %v745_v7 }
 0x16b   : > { %809 = vadd.xlane.f32.xlu1 %v746_v34 }
 0x1b4   : > { %v748_v35 = vpop.xlane.xlu0 %747 }
 0x1b5   : > { %v811_v32 = vmul.f32 0.0078125, %v748_v35  ;;  %v9079_v35 = vrot.slane %v8778_v0, %v942_v20 }
 0x1b7   : > { %v843_v36 = vadd.f32 1e-05, %v811_v32 }
 0x1b8   : > { %v750_v37 = vpop.xlane.xlu1 %749  ;;  %v780_v16 = vpop.xlane.xlu0 %779 }
 0x1b9   : > { %7503 = vrsqrt.f32 %v843_v36  ;;  %v812_v33 = vmul.f32 0.0078125, %v750_v37  ;;  %v827_v24 = vmul.f32 0.0078125, %v780_v16 }
 0x1bb   : > { %v844_v44 = vadd.f32 1e-05, %v812_v33  ;;  %v859_v10 = vadd.f32 1e-05, %v827_v24 }
 0x1bc   : > { %v782_v46 = vpop.xlane.xlu1 %781  ;;  %v752_v49 = vpop.xlane.xlu0 %751 }
 0x1bd   : > { %7505 = vrsqrt.f32 %v844_v44  ;;  %v828_v50 = vmul.f32 0.0078125, %v782_v46  ;;  %v813_v18 = vmul.f32 0.0078125, %v752_v49  ;;  %v9084_v46 = vrot.slane %v8783_v1, %v942_v20 }
 0x1be   : > { %7507 = vrsqrt.f32 %v859_v10 }
 0x1bf   : > { %v860_v53 = vadd.f32 1e-05, %v828_v50  ;;  %v845_v54 = vadd.f32 1e-05, %v813_v18 }
 0x1c0   : > { %v754_v12 = vpop.xlane.xlu1 %753  ;;  %v784_v58 = vpop.xlane.xlu0 %783 }
 0x1c1   : > { %7509 = vrsqrt.f32 %v860_v53  ;;  %v814_v59 = vmul.f32 0.0078125, %v754_v12  ;;  %v829_v29 = vmul.f32 0.0078125, %v784_v58 }
 0x1c2   : > { %7511 = vrsqrt.f32 %v845_v54 }
 0x1c3   : > { %v846_v62 = vadd.f32 1e-05, %v814_v59  ;;  %v861_v3 = vadd.f32 1e-05, %v829_v29 }
 0x1c4   : > { %v786_v4 = vpop.xlane.xlu1 %785  ;;  %v756_v14 = vpop.xlane.xlu0 %755 }
 0x1c5   : > { %7513 = vrsqrt.f32 %v846_v62  ;;  %v830_v31 = vmul.f32 0.0078125, %v786_v4  ;;  %v815_v7 = vmul.f32 0.0078125, %v756_v14 }
 0x1c6   : > { %v7504_v34 = vpop.eup %7503  ;;  %7515 = vrsqrt.f32 %v861_v3 }
 0x1c7   : > { %v862_v32 = vadd.f32 1e-05, %v830_v31  ;;  %v847_v36 = vadd.f32 1e-05, %v815_v7  ;;  %v907_v37 = vmul.f32 %v7504_v34, %v8917_v40 }
 0x1c8   : > { %v758_v16 = vpop.xlane.xlu1 %757  ;;  %v788_v33 = vpop.xlane.xlu0 %787 }
 0x1c9   : > { %7517 = vrsqrt.f32 %v862_v32  ;;  %v816_v24 = vmul.f32 0.0078125, %v758_v16  ;;  %v831_v42 = vmul.f32 0.0078125, %v788_v33  ;;  %v945_v10 = vmul.f32 %v9079_v35, %v907_v37 }
 0x1ca   : > { %v7506_v44 = vpop.eup %7505  ;;  %7519 = vrsqrt.f32 %v847_v36 }
 0x1cb   : > { %v7508_v49 = vpop.eup %7507  ;;  %v848_v50 = vadd.f32 1e-05, %v816_v24  ;;  %v863_v18 = vadd.f32 1e-05, %v831_v42  ;;  %v908_v27 = vmul.f32 %v7506_v44, %v8925_v47  ;;  %v983_v62 = vadd.f32 %v9084_v46, %v945_v10 }
 0x1cc   : > { %v790_v53 = vpop.xlane.xlu1 %789  ;;  %v760_v54 = vpop.xlane.xlu0 %759  ;;  %v923_v40 = vmul.f32 %v7508_v49, %v8920_v41 }
 0x1cd   : > { %7521 = vrsqrt.f32 %v848_v50  ;;  %v832_v12 = vmul.f32 0.0078125, %v790_v53  ;;  %v817_v58 = vmul.f32 0.0078125, %v760_v54  ;;  %v946_v59 = vmul.f32 %v9079_v35, %v908_v27 }
 0x1ce   : > { %v7510_v29 = vpop.eup %7509  ;;  %7523 = vrsqrt.f32 %v863_v18  ;;  %v961_v41 = vmul.f32 %v9079_v35, %v923_v40 }
 0x1cf   : > { %v7512_v20 = vpop.eup %7511  ;;  %v864_v3 = vadd.f32 1e-05, %v832_v12  ;;  %v849_v4 = vadd.f32 1e-05, %v817_v58  ;;  %v984_v14 = vadd.f32 %v9084_v46, %v946_v59  ;;  %v924_v47 = vmul.f32 %v7510_v29, %v8928_v48 }
 0x1d0   : > { %v762_v31 = vpop.xlane.xlu1 %761  ;;  %v792_v7 = vpop.xlane.xlu0 %791  ;;  %v909_v34 = vmul.f32 %v7512_v20, %v8935_v55  ;;  %v999_v55 = vadd.f32 %v9084_v46, %v961_v41 }
 0x1d1   : > { %7525 = vrsqrt.f32 %v864_v3  ;;  %v818_v32 = vmul.f32 0.0078125, %v762_v31  ;;  %v833_v36 = vmul.f32 0.0078125, %v792_v7  ;;  %v1015_v37 = vpack.c.bf16 %v984_v14, %v983_v62 }
 0x1d2   : > { %v7514_v16 = vpop.eup %7513  ;;  %7527 = vrsqrt.f32 %v849_v4  ;;  %v962_v33 = vmul.f32 %v9079_v35, %v924_v47  ;;  %v947_v24 = vmul.f32 %v9079_v35, %v909_v34 }
 0x1d3   : > { %v7516_v42 = vpop.eup %7515  ;;  %v850_v44 = vadd.f32 1e-05, %v818_v32  ;;  %v865_v10 = vadd.f32 1e-05, %v833_v36  ;;  %1160 = vmatmul.mubr.bf16.vlgmr.msra.gmra.mxu0 %v1015_v37  ;;  %v910_v48 = vmul.f32 %v7514_v16, %v8938_v56 }
 0x1d4   : > { %v794_v49 = vpop.xlane.xlu1 %793  ;;  %v764_v50 = vpop.xlane.xlu0 %763  ;;  %v1000_v18 = vadd.f32 %v9084_v46, %v962_v33  ;;  %1169 = vmatprep.mubr.bf16.mxu0 %v8457_v38  ;;  %v925_v27 = vmul.f32 %v7516_v42, %v8945_v63  ;;  %v985_v56 = vadd.f32 %v9084_v46, %v947_v24 }
 0x1d5   : > { %7529 = vrsqrt.f32 %v850_v44  ;;  %v834_v53 = vmul.f32 0.0078125, %v794_v49  ;;  %v819_v54 = vmul.f32 0.0078125, %v764_v50  ;;  %v948_v40 = vmul.f32 %v9079_v35, %v910_v48 }
 0x1d6   : > { %v7518_v12 = vpop.eup %7517  ;;  %7531 = vrsqrt.f32 %v865_v10  ;;  %v1023_v58 = vpack.c.bf16 %v1000_v18, %v999_v55  ;;  %v963_v14 = vmul.f32 %v9079_v35, %v925_v27 }
 0x1d7   : > { %v7520_v59 = vpop.eup %7519  ;;  %v866_v29 = vadd.f32 1e-05, %v834_v53  ;;  %v851_v62 = vadd.f32 1e-05, %v819_v54  ;;  %v986_v20 = vadd.f32 %v9084_v46, %v948_v40  ;;  %v926_v3 = vmul.f32 %v7518_v12, %v8948_v2 }
 0x1d8   : > { %1240 = vmatmul.mubr.bf16.vlgmr.msra.gmra.mxu1 %v1023_v58  ;;  %v766_v4 = vpop.xlane.xlu1 %765  ;;  %v796_v63 = vpop.xlane.xlu0 %795  ;;  %v911_v47 = vmul.f32 %v7520_v59, %v8955_v8  ;;  %v1001_v42 = vadd.f32 %v9084_v46, %v963_v14 }
 0x1d9   : > { %7533 = vrsqrt.f32 %v866_v29  ;;  %v820_v31 = vmul.f32 0.0078125, %v766_v4  ;;  %v835_v7 = vmul.f32 0.0078125, %v796_v63  ;;  %v1016_v41 = vpack.c.bf16 %v986_v20, %v985_v56  ;;  %1249 = vmatprep.mubr.bf16.mxu1 %v8457_v38 }
 0x1da   : > { %v7522_v34 = vpop.eup %7521  ;;  %7535 = vrsqrt.f32 %v851_v62  ;;  %v964_v32 = vmul.f32 %v9079_v35, %v926_v3  ;;  %v949_v36 = vmul.f32 %v9079_v35, %v911_v47 }
 0x1db   : > { %v7524_v2 = vpop.eup %7523  ;;  %v852_v37 = vadd.f32 1e-05, %v820_v31  ;;  %v867_v16 = vadd.f32 1e-05, %v835_v7  ;;  %1170 = vmatmul.mubr.bf16.gmra.mxu0 %v1016_v41  ;;  %v912_v33 = vmul.f32 %v7522_v34, %v8958_v9 }
 0x1dc   : > { %v798_v24 = vpop.xlane.xlu1 %797  ;;  %v768_v8 = vpop.xlane.xlu0 %767  ;;  %v1002_v44 = vadd.f32 %v9084_v46, %v964_v32  ;;  %1179 = vmatprep.mubr.bf16.mxu0 %v8457_v38  ;;  %v927_v10 = vmul.f32 %v7524_v2, %v8965_v45  ;;  %v987_v9 = vadd.f32 %v9084_v46, %v949_v36 }
 0x1dd   : > { %7537 = vrsqrt.f32 %v852_v37  ;;  %v836_v48 = vmul.f32 0.0078125, %v798_v24  ;;  %v821_v49 = vmul.f32 0.0078125, %v768_v8  ;;  %v950_v50 = vmul.f32 %v9079_v35, %v912_v33 }
 0x1de   : > { %v7526_v55 = vpop.eup %7525  ;;  %7539 = vrsqrt.f32 %v867_v16  ;;  %v1024_v18 = vpack.c.bf16 %v1002_v44, %v1001_v42  ;;  %v965_v56 = vmul.f32 %v9079_v35, %v927_v10 }
 0x1df   : > { %v7528_v27 = vpop.eup %7527  ;;  %v868_v53 = vadd.f32 1e-05, %v836_v48  ;;  %v853_v54 = vadd.f32 1e-05, %v821_v49  ;;  %v988_v40 = vadd.f32 %v9084_v46, %v950_v50  ;;  %v928_v12 = vmul.f32 %v7526_v55, %v8968_v11 }
 0x1e0   : > { %1250 = vmatmul.mubr.bf16.gmra.mxu1 %v1024_v18  ;;  %v770_v58 = vpop.xlane.xlu1 %769  ;;  %v800_v45 = vpop.xlane.xlu0 %799  ;;  %v913_v59 = vmul.f32 %v7528_v27, %v8975_v57  ;;  %v1003_v41 = vadd.f32 %v9084_v46, %v965_v56 }
 0x1e1   : > { %7541 = vrsqrt.f32 %v868_v53  ;;  %v822_v29 = vmul.f32 0.0078125, %v770_v58  ;;  %v837_v62 = vmul.f32 0.0078125, %v800_v45  ;;  %v1017_v20 = vpack.c.bf16 %v988_v40, %v987_v9  ;;  %1259 = vmatprep.mubr.bf16.mxu1 %v8457_v38 }
 0x1e2   : > { %v7530_v3 = vpop.eup %7529  ;;  %7543 = vrsqrt.f32 %v853_v54  ;;  %v966_v4 = vmul.f32 %v9079_v35, %v928_v12  ;;  %v951_v63 = vmul.f32 %v9079_v35, %v913_v59 }
 0x1e3   : > { %v7532_v11 = vpop.eup %7531  ;;  %v854_v14 = vadd.f32 1e-05, %v822_v29  ;;  %v869_v47 = vadd.f32 1e-05, %v837_v62  ;;  %1180 = vmatmul.mubr.bf16.gmra.mxu0 %v1017_v20  ;;  %v914_v31 = vmul.f32 %v7530_v3, %v8978_v13 }
 0x1e4   : > { %v802_v7 = vpop.xlane.xlu1 %801  ;;  %v772_v57 = vpop.xlane.xlu0 %771  ;;  %v1004_v34 = vadd.f32 %v9084_v46, %v966_v4  ;;  %1189 = vmatprep.mubr.bf16.mxu0 %v8457_v38  ;;  %v929_v32 = vmul.f32 %v7532_v11, %v8985_v5  ;;  %v989_v13 = vadd.f32 %v9084_v46, %v951_v63 }
 0x1e5   : > { %7545 = vrsqrt.f32 %v854_v14  ;;  %v838_v36 = vmul.f32 0.0078125, %v802_v7  ;;  %v823_v2 = vmul.f32 0.0078125, %v772_v57  ;;  %v952_v37 = vmul.f32 %v9079_v35, %v914_v31 }
 0x1e6   : > { %v7534_v16 = vpop.eup %7533  ;;  %7547 = vrsqrt.f32 %v869_v47  ;;  %v1025_v33 = vpack.c.bf16 %v1004_v34, %v1003_v41  ;;  %v967_v49 = vmul.f32 %v9079_v35, %v929_v32 }
 0x1e7   : > { %v7536_v24 = vpop.eup %7535  ;;  %v870_v8 = vadd.f32 1e-05, %v838_v36  ;;  %v855_v42 = vadd.f32 1e-05, %v823_v2  ;;  %v990_v44 = vadd.f32 %v9084_v46, %v952_v37  ;;  %v930_v10 = vmul.f32 %v7534_v16, %v8988_v15 }
 0x1e8   : > { %1260 = vmatmul.mubr.bf16.gmra.mxu1 %v1025_v33  ;;  %v774_v48 = vpop.xlane.xlu1 %773  ;;  %v804_v5 = vpop.xlane.xlu0 %803  ;;  %v915_v50 = vmul.f32 %v7536_v24, %v8995_v39  ;;  %v1005_v56 = vadd.f32 %v9084_v46, %v967_v49 }
 0x1e9   : > { %7549 = vrsqrt.f32 %v870_v8  ;;  %v824_v55 = vmul.f32 0.0078125, %v774_v48  ;;  %v839_v18 = vmul.f32 0.0078125, %v804_v5  ;;  %v1018_v9 = vpack.c.bf16 %v990_v44, %v989_v13  ;;  %1269 = vmatprep.mubr.bf16.mxu1 %v8457_v38 }
 0x1ea   : > { %v7538_v27 = vpop.eup %7537  ;;  %7551 = vrsqrt.f32 %v855_v42  ;;  %v968_v53 = vmul.f32 %v9079_v35, %v930_v10  ;;  %v953_v54 = vmul.f32 %v9079_v35, %v915_v50 }
 0x1eb   : > { %v7540_v15 = vpop.eup %7539  ;;  %v856_v40 = vadd.f32 1e-05, %v824_v55  ;;  %v871_v12 = vadd.f32 1e-05, %v839_v18  ;;  %1190 = vmatmul.mubr.bf16.gmra.mxu0 %v1018_v9  ;;  %v916_v58 = vmul.f32 %v7538_v27, %v8998_v17 }
 0x1ec   : > { %v806_v45 = vpop.xlane.xlu1 %805  ;;  %v776_v39 = vpop.xlane.xlu0 %775  ;;  %v1006_v59 = vadd.f32 %v9084_v46, %v968_v53  ;;  %1199 = vmatprep.mubr.bf16.mxu0 %v8457_v38  ;;  %v931_v29 = vmul.f32 %v7540_v15, %v9005_v51  ;;  %v991_v17 = vadd.f32 %v9084_v46, %v953_v54 }
 0x1ed   : > { %7553 = vrsqrt.f32 %v856_v40  ;;  %v840_v62 = vmul.f32 0.0078125, %v806_v45  ;;  %v825_v20 = vmul.f32 0.0078125, %v776_v39  ;;  %v954_v3 = vmul.f32 %v9079_v35, %v916_v58 }
 0x1ee   : > { %v7542_v4 = vpop.eup %7541  ;;  %7555 = vrsqrt.f32 %v871_v12  ;;  %v1026_v63 = vpack.c.bf16 %v1006_v59, %v1005_v56  ;;  %v969_v41 = vmul.f32 %v9079_v35, %v931_v29 }
 0x1ef   : > { %v7544_v11 = vpop.eup %7543  ;;  %v872_v14 = vadd.f32 1e-05, %v840_v62  ;;  %v857_v47 = vadd.f32 1e-05, %v825_v20  ;;  %v992_v31 = vadd.f32 %v9084_v46, %v954_v3  ;;  %v932_v7 = vmul.f32 %v7542_v4, %v9008_v19 }
 0x1f0   : > { %1270 = vmatmul.mubr.bf16.gmra.mxu1 %v1026_v63  ;;  %v778_v57 = vpop.xlane.xlu1 %777  ;;  %v808_v51 = vpop.xlane.xlu0 %807  ;;  %v917_v34 = vmul.f32 %v7544_v11, %v9015_v61  ;;  %v1007_v61 = vadd.f32 %v9084_v46, %v969_v41 }
 0x1f1   : > { %7557 = vrsqrt.f32 %v872_v14  ;;  %v826_v32 = vmul.f32 0.0078125, %v778_v57  ;;  %v841_v36 = vmul.f32 0.0078125, %v808_v51  ;;  %v1019_v2 = vpack.c.bf16 %v992_v31, %v991_v17  ;;  %1279 = vmatprep.mubr.bf16.mxu1 %v8457_v38 }
 0x1f2   : > { %v7546_v37 = vpop.eup %7545  ;;  %7559 = vrsqrt.f32 %v857_v47  ;;  %v970_v16 = vmul.f32 %v9079_v35, %v932_v7  ;;  %v955_v33 = vmul.f32 %v9079_v35, %v917_v34 }
 0x1f3   : > { %v7548_v19 = vpop.eup %7547  ;;  %v858_v13 = vadd.f32 1e-05, %v826_v32  ;;  %v873_v24 = vadd.f32 1e-05, %v841_v36  ;;  %1200 = vmatmul.mubr.bf16.gmra.mxu0 %v1019_v2  ;;  %v918_v8 = vmul.f32 %v7546_v37, %v9018_v21 }
 0x1f4   : > { %v810_v42 = vpop.xlane.xlu1 %809  ;;  %v1008_v44 = vadd.f32 %v9084_v46, %v970_v16  ;;  %1209 = vmatprep.mubr.bf16.mxu0 %v8457_v38  ;;  %v933_v10 = vmul.f32 %v7548_v19, %v9025_v22  ;;  %v993_v55 = vadd.f32 %v9084_v46, %v955_v33 }
 0x1f5   : > { %7561 = vrsqrt.f32 %v858_v13  ;;  %v842_v48 = vmul.f32 0.0078125, %v810_v42  ;;  %v956_v5 = vmul.f32 %v9079_v35, %v918_v8 }
 0x1f6   : > { %v7550_v49 = vpop.eup %7549  ;;  %7563 = vrsqrt.f32 %v873_v24  ;;  %v1027_v50 = vpack.c.bf16 %v1008_v44, %v1007_v61  ;;  %v971_v53 = vmul.f32 %v9079_v35, %v933_v10 }
 0x1f7   : > { %v7552_v18 = vpop.eup %7551  ;;  %v874_v21 = vadd.f32 1e-05, %v842_v48  ;;  %v994_v9 = vadd.f32 %v9084_v46, %v956_v5  ;;  %v934_v27 = vmul.f32 %v7550_v49, %v9028_v23 }
 0x1f8   : > { %1280 = vmatmul.mubr.bf16.gmra.mxu1 %v1027_v50  ;;  %v919_v22 = vmul.f32 %v7552_v18, %v9037_v43  ;;  %v1009_v58 = vadd.f32 %v9084_v46, %v971_v53 }
 0x1f9   : > { %7565 = vrsqrt.f32 %v874_v21  ;;  %v1020_v54 = vpack.c.bf16 %v994_v9, %v993_v55  ;;  %1289 = vmatprep.mubr.bf16.mxu1 %v8457_v38  ;;  %v972_v15 = vmul.f32 %v9079_v35, %v934_v27 }
 0x1fa   : > { %v7554_v40 = vpop.eup %7553  ;;  %v957_v39 = vmul.f32 %v9079_v35, %v919_v22 }
 0x1fb   : > { %v7556_v12 = vpop.eup %7555  ;;  %1210 = vmatmul.mubr.bf16.gmra.mxu0 %v1020_v54  ;;  %v1010_v45 = vadd.f32 %v9084_v46, %v972_v15  ;;  %v920_v23 = vmul.f32 %v7554_v40, %v9040_v25 }
 0x1fc   : > { %1219 = vmatprep.mubr.bf16.mxu0 %v8457_v38  ;;  %v935_v43 = vmul.f32 %v7556_v12, %v9047_v52  ;;  %v995_v20 = vadd.f32 %v9084_v46, %v957_v39 }
 0x1fd   : > { %v1028_v56 = vpack.c.bf16 %v1010_v45, %v1009_v58  ;;  %v958_v59 = vmul.f32 %v9079_v35, %v920_v23 }
 0x1fe   : > { %v7558_v29 = vpop.eup %7557  ;;  %v973_v63 = vmul.f32 %v9079_v35, %v935_v43 }
 0x1ff   : > { %v7560_v62 = vpop.eup %7559  ;;  %v996_v3 = vadd.f32 %v9084_v46, %v958_v59  ;;  %v936_v4 = vmul.f32 %v7558_v29, %v9050_v26 }
 0x200   : > { %1290 = vmatmul.mubr.bf16.gmra.mxu1 %v1028_v56  ;;  %v921_v25 = vmul.f32 %v7560_v62, %v9057_v60  ;;  %v1011_v47 = vadd.f32 %v9084_v46, %v973_v63 }
 0x201   : > { %v1021_v17 = vpack.c.bf16 %v996_v3, %v995_v20  ;;  %1299 = vmatprep.mubr.bf16.mxu1 %v8457_v38  ;;  %v974_v52 = vmul.f32 %v9079_v35, %v936_v4 }
 0x202   : > { %v7562_v11 = vpop.eup %7561  ;;  %v959_v26 = vmul.f32 %v9079_v35, %v921_v25 }
 0x203   : > { %v7564_v14 = vpop.eup %7563  ;;  %1220 = vmatmul.mubr.bf16.gmra.mxu0 %v1021_v17  ;;  %v1012_v31 = vadd.f32 %v9084_v46, %v974_v52  ;;  %v922_v7 = vmul.f32 %v7562_v11, %v9060_v28 }
 0x204   : > { %1229 = vmatprep.mubr.bf16.mxu0 %v8457_v38  ;;  %v937_v60 = vmul.f32 %v7564_v14, %v9067_v6  ;;  %v997_v34 = vadd.f32 %v9084_v46, %v959_v26 }
 0x205   : > { %v1029_v57 = vpack.c.bf16 %v1012_v31, %v1011_v47  ;;  %v960_v51 = vmul.f32 %v9079_v35, %v922_v7 }
 0x206   : > { %v7566_v41 = vpop.eup %7565  ;;  %v975_v2 = vmul.f32 %v9079_v35, %v937_v60 }
 0x207   : > { %v998_v32 = vadd.f32 %v9084_v46, %v960_v51  ;;  %v938_v36 = vmul.f32 %v7566_v41, %v9070_v30 }
 0x208   : > { %1300 = vmatmul.mubr.bf16.gmra.mxu1 %v1029_v57  ;;  %v1013_v6 = vadd.f32 %v9084_v46, %v975_v2 }
 0x209   : > { %v1022_v28 = vpack.c.bf16 %v998_v32, %v997_v34  ;;  %1309 = vmatprep.mubr.bf16.mxu1 %v8457_v38  ;;  %v976_v37 = vmul.f32 %v9079_v35, %v938_v36 }
 0x20b   : > { %1230 = vmatmul.mubr.bf16.gmra.mxu0 %v1022_v28  ;;  %v1014_v16 = vadd.f32 %v9084_v46, %v976_v37 }
 0x20d   : > { %v1030_v33 = vpack.c.bf16 %v1014_v16, %v1013_v6 }
 0x210   : > { %1310 = vmatmul.mubr.bf16.gmra.mxu1 %v1030_v33 }
 0x293   : > { %v1161_v19 = vpop.f32.mrf.mxu0 }
 0x295   : > { %v1163_v13 = vpop.f32.mrf.mxu0 }
 0x297   : > { %v1165_v24 = vpop.f32.mrf.mxu0 }
 0x298   : > { %v6520_v8 = vpack.c.bf16 %v1165_v24, %v1161_v19  ;;  %v1241_v30 = vpop.f32.mrf.mxu1 }
 0x299   : > { %v1167_v42 = vpop.f32.mrf.mxu0 }
 0x29a   : > { %6521 = vst [vmem:[#allocation2] sm:$0xff] %v6520_v8   ;;  %v6600_v61 = vpack.c.bf16 %v1167_v42, %v1163_v13  ;;  %v1243_v44 = vpop.f32.mrf.mxu1 }
 0x29b   : > { %v1171_v10 = vpop.f32.mrf.mxu0 }
 0x29c   : > { %6601 = vst [vmem:[#allocation3] sm:$0xff] %v6600_v61   ;;  %v1245_v38 = vpop.f32.mrf.mxu1 }
 0x29d   : > { %v6560_v35 = vpack.c.bf16 %v1245_v38, %v1241_v30  ;;  %v1173_v48 = vpop.f32.mrf.mxu0 }
 0x29e   : > { %v1247_v5 = vpop.f32.mrf.mxu1 }
 0x29f   : > { %6684 = vst [vmem:[#allocation2 + $0x40] sm:$0xff] %v6560_v35   ;;  %v6640_v49 = vpack.c.bf16 %v1247_v5, %v1243_v44  ;;  %v1175_v46 = vpop.f32.mrf.mxu0 }
 0x2a0   : > { %v6525_v50 = vpack.c.bf16 %v1175_v46, %v1171_v10  ;;  %v1251_v55 = vpop.f32.mrf.mxu1 }
 0x2a1   : > { %6699 = vst [vmem:[#allocation3 + $0x40] sm:$0xff] %v6640_v49   ;;  %v1177_v18 = vpop.f32.mrf.mxu0 }
 0x2a2   : > { %6677 = vst [vmem:[#allocation2 + $0x8] sm:$0xff] %v6525_v50   ;;  %v6605_v21 = vpack.c.bf16 %v1177_v18, %v1173_v48  ;;  %v1253_v9 = vpop.f32.mrf.mxu1 }
 0x2a3   : > { %v1181_v27 = vpop.f32.mrf.mxu0 }
 0x2a4   : > { %6692 = vst [vmem:[#allocation3 + $0x8] sm:$0xff] %v6605_v21   ;;  %v1255_v53 = vpop.f32.mrf.mxu1 }
 0x2a5   : > { %v6565_v22 = vpack.c.bf16 %v1255_v53, %v1251_v55  ;;  %v1183_v54 = vpop.f32.mrf.mxu0 }
 0x2a6   : > { %v1257_v15 = vpop.f32.mrf.mxu1 }
 0x2a7   : > { %6685 = vst [vmem:[#allocation2 + $0x48] sm:$0xff] %v6565_v22   ;;  %v6645_v40 = vpack.c.bf16 %v1257_v15, %v1253_v9  ;;  %v1185_v12 = vpop.f32.mrf.mxu0 }
 0x2a8   : > { %v6530_v58 = vpack.c.bf16 %v1185_v12, %v1181_v27  ;;  %v1261_v45 = vpop.f32.mrf.mxu1 }
 0x2a9   : > { %6700 = vst [vmem:[#allocation3 + $0x48] sm:$0xff] %v6645_v40   ;;  %v1187_v23 = vpop.f32.mrf.mxu0 }
 0x2aa   : > { %6678 = vst [vmem:[#allocation2 + $0x10] sm:$0xff] %v6530_v58   ;;  %v6610_v39 = vpack.c.bf16 %v1187_v23, %v1183_v54  ;;  %v1263_v43 = vpop.f32.mrf.mxu1 }
 0x2ab   : > { %v1191_v56 = vpop.f32.mrf.mxu0 }
 0x2ac   : > { %6693 = vst [vmem:[#allocation3 + $0x10] sm:$0xff] %v6610_v39   ;;  %v1265_v59 = vpop.f32.mrf.mxu1 }
 0x2ad   : > { %v6570_v29 = vpack.c.bf16 %v1265_v59, %v1261_v45  ;;  %v1193_v62 = vpop.f32.mrf.mxu0 }
 0x2ae   : > { %v1267_v20 = vpop.f32.mrf.mxu1 }
 0x2af   : > { %6686 = vst [vmem:[#allocation2 + $0x50] sm:$0xff] %v6570_v29   ;;  %v6650_v3 = vpack.c.bf16 %v1267_v20, %v1263_v43  ;;  %v1195_v4 = vpop.f32.mrf.mxu0 }
 0x2b0   : > { %v6535_v63 = vpack.c.bf16 %v1195_v4, %v1191_v56  ;;  %v1271_v25 = vpop.f32.mrf.mxu1 }
 0x2b1   : > { %6701 = vst [vmem:[#allocation3 + $0x50] sm:$0xff] %v6650_v3   ;;  %v1197_v17 = vpop.f32.mrf.mxu0 }
 0x2b2   : > { %6679 = vst [vmem:[#allocation2 + $0x18] sm:$0xff] %v6535_v63   ;;  %v6615_v52 = vpack.c.bf16 %v1197_v17, %v1193_v62  ;;  %v1273_v11 = vpop.f32.mrf.mxu1 }
 0x2b3   : > { %v1201_v14 = vpop.f32.mrf.mxu0 }
 0x2b4   : > { %6694 = vst [vmem:[#allocation3 + $0x18] sm:$0xff] %v6615_v52   ;;  %v1275_v47 = vpop.f32.mrf.mxu1 }
 0x2b5   : > { %v6575_v31 = vpack.c.bf16 %v1275_v47, %v1271_v25  ;;  %v1203_v7 = vpop.f32.mrf.mxu0 }
 0x2b6   : > { %v1277_v26 = vpop.f32.mrf.mxu1 }
 0x2b7   : > { %6687 = vst [vmem:[#allocation2 + $0x58] sm:$0xff] %v6575_v31   ;;  %v6655_v60 = vpack.c.bf16 %v1277_v26, %v1273_v11  ;;  %v1205_v57 = vpop.f32.mrf.mxu0 }
 0x2b8   : > { %v6540_v51 = vpack.c.bf16 %v1205_v57, %v1201_v14  ;;  %v1281_v41 = vpop.f32.mrf.mxu1 }
 0x2b9   : > { %6702 = vst [vmem:[#allocation3 + $0x58] sm:$0xff] %v6655_v60   ;;  %v1207_v34 = vpop.f32.mrf.mxu0 }
 0x2ba   : > { %6680 = vst [vmem:[#allocation2 + $0x20] sm:$0xff] %v6540_v51   ;;  %v6620_v32 = vpack.c.bf16 %v1207_v34, %v1203_v7  ;;  %v1283_v36 = vpop.f32.mrf.mxu1 }
 0x2bb   : > { %v1211_v2 = vpop.f32.mrf.mxu0 }
 0x2bc   : > { %6695 = vst [vmem:[#allocation3 + $0x20] sm:$0xff] %v6620_v32   ;;  %v1285_v28 = vpop.f32.mrf.mxu1 }
 0x2bd   : > { %v6580_v37 = vpack.c.bf16 %v1285_v28, %v1281_v41  ;;  %v1213_v6 = vpop.f32.mrf.mxu0 }
 0x2be   : > { %v1287_v16 = vpop.f32.mrf.mxu1 }
 0x2bf   : > { %6688 = vst [vmem:[#allocation2 + $0x60] sm:$0xff] %v6580_v37   ;;  %v6660_v33 = vpack.c.bf16 %v1287_v16, %v1283_v36  ;;  %v1215_v19 = vpop.f32.mrf.mxu0 }
 0x2c0   : > { %v6545_v13 = vpack.c.bf16 %v1215_v19, %v1211_v2  ;;  %v1291_v24 = vpop.f32.mrf.mxu1 }
 0x2c1   : > { %6703 = vst [vmem:[#allocation3 + $0x60] sm:$0xff] %v6660_v33   ;;  %v1217_v8 = vpop.f32.mrf.mxu0 }
 0x2c2   : > { %6681 = vst [vmem:[#allocation2 + $0x28] sm:$0xff] %v6545_v13   ;;  %v6625_v30 = vpack.c.bf16 %v1217_v8, %v1213_v6  ;;  %v1293_v42 = vpop.f32.mrf.mxu1 }
 0x2c3   : > { %v1221_v61 = vpop.f32.mrf.mxu0 }
 0x2c4   : > { %6696 = vst [vmem:[#allocation3 + $0x28] sm:$0xff] %v6625_v30   ;;  %v1295_v44 = vpop.f32.mrf.mxu1 }
 0x2c5   : > { %v6585_v10 = vpack.c.bf16 %v1295_v44, %v1291_v24  ;;  %v1223_v38 = vpop.f32.mrf.mxu0 }
 0x2c6   : > { %v1297_v35 = vpop.f32.mrf.mxu1 }
 0x2c7   : > { %6689 = vst [vmem:[#allocation2 + $0x68] sm:$0xff] %v6585_v10   ;;  %v6665_v48 = vpack.c.bf16 %v1297_v35, %v1293_v42  ;;  %v1225_v5 = vpop.f32.mrf.mxu0 }
 0x2c8   : > { %v6550_v49 = vpack.c.bf16 %v1225_v5, %v1221_v61  ;;  %v1301_v46 = vpop.f32.mrf.mxu1 }
 0x2c9   : > { %6704 = vst [vmem:[#allocation3 + $0x68] sm:$0xff] %v6665_v48   ;;  %v1227_v50 = vpop.f32.mrf.mxu0 }
 0x2ca   : > { %6682 = vst [vmem:[#allocation2 + $0x30] sm:$0xff] %v6550_v49   ;;  %v6630_v55 = vpack.c.bf16 %v1227_v50, %v1223_v38  ;;  %v1303_v18 = vpop.f32.mrf.mxu1 }
 0x2cb   : > { %v1231_v21 = vpop.f32.mrf.mxu0 }
 0x2cc   : > { %6697 = vst [vmem:[#allocation3 + $0x30] sm:$0xff] %v6630_v55   ;;  %v1305_v9 = vpop.f32.mrf.mxu1 }
 0x2cd   : > { %v6590_v27 = vpack.c.bf16 %v1305_v9, %v1301_v46  ;;  %v1233_v53 = vpop.f32.mrf.mxu0 }
 0x2ce   : > { %v1307_v22 = vpop.f32.mrf.mxu1 }
 0x2cf   : > { %6690 = vst [vmem:[#allocation2 + $0x70] sm:$0xff] %v6590_v27   ;;  %v6670_v54 = vpack.c.bf16 %v1307_v22, %v1303_v18  ;;  %v1235_v15 = vpop.f32.mrf.mxu0 }
 0x2d0   : > { %v6555_v40 = vpack.c.bf16 %v1235_v15, %v1231_v21  ;;  %v1311_v12 = vpop.f32.mrf.mxu1 }
 0x2d1   : > { %6705 = vst [vmem:[#allocation3 + $0x70] sm:$0xff] %v6670_v54   ;;  %v1237_v58 = vpop.f32.mrf.mxu0 }
 0x2d2   : > { %6683 = vst [vmem:[#allocation2 + $0x38] sm:$0xff] %v6555_v40   ;;  %v6635_v45 = vpack.c.bf16 %v1237_v58, %v1233_v53  ;;  %v1313_v23 = vpop.f32.mrf.mxu1 }
 0x2d4   : > { %6698 = vst [vmem:[#allocation3 + $0x38] sm:$0xff] %v6635_v45   ;;  %v1315_v39 = vpop.f32.mrf.mxu1 }
 0x2d5   : > { %v6595_v43 = vpack.c.bf16 %v1315_v39, %v1311_v12 }
 0x2d6   : > { %v1317_v56 = vpop.f32.mrf.mxu1 }
 0x2d7   : > { %6691 = vst [vmem:[#allocation2 + $0x78] sm:$0xff] %v6595_v43   ;;  %v6675_v59 = vpack.c.bf16 %v1317_v56, %v1313_v23 }
 0x2d9   : > { %6706 = vst [vmem:[#allocation3 + $0x78] sm:$0xff] %v6675_v59  }
 0x2da PF: > { %s12544_s20 = sld [smem:[#allocation21_spill]]  ;;  %v7567_v54 = vld [vmem:[#allocation7 + $0x38] sm:$0xff]   ;;  %v7568_v56 = vld [vmem:[#allocation7 + $0x30] sm:$0xff]   ;;  %vm12403_vm0 = vcmask 261120   ;;  %s8458_s11 = smov 96  }
 0x2db   : > { %7187 = vmatprep.subr.bf16.mxu0 %v7567_v54  ;;  %s8459_s10 = smov 64   ;;  %s8460_s24 = smov 32  }
 0x2dc   : > { %7188 = vmatpush3.bf16.msra.mxu0 %v7567_v54  ;;  %s12931_s15 = sld [smem:[#allocation127_spill]]  ;;  %s6091_s21 = sshll.u32 %s8785_s19, 4  ;;  %s12248_s21 = int_to_ptr.vmem [resolvable:$true] %s6091_s21 }
 0x2dd   : > { %7189 = vmatprep.subr.bf16.mxu0 %v7568_v56  ;;  %s12932_s13 = sld [smem:[#allocation128_spill]] }
 0x2de   : > { %s12936_s23 = sld [smem:[#allocation132_spill]] }
 0x2df   : > { %s12937_s7 = sld [smem:[#allocation22_spill]] }
 0x2e0   : > { %s6329_s12 = sshll.u32 %s12544_s20, 7  ;;  %7190 = vmatpush3.bf16.msra.mxu0 %v7568_v56 }
 0x2e1   : > { %s9198_s3 = scalar_lea.vmem %s8754_s28, %s6329_s12 [#allocation4]  ;;  %s12930_s28 = sld [smem:[#allocation126_spill]] }
 0x2e2   : > { %v1642_v29 = vld [vmem:[%s9198_s3] sm:$0xff]  ;;  %v1644_v62 = vld [vmem:[%s9198_s3 + $0x10] sm:$0xff]  ;;  %v1643_v20 = vld [vmem:[%s9198_s3 + $0x8] sm:$0xff] }
 0x2e3   : > { %1658 = vadd.xlane.f32.xlu0 %v1642_v29  ;;  %1662 = vadd.xlane.f32.xlu1 %v1644_v62  ;;  %v1645_v3 = vld [vmem:[%s9198_s3 + $0x18] sm:$0xff]  ;;  %v1646_v4 = vld [vmem:[%s9198_s3 + $0x20] sm:$0xff]  ;;  %v1647_v63 = vld [vmem:[%s9198_s3 + $0x28] sm:$0xff] }
 0x2e4   : > { %v1648_v25 = vld [vmem:[%s9198_s3 + $0x30] sm:$0xff]  ;;  %v1649_v17 = vld [vmem:[%s9198_s3 + $0x38] sm:$0xff]  ;;  %v1650_v52 = vld [vmem:[%s9198_s3 + $0x40] sm:$0xff] }
 0x2e5   : > { %v1651_v11 = vld [vmem:[%s9198_s3 + $0x48] sm:$0xff]  ;;  %v9211_v14 = vld [vmem:[%s9198_s3 + $0x50] sm:$0xff]  ;;  %v9214_v47 = vld [vmem:[%s9198_s3 + $0x58] sm:$0xff]  ;;  %s6448_s22 = sshll.u32 %s12937_s7, 5 }
 0x2e6   : > { %v9217_v31 = vld [vmem:[%s9198_s3 + $0x60] sm:$0xff]  ;;  %v9220_v7 = vld [vmem:[%s9198_s3 + $0x68] sm:$0xff]  ;;  %v9225_v26 = vld [vmem:[%s9198_s3 + $0x70] sm:$0xff] }
 0x2e7   : > { %1660 = vadd.xlane.f32.xlu0 %v1643_v20  ;;  %1664 = vadd.xlane.f32.xlu1 %v1645_v3  ;;  %v9228_v60 = vld [vmem:[%s9198_s3 + $0x78] sm:$0xff] }
 0x2eb   : > { %1666 = vadd.xlane.f32.xlu0 %v1646_v4  ;;  %1668 = vadd.xlane.f32.xlu1 %v1647_v63 }
 0x2ef   : > { %1670 = vadd.xlane.f32.xlu0 %v1648_v25  ;;  %1672 = vadd.xlane.f32.xlu1 %v1649_v17 }
 0x2f3   : > { %1674 = vadd.xlane.f32.xlu0 %v1650_v52  ;;  %1676 = vadd.xlane.f32.xlu1 %v1651_v11 }
 0x2f7   : > { %1678 = vadd.xlane.f32.xlu0 %v9211_v14  ;;  %1680 = vadd.xlane.f32.xlu1 %v9214_v47 }
 0x2fb   : > { %1682 = vadd.xlane.f32.xlu0 %v9217_v31  ;;  %1684 = vadd.xlane.f32.xlu1 %v9220_v7 }
 0x2ff   : > { %1686 = vadd.xlane.f32.xlu0 %v9225_v26  ;;  %1688 = vadd.xlane.f32.xlu1 %v9228_v60 }
 0x36c   : > { %v1659_v57 = vpop.xlane.xlu0 %1658  ;;  %v1663_v51 = vpop.xlane.xlu1 %1662 }
 0x36d   : > { %v1691_v41 = vmul.f32 0.0078125, %v1659_v57  ;;  %v1693_v34 = vmul.f32 0.0078125, %v1663_v51 }
 0x36f   : > { %v9234_v32 = vsub.f32 %v1642_v29, %v1691_v41  ;;  %v9236_v36 = vsub.f32 %v1644_v62, %v1693_v34 }
 0x370   : > { %v1661_v2 = vpop.xlane.xlu0 %1660  ;;  %v1665_v28 = vpop.xlane.xlu1 %1664 }
 0x371   : > { %v1692_v37 = vmul.f32 0.0078125, %v1661_v2  ;;  %v1723_v6 = vmul.f32 %v9234_v32, %v9234_v32  ;;  %v1694_v16 = vmul.f32 0.0078125, %v1665_v28  ;;  %v1725_v33 = vmul.f32 %v9236_v36, %v9236_v36  ;;  %v7570_v2 = vld [vmem:[#allocation7 + $0x20] sm:$0xff]  }
 0x373   : > { %1739 = vadd.xlane.f32.xlu0 %v1723_v6  ;;  %v9242_v19 = vsub.f32 %v1643_v20, %v1692_v37  ;;  %v9244_v13 = vsub.f32 %v1645_v3, %v1694_v16  ;;  %v7571_v6 = vld [vmem:[#allocation7 + $0x18] sm:$0xff]  }
 0x374   : > { %v1667_v24 = vpop.xlane.xlu0 %1666  ;;  %v1669_v8 = vpop.xlane.xlu1 %1668 }
 0x375   : > { %v1695_v30 = vmul.f32 0.0078125, %v1667_v24  ;;  %v1724_v42 = vmul.f32 %v9242_v19, %v9242_v19  ;;  %v1696_v61 = vmul.f32 0.0078125, %v1669_v8  ;;  %v1726_v44 = vmul.f32 %v9244_v13, %v9244_v13  ;;  %v9304_v24 = vld [vmem:[#allocation2 + $0x78] sm:$0xff]  }
 0x376   : > { %v9306_v8 = vld [vmem:[#allocation2 + $0x38] sm:$0xff]   ;;  %7283 = vmatprep.subr.msk.bf16.mxu1 %vm12403_vm0, %v9304_v24 }
 0x377   : > { %1743 = vadd.xlane.f32.xlu0 %v1725_v33  ;;  %1741 = vadd.xlane.f32.xlu1 %v1724_v42  ;;  %v9250_v10 = vsub.f32 %v1646_v4, %v1695_v30  ;;  %v9252_v38 = vsub.f32 %v1647_v63, %v1696_v61  ;;  %v7572_v33 = vld [vmem:[#allocation7 + $0x10] sm:$0xff]   ;;  %v2332_v42 = vsel %vm12403_vm0, %v9306_v8, 0 }
 0x378   : > { %v1671_v35 = vpop.xlane.xlu0 %1670  ;;  %v1673_v48 = vpop.xlane.xlu1 %1672  ;;  %v9308_v30 = vld [vmem:[#allocation2 + $0x70] sm:$0xff]   ;;  %6724 = vmatpush3.bf16.xpose.msra.mxu1 %v2332_v42 }
 0x379   : > { %v1697_v5 = vmul.f32 0.0078125, %v1671_v35  ;;  %v1727_v49 = vmul.f32 %v9250_v10, %v9250_v10  ;;  %v1698_v46 = vmul.f32 0.0078125, %v1673_v48  ;;  %v1728_v50 = vmul.f32 %v9252_v38, %v9252_v38  ;;  %7284 = vmatprep.subr.msk.bf16.mxu1 %vm12403_vm0, %v9308_v30  ;;  %v9316_v61 = vld [vmem:[#allocation2 + $0x30] sm:$0xff]   ;;  %v9320_v35 = vld [vmem:[#allocation2 + $0x68] sm:$0xff]  }
 0x37a   : > { %v9324_v48 = vld [vmem:[#allocation2 + $0x28] sm:$0xff]  }
 0x37b   : > { %1745 = vadd.xlane.f32.xlu1 %v1726_v44  ;;  %1747 = vadd.xlane.f32.xlu0 %v1727_v49  ;;  %v9258_v55 = vsub.f32 %v1648_v25, %v1697_v5  ;;  %v9260_v18 = vsub.f32 %v1649_v17, %v1698_v46  ;;  %v7569_v17 = vld [vmem:[#allocation7 + $0x28] sm:$0xff]   ;;  %v2329_v44 = vsel %vm12403_vm0, %v9316_v61, 0  ;;  %v2326_v5 = vsel %vm12403_vm0, %v9324_v48, 0  ;;  %v9328_v49 = vld [vmem:[#allocation2 + $0x60] sm:$0xff]  }
 0x37c   : > { %v1675_v21 = vpop.xlane.xlu0 %1674  ;;  %v1677_v9 = vpop.xlane.xlu1 %1676  ;;  %7191 = vmatprep.subr.bf16.mxu0 %v7569_v17  ;;  %v9332_v46 = vld [vmem:[#allocation2 + $0x20] sm:$0xff]  }
 0x37d   : > { %v1699_v27 = vmul.f32 0.0078125, %v1675_v21  ;;  %v1729_v53 = vmul.f32 %v9258_v55, %v9258_v55  ;;  %v1700_v22 = vmul.f32 0.0078125, %v1677_v9  ;;  %v1730_v15 = vmul.f32 %v9260_v18, %v9260_v18  ;;  %7192 = vmatpush3.bf16.msra.mxu0 %v7569_v17  ;;  %v9336_v21 = vld [vmem:[#allocation2 + $0x58] sm:$0xff]  }
 0x37e   : > { %7193 = vmatprep.subr.bf16.mxu0 %v7570_v2  ;;  %v9340_v9 = vld [vmem:[#allocation2 + $0x18] sm:$0xff]  }
 0x37f   : > { %1749 = vadd.xlane.f32.xlu1 %v1728_v50  ;;  %1751 = vadd.xlane.f32.xlu0 %v1729_v53  ;;  %v9266_v40 = vsub.f32 %v1650_v52, %v1699_v27  ;;  %v9268_v12 = vsub.f32 %v1651_v11, %v1700_v22  ;;  %v2323_v50 = vsel %vm12403_vm0, %v9332_v46, 0  ;;  %v2320_v27 = vsel %vm12403_vm0, %v9340_v9, 0  ;;  %v9344_v53 = vld [vmem:[#allocation2 + $0x50] sm:$0xff]  }
 0x380   : > { %v1679_v58 = vpop.xlane.xlu0 %1678  ;;  %v1681_v45 = vpop.xlane.xlu1 %1680  ;;  %6726 = vmatpush3.bf16.xpose.msra.mxu1 %v2329_v44  ;;  %v9348_v22 = vld [vmem:[#allocation2 + $0x10] sm:$0xff]  }
 0x381   : > { %v1701_v23 = vmul.f32 0.0078125, %v1679_v58  ;;  %v1731_v39 = vmul.f32 %v9266_v40, %v9266_v40  ;;  %v1702_v43 = vmul.f32 0.0078125, %v1681_v45  ;;  %v1732_v59 = vmul.f32 %v9268_v12, %v9268_v12  ;;  %7194 = vmatpush3.bf16.msra.mxu0 %v7570_v2  ;;  %7285 = vmatprep.subr.msk.bf16.mxu1 %vm12403_vm0, %v9320_v35  ;;  %v7588_v58 = vld [vmem:[#allocation2 + $0x8] sm:$0xff]  }
 0x382   : > { %7195 = vmatprep.subr.bf16.mxu0 %v7571_v6  ;;  %v2317_v54 = vsel %vm12403_vm0, %v9348_v22, 0  ;;  %v2314_v45 = vsel %vm12403_vm0, %v7588_v58, 0 }
 0x383   : > { %1753 = vadd.xlane.f32.xlu1 %v1730_v15  ;;  %1755 = vadd.xlane.f32.xlu0 %v1731_v39  ;;  %v9275_v29 = vsub.f32 %v9211_v14, %v1701_v23  ;;  %v9278_v62 = vsub.f32 %v9214_v47, %v1702_v43  ;;  %v7587_v15 = vld [vmem:[#allocation2 + $0x48] sm:$0xff]  }
 0x384   : > { %v1683_v20 = vpop.xlane.xlu0 %1682  ;;  %v1685_v3 = vpop.xlane.xlu1 %1684 }
 0x385   : > { %v1703_v4 = vmul.f32 0.0078125, %v1683_v20  ;;  %v1733_v63 = vmul.f32 %v9275_v29, %v9275_v29  ;;  %v1704_v25 = vmul.f32 0.0078125, %v1685_v3  ;;  %v1734_v52 = vmul.f32 %v9278_v62, %v9278_v62  ;;  %7196 = vmatpush3.bf16.msra.mxu0 %v7571_v6 }
 0x386   : > { %7197 = vmatprep.subr.bf16.mxu0 %v7572_v33 }
 0x387   : > { %1757 = vadd.xlane.f32.xlu1 %v1732_v59  ;;  %1759 = vadd.xlane.f32.xlu0 %v1733_v63  ;;  %v9285_v11 = vsub.f32 %v9217_v31, %v1703_v4  ;;  %v9288_v14 = vsub.f32 %v9220_v7, %v1704_v25  ;;  %v1836_v4 = vlaneseq }
 0x388   : > { %v1687_v47 = vpop.xlane.xlu0 %1686  ;;  %v1689_v57 = vpop.xlane.xlu1 %1688  ;;  %6728 = vmatpush3.bf16.xpose.msra.mxu1 %v2326_v5 }
 0x389   : > { %v1705_v51 = vmul.f32 0.0078125, %v1687_v47  ;;  %v1735_v41 = vmul.f32 %v9285_v11, %v9285_v11  ;;  %v1706_v34 = vmul.f32 0.0078125, %v1689_v57  ;;  %v1736_v28 = vmul.f32 %v9288_v14, %v9288_v14  ;;  %7198 = vmatpush3.bf16.msra.mxu0 %v7572_v33  ;;  %7286 = vmatprep.subr.msk.bf16.mxu1 %vm12403_vm0, %v9328_v49 }
 0x38b   : > { %1761 = vadd.xlane.f32.xlu1 %v1734_v52  ;;  %1763 = vadd.xlane.f32.xlu0 %v1735_v41  ;;  %v9295_v31 = vsub.f32 %v9225_v26, %v1705_v51  ;;  %v9298_v7 = vsub.f32 %v9228_v60, %v1706_v34  ;;  %v7573_v26 = vld [vmem:[#allocation7 + $0x8] sm:$0xff]   ;;  %v7574_v60 = vld [vmem:[#allocation7] sm:$0xff]   ;;  %v9355_v51 = vshrl.u32 %v1836_v4, 7 }
 0x38c   : > { %7199 = vmatprep.subr.bf16.mxu0 %v7573_v26 }
 0x38d   : > { %v1737_v37 = vmul.f32 %v9295_v31, %v9295_v31  ;;  %v1738_v16 = vmul.f32 %v9298_v7, %v9298_v7  ;;  %7200 = vmatpush3.bf16.msra.mxu0 %v7573_v26  ;;  %12545 = vst [vmem:[#allocation26_spill] sm:$0xff] %v9355_v51 }
 0x38e   : > { %7201 = vmatprep.subr.bf16.mxu0 %v7574_v60 }
 0x38f   : > { %1765 = vadd.xlane.f32.xlu1 %v1736_v28  ;;  %1767 = vadd.xlane.f32.xlu0 %v1737_v37 }
 0x390   : > { %6730 = vmatpush3.bf16.xpose.msra.mxu1 %v2323_v50 }
 0x391   : > { %7202 = vmatpush3.bf16.msra.mxu0 %v7574_v60  ;;  %7287 = vmatprep.subr.msk.bf16.mxu1 %vm12403_vm0, %v9336_v21 }
 0x393   : > { %1769 = vadd.xlane.f32.xlu1 %v1738_v16  ;;  %v9358_v16 = vsub.s32 0, %v9355_v51 }
 0x395   : > { %12546 = vst [vmem:[#allocation27_spill] sm:$0xff] %v9358_v16 }
 0x398   : > { %6732 = vmatpush3.bf16.xpose.msra.mxu1 %v2320_v27  ;;  %v9362_v27 = vrot.slane %v8778_v0, %v9358_v16 }
 0x399   : > { %7288 = vmatprep.subr.msk.bf16.mxu1 %vm12403_vm0, %v9344_v53 }
 0x3a0   : > { %6734 = vmatpush3.bf16.xpose.msra.mxu1 %v2317_v54 }
 0x3a1   : > { %7289 = vmatprep.subr.msk.bf16.mxu1 %vm12403_vm0, %v7587_v15 }
 0x3a4   : > { %3014 = vrot.lane.b32.xlu1 %v9304_v24, %s8458_s11 }
 0x3a5   : > { %2998 = vrot.lane.b32.xlu0 %v9306_v8, %s8458_s11 }
 0x3a8   : > { %6736 = vmatpush3.bf16.xpose.msra.mxu1 %v2314_v45  ;;  %3012 = vrot.lane.b32.xlu1 %v9308_v30, %s8458_s11 }
 0x3a9   : > { %2996 = vrot.lane.b32.xlu0 %v9316_v61, %s8458_s11 }
 0x3ac   : > { %3010 = vrot.lane.b32.xlu1 %v9320_v35, %s8458_s11 }
 0x3ad   : > { %2994 = vrot.lane.b32.xlu0 %v9324_v48, %s8458_s11 }
 0x3b0   : > { %3008 = vrot.lane.b32.xlu1 %v9328_v49, %s8458_s11 }
 0x3b1   : > { %2992 = vrot.lane.b32.xlu0 %v9332_v46, %s8458_s11 }
 0x3fc   : > { %v1740_v23 = vpop.xlane.xlu0 %1739 }
 0x3fd   : > { %v1771_v39 = vmul.f32 0.0078125, %v1740_v23 }
 0x3ff   : > { %v1787_v43 = vadd.f32 1e-05, %v1771_v39 }
 0x400   : > { %v1742_v56 = vpop.xlane.xlu1 %1741  ;;  %v1744_v59 = vpop.xlane.xlu0 %1743 }
 0x401   : > { %7655 = vrsqrt.f32 %v1787_v43  ;;  %v1772_v20 = vmul.f32 0.0078125, %v1742_v56  ;;  %v1773_v3 = vmul.f32 0.0078125, %v1744_v59 }
 0x403   : > { %v1788_v63 = vadd.f32 1e-05, %v1772_v20  ;;  %v1789_v25 = vadd.f32 1e-05, %v1773_v3  ;;  %v9368_v20 = vrot.slane %v8783_v1, %v9358_v16 }
 0x404   : > { %v1746_v17 = vpop.xlane.xlu1 %1745  ;;  %v1748_v52 = vpop.xlane.xlu0 %1747 }
 0x405   : > { %7657 = vrsqrt.f32 %v1788_v63  ;;  %v1774_v47 = vmul.f32 0.0078125, %v1746_v17  ;;  %v1775_v57 = vmul.f32 0.0078125, %v1748_v52 }
 0x406   : > { %7659 = vrsqrt.f32 %v1789_v25 }
 0x407   : > { %v1790_v41 = vadd.f32 1e-05, %v1774_v47  ;;  %v1791_v34 = vadd.f32 1e-05, %v1775_v57 }
 0x408   : > { %v1750_v2 = vpop.xlane.xlu1 %1749  ;;  %v1752_v28 = vpop.xlane.xlu0 %1751 }
 0x409   : > { %7661 = vrsqrt.f32 %v1790_v41  ;;  %v1776_v37 = vmul.f32 0.0078125, %v1750_v2  ;;  %v1777_v6 = vmul.f32 0.0078125, %v1752_v28 }
 0x40a   : > { %7663 = vrsqrt.f32 %v1791_v34 }
 0x40b   : > { %v1792_v33 = vadd.f32 1e-05, %v1776_v37  ;;  %v1793_v26 = vadd.f32 1e-05, %v1777_v6 }
 0x40c   : > { %v1754_v60 = vpop.xlane.xlu1 %1753  ;;  %v1756_v42 = vpop.xlane.xlu0 %1755 }
 0x40d   : > { %7665 = vrsqrt.f32 %v1792_v33  ;;  %v1778_v44 = vmul.f32 0.0078125, %v1754_v60  ;;  %v1779_v5 = vmul.f32 0.0078125, %v1756_v42 }
 0x40e   : > { %v7656_v50 = vpop.eup %7655  ;;  %7667 = vrsqrt.f32 %v1793_v26 }
 0x40f   : > { %v1794_v54 = vadd.f32 1e-05, %v1778_v44  ;;  %v1795_v15 = vadd.f32 1e-05, %v1779_v5  ;;  %v1819_v58 = vmul.f32 %v7656_v50, %v9234_v32 }
 0x410   : > { %v1758_v45 = vpop.xlane.xlu1 %1757  ;;  %v1760_v23 = vpop.xlane.xlu0 %1759 }
 0x411   : > { %7669 = vrsqrt.f32 %v1794_v54  ;;  %v1780_v39 = vmul.f32 0.0078125, %v1758_v45  ;;  %v1781_v43 = vmul.f32 0.0078125, %v1760_v23  ;;  %v1841_v59 = vmul.f32 %v9362_v27, %v1819_v58 }
 0x412   : > { %v7658_v56 = vpop.eup %7657  ;;  %7671 = vrsqrt.f32 %v1795_v15 }
 0x413   : > { %v7660_v3 = vpop.eup %7659  ;;  %v1796_v0 = vadd.f32 1e-05, %v1780_v39  ;;  %v1797_v63 = vadd.f32 1e-05, %v1781_v43  ;;  %v1820_v25 = vmul.f32 %v7658_v56, %v9242_v19  ;;  %v1863_v2 = vadd.f32 %v9368_v20, %v1841_v59 }
 0x414   : > { %v1762_v17 = vpop.xlane.xlu1 %1761  ;;  %v1764_v32 = vpop.xlane.xlu0 %1763  ;;  %v1821_v52 = vmul.f32 %v7660_v3, %v9236_v36 }
 0x415   : > { %7673 = vrsqrt.f32 %v1796_v0  ;;  %v1782_v47 = vmul.f32 0.0078125, %v1762_v17  ;;  %v1783_v57 = vmul.f32 0.0078125, %v1764_v32  ;;  %v1842_v41 = vmul.f32 %v9362_v27, %v1820_v25 }
 0x416   : > { %v7662_v34 = vpop.eup %7661  ;;  %7675 = vrsqrt.f32 %v1797_v63  ;;  %v1843_v36 = vmul.f32 %v9362_v27, %v1821_v52 }
 0x417   : > { %v7664_v1 = vpop.eup %7663  ;;  %v1798_v28 = vadd.f32 1e-05, %v1782_v47  ;;  %v1799_v37 = vadd.f32 1e-05, %v1783_v57  ;;  %v1864_v6 = vadd.f32 %v9368_v20, %v1842_v41  ;;  %v1822_v19 = vmul.f32 %v7662_v34, %v9244_v13 }
 0x418   : > { %v1766_v33 = vpop.xlane.xlu1 %1765  ;;  %v1768_v26 = vpop.xlane.xlu0 %1767  ;;  %v1823_v60 = vmul.f32 %v7664_v1, %v9250_v10  ;;  %v1865_v43 = vadd.f32 %v9368_v20, %v1843_v36 }
 0x419   : > { %7677 = vrsqrt.f32 %v1798_v28  ;;  %v1784_v42 = vmul.f32 0.0078125, %v1766_v33  ;;  %v1785_v44 = vmul.f32 0.0078125, %v1768_v26  ;;  %v1879_v5 = vpack.c.bf16 %v1864_v6, %v1863_v2 }
 0x41a   : > { %v7666_v50 = vpop.eup %7665  ;;  %7679 = vrsqrt.f32 %v1799_v37  ;;  %v1844_v54 = vmul.f32 %v9362_v27, %v1822_v19  ;;  %v1845_v15 = vmul.f32 %v9362_v27, %v1823_v60 }
 0x41b   : > { %v7668_v58 = vpop.eup %7667  ;;  %v1800_v45 = vadd.f32 1e-05, %v1784_v42  ;;  %v1801_v23 = vadd.f32 1e-05, %v1785_v44  ;;  %7203 = vmatprep.mubr.bf16.mxu0 %v1879_v5  ;;  %v1824_v13 = vmul.f32 %v7666_v50, %v9252_v38 }
 0x41c   : > { %v1770_v39 = vpop.xlane.xlu1 %1769  ;;  %v1866_v10 = vadd.f32 %v9368_v20, %v1844_v54  ;;  %v1825_v56 = vmul.f32 %v7668_v58, %v9258_v55  ;;  %v1867_v25 = vadd.f32 %v9368_v20, %v1845_v15 }
 0x41d   : > { %7681 = vrsqrt.f32 %v1800_v45  ;;  %v1786_v59 = vmul.f32 0.0078125, %v1770_v39  ;;  %v1846_v3 = vmul.f32 %v9362_v27, %v1824_v13 }
 0x41e   : > { %v7670_v0 = vpop.eup %7669  ;;  %7683 = vrsqrt.f32 %v1801_v23  ;;  %v1880_v63 = vpack.c.bf16 %v1866_v10, %v1865_v43  ;;  %v1847_v47 = vmul.f32 %v9362_v27, %v1825_v56 }
 0x41f   : > { %v7672_v17 = vpop.eup %7671  ;;  %v1802_v32 = vadd.f32 1e-05, %v1786_v59  ;;  %v1868_v38 = vadd.f32 %v9368_v20, %v1846_v3  ;;  %v1826_v52 = vmul.f32 %v7670_v0, %v9260_v18 }
 0x420   : > { %7204 = vmatmul.mubr.bf16.vlgmr.msra.gmra.mxu0 %v1880_v63  ;;  %v1827_v55 = vmul.f32 %v7672_v17, %v9266_v40  ;;  %v1869_v1 = vadd.f32 %v9368_v20, %v1847_v47  ;;  %v9418_v17 = vld [vmem:[#allocation2] sm:$0xff]  }
 0x421   : > { %7685 = vrsqrt.f32 %v1802_v32  ;;  %v1881_v57 = vpack.c.bf16 %v1868_v38, %v1867_v25  ;;  %v1848_v41 = vmul.f32 %v9362_v27, %v1826_v52  ;;  %v9416_v25 = vld [vmem:[#allocation2 + $0x40] sm:$0xff]  }
 0x422   : > { %v7674_v34 = vpop.eup %7673  ;;  %v1849_v18 = vmul.f32 %v9362_v27, %v1827_v55  ;;  %7290 = vmatprep.subr.msk.bf16.mxu1 %vm12403_vm0, %v9416_v25 }
 0x423   : > { %v7676_v2 = vpop.eup %7675  ;;  %7207 = vmatprep.mubr.bf16.mxu0 %v1881_v57  ;;  %v1870_v28 = vadd.f32 %v9368_v20, %v1848_v41  ;;  %v1828_v37 = vmul.f32 %v7674_v34, %v9268_v12 }
 0x424   : > { %v1829_v6 = vmul.f32 %v7676_v2, %v9275_v29  ;;  %v1871_v36 = vadd.f32 %v9368_v20, %v1849_v18 }
 0x425   : > { %v1882_v19 = vpack.c.bf16 %v1870_v28, %v1869_v1  ;;  %v1850_v40 = vmul.f32 %v9362_v27, %v1828_v37 }
 0x426   : > { %v7678_v33 = vpop.eup %7677  ;;  %v1851_v44 = vmul.f32 %v9362_v27, %v1829_v6 }
 0x427   : > { %v7680_v26 = vpop.eup %7679  ;;  %v1872_v60 = vadd.f32 %v9368_v20, %v1850_v40  ;;  %v1830_v42 = vmul.f32 %v7678_v33, %v9278_v62 }
 0x428   : > { %7208 = vmatmul.mubr.bf16.gmra.mxu0 %v1882_v19  ;;  %v1831_v12 = vmul.f32 %v7680_v26, %v9285_v11  ;;  %v1873_v15 = vadd.f32 %v9368_v20, %v1851_v44 }
 0x429   : > { %v1883_v5 = vpack.c.bf16 %v1872_v60, %v1871_v36  ;;  %v1852_v50 = vmul.f32 %v9362_v27, %v1830_v42 }
 0x42a   : > { %v7682_v29 = vpop.eup %7681  ;;  %v1853_v23 = vmul.f32 %v9362_v27, %v1831_v12 }
 0x42b   : > { %v7684_v54 = vpop.eup %7683  ;;  %7211 = vmatprep.mubr.bf16.mxu0 %v1883_v5  ;;  %v1874_v58 = vadd.f32 %v9368_v20, %v1852_v50  ;;  %v1832_v45 = vmul.f32 %v7682_v29, %v9288_v14 }
 0x42c   : > { %v1833_v62 = vmul.f32 %v7684_v54, %v9295_v31  ;;  %v1875_v43 = vadd.f32 %v9368_v20, %v1853_v23  ;;  %v7591_v23 = vld [vmem:[#allocation3 + $0x78] sm:$0xff]  }
 0x42d   : > { %v1884_v13 = vpack.c.bf16 %v1874_v58, %v1873_v15  ;;  %v1854_v39 = vmul.f32 %v9362_v27, %v1832_v45  ;;  %6755 = vmatprep.subr.bf16.mxu0 %v7591_v23 }
 0x42e   : > { %v7686_v11 = vpop.eup %7685  ;;  %v1855_v59 = vmul.f32 %v9362_v27, %v1833_v62  ;;  %v7592_v62 = vld [vmem:[#allocation3 + $0x38] sm:$0xff]  }
 0x42f   : > { %v1876_v10 = vadd.f32 %v9368_v20, %v1854_v39  ;;  %v1834_v56 = vmul.f32 %v7686_v11, %v9298_v7  ;;  %v2311_v7 = vsel %vm12403_vm0, %v9418_v17, 0  ;;  %6756 = vmatpush3.bf16.msra.mxu0 %v7592_v62  ;;  %v7594_v39 = vld [vmem:[#allocation3 + $0x30] sm:$0xff]   ;;  %v7595_v11 = vld [vmem:[#allocation3 + $0x68] sm:$0xff]   ;;  %v2143_v62 = vadd.s32 48, %v9355_v51 }
 0x430   : > { %7212 = vmatmul.mubr.bf16.gmra.mxu0 %v1884_v13  ;;  %v1877_v0 = vadd.f32 %v9368_v20, %v1855_v59  ;;  %6738 = vmatpush3.bf16.xpose.msra.mxu1 %v2311_v7  ;;  %v7593_v13 = vld [vmem:[#allocation3 + $0x70] sm:$0xff]   ;;  %v7599_v59 = vld [vmem:[#allocation3 + $0x58] sm:$0xff]   ;;  %v7605_v7 = vld [vmem:[#allocation3 + $0x40] sm:$0xff]  }
 0x431   : > { %v1885_v3 = vpack.c.bf16 %v1876_v10, %v1875_v43  ;;  %v1856_v14 = vmul.f32 %v9362_v27, %v1834_v56  ;;  %6757 = vmatprep.subr.bf16.mxu0 %v7593_v13  ;;  %v7596_v43 = vld [vmem:[#allocation3 + $0x28] sm:$0xff]   ;;  %v7597_v10 = vld [vmem:[#allocation3 + $0x60] sm:$0xff]  }
 0x432   : > { %v7598_v56 = vld [vmem:[#allocation3 + $0x20] sm:$0xff]  }
 0x433   : > { %7215 = vmatprep.mubr.bf16.mxu0 %v1885_v3  ;;  %v1878_v31 = vadd.f32 %v9368_v20, %v1856_v14  ;;  %6758 = vmatpush3.bf16.msra.mxu0 %v7594_v39  ;;  %v7600_v3 = vld [vmem:[#allocation3 + $0x18] sm:$0xff]   ;;  %v7601_v14 = vld [vmem:[#allocation3 + $0x50] sm:$0xff]  }
 0x434   : > { %6759 = vmatprep.subr.bf16.mxu0 %v7595_v11 }
 0x435   : > { %v1886_v63 = vpack.c.bf16 %v1878_v31, %v1877_v0  ;;  %v7602_v0 = vld [vmem:[#allocation3 + $0x10] sm:$0xff]   ;;  %v7603_v31 = vld [vmem:[#allocation3 + $0x48] sm:$0xff]  }
 0x437   : > { %6760 = vmatpush3.bf16.msra.mxu0 %v7596_v43 }
 0x438   : > { %7216 = vmatmul.mubr.bf16.gmra.mxu0 %v1886_v63  ;;  %6761 = vmatprep.subr.bf16.mxu0 %v7597_v10  ;;  %v7604_v63 = vld [vmem:[#allocation3 + $0x8] sm:$0xff]  }
 0x43b   : > { %6762 = vmatpush3.bf16.msra.mxu0 %v7598_v56 }
 0x43c   : > { %6763 = vmatprep.subr.bf16.mxu0 %v7599_v59 }
 0x43f   : > { %6764 = vmatpush3.bf16.msra.mxu0 %v7600_v3 }
 0x440   : > { %6765 = vmatprep.subr.bf16.mxu0 %v7601_v14 }
 0x443   : > { %6766 = vmatpush3.bf16.msra.mxu0 %v7602_v0  ;;  %v2144_v0 = vadd.s32 56, %v9355_v51 }
 0x444   : > { %6767 = vmatprep.subr.bf16.mxu0 %v7603_v31 }
 0x447   : > { %6768 = vmatpush3.bf16.msra.mxu0 %v7604_v63 }
 0x448   : > { %6769 = vmatprep.subr.bf16.mxu0 %v7605_v7 }
 0x4e0   : > { %v7205_v24 = vpop.f32.mrf.mxu0 }
 0x4e1   : > { %v2050_v52 = vmul.f32 0.088388346, %v7205_v24  ;;  %v7606_v24 = vld [vmem:[#allocation3] sm:$0xff]  }
 0x4e2   : > { %v1985_v8 = vpop.f32.mrf.mxu0  ;;  %6770 = vmatpush3.bf16.msra.mxu0 %v7606_v24 }
 0x4e3   : > { %v2048_v30 = vmul.f32 0.088388346, %v1985_v8  ;;  %v3015_v8 = vpop.permute.xlu1 %3014 }
 0x4e4   : > { %v7206_v27 = vpop.f32.mrf.mxu0  ;;  %7291 = vmatprep.subr.msk.bf16.mxu0 %vm12403_vm0, %v3015_v8 }
 0x4e5   : > { %v2051_v32 = vmul.f32 0.088388346, %v7206_v27  ;;  %v9490_v27 = vand.u32 127, %v1836_v4 }
 0x4e6   : > { %v1988_v20 = vpop.f32.mrf.mxu0 }
 0x4e7   : > { %v2049_v38 = vmul.f32 0.088388346, %v1988_v20  ;;  %v9442_v55 = vpack.c.bf16 %v2051_v32, %v2050_v52  ;;  %12547 = vst [vmem:[#allocation28_spill] sm:$0xff] %v9490_v27  ;;  %v9494_v20 = vstv %s6329_s12  ;;  %v9501_v32 = vadd.s32 128, %v9490_v27 }
 0x4e8   : > { %v7209_v61 = vpop.f32.mrf.mxu0  ;;  %v2139_v52 = vadd.s32 16, %v9355_v51  ;;  %v9603_v59 = vadd.s32 %v9494_v20, %v2143_v62 }
 0x4e9   : > { %v9440_v47 = vpack.c.bf16 %v2049_v38, %v2048_v30  ;;  %v2054_v37 = vmul.f32 0.088388346, %v7209_v61  ;;  %v9498_v30 = vadd.s32 %v9494_v20, %v9355_v51  ;;  %12549 = vst [vmem:[#allocation30_spill] sm:$0xff] %v9501_v32  ;;  %v2138_v38 = vadd.s32 8, %v9355_v51 }
 0x4ea   : > { %v2001_v35 = vpop.f32.mrf.mxu0  ;;  %12555 = vst [vmem:[#allocation36_spill] sm:$0xff] %v9603_v59  ;;  %vm12340_vm13 = vcmp.ge.s32.totalorder %v9603_v59, %v9490_v27  ;;  %vm12339_vm14 = vcmp.ge.s32.totalorder %v9603_v59, %v9501_v32 }
 0x4eb   : > { %6739 = vmatprep.mubr.msk.bf16.mxu1 %vm12403_vm0, %v9440_v47  ;;  %v2052_v41 = vmul.f32 0.088388346, %v2001_v35  ;;  %12548 = vst [vmem:[#allocation29_spill] sm:$0xff] %v9498_v30  ;;  %vm2173_vm1 = vcmp.ge.s32.totalorder %v9498_v30, %v9490_v27  ;;  %vm2174_vm2 = vcmp.ge.s32.totalorder %v9498_v30, %v9501_v32  ;;  %v9509_v4 = vadd.s32 %v9494_v20, %v2138_v38 }
 0x4ec   : > { %v7210_v48 = vpop.f32.mrf.mxu0  ;;  %6740 = vmatmul.mubr.msk.bf16.vlgmr.msra.gmra.mxu1 %vm12403_vm0, %v9440_v47  ;;  %v9629_v38 = vadd.s32 %v9494_v20, %v2144_v0  ;;  %v2148_v0 = vadd.s32 88, %v9355_v51 }
 0x4ed   : > { %6741 = vmatprep.mubr.msk.bf16.mxu1 %vm12403_vm0, %v9442_v55  ;;  %v2055_v1 = vmul.f32 0.088388346, %v7210_v48  ;;  %12550 = vst [vmem:[#allocation31_spill] sm:$0xff] %v9509_v4  ;;  %vm2175_vm3 = vcmp.ge.s32.totalorder %v9509_v4, %v9490_v27  ;;  %vm2176_vm4 = vcmp.ge.s32.totalorder %v9509_v4, %v9501_v32 }
 0x4ee   : > { %v2004_v49 = vpop.f32.mrf.mxu0  ;;  %12556 = vst [vmem:[#allocation37_spill] sm:$0xff] %v9629_v38  ;;  %vm12342_vm15 = vcmp.ge.s32.totalorder %v9629_v38, %v9490_v27 }
 0x4ef   : > { %v2053_v46 = vmul.f32 0.088388346, %v2004_v49  ;;  %v9456_v18 = vpack.c.bf16 %v2055_v1, %v2054_v37 }
 0x4f0   : > { %v7213_v57 = vpop.f32.mrf.mxu0 }
 0x4f1   : > { %v9450_v34 = vpack.c.bf16 %v2053_v46, %v2052_v41  ;;  %v2058_v44 = vmul.f32 0.088388346, %v7213_v57  ;;  %v2140_v46 = vadd.s32 24, %v9355_v51 }
 0x4f2   : > { %v2017_v2 = vpop.f32.mrf.mxu0 }
 0x4f3   : > { %v2056_v33 = vmul.f32 0.088388346, %v2017_v2  ;;  %v9530_v2 = vadd.s32 %v9494_v20, %v2139_v52 }
 0x4f4   : > { %6742 = vmatmul.mubr.msk.bf16.gmra.mxu1 %vm12403_vm0, %v9442_v55  ;;  %v7214_v28 = vpop.f32.mrf.mxu0 }
 0x4f5   : > { %6743 = vmatprep.mubr.msk.bf16.mxu1 %vm12403_vm0, %v9450_v34  ;;  %v2059_v60 = vmul.f32 0.088388346, %v7214_v28  ;;  %12551 = vst [vmem:[#allocation32_spill] sm:$0xff] %v9530_v2  ;;  %vm2177_vm5 = vcmp.ge.s32.totalorder %v9530_v2, %v9490_v27  ;;  %vm2178_vm6 = vcmp.ge.s32.totalorder %v9530_v2, %v9501_v32 }
 0x4f6   : > { %v2020_v6 = vpop.f32.mrf.mxu0 }
 0x4f7   : > { %v2057_v19 = vmul.f32 0.088388346, %v2020_v6  ;;  %v9468_v12 = vpack.c.bf16 %v2059_v60, %v2058_v44  ;;  %v9543_v6 = vadd.s32 %v9494_v20, %v2140_v46 }
 0x4f8   : > { %v7217_v40 = vpop.f32.mrf.mxu0 }
 0x4f9   : > { %v9462_v26 = vpack.c.bf16 %v2057_v19, %v2056_v33  ;;  %v2062_v58 = vmul.f32 0.088388346, %v7217_v40  ;;  %12552 = vst [vmem:[#allocation33_spill] sm:$0xff] %v9543_v6  ;;  %v2141_v33 = vadd.s32 32, %v9355_v51  ;;  %vm2179_vm7 = vcmp.ge.s32.totalorder %v9543_v6, %v9490_v27 }
 0x4fa   : > { %v2033_v36 = vpop.f32.mrf.mxu0  ;;  %vm2180_vm8 = vcmp.ge.s32.totalorder %v9543_v6, %v9501_v32 }
 0x4fb   : > { %v2060_v29 = vmul.f32 0.088388346, %v2033_v36 }
 0x4fc   : > { %6744 = vmatmul.mubr.msk.bf16.gmra.mxu1 %vm12403_vm0, %v9450_v34  ;;  %v7218_v42 = vpop.f32.mrf.mxu0 }
 0x4fd   : > { %6745 = vmatprep.mubr.msk.bf16.mxu1 %vm12403_vm0, %v9456_v18  ;;  %v2063_v15 = vmul.f32 0.088388346, %v7218_v42 }
 0x4fe   : > { %v2036_v5 = vpop.f32.mrf.mxu0 }
 0x4ff   : > { %v2061_v50 = vmul.f32 0.088388346, %v2036_v5  ;;  %v9480_v45 = vpack.c.bf16 %v2063_v15, %v2062_v58 }
 0x501   : > { %v9474_v54 = vpack.c.bf16 %v2061_v50, %v2060_v29  ;;  %v9569_v50 = vadd.s32 %v9494_v20, %v2141_v33  ;;  %v2142_v29 = vadd.s32 40, %v9355_v51 }
 0x503   : > { %12553 = vst [vmem:[#allocation34_spill] sm:$0xff] %v9569_v50  ;;  %vm2181_vm9 = vcmp.ge.s32.totalorder %v9569_v50, %v9490_v27  ;;  %vm12404_vm10 = vcmp.ge.s32.totalorder %v9569_v50, %v9501_v32  ;;  %v9590_v11 = vadd.s32 %v9494_v20, %v2142_v29 }
 0x504   : > { %6746 = vmatmul.mubr.msk.bf16.gmra.mxu1 %vm12403_vm0, %v9456_v18 }
 0x505   : > { %6747 = vmatprep.mubr.msk.bf16.mxu1 %vm12403_vm0, %v9462_v26  ;;  %12554 = vst [vmem:[#allocation35_spill] sm:$0xff] %v9590_v11  ;;  %vm12405_vm11 = vcmp.ge.s32.totalorder %v9590_v11, %v9490_v27  ;;  %vm12338_vm12 = vcmp.ge.s32.totalorder %v9590_v11, %v9501_v32 }
 0x50c   : > { %6748 = vmatmul.mubr.msk.bf16.gmra.mxu1 %vm12403_vm0, %v9462_v26 }
 0x50d   : > { %6749 = vmatprep.mubr.msk.bf16.mxu1 %vm12403_vm0, %v9468_v12 }
 0x514   : > { %6750 = vmatmul.mubr.msk.bf16.gmra.mxu1 %vm12403_vm0, %v9468_v12 }
 0x515   : > { %6751 = vmatprep.mubr.msk.bf16.mxu1 %vm12403_vm0, %v9474_v54 }
 0x51c   : > { %6752 = vmatmul.mubr.msk.bf16.gmra.mxu1 %vm12403_vm0, %v9474_v54 }
 0x51d   : > { %6753 = vmatprep.mubr.msk.bf16.mxu1 %vm12403_vm0, %v9480_v45 }
 0x524   : > { %6754 = vmatmul.mubr.msk.bf16.gmra.mxu1 %vm12403_vm0, %v9480_v45 }
 0x5ac   : > { %v2392_v61 = vpop.f32.mrf.mxu1 }
 0x5ad   : > { %v9515_v48 = vsel %vm2173_vm1, %v2392_v61, -1e+30  ;;  %v2145_v61 = vadd.s32 64, %v9355_v51 }
 0x5ae   : > { %v2394_v35 = vpop.f32.mrf.mxu1 }
 0x5af   : > { %v9520_v49 = vsel %vm2174_vm2, %v2394_v35, -1e+30 }
 0x5b0   : > { %v2396_v57 = vpop.f32.mrf.mxu1  ;;  %v2503_v41 = vmax.f32 %v9515_v48, %v9520_v49 }
 0x5b1   : > { %v9535_v28 = vsel %vm2175_vm3, %v2396_v57, -1e+30  ;;  %v2146_v57 = vadd.s32 72, %v9355_v51 }
 0x5b2   : > { %2504 = vmax.xlane.f32.xlu0 %v2503_v41  ;;  %v2398_v1 = vpop.f32.mrf.mxu1 }
 0x5b3   : > { %v9540_v37 = vsel %vm2176_vm4, %v2398_v1, -1e+30 }
 0x5b4   : > { %v2402_v19 = vpop.f32.mrf.mxu1  ;;  %v2506_v40 = vmax.f32 %v9535_v28, %v9540_v37 }
 0x5b5   : > { %v9555_v60 = vsel %vm2177_vm5, %v2402_v19, -1e+30  ;;  %v9650_v19 = vadd.s32 %v9494_v20, %v2145_v61  ;;  %v2149_v61 = vadd.s32 96, %v9355_v51 }
 0x5b6   : > { %2507 = vmax.xlane.f32.xlu1 %v2506_v40  ;;  %v2404_v36 = vpop.f32.mrf.mxu1 }
 0x5b7   : > { %v9560_v42 = vsel %vm2178_vm6, %v2404_v36, -1e+30  ;;  %12557 = vst [vmem:[#allocation38_spill] sm:$0xff] %v9650_v19 }
 0x5b8   : > { %v2406_v44 = vpop.f32.mrf.mxu1  ;;  %v2509_v5 = vmax.f32 %v9555_v60, %v9560_v42 }
 0x5b9   : > { %v9575_v58 = vsel %vm2179_vm7, %v2406_v44, -1e+30  ;;  %v9663_v44 = vadd.s32 %v9494_v20, %v2146_v57 }
 0x5ba   : > { %2510 = vmax.xlane.f32.xlu0 %v2509_v5  ;;  %v2408_v15 = vpop.f32.mrf.mxu1 }
 0x5bb   : > { %v9580_v23 = vsel %vm2180_vm8, %v2408_v15, -1e+30  ;;  %12558 = vst [vmem:[#allocation39_spill] sm:$0xff] %v9663_v44  ;;  %v2147_v15 = vadd.s32 80, %v9355_v51 }
 0x5bc   : > { %v2412_v13 = vpop.f32.mrf.mxu1  ;;  %v2512_v39 = vmax.f32 %v9575_v58, %v9580_v23 }
 0x5bd   : > { %v9595_v10 = vsel %vm2181_vm9, %v2412_v13, -1e+30 }
 0x5be   : > { %2513 = vmax.xlane.f32.xlu1 %v2512_v39  ;;  %v2414_v43 = vpop.f32.mrf.mxu1 }
 0x5bf   : > { %v9600_v56 = vsel %vm12404_vm10, %v2414_v43, -1e+30 }
 0x5c0   : > { %v2416_v3 = vpop.f32.mrf.mxu1  ;;  %v2515_v14 = vmax.f32 %v9595_v10, %v9600_v56 }
 0x5c1   : > { %v9615_v63 = vsel %vm12405_vm11, %v2416_v3, -1e+30 }
 0x5c2   : > { %2516 = vmax.xlane.f32.xlu0 %v2515_v14  ;;  %v2418_v31 = vpop.f32.mrf.mxu1  ;;  %v9689_v14 = vadd.s32 %v9494_v20, %v2147_v15 }
 0x5c3   : > { %v9620_v7 = vsel %vm12338_vm12, %v2418_v31, -1e+30  ;;  %vm12341_vm12 = vcmp.ge.s32.totalorder %v9629_v38, %v9501_v32 }
 0x5c4   : > { %v2422_v24 = vpop.f32.mrf.mxu1  ;;  %v2518_v8 = vmax.f32 %v9615_v63, %v9620_v7  ;;  %12559 = vst [vmem:[#allocation40_spill] sm:$0xff] %v9689_v14 }
 0x5c5   : > { %v9635_v35 = vsel %vm12340_vm13, %v2422_v24, -1e+30  ;;  %vm12343_vm13 = vcmp.ge.s32.totalorder %v9650_v19, %v9501_v32 }
 0x5c6   : > { %2519 = vmax.xlane.f32.xlu1 %v2518_v8  ;;  %v2424_v52 = vpop.f32.mrf.mxu1 }
 0x5c7   : > { %v9640_v46 = vsel %vm12339_vm14, %v2424_v52, -1e+30  ;;  %vm12344_vm14 = vcmp.ge.s32.totalorder %v9650_v19, %v9490_v27 }
 0x5c8   : > { %v2426_v41 = vpop.f32.mrf.mxu1  ;;  %v2521_v1 = vmax.f32 %v9635_v35, %v9640_v46 }
 0x5c9   : > { %v9655_v33 = vsel %vm12342_vm15, %v2426_v41, -1e+30  ;;  %vm12345_vm15 = vcmp.ge.s32.totalorder %v9663_v44, %v9501_v32  ;;  %v9710_v41 = vadd.s32 %v9494_v20, %v2148_v0 }
 0x5ca   : > { %2522 = vmax.xlane.f32.xlu0 %v2521_v1  ;;  %v2428_v40 = vpop.f32.mrf.mxu1 }
 0x5cb   : > { %v9660_v36 = vsel %vm12341_vm12, %v2428_v40, -1e+30  ;;  %vm12346_vm12 = vcmp.ge.s32.totalorder %v9663_v44, %v9490_v27  ;;  %12560 = vst [vmem:[#allocation41_spill] sm:$0xff] %v9710_v41 }
 0x5cc   : > { %v2432_v5 = vpop.f32.mrf.mxu1  ;;  %v2524_v29 = vmax.f32 %v9655_v33, %v9660_v36 }
 0x5cd   : > { %v9675_v13 = vsel %vm12344_vm14, %v2432_v5, -1e+30  ;;  %vm12347_vm14 = vcmp.ge.s32.totalorder %v9689_v14, %v9501_v32 }
 0x5ce   : > { %2525 = vmax.xlane.f32.xlu1 %v2524_v29  ;;  %v2434_v62 = vpop.f32.mrf.mxu1  ;;  %v9723_v29 = vadd.s32 %v9494_v20, %v2149_v61 }
 0x5cf   : > { %v9680_v39 = vsel %vm12343_vm13, %v2434_v62, -1e+30  ;;  %vm12348_vm13 = vcmp.ge.s32.totalorder %v9689_v14, %v9490_v27 }
 0x5d0   : > { %v2436_v43 = vpop.f32.mrf.mxu1  ;;  %v2527_v3 = vmax.f32 %v9675_v13, %v9680_v39  ;;  %12561 = vst [vmem:[#allocation42_spill] sm:$0xff] %v9723_v29 }
 0x5d1   : > { %v9695_v24 = vsel %vm12346_vm12, %v2436_v43, -1e+30  ;;  %vm12349_vm12 = vcmp.ge.s32.totalorder %v9710_v41, %v9501_v32  ;;  %v2150_v43 = vadd.s32 104, %v9355_v51 }
 0x5d2   : > { %2528 = vmax.xlane.f32.xlu0 %v2527_v3  ;;  %v2438_v31 = vpop.f32.mrf.mxu1 }
 0x5d3   : > { %v9700_v8 = vsel %vm12345_vm15, %v2438_v31, -1e+30  ;;  %vm12351_vm15 = vcmp.ge.s32.totalorder %v9710_v41, %v9490_v27 }
 0x5d4   : > { %v2442_v52 = vpop.f32.mrf.mxu1  ;;  %v2530_v57 = vmax.f32 %v9695_v24, %v9700_v8 }
 0x5d5   : > { %v9715_v40 = vsel %vm12348_vm13, %v2442_v52, -1e+30  ;;  %vm12354_vm13 = vcmp.ge.s32.totalorder %v9723_v29, %v9501_v32 }
 0x5d6   : > { %2531 = vmax.xlane.f32.xlu1 %v2530_v57  ;;  %v2444_v1 = vpop.f32.mrf.mxu1  ;;  %v9749_v57 = vadd.s32 %v9494_v20, %v2150_v43 }
 0x5d7   : > { %v9720_v5 = vsel %vm12347_vm14, %v2444_v1, -1e+30  ;;  %vm12357_vm14 = vcmp.ge.s32.totalorder %v9723_v29, %v9490_v27  ;;  %v2151_v1 = vadd.s32 112, %v9355_v51 }
 0x5d8   : > { %v2446_v15 = vpop.f32.mrf.mxu1  ;;  %v2533_v62 = vmax.f32 %v9715_v40, %v9720_v5  ;;  %12562 = vst [vmem:[#allocation43_spill] sm:$0xff] %v9749_v57 }
 0x5d9   : > { %v9735_v0 = vsel %vm12351_vm15, %v2446_v15, -1e+30  ;;  %vm2200_vm15 = vcmp.ge.s32.totalorder %v9749_v57, %v9501_v32 }
 0x5da   : > { %2534 = vmax.xlane.f32.xlu0 %v2533_v62  ;;  %v2448_v3 = vpop.f32.mrf.mxu1 }
 0x5db   : > { %v9740_v31 = vsel %vm12349_vm12, %v2448_v3, -1e+30  ;;  %vm2199_vm12 = vcmp.ge.s32.totalorder %v9749_v57, %v9490_v27 }
 0x5dc   : > { %v2452_v61 = vpop.f32.mrf.mxu1  ;;  %v2536_v52 = vmax.f32 %v9735_v0, %v9740_v31 }
 0x5dd   : > { %v9755_v62 = vsel %vm12357_vm14, %v2452_v61, -1e+30 }
 0x5de   : > { %2537 = vmax.xlane.f32.xlu1 %v2536_v52  ;;  %v2454_v15 = vpop.f32.mrf.mxu1  ;;  %v9769_v52 = vadd.s32 %v9494_v20, %v2151_v1 }
 0x5df   : > { %v9760_v3 = vsel %vm12354_vm13, %v2454_v15, -1e+30 }
 0x5e0   : > { %v2456_v16 = vpop.f32.mrf.mxu1  ;;  %v2539_v43 = vmax.f32 %v9755_v62, %v9760_v3  ;;  %12563 = vst [vmem:[#allocation44_spill] sm:$0xff] %v9769_v52  ;;  %vm12363_vm13 = vcmp.ge.s32.totalorder %v9769_v52, %v9490_v27  ;;  %vm12362_vm14 = vcmp.ge.s32.totalorder %v9769_v52, %v9501_v32 }
 0x5e1   : > { %v9774_v15 = vsel %vm2199_vm12, %v2456_v16, -1e+30 }
 0x5e2   : > { %2540 = vmax.xlane.f32.xlu0 %v2539_v43  ;;  %v2458_v61 = vpop.f32.mrf.mxu1 }
 0x5e3   : > { %v9779_v29 = vsel %vm2200_vm15, %v2458_v61, -1e+30 }
 0x5e4   : > { %v2462_v41 = vpop.f32.mrf.mxu1  ;;  %v2542_v1 = vmax.f32 %v9774_v15, %v9779_v29 }
 0x5e5   : > { %v9790_v16 = vsel %vm12363_vm13, %v2462_v41, -1e+30  ;;  %v2152_v41 = vadd.s32 120, %v9355_v51 }
 0x5e6   : > { %2543 = vmax.xlane.f32.xlu1 %v2542_v1  ;;  %v2464_v43 = vpop.f32.mrf.mxu1 }
 0x5e7   : > { %v9795_v61 = vsel %vm12362_vm14, %v2464_v43, -1e+30  ;;  %v9807_v52 = vadd.s32 %v9494_v20, %v2152_v41  ;;  %v9825_v20 = vpop.permute.xlu0 %2998  ;;  %v9829_v41 = vpop.permute.xlu1 %3012 }
 0x5e8   : > { %v2545_v57 = vmax.f32 %v9790_v16, %v9795_v61  ;;  %v2466_v1 = vpop.f32.mrf.mxu1 }
 0x5e9   : > { %12564 = vst [vmem:[#allocation45_spill] sm:$0xff] %v9807_v52  ;;  %vm2204_vm14 = vcmp.ge.s32.totalorder %v9807_v52, %v9501_v32  ;;  %vm2203_vm13 = vcmp.ge.s32.totalorder %v9807_v52, %v9490_v27 }
 0x5ea   : > { %2546 = vmax.xlane.f32.xlu0 %v2545_v57  ;;  %v2468_v43 = vpop.f32.mrf.mxu1 }
 0x5eb   : > { %v9827_v57 = vpop.permute.xlu0 %2996  ;;  %v9835_v51 = vpop.permute.xlu1 %3010 }
 0x5f7   : > { %3006 = vrot.lane.b32.xlu1 %v9336_v21, %s8458_s11  ;;  %v9816_v21 = vsel %vm2204_vm14, %v2468_v43, -1e+30  ;;  %v9833_v43 = vpop.permute.xlu0 %2994 }
 0x5fb   : > { %2988 = vrot.lane.b32.xlu1 %v9348_v22, %s8458_s11  ;;  %v9837_v52 = vpop.permute.xlu0 %2992 }
 0x600   : > { %2990 = vrot.lane.b32.xlu0 %v9340_v9, %s8458_s11  ;;  %v9821_v9 = vsel %vm2203_vm13, %v2466_v1, -1e+30  ;;  %v9839_v1 = vpop.permute.xlu1 %3008 }
 0x601   : > { %v2548_v22 = vmax.f32 %v9821_v9, %v9816_v21 }
 0x61f   : > { %2549 = vmax.xlane.f32.xlu1 %v2548_v22 }
 0x630   : > { %3004 = vrot.lane.b32.xlu1 %v9344_v53, %s8458_s11 }
 0x63b   : > { %v2505_v14 = vpop.xlane.xlu0 %2504 }
 0x63c   : > { %v2551_v22 = vsub.f32 %v9515_v48, %v2505_v14  ;;  %v2552_v44 = vsub.f32 %v9520_v49, %v2505_v14 }
 0x63e   : > { %v2583_v19 = vmul.f32 1.442695, %v2551_v22  ;;  %v2585_v38 = vmul.f32 1.442695, %v2552_v44 }
 0x63f   : > { %v2508_v59 = vpop.xlane.xlu1 %2507 }
 0x640   : > { %7687 = vpow2.f32 %v2583_v19  ;;  %v2553_v11 = vsub.f32 %v9535_v28, %v2508_v59  ;;  %v2554_v53 = vsub.f32 %v9540_v37, %v2508_v59 }
 0x641   : > { %7689 = vpow2.f32 %v2585_v38 }
 0x642   : > { %v2587_v50 = vmul.f32 1.442695, %v2553_v11  ;;  %v2589_v6 = vmul.f32 1.442695, %v2554_v53 }
 0x643   : > { %v2511_v2 = vpop.xlane.xlu0 %2510 }
 0x644   : > { %7691 = vpow2.f32 %v2587_v50  ;;  %v2555_v4 = vsub.f32 %v9555_v60, %v2511_v2  ;;  %v2556_v32 = vsub.f32 %v9560_v42, %v2511_v2 }
 0x645   : > { %7693 = vpow2.f32 %v2589_v6 }
 0x646   : > { %v2591_v48 = vmul.f32 1.442695, %v2555_v4  ;;  %v2593_v49 = vmul.f32 1.442695, %v2556_v32 }
 0x647   : > { %v2514_v14 = vpop.xlane.xlu1 %2513 }
 0x648   : > { %7695 = vpow2.f32 %v2591_v48  ;;  %v2557_v19 = vsub.f32 %v9575_v58, %v2514_v14  ;;  %v2558_v28 = vsub.f32 %v9580_v23, %v2514_v14 }
 0x649   : > { %7697 = vpow2.f32 %v2593_v49 }
 0x64a   : > { %v2595_v37 = vmul.f32 1.442695, %v2557_v19  ;;  %v2597_v59 = vmul.f32 1.442695, %v2558_v28 }
 0x64b   : > { %v2517_v11 = vpop.xlane.xlu0 %2516 }
 0x64c   : > { %7699 = vpow2.f32 %v2595_v37  ;;  %v2559_v50 = vsub.f32 %v9595_v10, %v2517_v11  ;;  %v2560_v60 = vsub.f32 %v9600_v56, %v2517_v11 }
 0x64d   : > { %v9851_v38 = vpop.eup %7687  ;;  %7701 = vpow2.f32 %v2597_v59 }
 0x64e   : > { %v9853_v4 = vpop.eup %7689  ;;  %v2599_v32 = vmul.f32 1.442695, %v2559_v50  ;;  %v2601_v2 = vmul.f32 1.442695, %v2560_v60 }
 0x64f   : > { %v2520_v6 = vpop.xlane.xlu1 %2519  ;;  %v2647_v42 = vadd.f32 %v9853_v4, %v9851_v38 }
 0x650   : > { %7703 = vpow2.f32 %v2599_v32  ;;  %v2561_v58 = vsub.f32 %v9615_v63, %v2520_v6  ;;  %v2562_v23 = vsub.f32 %v9620_v7, %v2520_v6 }
 0x651   : > { %v9859_v44 = vpop.eup %7691  ;;  %7705 = vpow2.f32 %v2601_v2  ;;  %2648 = vadd.xlane.f32.xlu0 %v2647_v42 }
 0x652   : > { %v9861_v10 = vpop.eup %7693  ;;  %v2603_v56 = vmul.f32 1.442695, %v2561_v58  ;;  %v2605_v22 = vmul.f32 1.442695, %v2562_v23 }
 0x653   : > { %v2523_v53 = vpop.xlane.xlu0 %2522  ;;  %v2650_v48 = vadd.f32 %v9861_v10, %v9859_v44 }
 0x654   : > { %7707 = vpow2.f32 %v2603_v56  ;;  %v2563_v49 = vsub.f32 %v9635_v35, %v2523_v53  ;;  %v2564_v14 = vsub.f32 %v9640_v46, %v2523_v53 }
 0x655   : > { %v9867_v63 = vpop.eup %7695  ;;  %7709 = vpow2.f32 %v2605_v22  ;;  %2651 = vadd.xlane.f32.xlu1 %v2650_v48 }
 0x656   : > { %v9869_v7 = vpop.eup %7697  ;;  %v2607_v19 = vmul.f32 1.442695, %v2563_v49  ;;  %v2609_v28 = vmul.f32 1.442695, %v2564_v14 }
 0x657   : > { %v2526_v37 = vpop.xlane.xlu1 %2525  ;;  %v2653_v59 = vadd.f32 %v9869_v7, %v9867_v63 }
 0x658   : > { %7711 = vpow2.f32 %v2607_v19  ;;  %v2565_v11 = vsub.f32 %v9655_v33, %v2526_v37  ;;  %v2566_v50 = vsub.f32 %v9660_v36, %v2526_v37 }
 0x659   : > { %v9875_v35 = vpop.eup %7699  ;;  %7713 = vpow2.f32 %v2609_v28  ;;  %2654 = vadd.xlane.f32.xlu0 %v2653_v59 }
 0x65a   : > { %v9877_v46 = vpop.eup %7701  ;;  %v2611_v60 = vmul.f32 1.442695, %v2565_v11  ;;  %v2613_v32 = vmul.f32 1.442695, %v2566_v50 }
 0x65b   : > { %v2529_v2 = vpop.xlane.xlu0 %2528  ;;  %v2656_v6 = vadd.f32 %v9877_v46, %v9875_v35 }
 0x65c   : > { %7715 = vpow2.f32 %v2611_v60  ;;  %v2567_v42 = vsub.f32 %v9675_v13, %v2529_v2  ;;  %v2568_v58 = vsub.f32 %v9680_v39, %v2529_v2 }
 0x65d   : > { %v9883_v33 = vpop.eup %7703  ;;  %7717 = vpow2.f32 %v2613_v32  ;;  %2657 = vadd.xlane.f32.xlu1 %v2656_v6 }
 0x65e   : > { %v9885_v36 = vpop.eup %7705  ;;  %v2615_v23 = vmul.f32 1.442695, %v2567_v42  ;;  %v2617_v56 = vmul.f32 1.442695, %v2568_v58 }
 0x65f   : > { %v2532_v22 = vpop.xlane.xlu1 %2531  ;;  %v2659_v53 = vadd.f32 %v9885_v36, %v9883_v33 }
 0x660   : > { %7719 = vpow2.f32 %v2615_v23  ;;  %v2569_v48 = vsub.f32 %v9695_v24, %v2532_v22  ;;  %v2570_v49 = vsub.f32 %v9700_v8, %v2532_v22 }
 0x661   : > { %v9891_v13 = vpop.eup %7707  ;;  %7721 = vpow2.f32 %v2617_v56  ;;  %2660 = vadd.xlane.f32.xlu0 %v2659_v53 }
 0x662   : > { %v9893_v39 = vpop.eup %7709  ;;  %v2619_v14 = vmul.f32 1.442695, %v2569_v48  ;;  %v2621_v19 = vmul.f32 1.442695, %v2570_v49 }
 0x663   : > { %v2535_v28 = vpop.xlane.xlu0 %2534  ;;  %v2662_v37 = vadd.f32 %v9893_v39, %v9891_v13 }
 0x664   : > { %7723 = vpow2.f32 %v2619_v14  ;;  %v2571_v59 = vsub.f32 %v9715_v40, %v2535_v28  ;;  %v2572_v11 = vsub.f32 %v9720_v5, %v2535_v28 }
 0x665   : > { %v9899_v24 = vpop.eup %7711  ;;  %7725 = vpow2.f32 %v2621_v19  ;;  %2663 = vadd.xlane.f32.xlu1 %v2662_v37 }
 0x666   : > { %v9901_v8 = vpop.eup %7713  ;;  %v2623_v50 = vmul.f32 1.442695, %v2571_v59  ;;  %v2625_v60 = vmul.f32 1.442695, %v2572_v11 }
 0x667   : > { %v2538_v32 = vpop.xlane.xlu1 %2537  ;;  %v2665_v2 = vadd.f32 %v9901_v8, %v9899_v24 }
 0x668   : > { %7727 = vpow2.f32 %v2623_v50  ;;  %v2573_v6 = vsub.f32 %v9735_v0, %v2538_v32  ;;  %v2574_v42 = vsub.f32 %v9740_v31, %v2538_v32 }
 0x669   : > { %v9907_v40 = vpop.eup %7715  ;;  %7729 = vpow2.f32 %v2625_v60  ;;  %2666 = vadd.xlane.f32.xlu0 %v2665_v2 }
 0x66a   : > { %v9909_v5 = vpop.eup %7717  ;;  %v2627_v58 = vmul.f32 1.442695, %v2573_v6  ;;  %v2629_v23 = vmul.f32 1.442695, %v2574_v42 }
 0x66b   : > { %v2541_v56 = vpop.xlane.xlu0 %2540  ;;  %v2668_v22 = vadd.f32 %v9909_v5, %v9907_v40 }
 0x66c   : > { %7731 = vpow2.f32 %v2627_v58  ;;  %v2575_v53 = vsub.f32 %v9755_v62, %v2541_v56  ;;  %v2576_v48 = vsub.f32 %v9760_v3, %v2541_v56 }
 0x66d   : > { %v9915_v0 = vpop.eup %7719  ;;  %7733 = vpow2.f32 %v2629_v23  ;;  %2669 = vadd.xlane.f32.xlu1 %v2668_v22 }
 0x66e   : > { %v9917_v31 = vpop.eup %7721  ;;  %v2631_v49 = vmul.f32 1.442695, %v2575_v53  ;;  %v2633_v14 = vmul.f32 1.442695, %v2576_v48 }
 0x66f   : > { %v2544_v19 = vpop.xlane.xlu1 %2543  ;;  %v2671_v28 = vadd.f32 %v9917_v31, %v9915_v0 }
 0x670   : > { %7735 = vpow2.f32 %v2631_v49  ;;  %v2577_v37 = vsub.f32 %v9774_v15, %v2544_v19  ;;  %v2578_v59 = vsub.f32 %v9779_v29, %v2544_v19  ;;  %v9953_v49 = vld [vmem:[#allocation2 + $0x48] sm:$0xff]  }
 0x671   : > { %v9923_v62 = vpop.eup %7723  ;;  %7737 = vpow2.f32 %v2633_v14  ;;  %2672 = vadd.xlane.f32.xlu1 %v2671_v28  ;;  %v9958_v28 = vld [vmem:[#allocation2 + $0x8] sm:$0xff]  }
 0x672   : > { %v9925_v3 = vpop.eup %7725  ;;  %v2635_v11 = vmul.f32 1.442695, %v2577_v37  ;;  %v2637_v50 = vmul.f32 1.442695, %v2578_v59 }
 0x673   : > { %v2674_v60 = vadd.f32 %v9925_v3, %v9923_v62  ;;  %v2547_v14 = vpop.xlane.xlu0 %2546  ;;  %v9963_v59 = vpop.permute.xlu1 %3006 }
 0x674   : > { %7739 = vpow2.f32 %v2635_v11  ;;  %v2579_v19 = vsub.f32 %v9790_v16, %v2547_v14  ;;  %v2580_v37 = vsub.f32 %v9795_v61, %v2547_v14 }
 0x675   : > { %v9929_v32 = vpop.eup %7727  ;;  %7741 = vpow2.f32 %v2637_v50  ;;  %2675 = vadd.xlane.f32.xlu0 %v2674_v60 }
 0x676   : > { %v9931_v2 = vpop.eup %7729  ;;  %v2639_v11 = vmul.f32 1.442695, %v2579_v19  ;;  %v2641_v50 = vmul.f32 1.442695, %v2580_v37 }
 0x677   : > { %v2677_v29 = vadd.f32 %v9931_v2, %v9929_v32  ;;  %v9965_v60 = vpop.permute.xlu1 %2988 }
 0x678   : > { %7743 = vpow2.f32 %v2639_v11  ;;  %v9989_v11 = vld [vmem:[#allocation2 + $0x70] sm:$0xff]  }
 0x679   : > { %v9935_v15 = vpop.eup %7731  ;;  %2678 = vadd.xlane.f32.xlu1 %v2677_v29  ;;  %7745 = vpow2.f32 %v2641_v50  ;;  %v9995_v50 = vpop.permute.xlu0 %2990 }
 0x67a   : > { %v9937_v6 = vpop.eup %7733 }
 0x67b   : > { %v2680_v42 = vadd.f32 %v9937_v6, %v9935_v15 }
 0x67d   : > { %v9941_v58 = vpop.eup %7735  ;;  %2681 = vadd.xlane.f32.xlu0 %v2680_v42 }
 0x67e   : > { %12565 = vst [vmem:[#allocation46_spill] sm:$0xff] %v9941_v58  ;;  %v9943_v23 = vpop.eup %7737 }
 0x67f   : > { %12566 = vst [vmem:[#allocation47_spill] sm:$0xff] %v9943_v23  ;;  %v2683_v56 = vadd.f32 %v9943_v23, %v9941_v58 }
 0x681   : > { %v9947_v22 = vpop.eup %7739  ;;  %2684 = vadd.xlane.f32.xlu1 %v2683_v56 }
 0x682   : > { %12567 = vst [vmem:[#allocation48_spill] sm:$0xff] %v9947_v22  ;;  %v9949_v53 = vpop.eup %7741 }
 0x683   : > { %12568 = vst [vmem:[#allocation49_spill] sm:$0xff] %v9949_v53  ;;  %v2686_v48 = vadd.f32 %v9949_v53, %v9947_v22 }
 0x685   : > { %2687 = vadd.xlane.f32.xlu0 %v2686_v48  ;;  %v9969_v27 = vpop.eup %7743 }
 0x686   : > { %12569 = vst [vmem:[#allocation50_spill] sm:$0xff] %v9969_v27  ;;  %v9971_v61 = vpop.eup %7745 }
 0x687   : > { %12570 = vst [vmem:[#allocation51_spill] sm:$0xff] %v9971_v61  ;;  %v2689_v14 = vadd.f32 %v9971_v61, %v9969_v27  ;;  %v10031_v27 = vld [vmem:[#allocation2 + $0x50] sm:$0xff]   ;;  %v10035_v61 = vld [vmem:[#allocation2 + $0x20] sm:$0xff]  }
 0x688   : > { %12573 = vst [vmem:[#allocation54_spill] sm:$0xff] %v10031_v27  ;;  %12574 = vst [vmem:[#allocation55_spill] sm:$0xff] %v10035_v61 }
 0x692   : > { %3002 = vrot.lane.b32.xlu1 %v9953_v49, %s8458_s11 }
 0x69b   : > { %2986 = vrot.lane.b32.xlu0 %v9958_v28, %s8458_s11 }
 0x6a8   : > { %v2550_v29 = vpop.xlane.xlu1 %2549 }
 0x6a9   : > { %v2581_v42 = vsub.f32 %v9821_v9, %v2550_v29  ;;  %v2582_v16 = vsub.f32 %v9816_v21, %v2550_v29  ;;  %v9983_v21 = vld [vmem:[#allocation2 + $0x38] sm:$0xff]  }
 0x6ab   : > { %v2643_v56 = vmul.f32 1.442695, %v2581_v42  ;;  %v2645_v48 = vmul.f32 1.442695, %v2582_v16  ;;  %v10007_v16 = vld [vmem:[#allocation2 + $0x78] sm:$0xff]  }
 0x6ac   : > { %v10003_v29 = vpop.permute.xlu1 %3004 }
 0x6ad   : > { %7747 = vpow2.f32 %v2643_v56  ;;  %v10011_v56 = vld [vmem:[#allocation2 + $0x60] sm:$0xff]  }
 0x6ae   : > { %7749 = vpow2.f32 %v2645_v48  ;;  %v10015_v48 = vld [vmem:[#allocation2 + $0x30] sm:$0xff]  }
 0x6b6   : > { %2690 = vadd.xlane.f32.xlu1 %v2689_v14 }
 0x6ba   : > { %v9975_v19 = vpop.eup %7747 }
 0x6bb   : > { %12571 = vst [vmem:[#allocation52_spill] sm:$0xff] %v9975_v19  ;;  %v9977_v37 = vpop.eup %7749 }
 0x6bc   : > { %12572 = vst [vmem:[#allocation53_spill] sm:$0xff] %v9977_v37  ;;  %v2692_v9 = vadd.f32 %v9977_v37, %v9975_v19 }
 0x6be   : > { %2693 = vadd.xlane.f32.xlu0 %v2692_v9  ;;  %v10019_v9 = vld [vmem:[#allocation2 + $0x18] sm:$0xff]  }
 0x6c7   : > { %3000 = vrot.lane.b32.xlu1 %v9416_v25, %s8458_s11  ;;  %v9997_v25 = vld [vmem:[#allocation2 + $0x28] sm:$0xff]  }
 0x6cb   : > { %3672 = vrot.lane.b32.xlu1 %v9983_v21, %s8459_s10 }
 0x6cf   : > { %2970 = vrot.lane.b32.xlu1 %v9442_v55, %s8458_s11 }
 0x6d3   : > { %3686 = vrot.lane.b32.xlu1 %v9989_v11, %s8459_s10 }
 0x6d4   : > { %2984 = vrot.lane.b32.xlu0 %v9418_v17, %s8458_s11 }
 0x6d7   : > { %3668 = vrot.lane.b32.xlu1 %v9997_v25, %s8459_s10 }
 0x6d8   : > { %2968 = vrot.lane.b32.xlu0 %v9440_v47, %s8458_s11 }
 0x6da   : > { %v2649_v42 = vpop.xlane.xlu0 %2648 }
 0x6db   : > { %2974 = vrot.lane.b32.xlu1 %v9456_v18, %s8458_s11  ;;  %7751 = vrcp.f32 %v2649_v42 }
 0x6dc   : > { %3688 = vrot.lane.b32.xlu0 %v10007_v16, %s8459_s10 }
 0x6de   : > { %v2652_v17 = vpop.xlane.xlu1 %2651 }
 0x6df   : > { %7753 = vrcp.f32 %v2652_v17  ;;  %3682 = vrot.lane.b32.xlu1 %v10011_v56, %s8459_s10  ;;  %v10027_v17 = vld [vmem:[#allocation2 + $0x68] sm:$0xff]  }
 0x6e0   : > { %3670 = vrot.lane.b32.xlu0 %v10015_v48, %s8459_s10 }
 0x6e2   : > { %v2655_v14 = vpop.xlane.xlu0 %2654 }
 0x6e3   : > { %3664 = vrot.lane.b32.xlu1 %v10019_v9, %s8459_s10  ;;  %7755 = vrcp.f32 %v2655_v14 }
 0x6e4   : > { %2972 = vrot.lane.b32.xlu0 %v9450_v34, %s8458_s11 }
 0x6e6   : > { %v2658_v42 = vpop.xlane.xlu1 %2657 }
 0x6e7   : > { %7757 = vrcp.f32 %v2658_v42  ;;  %2978 = vrot.lane.b32.xlu1 %v9468_v12, %s8458_s11 }
 0x6e8   : > { %3684 = vrot.lane.b32.xlu0 %v10027_v17, %s8459_s10  ;;  %v7752_v30 = vpop.eup %7751 }
 0x6e9   : > { %v2712_v14 = vmul.f32 %v7752_v30, %v9853_v4  ;;  %v2711_v22 = vmul.f32 %v7752_v30, %v9851_v38  ;;  %v3062_v4 = vsel %vm12403_vm0, %v9825_v20, 0  ;;  %v10053_v38 = vld [vmem:[#allocation2 + $0x58] sm:$0xff]  }
 0x6ea   : > { %v2661_v19 = vpop.xlane.xlu0 %2660 }
 0x6eb   : > { %3678 = vrot.lane.b32.xlu1 %v10031_v27, %s8459_s10  ;;  %7759 = vrcp.f32 %v2661_v19  ;;  %v10065_v19 = vld [vmem:[#allocation2 + $0x10] sm:$0xff]  }
 0x6ec   : > { %v7754_v37 = vpop.eup %7753  ;;  %3666 = vrot.lane.b32.xlu0 %v10035_v61, %s8459_s10 }
 0x6ed   : > { %v2714_v42 = vmul.f32 %v7754_v37, %v9861_v10  ;;  %v2713_v58 = vmul.f32 %v7754_v37, %v9859_v44 }
 0x6ee   : > { %v2664_v53 = vpop.xlane.xlu1 %2663 }
 0x6ef   : > { %7761 = vrcp.f32 %v2664_v53  ;;  %3660 = vrot.lane.b32.xlu1 %v9958_v28, %s8459_s10  ;;  %v2744_v23 = vpack.c.bf16 %v2714_v42, %v2712_v14  ;;  %v2743_v27 = vpack.c.bf16 %v2713_v58, %v2711_v22  ;;  %v10061_v22 = vld [vmem:[#allocation2 + $0x40] sm:$0xff]  }
 0x6f0   : > { %2976 = vrot.lane.b32.xlu0 %v9462_v26, %s8458_s11  ;;  %v7756_v61 = vpop.eup %7755 }
 0x6f1   : > { %2887 = vmatprep.mubr.bf16.mxu0 %v2744_v23  ;;  %v2716_v44 = vmul.f32 %v7756_v61, %v9869_v7 }
 0x6f2   : > { %2888 = vmatmul.mubr.bf16.vlgmr.msra.gmra.mxu0 %v2743_v27  ;;  %v2667_v10 = vpop.xlane.xlu0 %2666  ;;  %v2715_v27 = vmul.f32 %v7756_v61, %v9867_v63  ;;  %v3059_v63 = vsel %vm12403_vm0, %v9827_v57, 0 }
 0x6f3   : > { %6820 = vmatpush3.bf16.xpose.msra.mxu0 %v3062_v4  ;;  %2982 = vrot.lane.b32.xlu1 %v9480_v45, %s8458_s11  ;;  %7763 = vrcp.f32 %v2667_v10 }
 0x6f4   : > { %v7758_v30 = vpop.eup %7757  ;;  %7292 = vmatprep.subr.msk.bf16.mxu0 %vm12403_vm0, %v9829_v41  ;;  %3680 = vrot.lane.b32.xlu0 %v10053_v38, %s8459_s10 }
 0x6f5   : > { %v2718_v20 = vmul.f32 %v7758_v30, %v9877_v46  ;;  %v2717_v58 = vmul.f32 %v7758_v30, %v9875_v35 }
 0x6f6   : > { %v2670_v23 = vpop.xlane.xlu1 %2669 }
 0x6f7   : > { %7765 = vrcp.f32 %v2670_v23  ;;  %3674 = vrot.lane.b32.xlu1 %v10061_v22, %s8459_s10  ;;  %v2746_v41 = vpack.c.bf16 %v2718_v20, %v2716_v44  ;;  %v2745_v53 = vpack.c.bf16 %v2717_v58, %v2715_v27 }
 0x6f8   : > { %3662 = vrot.lane.b32.xlu0 %v10065_v19, %s8459_s10  ;;  %v7760_v7 = vpop.eup %7759 }
 0x6f9   : > { %2895 = vmatprep.mubr.bf16.mxu0 %v2746_v41  ;;  %v2720_v61 = vmul.f32 %v7760_v7, %v9885_v36  ;;  %v2719_v57 = vmul.f32 %v7760_v7, %v9883_v33  ;;  %v3056_v36 = vsel %vm12403_vm0, %v9833_v43, 0  ;;  %v12577_v7 = vld [vmem:[#allocation47_spill] sm:$0xff] }
 0x6fa   : > { %v2673_v35 = vpop.xlane.xlu1 %2672  ;;  %2896 = vmatmul.mubr.bf16.gmra.mxu0 %v2745_v53 }
 0x6fb   : > { %6822 = vmatpush3.bf16.xpose.msra.mxu0 %v3059_v63  ;;  %4346 = vrot.lane.b32.xlu1 %v9983_v21, %s8460_s24  ;;  %7767 = vrcp.f32 %v2673_v35 }
 0x6fc   : > { %v7762_v46 = vpop.eup %7761  ;;  %7293 = vmatprep.subr.msk.bf16.mxu0 %vm12403_vm0, %v9835_v51  ;;  %2980 = vrot.lane.b32.xlu0 %v9474_v54, %s8458_s11 }
 0x6fd   : > { %v2722_v37 = vmul.f32 %v7762_v46, %v9893_v39  ;;  %v2721_v14 = vmul.f32 %v7762_v46, %v9891_v13  ;;  %v10091_v13 = vld [vmem:[#allocation2] sm:$0xff]  }
 0x6fe   : > { %v2676_v42 = vpop.xlane.xlu0 %2675  ;;  %v12579_v46 = vld [vmem:[#allocation46_spill] sm:$0xff] }
 0x6ff   : > { %7769 = vrcp.f32 %v2676_v42  ;;  %3644 = vrot.lane.b32.xlu1 %v9442_v55, %s8459_s10  ;;  %v2748_v21 = vpack.c.bf16 %v2722_v37, %v2720_v61  ;;  %v2747_v4 = vpack.c.bf16 %v2721_v14, %v2719_v57  ;;  %v12580_v37 = vld [vmem:[#allocation48_spill] sm:$0xff] }
 0x700   : > { %3676 = vrot.lane.b32.xlu0 %v9953_v49, %s8459_s10  ;;  %v7764_v51 = vpop.eup %7763 }
 0x701   : > { %2903 = vmatprep.mubr.bf16.mxu0 %v2748_v21  ;;  %v2724_v10 = vmul.f32 %v7764_v51, %v9901_v8  ;;  %v2723_v30 = vmul.f32 %v7764_v51, %v9899_v24  ;;  %v3053_v8 = vsel %vm12403_vm0, %v9837_v52, 0 }
 0x702   : > { %v2679_v39 = vpop.xlane.xlu1 %2678  ;;  %2904 = vmatmul.mubr.bf16.gmra.mxu0 %v2747_v4  ;;  %v10204_v4 = vld [vmem:[#allocation3 + $0x70] sm:$0xff]  }
 0x703   : > { %6824 = vmatpush3.bf16.xpose.msra.mxu0 %v3056_v36  ;;  %4360 = vrot.lane.b32.xlu1 %v9989_v11, %s8460_s24  ;;  %7771 = vrcp.f32 %v2679_v39  ;;  %v10210_v39 = vld [vmem:[#allocation3 + $0x68] sm:$0xff]  }
 0x704   : > { %v7766_v33 = vpop.eup %7765  ;;  %7294 = vmatprep.subr.msk.bf16.mxu0 %vm12403_vm0, %v9839_v1  ;;  %3658 = vrot.lane.b32.xlu0 %v10091_v13, %s8459_s10 }
 0x705   : > { %v2726_v43 = vmul.f32 %v7766_v33, %v9909_v5  ;;  %v2725_v44 = vmul.f32 %v7766_v33, %v9907_v40 }
 0x706   : > { %v2682_v20 = vpop.xlane.xlu0 %2681 }
 0x707   : > { %7773 = vrcp.f32 %v2682_v20  ;;  %4342 = vrot.lane.b32.xlu1 %v9997_v25, %s8460_s24  ;;  %v2750_v1 = vpack.c.bf16 %v2726_v43, %v2724_v10  ;;  %v2749_v11 = vpack.c.bf16 %v2725_v44, %v2723_v30  ;;  %v10217_v43 = vld [vmem:[#allocation3 + $0x60] sm:$0xff]   ;;  %v12581_v44 = vld [vmem:[#allocation51_spill] sm:$0xff] }
 0x708   : > { %3642 = vrot.lane.b32.xlu0 %v9440_v47, %s8459_s10  ;;  %v7768_v27 = vpop.eup %7767 }
 0x709   : > { %2911 = vmatprep.mubr.bf16.mxu0 %v2750_v1  ;;  %v2728_v40 = vmul.f32 %v7768_v27, %v9917_v31  ;;  %v2727_v52 = vmul.f32 %v7768_v27, %v9915_v0  ;;  %v3050_v31 = vsel %vm12403_vm0, %v9995_v50, 0  ;;  %v12582_v1 = vld [vmem:[#allocation53_spill] sm:$0xff]  ;;  %v12583_v27 = vld [vmem:[#allocation50_spill] sm:$0xff] }
 0x70a   : > { %v2685_v5 = vpop.xlane.xlu1 %2684  ;;  %2912 = vmatmul.mubr.bf16.gmra.mxu0 %v2749_v11 }
 0x70b   : > { %6826 = vmatpush3.bf16.xpose.msra.mxu0 %v3053_v8  ;;  %3648 = vrot.lane.b32.xlu1 %v9456_v18, %s8459_s10  ;;  %7775 = vrcp.f32 %v2685_v5  ;;  %v12584_v5 = vld [vmem:[#allocation52_spill] sm:$0xff] }
 0x70c   : > { %v7770_v24 = vpop.eup %7769  ;;  %7295 = vmatprep.subr.msk.bf16.mxu0 %vm12403_vm0, %v9963_v59  ;;  %4362 = vrot.lane.b32.xlu0 %v10007_v16, %s8460_s24 }
 0x70d   : > { %v2730_v25 = vmul.f32 %v7770_v24, %v9925_v3  ;;  %v2729_v58 = vmul.f32 %v7770_v24, %v9923_v62 }
 0x70e   : > { %v2688_v23 = vpop.xlane.xlu0 %2687 }
 0x70f   : > { %7777 = vrcp.f32 %v2688_v23  ;;  %4356 = vrot.lane.b32.xlu1 %v10011_v56, %s8460_s24  ;;  %v2752_v41 = vpack.c.bf16 %v2730_v25, %v2728_v40  ;;  %v2751_v53 = vpack.c.bf16 %v2729_v58, %v2727_v52  ;;  %v10229_v23 = vld [vmem:[#allocation3 + $0x20] sm:$0xff]  }
 0x710   : > { %4344 = vrot.lane.b32.xlu0 %v10015_v48, %s8460_s24  ;;  %v7772_v59 = vpop.eup %7771 }
 0x711   : > { %2919 = vmatprep.mubr.bf16.mxu0 %v2752_v41  ;;  %v2732_v62 = vmul.f32 %v7772_v59, %v9931_v2  ;;  %v2731_v16 = vmul.f32 %v7772_v59, %v9929_v32  ;;  %v3003_v2 = vpop.permute.xlu1 %3002  ;;  %v12575_v32 = vld [vmem:[#allocation54_spill] sm:$0xff]  ;;  %v10236_v59 = vld [vmem:[#allocation3 + $0x58] sm:$0xff]  }
 0x712   : > { %2920 = vmatmul.mubr.bf16.gmra.mxu0 %v2751_v53  ;;  %v2987_v57 = vpop.permute.xlu0 %2986 }
 0x713   : > { %6828 = vmatpush3.bf16.xpose.msra.mxu0 %v3050_v31  ;;  %4338 = vrot.lane.b32.xlu1 %v10019_v9, %s8460_s24  ;;  %v3047_v9 = vsel %vm12403_vm0, %v9965_v60, 0  ;;  %v3044_v21 = vsel %vm12403_vm0, %v2987_v57, 0 }
 0x714   : > { %v7774_v0 = vpop.eup %7773  ;;  %7296 = vmatprep.subr.msk.bf16.mxu0 %vm12403_vm0, %v10003_v29  ;;  %3646 = vrot.lane.b32.xlu0 %v9450_v34, %s8459_s10 }
 0x715   : > { %v2734_v3 = vmul.f32 %v7774_v0, %v9937_v6  ;;  %v2733_v50 = vmul.f32 %v7774_v0, %v9935_v15  ;;  %v12576_v6 = vld [vmem:[#allocation55_spill] sm:$0xff] }
 0x717   : > { %3652 = vrot.lane.b32.xlu1 %v9468_v12, %s8459_s10  ;;  %v2754_v56 = vpack.c.bf16 %v2734_v3, %v2732_v62  ;;  %v2753_v48 = vpack.c.bf16 %v2733_v50, %v2731_v16  ;;  %v10241_v62 = vld [vmem:[#allocation3 + $0x50] sm:$0xff]  }
 0x718   : > { %4358 = vrot.lane.b32.xlu0 %v10027_v17, %s8460_s24  ;;  %v7776_v29 = vpop.eup %7775  ;;  %v12578_v17 = vld [vmem:[#allocation49_spill] sm:$0xff] }
 0x719   : > { %2927 = vmatprep.mubr.bf16.mxu0 %v2754_v56  ;;  %v2736_v63 = vmul.f32 %v7776_v29, %v12577_v7  ;;  %v2735_v61 = vmul.f32 %v7776_v29, %v12579_v46  ;;  %v10253_v56 = vld [vmem:[#allocation3 + $0x10] sm:$0xff]  }
 0x71a   : > { %2928 = vmatmul.mubr.bf16.gmra.mxu0 %v2753_v48 }
 0x71b   : > { %6830 = vmatpush3.bf16.xpose.msra.mxu0 %v3047_v9  ;;  %4352 = vrot.lane.b32.xlu1 %v12575_v32, %s8460_s24 }
 0x71c   : > { %v7778_v15 = vpop.eup %7777  ;;  %7297 = vmatprep.subr.msk.bf16.mxu0 %vm12403_vm0, %v3003_v2  ;;  %4340 = vrot.lane.b32.xlu0 %v12576_v6, %s8460_s24  ;;  %v10260_v2 = vld [vmem:[#allocation3 + $0x48] sm:$0xff]   ;;  %v10269_v6 = vld [vmem:[#allocation3 + $0x40] sm:$0xff]  }
 0x71d   : > { %v2738_v35 = vmul.f32 %v7778_v15, %v12578_v17  ;;  %v2737_v60 = vmul.f32 %v7778_v15, %v12580_v37 }
 0x71f   : > { %4334 = vrot.lane.b32.xlu1 %v9958_v28, %s8460_s24  ;;  %v2756_v14 = vpack.c.bf16 %v2738_v35, %v2736_v63  ;;  %v2755_v42 = vpack.c.bf16 %v2737_v60, %v2735_v61  ;;  %v10194_v28 = vld [vmem:[#allocation3 + $0x18] sm:$0xff]   ;;  %v10278_v35 = vld [vmem:[#allocation3] sm:$0xff]  }
 0x720   : > { %3650 = vrot.lane.b32.xlu0 %v9462_v26, %s8459_s10 }
 0x721   : > { %2935 = vmatprep.mubr.bf16.mxu0 %v2756_v14 }
 0x722   : > { %2936 = vmatmul.mubr.bf16.gmra.mxu0 %v2755_v42 }
 0x723   : > { %6832 = vmatpush3.bf16.xpose.msra.mxu0 %v3044_v21  ;;  %3656 = vrot.lane.b32.xlu1 %v9480_v45, %s8459_s10 }
 0x724   : > { %4354 = vrot.lane.b32.xlu0 %v10053_v38, %s8460_s24 }
 0x727   : > { %4348 = vrot.lane.b32.xlu1 %v10061_v22, %s8460_s24 }
 0x728   : > { %4336 = vrot.lane.b32.xlu0 %v10065_v19, %s8460_s24  ;;  %v8124_v19 = vld [vmem:[#allocation3 + $0x8] sm:$0xff]  }
 0x72b   : > { %4318 = vrot.lane.b32.xlu1 %v9442_v55, %s8460_s24  ;;  %v10175_v55 = vld [vmem:[#allocation3 + $0x38] sm:$0xff]  }
 0x72c   : > { %3654 = vrot.lane.b32.xlu0 %v9474_v54, %s8459_s10 }
 0x72f   : > { %4322 = vrot.lane.b32.xlu1 %v9456_v18, %s8460_s24 }
 0x730   : > { %4350 = vrot.lane.b32.xlu0 %v9953_v49, %s8460_s24  ;;  %v10181_v49 = vld [vmem:[#allocation3 + $0x30] sm:$0xff]  }
 0x733   : > { %4326 = vrot.lane.b32.xlu1 %v9468_v12, %s8460_s24 }
 0x734   : > { %4332 = vrot.lane.b32.xlu0 %v10091_v13, %s8460_s24 }
 0x737   : > { %4330 = vrot.lane.b32.xlu1 %v9480_v45, %s8460_s24  ;;  %v10187_v45 = vld [vmem:[#allocation3 + $0x28] sm:$0xff]  }
 0x738   : > { %4316 = vrot.lane.b32.xlu0 %v9440_v47, %s8460_s24 }
 0x73b   : > { %3503 = vrot.lane.b32.xlu1 %v10175_v55, %s8458_s11 }
 0x73c   : > { %4320 = vrot.lane.b32.xlu0 %v9450_v34, %s8460_s24 }
 0x73f   : > { %v2691_v18 = vpop.xlane.xlu1 %2690  ;;  %3501 = vrot.lane.b32.xlu1 %v10181_v49, %s8458_s11 }
 0x740   : > { %4324 = vrot.lane.b32.xlu0 %v9462_v26, %s8460_s24  ;;  %7779 = vrcp.f32 %v2691_v18  ;;  %v10198_v26 = vld [vmem:[#allocation3 + $0x78] sm:$0xff]  }
 0x743   : > { %v3001_v12 = vpop.permute.xlu1 %3000  ;;  %3499 = vrot.lane.b32.xlu1 %v10187_v45, %s8458_s11 }
 0x744   : > { %4328 = vrot.lane.b32.xlu0 %v9474_v54, %s8460_s24  ;;  %7298 = vmatprep.subr.msk.bf16.mxu0 %vm12403_vm0, %v3001_v12 }
 0x747   : > { %v3673_v47 = vpop.permute.xlu1 %3672  ;;  %v2694_v34 = vpop.xlane.xlu0 %2693  ;;  %3495 = vrot.lane.b32.xlu1 %v10194_v28, %s8458_s11 }
 0x748   : > { %7781 = vrcp.f32 %v2694_v34  ;;  %3519 = vrot.lane.b32.xlu0 %v10198_v26, %s8458_s11  ;;  %v3736_v3 = vsel %vm12403_vm0, %v3673_v47, 0 }
 0x74b   : > { %v2971_v38 = vpop.permute.xlu1 %2970  ;;  %v2985_v22 = vpop.permute.xlu0 %2984  ;;  %3491 = vrot.lane.b32.xlu1 %v8124_v19, %s8458_s11 }
 0x74c   : > { %v3041_v54 = vsel %vm12403_vm0, %v2985_v22, 0  ;;  %3517 = vrot.lane.b32.xlu0 %v10204_v4, %s8458_s11 }
 0x74d   : > { %6834 = vmatpush3.bf16.xpose.msra.mxu0 %v3041_v54  ;;  %v7780_v33 = vpop.eup %7779 }
 0x74e   : > { %v2740_v20 = vmul.f32 %v7780_v33, %v12581_v44  ;;  %v2739_v8 = vmul.f32 %v7780_v33, %v12583_v27 }
 0x74f   : > { %v3687_v51 = vpop.permute.xlu1 %3686  ;;  %v2969_v36 = vpop.permute.xlu0 %2968  ;;  %4177 = vrot.lane.b32.xlu1 %v10175_v55, %s8459_s10 }
 0x750   : > { %3515 = vrot.lane.b32.xlu0 %v10210_v39, %s8458_s11 }
 0x753   : > { %v3669_v13 = vpop.permute.xlu1 %3668  ;;  %v3689_v10 = vpop.permute.xlu0 %3688  ;;  %4175 = vrot.lane.b32.xlu1 %v10181_v49, %s8459_s10 }
 0x754   : > { %7299 = vmatprep.subr.msk.bf16.mxu0 %vm12403_vm0, %v3689_v10  ;;  %3513 = vrot.lane.b32.xlu0 %v10217_v43, %s8458_s11  ;;  %v3730_v17 = vsel %vm12403_vm0, %v3669_v13, 0 }
 0x755   : > { %v7782_v30 = vpop.eup %7781 }
 0x756   : > { %v2742_v11 = vmul.f32 %v7782_v30, %v12582_v1  ;;  %v2741_v24 = vmul.f32 %v7782_v30, %v12584_v5 }
 0x757   : > { %v10225_v40 = vpop.permute.xlu1 %2974  ;;  %v3671_v25 = vpop.permute.xlu0 %3670  ;;  %4173 = vrot.lane.b32.xlu1 %v10187_v45, %s8459_s10 }
 0x758   : > { %v2758_v52 = vpack.c.bf16 %v2742_v11, %v2740_v20  ;;  %v2757_v58 = vpack.c.bf16 %v2741_v24, %v2739_v8  ;;  %3497 = vrot.lane.b32.xlu0 %v10229_v23, %s8458_s11  ;;  %v3733_v9 = vsel %vm12403_vm0, %v3671_v25, 0 }
 0x75a   : > { %2943 = vmatprep.mubr.bf16.mxu0 %v2758_v52 }
 0x75b   : > { %v3683_v41 = vpop.permute.xlu1 %3682  ;;  %2944 = vmatmul.mubr.bf16.gmra.mxu0 %v2757_v58  ;;  %v2973_v53 = vpop.permute.xlu0 %2972  ;;  %4169 = vrot.lane.b32.xlu1 %v10194_v28, %s8459_s10 }
 0x75c   : > { %6835 = vmatprep.mubr.msk.bf16.mxu0 %vm12403_vm0, %v2969_v36  ;;  %3511 = vrot.lane.b32.xlu0 %v10236_v59, %s8458_s11 }
 0x75f   : > { %v3665_v31 = vpop.permute.xlu1 %3664  ;;  %v3685_v0 = vpop.permute.xlu0 %3684  ;;  %4165 = vrot.lane.b32.xlu1 %v8124_v19, %s8459_s10 }
 0x760   : > { %3509 = vrot.lane.b32.xlu0 %v10241_v62, %s8458_s11  ;;  %v3724_v18 = vsel %vm12403_vm0, %v3665_v31, 0 }
 0x763   : > { %v10246_v16 = vpop.permute.xlu1 %2978  ;;  %6836 = vmatmul.mubr.msk.bf16.vlgmr.msra.gmra.mxu0 %vm12403_vm0, %v2969_v36  ;;  %v3667_v50 = vpop.permute.xlu0 %3666  ;;  %4851 = vrot.lane.b32.xlu1 %v10175_v55, %s8460_s24 }
 0x764   : > { %6916 = vmatpush3.bf16.xpose.msra.mxu0 %v3736_v3  ;;  %6837 = vmatprep.mubr.msk.bf16.mxu0 %vm12403_vm0, %v2971_v38  ;;  %v3727_v57 = vsel %vm12403_vm0, %v3667_v50, 0 }
 0x765   : > { %7300 = vmatprep.subr.msk.bf16.mxu0 %vm12403_vm0, %v3687_v51  ;;  %3493 = vrot.lane.b32.xlu0 %v10253_v56, %s8458_s11 }
 0x767   : > { %v3679_v48 = vpop.permute.xlu1 %3678  ;;  %v2977_v29 = vpop.permute.xlu0 %2976  ;;  %4849 = vrot.lane.b32.xlu1 %v10181_v49, %s8460_s24 }
 0x769   : > { %3507 = vrot.lane.b32.xlu0 %v10260_v2, %s8458_s11 }
 0x76b   : > { %v3661_v32 = vpop.permute.xlu1 %3660  ;;  %6838 = vmatmul.mubr.msk.bf16.gmra.mxu0 %vm12403_vm0, %v2971_v38  ;;  %v3681_v15 = vpop.permute.xlu0 %3680  ;;  %4861 = vrot.lane.b32.xlu1 %v10217_v43, %s8460_s24 }
 0x76c   : > { %6918 = vmatpush3.bf16.xpose.msra.mxu0 %v3733_v9  ;;  %6839 = vmatprep.mubr.msk.bf16.mxu0 %vm12403_vm0, %v2973_v53  ;;  %v3718_v36 = vsel %vm12403_vm0, %v3661_v32, 0 }
 0x76d   : > { %7301 = vmatprep.subr.msk.bf16.mxu0 %vm12403_vm0, %v3685_v0  ;;  %3505 = vrot.lane.b32.xlu0 %v10269_v6, %s8458_s11 }
 0x76f   : > { %v10273_v7 = vpop.permute.xlu1 %2982  ;;  %v3663_v63 = vpop.permute.xlu0 %3662  ;;  %4845 = vrot.lane.b32.xlu1 %v10229_v23, %s8460_s24 }
 0x770   : > { %v3721_v38 = vsel %vm12403_vm0, %v3663_v63, 0 }
 0x771   : > { %3489 = vrot.lane.b32.xlu0 %v10278_v35, %s8458_s11 }
 0x773   : > { %v3675_v46 = vpop.permute.xlu1 %3674  ;;  %6840 = vmatmul.mubr.msk.bf16.gmra.mxu0 %vm12403_vm0, %v2973_v53  ;;  %v2981_v61 = vpop.permute.xlu0 %2980  ;;  %4857 = vrot.lane.b32.xlu1 %v10241_v62, %s8460_s24 }
 0x774   : > { %6920 = vmatpush3.bf16.xpose.msra.mxu0 %v3730_v17  ;;  %6841 = vmatprep.mubr.msk.bf16.mxu0 %vm12403_vm0, %v10225_v40 }
 0x775   : > { %7302 = vmatprep.subr.msk.bf16.mxu0 %vm12403_vm0, %v3683_v41  ;;  %4193 = vrot.lane.b32.xlu0 %v10198_v26, %s8459_s10 }
 0x777   : > { %v4347_v37 = vpop.permute.xlu1 %4346  ;;  %v3677_v60 = vpop.permute.xlu0 %3676  ;;  %4841 = vrot.lane.b32.xlu1 %v10253_v56, %s8460_s24 }
 0x778   : > { %v4410_v27 = vsel %vm12403_vm0, %v4347_v37, 0 }
 0x779   : > { %4191 = vrot.lane.b32.xlu0 %v10204_v4, %s8459_s10 }
 0x77b   : > { %v10295_v14 = vpop.permute.xlu1 %3644  ;;  %6842 = vmatmul.mubr.msk.bf16.gmra.mxu0 %vm12403_vm0, %v10225_v40  ;;  %v3659_v42 = vpop.permute.xlu0 %3658 }
 0x77c   : > { %6922 = vmatpush3.bf16.xpose.msra.mxu0 %v3727_v57  ;;  %6843 = vmatprep.mubr.msk.bf16.mxu0 %vm12403_vm0, %v2977_v29  ;;  %v3715_v30 = vsel %vm12403_vm0, %v3659_v42, 0 }
 0x77d   : > { %7303 = vmatprep.subr.msk.bf16.mxu0 %vm12403_vm0, %v3681_v15  ;;  %4189 = vrot.lane.b32.xlu0 %v10210_v39, %s8459_s10 }
 0x77f   : > { %v4361_v21 = vpop.permute.xlu1 %4360  ;;  %v3643_v55 = vpop.permute.xlu0 %3642 }
 0x781   : > { %4187 = vrot.lane.b32.xlu0 %v10217_v43, %s8459_s10 }
 0x783   : > { %v10306_v49 = vpop.permute.xlu1 %4342  ;;  %6844 = vmatmul.mubr.msk.bf16.gmra.mxu0 %vm12403_vm0, %v2977_v29  ;;  %v4363_v12 = vpop.permute.xlu0 %4362 }
 0x784   : > { %6924 = vmatpush3.bf16.xpose.msra.mxu0 %v3724_v18  ;;  %6845 = vmatprep.mubr.msk.bf16.mxu0 %vm12403_vm0, %v10246_v16 }
 0x785   : > { %7304 = vmatprep.subr.msk.bf16.mxu0 %vm12403_vm0, %v3679_v48  ;;  %4171 = vrot.lane.b32.xlu0 %v10229_v23, %s8459_s10 }
 0x787   : > { %v10314_v47 = vpop.permute.xlu1 %3648  ;;  %v4345_v34 = vpop.permute.xlu0 %4344 }
 0x789   : > { %4185 = vrot.lane.b32.xlu0 %v10236_v59, %s8459_s10 }
 0x78b   : > { %v4357_v22 = vpop.permute.xlu1 %4356  ;;  %6846 = vmatmul.mubr.msk.bf16.gmra.mxu0 %vm12403_vm0, %v10246_v16  ;;  %v3647_v19 = vpop.permute.xlu0 %3646 }
 0x78c   : > { %6926 = vmatpush3.bf16.xpose.msra.mxu0 %v3721_v38  ;;  %6847 = vmatprep.mubr.msk.bf16.mxu0 %vm12403_vm0, %v2981_v61 }
 0x78d   : > { %7305 = vmatprep.subr.msk.bf16.mxu0 %vm12403_vm0, %v3677_v60  ;;  %4183 = vrot.lane.b32.xlu0 %v10241_v62, %s8459_s10 }
 0x78f   : > { %v10325_v54 = vpop.permute.xlu1 %4338  ;;  %v4359_v51 = vpop.permute.xlu0 %4358 }
 0x791   : > { %4167 = vrot.lane.b32.xlu0 %v10253_v56, %s8459_s10 }
 0x793   : > { %v10330_v33 = vpop.permute.xlu1 %3652  ;;  %6848 = vmatmul.mubr.msk.bf16.gmra.mxu0 %vm12403_vm0, %v2981_v61  ;;  %v4341_v13 = vpop.permute.xlu0 %4340 }
 0x794   : > { %6928 = vmatpush3.bf16.xpose.msra.mxu0 %v3718_v36  ;;  %6849 = vmatprep.mubr.msk.bf16.mxu0 %vm12403_vm0, %v10273_v7  ;;  %v4401_v3 = vsel %vm12403_vm0, %v4341_v13, 0 }
 0x795   : > { %7306 = vmatprep.subr.msk.bf16.mxu0 %vm12403_vm0, %v3675_v46  ;;  %4181 = vrot.lane.b32.xlu0 %v10260_v2, %s8459_s10 }
 0x797   : > { %v10338_v10 = vpop.permute.xlu1 %4352  ;;  %v10340_v43 = vpop.permute.xlu0 %3650 }
 0x799   : > { %4179 = vrot.lane.b32.xlu0 %v10269_v6, %s8459_s10  ;;  %v4398_v6 = vsel %vm12403_vm0, %v10325_v54, 0 }
 0x79b   : > { %v10345_v44 = vpop.permute.xlu1 %4334  ;;  %6850 = vmatmul.mubr.msk.bf16.gmra.mxu0 %vm12403_vm0, %v10273_v7  ;;  %v4355_v20 = vpop.permute.xlu0 %4354 }
 0x79c   : > { %6930 = vmatpush3.bf16.xpose.msra.mxu0 %v3715_v30  ;;  %6931 = vmatprep.mubr.msk.bf16.mxu0 %vm12403_vm0, %v3643_v55  ;;  %v4392_v54 = vsel %vm12403_vm0, %v10345_v44, 0 }
 0x79d   : > { %7307 = vmatprep.subr.msk.bf16.mxu0 %vm12403_vm0, %v4363_v12  ;;  %4163 = vrot.lane.b32.xlu0 %v10278_v35, %s8459_s10 }
 0x79f   : > { %v10353_v1 = vpop.permute.xlu1 %3656  ;;  %v10355_v11 = vpop.permute.xlu0 %4336 }
 0x7a1   : > { %4867 = vrot.lane.b32.xlu0 %v10198_v26, %s8460_s24  ;;  %v4407_v26 = vsel %vm12403_vm0, %v4345_v34, 0 }
 0x7a3   : > { %v10360_v8 = vpop.permute.xlu1 %4348  ;;  %6932 = vmatmul.mubr.msk.bf16.vlgmr.msra.gmra.mxu0 %vm12403_vm0, %v3643_v55  ;;  %v10363_v5 = vpop.permute.xlu0 %3654 }
 0x7a4   : > { %7012 = vmatpush3.bf16.xpose.msra.mxu0 %v4410_v27  ;;  %6933 = vmatprep.mubr.msk.bf16.mxu0 %vm12403_vm0, %v10295_v14 }
 0x7a5   : > { %7308 = vmatprep.subr.msk.bf16.mxu0 %vm12403_vm0, %v4361_v21  ;;  %4865 = vrot.lane.b32.xlu0 %v10204_v4, %s8460_s24  ;;  %v4395_v21 = vsel %vm12403_vm0, %v10355_v11, 0 }
 0x7a7   : > { %v10370_v24 = vpop.permute.xlu1 %4318  ;;  %v10372_v40 = vpop.permute.xlu0 %4350 }
 0x7a9   : > { %4863 = vrot.lane.b32.xlu0 %v10210_v39, %s8460_s24  ;;  %v4404_v39 = vsel %vm12403_vm0, %v10306_v49, 0  ;;  %v12629_v49 = vld [vmem:[#allocation42_spill] sm:$0xff] }
 0x7ab   : > { %v10377_v25 = vpop.permute.xlu1 %4322  ;;  %6934 = vmatmul.mubr.msk.bf16.gmra.mxu0 %vm12403_vm0, %v10295_v14  ;;  %v10381_v52 = vpop.permute.xlu0 %4332 }
 0x7ac   : > { %7014 = vmatpush3.bf16.xpose.msra.mxu0 %v4407_v26  ;;  %6935 = vmatprep.mubr.msk.bf16.mxu0 %vm12403_vm0, %v3647_v19  ;;  %v4389_v27 = vsel %vm12403_vm0, %v10381_v52, 0 }
 0x7ad   : > { %7309 = vmatprep.subr.msk.bf16.mxu0 %vm12403_vm0, %v4359_v51  ;;  %4847 = vrot.lane.b32.xlu0 %v10187_v45, %s8460_s24 }
 0x7af   : > { %v10387_v4 = vpop.permute.xlu0 %4316  ;;  %v10391_v58 = vpop.permute.xlu1 %4326 }
 0x7b1   : > { %4859 = vrot.lane.b32.xlu0 %v10236_v59, %s8460_s24 }
 0x7b2   : > { %v6771_v23 = vpop.f32.mrf.mxu0 }
 0x7b3   : > { %6936 = vmatmul.mubr.msk.bf16.gmra.mxu0 %vm12403_vm0, %v3647_v19  ;;  %v10396_v41 = vpop.permute.xlu0 %4320  ;;  %v10405_v0 = vpop.permute.xlu1 %4330 }
 0x7b4   : > { %7016 = vmatpush3.bf16.xpose.msra.mxu0 %v4404_v39  ;;  %v6772_v53 = vpop.f32.mrf.mxu0  ;;  %6937 = vmatprep.mubr.msk.bf16.mxu0 %vm12403_vm0, %v10314_v47 }
 0x7b5   : > { %v10400_v45 = vadd.f32 %v6772_v53, %v6771_v23  ;;  %7310 = vmatprep.subr.msk.bf16.mxu0 %vm12403_vm0, %v4357_v22  ;;  %4843 = vrot.lane.b32.xlu0 %v10194_v28, %s8460_s24 }
 0x7b6   : > { %v6774_v31 = vpop.f32.mrf.mxu0 }
 0x7b7   : > { %12585 = vst [vmem:[#allocation54_spill] sm:$0xff] %v10400_v45  ;;  %v10407_v59 = vpop.permute.xlu0 %4324  ;;  %v3504_v28 = vpop.permute.xlu1 %3503 }
 0x7b8   : > { %v6775_v62 = vpop.f32.mrf.mxu0 }
 0x7b9   : > { %v10410_v16 = vadd.f32 %v6775_v62, %v6774_v31 }
 0x7ba   : > { %v6777_v50 = vpop.f32.mrf.mxu0 }
 0x7bb   : > { %12586 = vst [vmem:[#allocation55_spill] sm:$0xff] %v10410_v16  ;;  %6938 = vmatmul.mubr.msk.bf16.gmra.mxu0 %vm12403_vm0, %v10314_v47  ;;  %v10416_v48 = vpop.permute.xlu0 %4328  ;;  %v3502_v63 = vpop.permute.xlu1 %3501 }
 0x7bc   : > { %7018 = vmatpush3.bf16.xpose.msra.mxu0 %v4401_v3  ;;  %v6778_v29 = vpop.f32.mrf.mxu0  ;;  %6939 = vmatprep.mubr.msk.bf16.mxu0 %vm12403_vm0, %v10340_v43 }
 0x7bd   : > { %v10420_v9 = vadd.f32 %v6778_v29, %v6777_v50  ;;  %7311 = vmatprep.subr.msk.bf16.mxu0 %vm12403_vm0, %v4355_v20 }
 0x7be   : > { %v6780_v2 = vpop.f32.mrf.mxu0 }
 0x7bf   : > { %12587 = vst [vmem:[#allocation47_spill] sm:$0xff] %v10420_v9  ;;  %v3520_v32 = vpop.permute.xlu0 %3519  ;;  %v3500_v14 = vpop.permute.xlu1 %3499 }
 0x7c0   : > { %v6781_v15 = vpop.f32.mrf.mxu0  ;;  %6851 = vmatprep.subr.bf16.mxu1 %v3520_v32 }
 0x7c1   : > { %v10425_v7 = vadd.f32 %v6781_v15, %v6780_v2  ;;  %6852 = vmatpush3.bf16.msra.mxu1 %v3504_v28 }
 0x7c2   : > { %v6783_v17 = vpop.f32.mrf.mxu0 }
 0x7c3   : > { %12588 = vst [vmem:[#allocation49_spill] sm:$0xff] %v10425_v7  ;;  %6940 = vmatmul.mubr.msk.bf16.gmra.mxu0 %vm12403_vm0, %v10340_v43  ;;  %v3518_v46 = vpop.permute.xlu0 %3517 }
 0x7c4   : > { %7020 = vmatpush3.bf16.xpose.msra.mxu0 %v4398_v6  ;;  %v6784_v61 = vpop.f32.mrf.mxu0  ;;  %6941 = vmatprep.mubr.msk.bf16.mxu0 %vm12403_vm0, %v10330_v33 }
 0x7c5   : > { %v10433_v37 = vadd.f32 %v6784_v61, %v6783_v17  ;;  %7312 = vmatprep.subr.msk.bf16.mxu0 %vm12403_vm0, %v10338_v10  ;;  %6853 = vmatprep.subr.bf16.mxu1 %v3518_v46  ;;  %v3496_v10 = vpop.permute.xlu1 %3495  ;;  %v12625_v17 = vld [vmem:[#allocation41_spill] sm:$0xff] }
 0x7c6   : > { %v6786_v60 = vpop.f32.mrf.mxu0  ;;  %6854 = vmatpush3.bf16.msra.mxu1 %v3502_v63 }
 0x7c7   : > { %12589 = vst [vmem:[#allocation46_spill] sm:$0xff] %v10433_v37  ;;  %v3516_v57 = vpop.permute.xlu0 %3515 }
 0x7c8   : > { %v6787_v42 = vpop.f32.mrf.mxu0  ;;  %6855 = vmatprep.subr.bf16.mxu1 %v3516_v57 }
 0x7c9   : > { %v10439_v55 = vadd.f32 %v6787_v42, %v6786_v60  ;;  %v3492_v52 = vpop.permute.xlu1 %3491 }
 0x7ca   : > { %v6789_v18 = vpop.f32.mrf.mxu0  ;;  %6856 = vmatpush3.bf16.msra.mxu1 %v3500_v14  ;;  %v12602_v14 = vld [vmem:[#allocation28_spill] sm:$0xff] }
 0x7cb   : > { %12590 = vst [vmem:[#allocation48_spill] sm:$0xff] %v10439_v55  ;;  %6942 = vmatmul.mubr.msk.bf16.gmra.mxu0 %vm12403_vm0, %v10330_v33  ;;  %v3514_v12 = vpop.permute.xlu0 %3513 }
 0x7cc   : > { %7022 = vmatpush3.bf16.xpose.msra.mxu0 %v4395_v21  ;;  %v6790_v47 = vpop.f32.mrf.mxu0  ;;  %6943 = vmatprep.mubr.msk.bf16.mxu0 %vm12403_vm0, %v10363_v5  ;;  %v12603_v21 = vld [vmem:[#allocation30_spill] sm:$0xff] }
 0x7cd   : > { %v10447_v34 = vadd.f32 %v6790_v47, %v6789_v18  ;;  %7313 = vmatprep.subr.msk.bf16.mxu0 %vm12403_vm0, %v10372_v40  ;;  %6857 = vmatprep.subr.bf16.mxu1 %v3514_v12 }
 0x7ce   : > { %v6792_v38 = vpop.f32.mrf.mxu0 }
 0x7cf   : > { %12591 = vst [vmem:[#allocation51_spill] sm:$0xff] %v10447_v34  ;;  %v3498_v22 = vpop.permute.xlu0 %3497 }
 0x7d0   : > { %v6793_v19 = vpop.f32.mrf.mxu0  ;;  %6858 = vmatpush3.bf16.msra.mxu1 %v3498_v22 }
 0x7d1   : > { %v10453_v51 = vadd.f32 %v6793_v19, %v6792_v38 }
 0x7d2   : > { %v6795_v36 = vpop.f32.mrf.mxu0 }
 0x7d3   : > { %12592 = vst [vmem:[#allocation53_spill] sm:$0xff] %v10453_v51  ;;  %6944 = vmatmul.mubr.msk.bf16.gmra.mxu0 %vm12403_vm0, %v10363_v5  ;;  %v3512_v13 = vpop.permute.xlu0 %3511 }
 0x7d4   : > { %7024 = vmatpush3.bf16.xpose.msra.mxu0 %v4392_v54  ;;  %v6796_v43 = vpop.f32.mrf.mxu0  ;;  %6945 = vmatprep.mubr.msk.bf16.mxu0 %vm12403_vm0, %v10353_v1 }
 0x7d5   : > { %v10461_v30 = vadd.f32 %v6796_v43, %v6795_v36  ;;  %7314 = vmatprep.subr.msk.bf16.mxu0 %vm12403_vm0, %v10360_v8  ;;  %6859 = vmatprep.subr.bf16.mxu1 %v3512_v13 }
 0x7d6   : > { %v6798_v44 = vpop.f32.mrf.mxu0  ;;  %6860 = vmatpush3.bf16.msra.mxu1 %v3496_v10 }
 0x7d7   : > { %12593 = vst [vmem:[#allocation50_spill] sm:$0xff] %v10461_v30  ;;  %v3510_v20 = vpop.permute.xlu0 %3509 }
 0x7d8   : > { %v6799_v11 = vpop.f32.mrf.mxu0  ;;  %6861 = vmatprep.subr.bf16.mxu1 %v3510_v20 }
 0x7d9   : > { %v10467_v5 = vadd.f32 %v6799_v11, %v6798_v44 }
 0x7da   : > { %v6801_v40 = vpop.f32.mrf.mxu0 }
 0x7db   : > { %12594 = vst [vmem:[#allocation52_spill] sm:$0xff] %v10467_v5  ;;  %6946 = vmatmul.mubr.msk.bf16.gmra.mxu0 %vm12403_vm0, %v10353_v1  ;;  %v3494_v39 = vpop.permute.xlu0 %3493 }
 0x7dc   : > { %7026 = vmatpush3.bf16.xpose.msra.mxu0 %v4389_v27  ;;  %v6802_v8 = vpop.f32.mrf.mxu0  ;;  %7027 = vmatprep.mubr.msk.bf16.mxu0 %vm12403_vm0, %v10387_v4 }
 0x7dd   : > { %v10475_v23 = vadd.f32 %v6802_v8, %v6801_v40  ;;  %6862 = vmatpush3.bf16.msra.mxu1 %v3494_v39 }
 0x7de   : > { %v6804_v53 = vpop.f32.mrf.mxu0 }
 0x7df   : > { %12595 = vst [vmem:[#allocation56_spill] sm:$0xff] %v10475_v23  ;;  %v3508_v31 = vpop.permute.xlu0 %3507  ;;  %v12634_v23 = vld [vmem:[#allocation44_spill] sm:$0xff] }
 0x7e0   : > { %v6805_v62 = vpop.f32.mrf.mxu0  ;;  %6863 = vmatprep.subr.bf16.mxu1 %v3508_v31 }
 0x7e1   : > { %v10477_v3 = vadd.f32 %v6805_v62, %v6804_v53  ;;  %6864 = vmatpush3.bf16.msra.mxu1 %v3492_v52  ;;  %v12607_v62 = vld [vmem:[#allocation34_spill] sm:$0xff] }
 0x7e2   : > { %v6807_v50 = vpop.f32.mrf.mxu0 }
 0x7e3   : > { %12596 = vst [vmem:[#allocation57_spill] sm:$0xff] %v10477_v3  ;;  %7028 = vmatmul.mubr.msk.bf16.vlgmr.msra.gmra.mxu0 %vm12403_vm0, %v10387_v4  ;;  %v3506_v28 = vpop.permute.xlu0 %3505 }
 0x7e4   : > { %v6808_v29 = vpop.f32.mrf.mxu0  ;;  %7029 = vmatprep.mubr.msk.bf16.mxu0 %vm12403_vm0, %v10370_v24  ;;  %6865 = vmatprep.subr.bf16.mxu1 %v3506_v28 }
 0x7e5   : > { %v10485_v2 = vadd.f32 %v6808_v29, %v6807_v50 }
 0x7e6   : > { %v6810_v32 = vpop.f32.mrf.mxu0 }
 0x7e7   : > { %12597 = vst [vmem:[#allocation58_spill] sm:$0xff] %v10485_v2  ;;  %v3490_v15 = vpop.permute.xlu0 %3489 }
 0x7e8   : > { %v6811_v6 = vpop.f32.mrf.mxu0  ;;  %6866 = vmatpush3.bf16.msra.mxu1 %v3490_v15 }
 0x7e9   : > { %v10487_v63 = vadd.f32 %v6811_v6, %v6810_v32  ;;  %v12608_v6 = vld [vmem:[#allocation35_spill] sm:$0xff] }
 0x7eb   : > { %12598 = vst [vmem:[#allocation59_spill] sm:$0xff] %v10487_v63  ;;  %7030 = vmatmul.mubr.msk.bf16.gmra.mxu0 %vm12403_vm0, %v10370_v24  ;;  %v4194_v4 = vpop.permute.xlu0 %4193 }
 0x7ec   : > { %7031 = vmatprep.mubr.msk.bf16.mxu0 %vm12403_vm0, %v10396_v41  ;;  %6947 = vmatprep.subr.bf16.mxu1 %v4194_v4 }
 0x7ef   : > { %v10667_v26 = vpop.permute.xlu0 %4191 }
 0x7f0   : > { %12628 = vst [vmem:[#allocation29_spill] sm:$0xff] %v10667_v26 }
 0x7f3   : > { %7032 = vmatmul.mubr.msk.bf16.gmra.mxu0 %vm12403_vm0, %v10396_v41 }
 0x7f4   : > { %7033 = vmatprep.mubr.msk.bf16.mxu0 %vm12403_vm0, %v10377_v25 }
 0x7fb   : > { %7034 = vmatmul.mubr.msk.bf16.gmra.mxu0 %vm12403_vm0, %v10377_v25 }
 0x7fc   : > { %7035 = vmatprep.mubr.msk.bf16.mxu0 %vm12403_vm0, %v10407_v59 }
 0x803   : > { %7036 = vmatmul.mubr.msk.bf16.gmra.mxu0 %vm12403_vm0, %v10407_v59 }
 0x804   : > { %7037 = vmatprep.mubr.msk.bf16.mxu0 %vm12403_vm0, %v10391_v58 }
 0x80b   : > { %7038 = vmatmul.mubr.msk.bf16.gmra.mxu0 %vm12403_vm0, %v10391_v58 }
 0x80c   : > { %7039 = vmatprep.mubr.msk.bf16.mxu0 %vm12403_vm0, %v10416_v48 }
 0x813   : > { %7040 = vmatmul.mubr.msk.bf16.gmra.mxu0 %vm12403_vm0, %v10416_v48 }
 0x814   : > { %7041 = vmatprep.mubr.msk.bf16.mxu0 %vm12403_vm0, %v10405_v0 }
 0x81b   : > { %v6813_v24 = vpop.f32.mrf.mxu0  ;;  %7042 = vmatmul.mubr.msk.bf16.gmra.mxu0 %vm12403_vm0, %v10405_v0  ;;  %vm12609_vm0 = vcmp.ge.s32.totalorder %v12608_v6, %v12603_v21 }
 0x81d   : > { %v6814_v25 = vpop.f32.mrf.mxu0 }
 0x81e   : > { %v10517_v41 = vadd.f32 %v6814_v25, %v6813_v24 }
 0x81f   : > { %v6816_v59 = vpop.f32.mrf.mxu0 }
 0x820   : > { %12599 = vst [vmem:[#allocation60_spill] sm:$0xff] %v10517_v41 }
 0x821   : > { %v6817_v46 = vpop.f32.mrf.mxu0 }
 0x822   : > { %v10519_v61 = vadd.f32 %v6817_v46, %v6816_v59 }
 0x823   : > { %v3122_v58 = vpop.f32.mrf.mxu0 }
 0x824   : > { %12600 = vst [vmem:[#allocation61_spill] sm:$0xff] %v10519_v61  ;;  %v10526_v42 = vsel %vm2173_vm1, %v3122_v58, -1e+30  ;;  %v12610_v58 = vld [vmem:[#allocation36_spill] sm:$0xff]  ;;  %v10691_v61 = vpop.permute.xlu0 %4189 }
 0x825   : > { %v3124_v57 = vpop.f32.mrf.mxu0  ;;  %12633 = vst [vmem:[#allocation28_spill] sm:$0xff] %v10691_v61 }
 0x826   : > { %v10531_v0 = vsel %vm2174_vm2, %v3124_v57, -1e+30 }
 0x827   : > { %v3233_v18 = vmax.f32 %v10526_v42, %v10531_v0  ;;  %v3126_v12 = vpop.f32.mrf.mxu0 }
 0x828   : > { %v10538_v22 = vsel %vm2175_vm3, %v3126_v12, -1e+30  ;;  %v10707_v30 = vpop.permute.xlu0 %4187 }
 0x829   : > { %v3128_v47 = vpop.f32.mrf.mxu0  ;;  %3234 = vmax.xlane.f32.xlu0 %v3233_v18  ;;  %12637 = vst [vmem:[#allocation30_spill] sm:$0xff] %v10707_v30 }
 0x82a   : > { %v10543_v19 = vsel %vm2176_vm4, %v3128_v47, -1e+30 }
 0x82b   : > { %v3236_v54 = vmax.f32 %v10538_v22, %v10543_v19  ;;  %v3132_v36 = vpop.f32.mrf.mxu0 }
 0x82c   : > { %v10550_v43 = vsel %vm2177_vm5, %v3132_v36, -1e+30  ;;  %v12613_v36 = vld [vmem:[#allocation37_spill] sm:$0xff]  ;;  %v10731_v55 = vpop.permute.xlu0 %4171 }
 0x82d   : > { %3237 = vmax.xlane.f32.xlu1 %v3236_v54  ;;  %v3134_v13 = vpop.f32.mrf.mxu0  ;;  %12639 = vst [vmem:[#allocation31_spill] sm:$0xff] %v10731_v55 }
 0x82e   : > { %v10555_v44 = vsel %vm2178_vm6, %v3134_v13, -1e+30 }
 0x82f   : > { %v3239_v20 = vmax.f32 %v10550_v43, %v10555_v44  ;;  %v3136_v11 = vpop.f32.mrf.mxu0 }
 0x830   : > { %v10562_v39 = vsel %vm2179_vm7, %v3136_v11, -1e+30  ;;  %v10747_v16 = vpop.permute.xlu0 %4185 }
 0x831   : > { %v3138_v27 = vpop.f32.mrf.mxu0  ;;  %3240 = vmax.xlane.f32.xlu0 %v3239_v20  ;;  %12640 = vst [vmem:[#allocation32_spill] sm:$0xff] %v10747_v16 }
 0x832   : > { %v10567_v8 = vsel %vm2180_vm8, %v3138_v27, -1e+30 }
 0x833   : > { %v3242_v53 = vmax.f32 %v10562_v39, %v10567_v8  ;;  %v3142_v52 = vpop.f32.mrf.mxu0 }
 0x834   : > { %v10574_v50 = vsel %vm2181_vm9, %v3142_v52, -1e+30  ;;  %v12616_v52 = vld [vmem:[#allocation38_spill] sm:$0xff]  ;;  %v10771_v16 = vpop.permute.xlu0 %4183 }
 0x835   : > { %v3144_v31 = vpop.f32.mrf.mxu0  ;;  %3243 = vmax.xlane.f32.xlu0 %v3242_v53  ;;  %12645 = vst [vmem:[#allocation37_spill] sm:$0xff] %v10771_v16 }
 0x836   : > { %v10579_v28 = vsel %vm12404_vm10, %v3144_v31, -1e+30  ;;  %vm12611_vm10 = vcmp.ge.s32.totalorder %v12610_v58, %v12602_v14 }
 0x837   : > { %v3245_v29 = vmax.f32 %v10574_v50, %v10579_v28  ;;  %v3146_v32 = vpop.f32.mrf.mxu0 }
 0x838   : > { %v10586_v4 = vsel %vm12405_vm11, %v3146_v32, -1e+30  ;;  %vm12612_vm11 = vcmp.ge.s32.totalorder %v12610_v58, %v12603_v21 }
 0x839   : > { %v3148_v15 = vpop.f32.mrf.mxu0  ;;  %3246 = vmax.xlane.f32.xlu0 %v3245_v29 }
 0x83a   : > { %v10591_v24 = vsel %vm12609_vm0, %v3148_v15, -1e+30  ;;  %vm12614_vm0 = vcmp.ge.s32.totalorder %v12613_v36, %v12602_v14 }
 0x83b   : > { %v3248_v25 = vmax.f32 %v10586_v4, %v10591_v24  ;;  %v3152_v59 = vpop.f32.mrf.mxu0 }
 0x83c   : > { %v10598_v57 = vsel %vm12611_vm10, %v3152_v59, -1e+30  ;;  %vm12615_vm10 = vcmp.ge.s32.totalorder %v12613_v36, %v12603_v21  ;;  %v12619_v59 = vld [vmem:[#allocation39_spill] sm:$0xff] }
 0x83d   : > { %3249 = vmax.xlane.f32.xlu1 %v3248_v25  ;;  %v3154_v46 = vpop.f32.mrf.mxu0 }
 0x83e   : > { %v10603_v18 = vsel %vm12612_vm11, %v3154_v46, -1e+30  ;;  %vm12617_vm11 = vcmp.ge.s32.totalorder %v12616_v52, %v12602_v14 }
 0x83f   : > { %v3251_v12 = vmax.f32 %v10598_v57, %v10603_v18  ;;  %v3156_v47 = vpop.f32.mrf.mxu0 }
 0x840   : > { %v10610_v13 = vsel %vm12614_vm0, %v3156_v47, -1e+30  ;;  %vm12618_vm0 = vcmp.ge.s32.totalorder %v12616_v52, %v12603_v21 }
 0x841   : > { %v3158_v54 = vpop.f32.mrf.mxu0  ;;  %3252 = vmax.xlane.f32.xlu0 %v3251_v12 }
 0x842   : > { %v10615_v20 = vsel %vm12615_vm10, %v3158_v54, -1e+30  ;;  %vm12620_vm10 = vcmp.ge.s32.totalorder %v12619_v59, %v12602_v14 }
 0x843   : > { %v3254_v11 = vmax.f32 %v10610_v13, %v10615_v20  ;;  %v3162_v27 = vpop.f32.mrf.mxu0 }
 0x844   : > { %v10622_v31 = vsel %vm12617_vm11, %v3162_v27, -1e+30  ;;  %vm12621_vm11 = vcmp.ge.s32.totalorder %v12619_v59, %v12603_v21  ;;  %v12622_v27 = vld [vmem:[#allocation40_spill] sm:$0xff] }
 0x845   : > { %3255 = vmax.xlane.f32.xlu1 %v3254_v11  ;;  %v3164_v53 = vpop.f32.mrf.mxu0 }
 0x846   : > { %v10627_v29 = vsel %vm12618_vm0, %v3164_v53, -1e+30  ;;  %vm12623_vm0 = vcmp.ge.s32.totalorder %v12622_v27, %v12602_v14 }
 0x847   : > { %v3257_v32 = vmax.f32 %v10622_v31, %v10627_v29  ;;  %v3166_v15 = vpop.f32.mrf.mxu0 }
 0x848   : > { %v10634_v46 = vsel %vm12620_vm10, %v3166_v15, -1e+30  ;;  %vm12624_vm10 = vcmp.ge.s32.totalorder %v12622_v27, %v12603_v21 }
 0x849   : > { %v3168_v25 = vpop.f32.mrf.mxu0  ;;  %3258 = vmax.xlane.f32.xlu0 %v3257_v32 }
 0x84a   : > { %v10639_v12 = vsel %vm12621_vm11, %v3168_v25, -1e+30  ;;  %vm12626_vm11 = vcmp.ge.s32.totalorder %v12625_v17, %v12602_v14 }
 0x84b   : > { %v3260_v47 = vmax.f32 %v10634_v46, %v10639_v12  ;;  %v3172_v54 = vpop.f32.mrf.mxu0 }
 0x84c   : > { %v10646_v53 = vsel %vm12623_vm0, %v3172_v54, -1e+30  ;;  %vm12627_vm0 = vcmp.ge.s32.totalorder %v12625_v17, %v12603_v21 }
 0x84d   : > { %3261 = vmax.xlane.f32.xlu1 %v3260_v47  ;;  %v3174_v11 = vpop.f32.mrf.mxu0 }
 0x84e   : > { %v10651_v32 = vsel %vm12624_vm10, %v3174_v11, -1e+30  ;;  %vm12630_vm10 = vcmp.ge.s32.totalorder %v12629_v49, %v12602_v14 }
 0x84f   : > { %v3263_v15 = vmax.f32 %v10646_v53, %v10651_v32  ;;  %v3176_v25 = vpop.f32.mrf.mxu0 }
 0x850   : > { %v10658_v47 = vsel %vm12626_vm11, %v3176_v25, -1e+30  ;;  %vm12631_vm11 = vcmp.ge.s32.totalorder %v12629_v49, %v12603_v21 }
 0x851   : > { %v3178_v60 = vpop.f32.mrf.mxu0  ;;  %3264 = vmax.xlane.f32.xlu0 %v3263_v15 }
 0x852   : > { %v10663_v54 = vsel %vm12627_vm0, %v3178_v60, -1e+30  ;;  %vm12635_vm0 = vcmp.ge.s32.totalorder %v12634_v23, %v12602_v14 }
 0x853   : > { %v3266_v11 = vmax.f32 %v10658_v47, %v10663_v54  ;;  %v3182_v1 = vpop.f32.mrf.mxu0 }
 0x854   : > { %v10672_v15 = vsel %vm12630_vm10, %v3182_v1, -1e+30  ;;  %vm12636_vm10 = vcmp.ge.s32.totalorder %v12634_v23, %v12603_v21 }
 0x855   : > { %3267 = vmax.xlane.f32.xlu1 %v3266_v11  ;;  %v3184_v33 = vpop.f32.mrf.mxu0 }
 0x856   : > { %v10677_v25 = vsel %vm12631_vm11, %v3184_v33, -1e+30  ;;  %vm12648_vm11 = vcmp.ge.s32.totalorder %v12607_v62, %v12603_v21 }
 0x857   : > { %v3269_v60 = vmax.f32 %v10672_v15, %v10677_v25  ;;  %v3186_v35 = vpop.f32.mrf.mxu0 }
 0x858   : > { %v10684_v11 = vsel %vm2199_vm12, %v3186_v35, -1e+30 }
 0x859   : > { %v3188_v56 = vpop.f32.mrf.mxu0  ;;  %3270 = vmax.xlane.f32.xlu0 %v3269_v60 }
 0x85a   : > { %v10689_v1 = vsel %vm2200_vm15, %v3188_v56, -1e+30 }
 0x85b   : > { %v3272_v33 = vmax.f32 %v10684_v11, %v10689_v1  ;;  %v3192_v2 = vpop.f32.mrf.mxu0 }
 0x85c   : > { %v10698_v60 = vsel %vm12635_vm0, %v3192_v2, -1e+30  ;;  %vm12651_vm0 = vcmp.ge.s32.totalorder %v12608_v6, %v12602_v14 }
 0x85d   : > { %3273 = vmax.xlane.f32.xlu1 %v3272_v33  ;;  %v3194_v63 = vpop.f32.mrf.mxu0 }
 0x85e   : > { %v10703_v35 = vsel %vm12636_vm10, %v3194_v63, -1e+30  ;;  %vm12653_vm10 = vcmp.ge.s32.totalorder %v12608_v6, %v12603_v21 }
 0x85f   : > { %v3275_v56 = vmax.f32 %v10698_v60, %v10703_v35  ;;  %v3196_v3 = vpop.f32.mrf.mxu0 }
 0x860   : > { %v10712_v34 = vsel %vm2203_vm13, %v3196_v3, -1e+30 }
 0x861   : > { %v3198_v5 = vpop.f32.mrf.mxu0  ;;  %3276 = vmax.xlane.f32.xlu0 %v3275_v56 }
 0x862   : > { %v10717_v2 = vsel %vm2204_vm14, %v3198_v5, -1e+30 }
 0x863   : > { %v3278_v63 = vmax.f32 %v10712_v34, %v10717_v2  ;;  %v3796_v51 = vpop.f32.mrf.mxu0 }
 0x864   : > { %v10724_v56 = vsel %vm2173_vm1, %v3796_v51, -1e+30 }
 0x865   : > { %3279 = vmax.xlane.f32.xlu1 %v3278_v63  ;;  %v3798_v37 = vpop.f32.mrf.mxu0 }
 0x866   : > { %v10729_v3 = vsel %vm2174_vm2, %v3798_v37, -1e+30 }
 0x867   : > { %v3907_v5 = vmax.f32 %v10724_v56, %v10729_v3  ;;  %v3800_v9 = vpop.f32.mrf.mxu0 }
 0x868   : > { %v10738_v63 = vsel %vm2175_vm3, %v3800_v9, -1e+30 }
 0x869   : > { %v3802_v7 = vpop.f32.mrf.mxu0  ;;  %3908 = vmax.xlane.f32.xlu0 %v3907_v5 }
 0x86a   : > { %v10743_v51 = vsel %vm2176_vm4, %v3802_v7, -1e+30 }
 0x86b   : > { %v3910_v37 = vmax.f32 %v10738_v63, %v10743_v51  ;;  %v3806_v45 = vpop.f32.mrf.mxu0 }
 0x86c   : > { %v10752_v5 = vsel %vm2177_vm5, %v3806_v45, -1e+30 }
 0x86d   : > { %3911 = vmax.xlane.f32.xlu1 %v3910_v37  ;;  %v3808_v55 = vpop.f32.mrf.mxu0  ;;  %12641 = vst [vmem:[#allocation33_spill] sm:$0xff] %v10752_v5 }
 0x86e   : > { %v10757_v9 = vsel %vm2178_vm6, %v3808_v55, -1e+30 }
 0x86f   : > { %12642 = vst [vmem:[#allocation34_spill] sm:$0xff] %v10757_v9  ;;  %v3913_v7 = vmax.f32 %v10752_v5, %v10757_v9  ;;  %v3810_v30 = vpop.f32.mrf.mxu0  ;;  %v10775_v5 = vpop.permute.xlu1 %4177 }
 0x870   : > { %v10764_v37 = vsel %vm2179_vm7, %v3810_v30, -1e+30  ;;  %12646 = vst [vmem:[#allocation38_spill] sm:$0xff] %v10775_v5 }
 0x871   : > { %v3812_v61 = vpop.f32.mrf.mxu0  ;;  %3914 = vmax.xlane.f32.xlu0 %v3913_v7  ;;  %12643 = vst [vmem:[#allocation35_spill] sm:$0xff] %v10764_v37 }
 0x872   : > { %v10769_v45 = vsel %vm2180_vm8, %v3812_v61, -1e+30 }
 0x873   : > { %12644 = vst [vmem:[#allocation36_spill] sm:$0xff] %v10769_v45  ;;  %v3916_v55 = vmax.f32 %v10764_v37, %v10769_v45  ;;  %v3816_v26 = vpop.f32.mrf.mxu0  ;;  %v10789_v45 = vpop.permute.xlu0 %4167 }
 0x874   : > { %v10780_v30 = vsel %vm2181_vm9, %v3816_v26, -1e+30  ;;  %12650 = vst [vmem:[#allocation41_spill] sm:$0xff] %v10789_v45 }
 0x875   : > { %3917 = vmax.xlane.f32.xlu1 %v3916_v55  ;;  %v3818_v9 = vpop.f32.mrf.mxu0  ;;  %12647 = vst [vmem:[#allocation39_spill] sm:$0xff] %v10780_v30 }
 0x876   : > { %v10785_v61 = vsel %vm12648_vm11, %v3818_v9, -1e+30  ;;  %vm12656_vm11 = vcmp.ge.s32.totalorder %v12610_v58, %v12602_v14 }
 0x877   : > { %12649 = vst [vmem:[#allocation40_spill] sm:$0xff] %v10785_v61  ;;  %v3919_v7 = vmax.f32 %v10780_v30, %v10785_v61  ;;  %v3820_v16 = vpop.f32.mrf.mxu0  ;;  %v10803_v61 = vpop.permute.xlu1 %4175 }
 0x878   : > { %v10794_v5 = vsel %vm12651_vm0, %v3820_v16, -1e+30  ;;  %12655 = vst [vmem:[#allocation44_spill] sm:$0xff] %v10803_v61  ;;  %v10810_v16 = vpop.permute.xlu0 %4181  ;;  %vm12659_vm0 = vcmp.ge.s32.totalorder %v12610_v58, %v12603_v21 }
 0x879   : > { %v3822_v55 = vpop.f32.mrf.mxu0  ;;  %3920 = vmax.xlane.f32.xlu0 %v3919_v7  ;;  %12652 = vst [vmem:[#allocation42_spill] sm:$0xff] %v10794_v5  ;;  %12658 = vst [vmem:[#allocation62_spill] sm:$0xff] %v10810_v16 }
 0x87a   : > { %v10799_v26 = vsel %vm12653_vm10, %v3822_v55, -1e+30  ;;  %vm12662_vm10 = vcmp.ge.s32.totalorder %v12613_v36, %v12602_v14 }
 0x87b   : > { %12654 = vst [vmem:[#allocation43_spill] sm:$0xff] %v10799_v26  ;;  %v3922_v9 = vmax.f32 %v10794_v5, %v10799_v26  ;;  %v3826_v37 = vpop.f32.mrf.mxu0 }
 0x87c   : > { %v10808_v7 = vsel %vm12656_vm11, %v3826_v37, -1e+30  ;;  %vm12664_vm11 = vcmp.ge.s32.totalorder %v12613_v36, %v12603_v21 }
 0x87d   : > { %3923 = vmax.xlane.f32.xlu1 %v3922_v9  ;;  %v3828_v45 = vpop.f32.mrf.mxu0  ;;  %12657 = vst [vmem:[#allocation45_spill] sm:$0xff] %v10808_v7  ;;  %v10819_v9 = vpop.permute.xlu1 %4173 }
 0x87e   : > { %v10815_v55 = vsel %vm12659_vm0, %v3828_v45, -1e+30  ;;  %12661 = vst [vmem:[#allocation64_spill] sm:$0xff] %v10819_v9  ;;  %vm12667_vm0 = vcmp.ge.s32.totalorder %v12616_v52, %v12602_v14 }
 0x87f   : > { %12660 = vst [vmem:[#allocation63_spill] sm:$0xff] %v10815_v55  ;;  %v3925_v26 = vmax.f32 %v10808_v7, %v10815_v55  ;;  %v3830_v5 = vpop.f32.mrf.mxu0  ;;  %v10833_v55 = vpop.permute.xlu0 %4179 }
 0x880   : > { %v10824_v37 = vsel %vm12662_vm10, %v3830_v5, -1e+30  ;;  %12666 = vst [vmem:[#allocation67_spill] sm:$0xff] %v10833_v55  ;;  %vm12669_vm10 = vcmp.ge.s32.totalorder %v12616_v52, %v12603_v21 }
 0x881   : > { %v3832_v30 = vpop.f32.mrf.mxu0  ;;  %3926 = vmax.xlane.f32.xlu0 %v3925_v26  ;;  %12663 = vst [vmem:[#allocation65_spill] sm:$0xff] %v10824_v37 }
 0x882   : > { %v10829_v16 = vsel %vm12664_vm11, %v3832_v30, -1e+30  ;;  %vm12673_vm11 = vcmp.ge.s32.totalorder %v12619_v59, %v12602_v14 }
 0x883   : > { %12665 = vst [vmem:[#allocation66_spill] sm:$0xff] %v10829_v16  ;;  %v3928_v45 = vmax.f32 %v10824_v37, %v10829_v16  ;;  %v3836_v61 = vpop.f32.mrf.mxu0  ;;  %v10847_v16 = vpop.permute.xlu1 %4169 }
 0x884   : > { %v10838_v9 = vsel %vm12667_vm0, %v3836_v61, -1e+30  ;;  %12671 = vst [vmem:[#allocation70_spill] sm:$0xff] %v10847_v16  ;;  %vm12675_vm0 = vcmp.ge.s32.totalorder %v12619_v59, %v12603_v21 }
 0x885   : > { %3929 = vmax.xlane.f32.xlu1 %v3928_v45  ;;  %v3838_v26 = vpop.f32.mrf.mxu0  ;;  %12668 = vst [vmem:[#allocation68_spill] sm:$0xff] %v10838_v9  ;;  %v10849_v45 = vpop.permute.xlu0 %4163 }
 0x886   : > { %v10843_v5 = vsel %vm12669_vm10, %v3838_v26, -1e+30  ;;  %12672 = vst [vmem:[#allocation71_spill] sm:$0xff] %v10849_v45  ;;  %vm12678_vm10 = vcmp.ge.s32.totalorder %v12622_v27, %v12602_v14 }
 0x887   : > { %12670 = vst [vmem:[#allocation69_spill] sm:$0xff] %v10843_v5  ;;  %v3931_v30 = vmax.f32 %v10838_v9, %v10843_v5  ;;  %v3840_v7 = vpop.f32.mrf.mxu0  ;;  %v10863_v9 = vpop.permute.xlu1 %4165 }
 0x888   : > { %v10854_v61 = vsel %vm12673_vm11, %v3840_v7, -1e+30  ;;  %12677 = vst [vmem:[#allocation74_spill] sm:$0xff] %v10863_v9  ;;  %vm12680_vm11 = vcmp.ge.s32.totalorder %v12622_v27, %v12603_v21 }
 0x889   : > { %v3842_v37 = vpop.f32.mrf.mxu0  ;;  %3932 = vmax.xlane.f32.xlu0 %v3931_v30  ;;  %12674 = vst [vmem:[#allocation72_spill] sm:$0xff] %v10854_v61 }
 0x88a   : > { %v10859_v26 = vsel %vm12675_vm0, %v3842_v37, -1e+30  ;;  %vm12683_vm0 = vcmp.ge.s32.totalorder %v12625_v17, %v12602_v14 }
 0x88b   : > { %12676 = vst [vmem:[#allocation73_spill] sm:$0xff] %v10859_v26  ;;  %v3934_v55 = vmax.f32 %v10854_v61, %v10859_v26  ;;  %v3846_v5 = vpop.f32.mrf.mxu0  ;;  %v10877_v26 = vpop.permute.xlu0 %4867 }
 0x88c   : > { %v10868_v30 = vsel %vm12678_vm10, %v3846_v5, -1e+30  ;;  %12682 = vst [vmem:[#allocation77_spill] sm:$0xff] %v10877_v26  ;;  %vm12685_vm10 = vcmp.ge.s32.totalorder %v12625_v17, %v12603_v21 }
 0x88d   : > { %3935 = vmax.xlane.f32.xlu1 %v3934_v55  ;;  %v3848_v16 = vpop.f32.mrf.mxu0  ;;  %12679 = vst [vmem:[#allocation75_spill] sm:$0xff] %v10868_v30 }
 0x88e   : > { %v10873_v7 = vsel %vm12680_vm11, %v3848_v16, -1e+30  ;;  %vm12689_vm11 = vcmp.ge.s32.totalorder %v12629_v49, %v12602_v14 }
 0x88f   : > { %12681 = vst [vmem:[#allocation76_spill] sm:$0xff] %v10873_v7  ;;  %v3937_v37 = vmax.f32 %v10868_v30, %v10873_v7  ;;  %v3850_v45 = vpop.f32.mrf.mxu0  ;;  %v10891_v7 = vpop.permute.xlu1 %4851 }
 0x890   : > { %v10882_v9 = vsel %vm12683_vm0, %v3850_v45, -1e+30  ;;  %12687 = vst [vmem:[#allocation80_spill] sm:$0xff] %v10891_v7  ;;  %v10893_v30 = vpop.permute.xlu0 %4865  ;;  %vm12691_vm0 = vcmp.ge.s32.totalorder %v12629_v49, %v12603_v21 }
 0x891   : > { %v3852_v55 = vpop.f32.mrf.mxu0  ;;  %3938 = vmax.xlane.f32.xlu0 %v3937_v37  ;;  %12684 = vst [vmem:[#allocation78_spill] sm:$0xff] %v10882_v9  ;;  %12688 = vst [vmem:[#allocation81_spill] sm:$0xff] %v10893_v30 }
 0x892   : > { %v10887_v5 = vsel %vm12685_vm10, %v3852_v55, -1e+30  ;;  %vm12697_vm10 = vcmp.ge.s32.totalorder %v12634_v23, %v12602_v14 }
 0x893   : > { %12686 = vst [vmem:[#allocation79_spill] sm:$0xff] %v10887_v5  ;;  %v3940_v16 = vmax.f32 %v10882_v9, %v10887_v5  ;;  %v3856_v61 = vpop.f32.mrf.mxu0 }
 0x894   : > { %v10898_v45 = vsel %vm12689_vm11, %v3856_v61, -1e+30  ;;  %vm12699_vm11 = vcmp.ge.s32.totalorder %v12634_v23, %v12603_v21 }
 0x895   : > { %3941 = vmax.xlane.f32.xlu1 %v3940_v16  ;;  %v3858_v26 = vpop.f32.mrf.mxu0  ;;  %12690 = vst [vmem:[#allocation82_spill] sm:$0xff] %v10898_v45  ;;  %v10907_v16 = vpop.permute.xlu1 %4849 }
 0x896   : > { %v10903_v37 = vsel %vm12691_vm0, %v3858_v26, -1e+30  ;;  %12693 = vst [vmem:[#allocation84_spill] sm:$0xff] %v10907_v16  ;;  %vm12728_vm0 = vcmp.ge.s32.totalorder %v12619_v59, %v12603_v21 }
 0x897   : > { %12692 = vst [vmem:[#allocation83_spill] sm:$0xff] %v10903_v37  ;;  %v3943_v55 = vmax.f32 %v10898_v45, %v10903_v37  ;;  %v3860_v5 = vpop.f32.mrf.mxu0  ;;  %v10921_v37 = vpop.permute.xlu0 %4863 }
 0x898   : > { %v10912_v30 = vsel %vm2199_vm12, %v3860_v5, -1e+30  ;;  %12696 = vst [vmem:[#allocation87_spill] sm:$0xff] %v10921_v37 }
 0x899   : > { %v3862_v9 = vpop.f32.mrf.mxu0  ;;  %3944 = vmax.xlane.f32.xlu0 %v3943_v55  ;;  %12694 = vst [vmem:[#allocation85_spill] sm:$0xff] %v10912_v30 }
 0x89a   : > { %v10917_v61 = vsel %vm2200_vm15, %v3862_v9, -1e+30 }
 0x89b   : > { %12695 = vst [vmem:[#allocation86_spill] sm:$0xff] %v10917_v61  ;;  %v3946_v26 = vmax.f32 %v10912_v30, %v10917_v61  ;;  %v3866_v7 = vpop.f32.mrf.mxu0  ;;  %v10935_v61 = vpop.permute.xlu1 %4861 }
 0x89c   : > { %v10926_v16 = vsel %vm12697_vm10, %v3866_v7, -1e+30  ;;  %12701 = vst [vmem:[#allocation90_spill] sm:$0xff] %v10935_v61  ;;  %vm12730_vm10 = vcmp.ge.s32.totalorder %v12619_v59, %v12602_v14 }
 0x89d   : > { %3947 = vmax.xlane.f32.xlu1 %v3946_v26  ;;  %v3868_v55 = vpop.f32.mrf.mxu0  ;;  %12698 = vst [vmem:[#allocation88_spill] sm:$0xff] %v10926_v16  ;;  %v10937_v26 = vpop.permute.xlu0 %4847 }
 0x89e   : > { %v10931_v5 = vsel %vm12699_vm11, %v3868_v55, -1e+30  ;;  %12702 = vst [vmem:[#allocation91_spill] sm:$0xff] %v10937_v26  ;;  %vm12732_vm11 = vcmp.ge.s32.totalorder %v12622_v27, %v12602_v14 }
 0x89f   : > { %12700 = vst [vmem:[#allocation89_spill] sm:$0xff] %v10931_v5  ;;  %v3949_v9 = vmax.f32 %v10926_v16, %v10931_v5  ;;  %v3870_v45 = vpop.f32.mrf.mxu0  ;;  %v10951_v16 = vpop.permute.xlu1 %4845 }
 0x8a0   : > { %v10942_v7 = vsel %vm2203_vm13, %v3870_v45, -1e+30  ;;  %12704 = vst [vmem:[#allocation93_spill] sm:$0xff] %v10951_v16 }
 0x8a1   : > { %v3872_v30 = vpop.f32.mrf.mxu0  ;;  %3950 = vmax.xlane.f32.xlu0 %v3949_v9 }
 0x8a2   : > { %v10947_v55 = vsel %vm2204_vm14, %v3872_v30, -1e+30 }
 0x8a3   : > { %12703 = vst [vmem:[#allocation92_spill] sm:$0xff] %v10947_v55  ;;  %v3952_v37 = vmax.f32 %v10942_v7, %v10947_v55  ;;  %v4470_v5 = vpop.f32.mrf.mxu0  ;;  %v10965_v55 = vpop.permute.xlu0 %4859 }
 0x8a4   : > { %v10956_v9 = vsel %vm2173_vm1, %v4470_v5, -1e+30  ;;  %12707 = vst [vmem:[#allocation96_spill] sm:$0xff] %v10965_v55  ;;  %vm12715_vm1 = vcmp.ge.s32.totalorder %v12607_v62, %v12603_v21 }
 0x8a5   : > { %3953 = vmax.xlane.f32.xlu1 %v3952_v37  ;;  %v4472_v61 = vpop.f32.mrf.mxu0  ;;  %12705 = vst [vmem:[#allocation94_spill] sm:$0xff] %v10956_v9 }
 0x8a6   : > { %v10961_v45 = vsel %vm2174_vm2, %v4472_v61, -1e+30  ;;  %vm12716_vm2 = vcmp.ge.s32.totalorder %v12608_v6, %v12602_v14 }
 0x8a7   : > { %12706 = vst [vmem:[#allocation95_spill] sm:$0xff] %v10961_v45  ;;  %v4581_v30 = vmax.f32 %v10956_v9, %v10961_v45  ;;  %v4474_v26 = vpop.f32.mrf.mxu0  ;;  %v10979_v45 = vpop.permute.xlu1 %4857 }
 0x8a8   : > { %v10970_v16 = vsel %vm2175_vm3, %v4474_v26, -1e+30  ;;  %12710 = vst [vmem:[#allocation99_spill] sm:$0xff] %v10979_v45  ;;  %vm12717_vm3 = vcmp.ge.s32.totalorder %v12608_v6, %v12603_v21 }
 0x8a9   : > { %4582 = vmax.xlane.f32.xlu0 %v4581_v30  ;;  %v4476_v37 = vpop.f32.mrf.mxu0  ;;  %12708 = vst [vmem:[#allocation97_spill] sm:$0xff] %v10970_v16  ;;  %v10981_v30 = vpop.permute.xlu0 %4843 }
 0x8aa   : > { %v10975_v5 = vsel %vm2176_vm4, %v4476_v37, -1e+30  ;;  %12711 = vst [vmem:[#allocation100_spill] sm:$0xff] %v10981_v30  ;;  %vm12718_vm4 = vcmp.ge.s32.totalorder %v12610_v58, %v12602_v14 }
 0x8ab   : > { %12709 = vst [vmem:[#allocation98_spill] sm:$0xff] %v10975_v5  ;;  %v4584_v48 = vmax.f32 %v10970_v16, %v10975_v5  ;;  %v4480_v61 = vpop.f32.mrf.mxu0 }
 0x8ac   : > { %v10986_v26 = vsel %vm2177_vm5, %v4480_v61, -1e+30  ;;  %vm12719_vm5 = vcmp.ge.s32.totalorder %v12610_v58, %v12603_v21 }
 0x8ad   : > { %4585 = vmax.xlane.f32.xlu1 %v4584_v48  ;;  %v4482_v55 = vpop.f32.mrf.mxu0  ;;  %12712 = vst [vmem:[#allocation101_spill] sm:$0xff] %v10986_v26  ;;  %v10995_v48 = vpop.permute.xlu1 %4841 }
 0x8ae   : > { %v10991_v38 = vsel %vm2178_vm6, %v4482_v55, -1e+30  ;;  %12714 = vst [vmem:[#allocation103_spill] sm:$0xff] %v10995_v48  ;;  %vm12720_vm6 = vcmp.ge.s32.totalorder %v12613_v36, %v12602_v14 }
 0x8af   : > { %12713 = vst [vmem:[#allocation102_spill] sm:$0xff] %v10991_v38  ;;  %v4587_v37 = vmax.f32 %v10986_v26, %v10991_v38  ;;  %v4484_v5 = vpop.f32.mrf.mxu0 }
 0x8b0   : > { %v11000_v45 = vsel %vm2179_vm7, %v4484_v5, -1e+30  ;;  %vm12721_vm7 = vcmp.ge.s32.totalorder %v12613_v36, %v12603_v21 }
 0x8b1   : > { %v4486_v16 = vpop.f32.mrf.mxu0  ;;  %4588 = vmax.xlane.f32.xlu0 %v4587_v37 }
 0x8b2   : > { %v11005_v61 = vsel %vm2180_vm8, %v4486_v16, -1e+30  ;;  %v3235_v10 = vpop.xlane.xlu0 %3234  ;;  %vm12723_vm8 = vcmp.ge.s32.totalorder %v12616_v52, %v12602_v14 }
 0x8b3   : > { %v4590_v55 = vmax.f32 %v11000_v45, %v11005_v61  ;;  %v3281_v30 = vsub.f32 %v10526_v42, %v3235_v10  ;;  %v3282_v37 = vsub.f32 %v10531_v0, %v3235_v10  ;;  %v4490_v38 = vpop.f32.mrf.mxu0 }
 0x8b4   : > { %v11014_v5 = vsel %vm2181_vm9, %v4490_v38, -1e+30  ;;  %vm12725_vm9 = vcmp.ge.s32.totalorder %v12616_v52, %v12603_v21 }
 0x8b5   : > { %v3313_v48 = vmul.f32 1.442695, %v3281_v30  ;;  %v3315_v26 = vmul.f32 1.442695, %v3282_v37  ;;  %4591 = vmax.xlane.f32.xlu1 %v4590_v55  ;;  %v4492_v9 = vpop.f32.mrf.mxu0 }
 0x8b6   : > { %v11019_v40 = vsel %vm12715_vm1, %v4492_v9, -1e+30  ;;  %v3238_v16 = vpop.xlane.xlu1 %3237  ;;  %vm12734_vm1 = vcmp.ge.s32.totalorder %v12622_v27, %v12603_v21 }
 0x8b7   : > { %7783 = vpow2.f32 %v3313_v48  ;;  %v4593_v42 = vmax.f32 %v11014_v5, %v11019_v40  ;;  %v3283_v0 = vsub.f32 %v10538_v22, %v3238_v16  ;;  %v3284_v30 = vsub.f32 %v10543_v19, %v3238_v16  ;;  %v4494_v10 = vpop.f32.mrf.mxu0 }
 0x8b8   : > { %7785 = vpow2.f32 %v3315_v26  ;;  %v11028_v62 = vsel %vm12716_vm2, %v4494_v10, -1e+30  ;;  %vm12736_vm2 = vcmp.ge.s32.totalorder %v12629_v49, %v12602_v14 }
 0x8b9   : > { %v3317_v55 = vmul.f32 1.442695, %v3283_v0  ;;  %v3319_v37 = vmul.f32 1.442695, %v3284_v30  ;;  %v4496_v38 = vpop.f32.mrf.mxu0  ;;  %4594 = vmax.xlane.f32.xlu0 %v4593_v42 }
 0x8ba   : > { %v11033_v9 = vsel %vm12717_vm3, %v4496_v38, -1e+30  ;;  %v3241_v48 = vpop.xlane.xlu0 %3240  ;;  %vm12737_vm3 = vcmp.ge.s32.totalorder %v12629_v49, %v12603_v21 }
 0x8bb   : > { %7787 = vpow2.f32 %v3317_v55  ;;  %v4596_v22 = vmax.f32 %v11028_v62, %v11033_v9  ;;  %v3285_v19 = vsub.f32 %v10550_v43, %v3241_v48  ;;  %v3286_v26 = vsub.f32 %v10555_v44, %v3241_v48  ;;  %v4500_v16 = vpop.f32.mrf.mxu0 }
 0x8bc   : > { %7789 = vpow2.f32 %v3319_v37  ;;  %v11042_v6 = vsel %vm12718_vm4, %v4500_v16, -1e+30  ;;  %vm12738_vm4 = vcmp.ge.s32.totalorder %v12625_v17, %v12603_v21 }
 0x8bd   : > { %4597 = vmax.xlane.f32.xlu1 %v4596_v22  ;;  %v4502_v42 = vpop.f32.mrf.mxu0  ;;  %v3321_v0 = vmul.f32 1.442695, %v3285_v19  ;;  %v3323_v55 = vmul.f32 1.442695, %v3286_v26 }
 0x8be   : > { %v11047_v30 = vsel %vm12719_vm5, %v4502_v42, -1e+30  ;;  %v3244_v10 = vpop.xlane.xlu0 %3243  ;;  %vm12739_vm5 = vcmp.ge.s32.totalorder %v12625_v17, %v12602_v14 }
 0x8bf   : > { %v4599_v43 = vmax.f32 %v11042_v6, %v11047_v30  ;;  %v3287_v44 = vsub.f32 %v10562_v39, %v3244_v10  ;;  %v3288_v37 = vsub.f32 %v10567_v8, %v3244_v10  ;;  %v4504_v38 = vpop.f32.mrf.mxu0  ;;  %7791 = vpow2.f32 %v3321_v0 }
 0x8c0   : > { %v11056_v58 = vsel %vm12720_vm6, %v4504_v38, -1e+30  ;;  %7793 = vpow2.f32 %v3323_v55  ;;  %vm12740_vm6 = vcmp.ge.s32.totalorder %v12634_v23, %v12602_v14 }
 0x8c1   : > { %v3325_v48 = vmul.f32 1.442695, %v3287_v44  ;;  %v4506_v22 = vpop.f32.mrf.mxu0  ;;  %4600 = vmax.xlane.f32.xlu0 %v4599_v43  ;;  %v3327_v19 = vmul.f32 1.442695, %v3288_v37 }
 0x8c2   : > { %v11061_v26 = vsel %vm12721_vm7, %v4506_v22, -1e+30  ;;  %v3247_v16 = vpop.xlane.xlu0 %3246  ;;  %vm12741_vm7 = vcmp.ge.s32.totalorder %v12634_v23, %v12603_v21 }
 0x8c3   : > { %v4602_v39 = vmax.f32 %v11056_v58, %v11061_v26  ;;  %v4510_v8 = vpop.f32.mrf.mxu0  ;;  %7795 = vpow2.f32 %v3325_v48  ;;  %v3289_v10 = vsub.f32 %v10574_v50, %v3247_v16  ;;  %v3290_v36 = vsub.f32 %v10579_v28, %v3247_v16 }
 0x8c4   : > { %v11065_v42 = vpop.eup %7783  ;;  %7797 = vpow2.f32 %v3327_v19  ;;  %v11074_v55 = vsel %vm12723_vm8, %v4510_v8, -1e+30 }
 0x8c5   : > { %12722 = vst [vmem:[#allocation104_spill] sm:$0xff] %v11065_v42  ;;  %v11067_v0 = vpop.eup %7785  ;;  %4603 = vmax.xlane.f32.xlu1 %v4602_v39  ;;  %v4512_v43 = vpop.f32.mrf.mxu0  ;;  %12724 = vst [vmem:[#allocation105_spill] sm:$0xff] %v11074_v55  ;;  %v3329_v19 = vmul.f32 1.442695, %v3289_v10  ;;  %v3331_v39 = vmul.f32 1.442695, %v3290_v36 }
 0x8c6   : > { %v11079_v44 = vsel %vm12725_vm9, %v4512_v43, -1e+30  ;;  %v3250_v38 = vpop.xlane.xlu1 %3249  ;;  %v3377_v48 = vadd.f32 %v11067_v0, %v11065_v42 }
 0x8c7   : > { %12726 = vst [vmem:[#allocation106_spill] sm:$0xff] %v11079_v44  ;;  %v4605_v37 = vmax.f32 %v11074_v55, %v11079_v44  ;;  %v4514_v50 = vpop.f32.mrf.mxu0  ;;  %v3291_v52 = vsub.f32 %v10586_v4, %v3250_v38  ;;  %v3292_v8 = vsub.f32 %v10591_v24, %v3250_v38  ;;  %7799 = vpow2.f32 %v3329_v19 }
 0x8c8   : > { %v11085_v22 = vpop.eup %7787  ;;  %v11101_v10 = vsel %vm12730_vm10, %v4514_v50, -1e+30  ;;  %7801 = vpow2.f32 %v3331_v39 }
 0x8c9   : > { %12727 = vst [vmem:[#allocation107_spill] sm:$0xff] %v11085_v22  ;;  %v11087_v28 = vpop.eup %7789  ;;  %v4516_v16 = vpop.f32.mrf.mxu0  ;;  %4606 = vmax.xlane.f32.xlu0 %v4605_v37  ;;  %3378 = vadd.xlane.f32.xlu1 %v3377_v48  ;;  %12731 = vst [vmem:[#allocation109_spill] sm:$0xff] %v11101_v10  ;;  %v3333_v4 = vmul.f32 1.442695, %v3291_v52  ;;  %v3335_v59 = vmul.f32 1.442695, %v3292_v8 }
 0x8ca   : > { %v3380_v44 = vadd.f32 %v11087_v28, %v11085_v22  ;;  %v11096_v55 = vsel %vm12728_vm0, %v4516_v16, -1e+30  ;;  %v3253_v36 = vpop.xlane.xlu0 %3252 }
 0x8cb   : > { %v4520_v43 = vpop.f32.mrf.mxu0  ;;  %12729 = vst [vmem:[#allocation108_spill] sm:$0xff] %v11096_v55  ;;  %v4608_v50 = vmax.f32 %v11101_v10, %v11096_v55  ;;  %v3293_v39 = vsub.f32 %v10598_v57, %v3253_v36  ;;  %v3294_v52 = vsub.f32 %v10603_v18, %v3253_v36  ;;  %7803 = vpow2.f32 %v3333_v4 }
 0x8cc   : > { %v11106_v24 = vsel %vm12732_vm11, %v4520_v43, -1e+30  ;;  %v11113_v48 = vpop.eup %7791  ;;  %7805 = vpow2.f32 %v3335_v59 }
 0x8cd   : > { %v4522_v37 = vpop.f32.mrf.mxu0  ;;  %3381 = vadd.xlane.f32.xlu1 %v3380_v44  ;;  %12733 = vst [vmem:[#allocation110_spill] sm:$0xff] %v11106_v24  ;;  %v11119_v16 = vpop.eup %7793  ;;  %v3337_v18 = vmul.f32 1.442695, %v3293_v39  ;;  %v3339_v36 = vmul.f32 1.442695, %v3294_v52 }
 0x8ce   : > { %v11111_v38 = vsel %vm12734_vm1, %v4522_v37, -1e+30  ;;  %v3256_v8 = vpop.xlane.xlu1 %3255  ;;  %v3383_v57 = vadd.f32 %v11119_v16, %v11113_v48 }
 0x8cf   : > { %12735 = vst [vmem:[#allocation111_spill] sm:$0xff] %v11111_v38  ;;  %v4611_v44 = vmax.f32 %v11106_v24, %v11111_v38  ;;  %v4524_v19 = vpop.f32.mrf.mxu0  ;;  %v3296_v42 = vsub.f32 %v10615_v20, %v3256_v8 }
 0x8d0   : > { %v11123_v27 = vpop.eup %7795 }
 0x8d1   : > { %v4526_v43 = vpop.f32.mrf.mxu0  ;;  %4612 = vmax.xlane.f32.xlu0 %v4611_v44  ;;  %4609 = vmax.xlane.f32.xlu1 %v4608_v50  ;;  %v11125_v22 = vpop.eup %7797  ;;  %v3295_v50 = vsub.f32 %v10610_v13, %v3256_v8 }
 0x8d2   : > { %v3259_v37 = vpop.xlane.xlu0 %3258  ;;  %v3386_v13 = vadd.f32 %v11125_v22, %v11123_v27 }
 0x8d3   : > { %v3297_v38 = vsub.f32 %v10622_v31, %v3259_v37  ;;  %v3298_v24 = vsub.f32 %v10627_v29, %v3259_v37  ;;  %v4530_v55 = vpop.f32.mrf.mxu0  ;;  %v3341_v49 = vmul.f32 1.442695, %v3295_v50 }
 0x8d4   : > { %v11136_v31 = vsel %vm12736_vm2, %v4530_v55, -1e+30  ;;  %v11152_v55 = vsel %vm12738_vm4, %v4526_v43, -1e+30 }
 0x8d5   : > { %v3345_v44 = vmul.f32 1.442695, %v3297_v38  ;;  %v3347_v10 = vmul.f32 1.442695, %v3298_v24  ;;  %v4532_v4 = vpop.f32.mrf.mxu0  ;;  %3384 = vadd.xlane.f32.xlu1 %v3383_v57  ;;  %v11154_v57 = vpop.eup %7799 }
 0x8d6   : > { %v11141_v29 = vsel %vm12737_vm3, %v4532_v4, -1e+30  ;;  %v3262_v59 = vpop.xlane.xlu1 %3261  ;;  %v11161_v43 = vpop.eup %7801 }
 0x8d7   : > { %7807 = vpow2.f32 %v3345_v44  ;;  %v4617_v24 = vmax.f32 %v11136_v31, %v11141_v29  ;;  %v3299_v20 = vsub.f32 %v10634_v46, %v3262_v59  ;;  %v3300_v38 = vsub.f32 %v10639_v12, %v3262_v59  ;;  %v4534_v39 = vpop.f32.mrf.mxu0 }
 0x8d8   : > { %7809 = vpow2.f32 %v3347_v10  ;;  %v3343_v46 = vmul.f32 1.442695, %v3296_v42  ;;  %v11159_v12 = vsel %vm12739_vm5, %v4524_v19, -1e+30 }
 0x8d9   : > { %7811 = vpow2.f32 %v3337_v18  ;;  %v3349_v52 = vmul.f32 1.442695, %v3299_v20  ;;  %v3351_v8 = vmul.f32 1.442695, %v3300_v38  ;;  %v4536_v37 = vpop.f32.mrf.mxu0  ;;  %4618 = vmax.xlane.f32.xlu0 %v4617_v24  ;;  %3387 = vadd.xlane.f32.xlu1 %v3386_v13  ;;  %v4614_v10 = vmax.f32 %v11159_v12, %v11152_v55  ;;  %v11179_v13 = vpop.eup %7803 }
 0x8da   : > { %7813 = vpow2.f32 %v3339_v36  ;;  %v3265_v44 = vpop.xlane.xlu0 %3264 }
 0x8db   : > { %7815 = vpow2.f32 %v3349_v52  ;;  %v3301_v18 = vsub.f32 %v10646_v53, %v3265_v44  ;;  %v3302_v50 = vsub.f32 %v10651_v32, %v3265_v44  ;;  %v4540_v4 = vpop.f32.mrf.mxu0  ;;  %v3389_v32 = vadd.f32 %v11161_v43, %v11154_v57 }
 0x8dc   : > { %7817 = vpow2.f32 %v3351_v8  ;;  %v11170_v17 = vsel %vm12740_vm6, %v4540_v4, -1e+30 }
 0x8dd   : > { %7819 = vpow2.f32 %v3341_v49  ;;  %v3353_v42 = vmul.f32 1.442695, %v3301_v18  ;;  %v3355_v36 = vmul.f32 1.442695, %v3302_v50  ;;  %v4542_v59 = vpop.f32.mrf.mxu0  ;;  %4615 = vmax.xlane.f32.xlu1 %v4614_v10  ;;  %v11185_v49 = vpop.eup %7805 }
 0x8de   : > { %7821 = vpow2.f32 %v3343_v46  ;;  %v11175_v19 = vsel %vm12741_vm7, %v4542_v59, -1e+30  ;;  %v3268_v53 = vpop.xlane.xlu1 %3267  ;;  %v3392_v10 = vadd.f32 %v11185_v49, %v11179_v13 }
 0x8df   : > { %7823 = vpow2.f32 %v3353_v42  ;;  %v4623_v24 = vmax.f32 %v11170_v17, %v11175_v19  ;;  %v3303_v20 = vsub.f32 %v10658_v47, %v3268_v53  ;;  %v3304_v38 = vsub.f32 %v10663_v54, %v3268_v53 }
 0x8e0   : > { %7825 = vpow2.f32 %v3355_v36  ;;  %v11196_v47 = vsel %vm2200_vm15, %v4536_v37, -1e+30 }
 0x8e1   : > { %v3357_v23 = vmul.f32 1.442695, %v3303_v20  ;;  %4624 = vmax.xlane.f32.xlu0 %v4623_v24  ;;  %3390 = vadd.xlane.f32.xlu1 %v3389_v32  ;;  %v3359_v52 = vmul.f32 1.442695, %v3304_v38 }
 0x8e2   : > { %v3271_v8 = vpop.xlane.xlu0 %3270 }
 0x8e3   : > { %v3305_v46 = vsub.f32 %v10672_v15, %v3271_v8  ;;  %v3306_v44 = vsub.f32 %v10677_v25, %v3271_v8  ;;  %7827 = vpow2.f32 %v3357_v23  ;;  %v11205_v15 = vsel %vm2199_vm12, %v4534_v39, -1e+30  ;;  %v4544_v39 = vpop.f32.mrf.mxu0 }
 0x8e4   : > { %v11191_v18 = vpop.eup %7807  ;;  %7829 = vpow2.f32 %v3359_v52  ;;  %v4620_v59 = vmax.f32 %v11205_v15, %v11196_v47  ;;  %vm5086_vm12 = vcmask 523264  }
 0x8e5   : > { %v11198_v54 = vpop.eup %7809  ;;  %v3361_v50 = vmul.f32 1.442695, %v3305_v46  ;;  %v3363_v4 = vmul.f32 1.442695, %v3306_v44  ;;  %3393 = vadd.xlane.f32.xlu1 %v3392_v10 }
 0x8e6   : > { %v11200_v42 = vpop.eup %7811  ;;  %v3274_v25 = vpop.xlane.xlu1 %3273  ;;  %v3401_v36 = vadd.f32 %v11198_v54, %v11191_v18 }
 0x8e7   : > { %v11209_v37 = vpop.eup %7813  ;;  %7831 = vpow2.f32 %v3361_v50  ;;  %v3307_v53 = vsub.f32 %v10684_v11, %v3274_v25  ;;  %v3308_v32 = vsub.f32 %v10689_v1, %v3274_v25 }
 0x8e8   : > { %v11215_v24 = vpop.eup %7815  ;;  %7833 = vpow2.f32 %v3363_v4  ;;  %3402 = vadd.xlane.f32.xlu0 %v3401_v36  ;;  %v3395_v44 = vadd.f32 %v11209_v37, %v11200_v42  ;;  %v4546_v4 = vpop.f32.mrf.mxu0 }
 0x8e9   : > { %v11217_v41 = vpop.eup %7817  ;;  %v3365_v20 = vmul.f32 1.442695, %v3307_v53  ;;  %v3367_v38 = vmul.f32 1.442695, %v3308_v32  ;;  %4621 = vmax.xlane.f32.xlu1 %v4620_v59 }
 0x8ea   : > { %v11219_v23 = vpop.eup %7819  ;;  %v3277_v52 = vpop.xlane.xlu0 %3276  ;;  %v3404_v8 = vadd.f32 %v11217_v41, %v11215_v24 }
 0x8eb   : > { %v11223_v46 = vpop.eup %7821  ;;  %7835 = vpow2.f32 %v3365_v20  ;;  %v3309_v11 = vsub.f32 %v10698_v60, %v3277_v52  ;;  %v3310_v1 = vsub.f32 %v10703_v35, %v3277_v52  ;;  %v11242_v20 = vsel %vm2204_vm14, %v4546_v4, -1e+30 }
 0x8ec   : > { %v11229_v10 = vpop.eup %7823  ;;  %7837 = vpow2.f32 %v3367_v38  ;;  %3405 = vadd.xlane.f32.xlu0 %v3404_v8  ;;  %v3398_v32 = vadd.f32 %v11223_v46, %v11219_v23  ;;  %vm12901_vm14 = vcmask 261120  }
 0x8ed   : > { %12742 = vst [vmem:[#allocation112_spill] sm:$0xff] %v11229_v10  ;;  %v11231_v50 = vpop.eup %7825  ;;  %v3369_v25 = vmul.f32 1.442695, %v3309_v11  ;;  %v3371_v36 = vmul.f32 1.442695, %v3310_v1  ;;  %3396 = vadd.xlane.f32.xlu1 %v3395_v44  ;;  %vm12905_vm15 = vmmov %vm12901_vm14 }
 0x8ee   : > { %v3280_v59 = vpop.xlane.xlu1 %3279  ;;  %v3407_v53 = vadd.f32 %v11231_v50, %v11229_v10  ;;  %vm12909_vm8 = vmmov %vm12901_vm14 }
 0x8ef   : > { %7839 = vpow2.f32 %v3369_v25  ;;  %v3311_v60 = vsub.f32 %v10712_v34, %v3280_v59  ;;  %v3312_v35 = vsub.f32 %v10717_v2, %v3280_v59  ;;  %v11249_v34 = vsel %vm2203_vm13, %v4544_v39, -1e+30  ;;  %vm12913_vm9 = vmmov %vm12909_vm8 }
 0x8f0   : > { %7841 = vpow2.f32 %v3371_v36  ;;  %3408 = vadd.xlane.f32.xlu0 %v3407_v53  ;;  %v11244_v8 = vpop.eup %7827  ;;  %v4626_v21 = vmax.f32 %v11249_v34, %v11242_v20  ;;  %vm5103_vm13 = vcmask 785408   ;;  %vm12917_vm0 = vmmov %vm12909_vm8 }
 0x8f1   : > { %v3373_v38 = vmul.f32 1.442695, %v3311_v60  ;;  %v3375_v52 = vmul.f32 1.442695, %v3312_v35  ;;  %3399 = vadd.xlane.f32.xlu1 %v3398_v32  ;;  %12743 = vst [vmem:[#allocation113_spill] sm:$0xff] %v11244_v8  ;;  %v11251_v11 = vpop.eup %7829  ;;  %vm12921_vm10 = vmmov %vm12917_vm0 }
 0x8f2   : > { %v3909_v2 = vpop.xlane.xlu0 %3908  ;;  %vm12925_vm11 = vmmov %vm12917_vm0 }
 0x8f3   : > { %7843 = vpow2.f32 %v3373_v38  ;;  %v3955_v1 = vsub.f32 %v10724_v56, %v3909_v2  ;;  %v3956_v44 = vsub.f32 %v10729_v3, %v3909_v2  ;;  %v3410_v56 = vadd.f32 %v11251_v11, %v11244_v8  ;;  %v12786_v8 = vld [vmem:[#allocation76_spill] sm:$0xff]  ;;  %vm12929_vm1 = vmmov %vm12917_vm0 }
 0x8f4   : > { %v11257_v4 = vpop.eup %7831  ;;  %7845 = vpow2.f32 %v3375_v52  ;;  %v12748_v52 = vld [vmem:[#allocation33_spill] sm:$0xff] }
 0x8f5   : > { %12744 = vst [vmem:[#allocation114_spill] sm:$0xff] %v11257_v4  ;;  %v11259_v25 = vpop.eup %7833  ;;  %v3987_v36 = vmul.f32 1.442695, %v3955_v1  ;;  %v3989_v14 = vmul.f32 1.442695, %v3956_v44  ;;  %4627 = vmax.xlane.f32.xlu1 %v4626_v21  ;;  %v12749_v21 = vld [vmem:[#allocation34_spill] sm:$0xff] }
 0x8f6   : > { %12745 = vst [vmem:[#allocation115_spill] sm:$0xff] %v11259_v25  ;;  %v3912_v33 = vpop.xlane.xlu1 %3911  ;;  %v3413_v39 = vadd.f32 %v11259_v25, %v11257_v4  ;;  %v12783_v25 = vld [vmem:[#allocation79_spill] sm:$0xff] }
 0x8f7   : > { %7847 = vpow2.f32 %v3987_v36  ;;  %v3957_v59 = vsub.f32 %v10738_v63, %v3912_v33  ;;  %v3958_v53 = vsub.f32 %v10743_v51, %v3912_v33 }
 0x8f8   : > { %v11267_v3 = vpop.eup %7835  ;;  %7849 = vpow2.f32 %v3989_v14  ;;  %3414 = vadd.xlane.f32.xlu0 %v3413_v39 }
 0x8f9   : > { %12746 = vst [vmem:[#allocation116_spill] sm:$0xff] %v11267_v3  ;;  %v11269_v60 = vpop.eup %7837  ;;  %v3991_v35 = vmul.f32 1.442695, %v3957_v59  ;;  %v3993_v32 = vmul.f32 1.442695, %v3958_v53  ;;  %3411 = vadd.xlane.f32.xlu1 %v3410_v56  ;;  %v12752_v59 = vld [vmem:[#allocation35_spill] sm:$0xff] }
 0x8fa   : > { %12747 = vst [vmem:[#allocation117_spill] sm:$0xff] %v11269_v60  ;;  %v3915_v38 = vpop.xlane.xlu0 %3914  ;;  %v3416_v51 = vadd.f32 %v11269_v60, %v11267_v3  ;;  %v12753_v56 = vld [vmem:[#allocation36_spill] sm:$0xff] }
 0x8fb   : > { %7851 = vpow2.f32 %v3991_v35  ;;  %v3959_v2 = vsub.f32 %v12748_v52, %v3915_v38  ;;  %v3960_v63 = vsub.f32 %v12749_v21, %v3915_v38 }
 0x8fc   : > { %v11275_v1 = vpop.eup %7839  ;;  %7853 = vpow2.f32 %v3993_v32 }
 0x8fd   : > { %12750 = vst [vmem:[#allocation33_spill] sm:$0xff] %v11275_v1  ;;  %v11277_v44 = vpop.eup %7841  ;;  %v3995_v36 = vmul.f32 1.442695, %v3959_v2  ;;  %v3997_v14 = vmul.f32 1.442695, %v3960_v63  ;;  %3417 = vadd.xlane.f32.xlu1 %v3416_v51  ;;  %v12756_v51 = vld [vmem:[#allocation39_spill] sm:$0xff] }
 0x8fe   : > { %12751 = vst [vmem:[#allocation34_spill] sm:$0xff] %v11277_v44  ;;  %v3918_v33 = vpop.xlane.xlu1 %3917  ;;  %v3419_v39 = vadd.f32 %v11277_v44, %v11275_v1 }
 0x8ff   : > { %7855 = vpow2.f32 %v3995_v36  ;;  %v3961_v53 = vsub.f32 %v12752_v59, %v3918_v33  ;;  %v3962_v35 = vsub.f32 %v12753_v56, %v3918_v33  ;;  %v12757_v36 = vld [vmem:[#allocation40_spill] sm:$0xff] }
 0x900   : > { %v11283_v38 = vpop.eup %7843  ;;  %7857 = vpow2.f32 %v3997_v14  ;;  %3420 = vadd.xlane.f32.xlu0 %v3419_v39 }
 0x901   : > { %12754 = vst [vmem:[#allocation35_spill] sm:$0xff] %v11283_v38  ;;  %v11285_v52 = vpop.eup %7845  ;;  %v3999_v32 = vmul.f32 1.442695, %v3961_v53  ;;  %v4001_v21 = vmul.f32 1.442695, %v3962_v35  ;;  %v12760_v35 = vld [vmem:[#allocation42_spill] sm:$0xff] }
 0x902   : > { %12755 = vst [vmem:[#allocation36_spill] sm:$0xff] %v11285_v52  ;;  %v3921_v2 = vpop.xlane.xlu0 %3920  ;;  %v3422_v63 = vadd.f32 %v11285_v52, %v11283_v38  ;;  %v12781_v52 = vld [vmem:[#allocation73_spill] sm:$0xff] }
 0x903   : > { %7859 = vpow2.f32 %v3999_v32  ;;  %v3963_v1 = vsub.f32 %v12756_v51, %v3921_v2  ;;  %v3964_v44 = vsub.f32 %v12757_v36, %v3921_v2  ;;  %v12761_v32 = vld [vmem:[#allocation43_spill] sm:$0xff] }
 0x904   : > { %v11291_v59 = vpop.eup %7847  ;;  %7861 = vpow2.f32 %v4001_v21  ;;  %3423 = vadd.xlane.f32.xlu1 %v3422_v63 }
 0x905   : > { %12758 = vst [vmem:[#allocation39_spill] sm:$0xff] %v11291_v59  ;;  %v11293_v33 = vpop.eup %7849  ;;  %v4003_v14 = vmul.f32 1.442695, %v3963_v1  ;;  %v4005_v39 = vmul.f32 1.442695, %v3964_v44  ;;  %v12764_v44 = vld [vmem:[#allocation45_spill] sm:$0xff] }
 0x906   : > { %12759 = vst [vmem:[#allocation40_spill] sm:$0xff] %v11293_v33  ;;  %v3924_v56 = vpop.xlane.xlu1 %3923  ;;  %v4051_v53 = vadd.f32 %v11293_v33, %v11291_v59 }
 0x907   : > { %7863 = vpow2.f32 %v4003_v14  ;;  %v3965_v38 = vsub.f32 %v12760_v35, %v3924_v56  ;;  %v3966_v4 = vsub.f32 %v12761_v32, %v3924_v56  ;;  %v12765_v14 = vld [vmem:[#allocation63_spill] sm:$0xff] }
 0x908   : > { %v11299_v51 = vpop.eup %7851  ;;  %7865 = vpow2.f32 %v4005_v39  ;;  %4052 = vadd.xlane.f32.xlu1 %v4051_v53 }
 0x909   : > { %12762 = vst [vmem:[#allocation42_spill] sm:$0xff] %v11299_v51  ;;  %v11301_v2 = vpop.eup %7853  ;;  %v4007_v21 = vmul.f32 1.442695, %v3965_v38  ;;  %v4009_v63 = vmul.f32 1.442695, %v3966_v4  ;;  %v12768_v38 = vld [vmem:[#allocation65_spill] sm:$0xff] }
 0x90a   : > { %12763 = vst [vmem:[#allocation43_spill] sm:$0xff] %v11301_v2  ;;  %v3927_v36 = vpop.xlane.xlu0 %3926  ;;  %v4054_v1 = vadd.f32 %v11301_v2, %v11299_v51 }
 0x90b   : > { %7867 = vpow2.f32 %v4007_v21  ;;  %v3967_v59 = vsub.f32 %v12764_v44, %v3927_v36  ;;  %v3968_v33 = vsub.f32 %v12765_v14, %v3927_v36  ;;  %v12769_v21 = vld [vmem:[#allocation66_spill] sm:$0xff] }
 0x90c   : > { %v11307_v35 = vpop.eup %7855  ;;  %7869 = vpow2.f32 %v4009_v63  ;;  %4055 = vadd.xlane.f32.xlu1 %v4054_v1 }
 0x90d   : > { %12766 = vst [vmem:[#allocation45_spill] sm:$0xff] %v11307_v35  ;;  %v11309_v56 = vpop.eup %7857  ;;  %v4011_v39 = vmul.f32 1.442695, %v3967_v59  ;;  %v4013_v53 = vmul.f32 1.442695, %v3968_v33 }
 0x90e   : > { %12767 = vst [vmem:[#allocation63_spill] sm:$0xff] %v11309_v56  ;;  %v3930_v32 = vpop.xlane.xlu1 %3929  ;;  %v4057_v4 = vadd.f32 %v11309_v56, %v11307_v35 }
 0x90f   : > { %7871 = vpow2.f32 %v4011_v39  ;;  %v3969_v51 = vsub.f32 %v12768_v38, %v3930_v32  ;;  %v3970_v2 = vsub.f32 %v12769_v21, %v3930_v32  ;;  %v8135_v32 = vld [vmem:[#allocation3 + $0x48] sm:$0xff]   ;;  %v12777_v21 = vld [vmem:[#allocation69_spill] sm:$0xff] }
 0x910   : > { %v11315_v44 = vpop.eup %7859  ;;  %7873 = vpow2.f32 %v4013_v53  ;;  %4058 = vadd.xlane.f32.xlu1 %v4057_v4 }
 0x911   : > { %12770 = vst [vmem:[#allocation65_spill] sm:$0xff] %v11315_v44  ;;  %v11317_v36 = vpop.eup %7861  ;;  %v4015_v63 = vmul.f32 1.442695, %v3969_v51  ;;  %v4017_v1 = vmul.f32 1.442695, %v3970_v2  ;;  %v12776_v2 = vld [vmem:[#allocation68_spill] sm:$0xff] }
 0x912   : > { %12771 = vst [vmem:[#allocation66_spill] sm:$0xff] %v11317_v36  ;;  %v4060_v59 = vadd.f32 %v11317_v36, %v11315_v44  ;;  %v3933_v39 = vpop.xlane.xlu0 %3932 }
 0x913   : > { %7875 = vpow2.f32 %v4015_v63  ;;  %v3971_v38 = vsub.f32 %v12776_v2, %v3933_v39  ;;  %v3972_v63 = vsub.f32 %v12777_v21, %v3933_v39  ;;  %v12782_v21 = vld [vmem:[#allocation78_spill] sm:$0xff] }
 0x914   : > { %v11321_v33 = vpop.eup %7863  ;;  %7877 = vpow2.f32 %v4017_v1  ;;  %4061 = vadd.xlane.f32.xlu1 %v4060_v59 }
 0x915   : > { %12772 = vst [vmem:[#allocation118_spill] sm:$0xff] %v11321_v33  ;;  %v11323_v14 = vpop.eup %7865  ;;  %v4019_v44 = vmul.f32 1.442695, %v3971_v38  ;;  %v12785_v38 = vld [vmem:[#allocation75_spill] sm:$0xff] }
 0x916   : > { %12773 = vst [vmem:[#allocation119_spill] sm:$0xff] %v11323_v14  ;;  %4855 = vrot.lane.b32.xlu0 %v8135_v32, %s8460_s24  ;;  %v4063_v53 = vadd.f32 %v11323_v14, %v11321_v33  ;;  %v3936_v1 = vpop.xlane.xlu1 %3935  ;;  %v4021_v33 = vmul.f32 1.442695, %v3972_v63  ;;  %v12780_v14 = vld [vmem:[#allocation72_spill] sm:$0xff] }
 0x917   : > { %v3973_v56 = vsub.f32 %v12780_v14, %v3936_v1  ;;  %v3974_v39 = vsub.f32 %v12781_v52, %v3936_v1  ;;  %7879 = vpow2.f32 %v4019_v44  ;;  %v12787_v44 = vld [vmem:[#allocation82_spill] sm:$0xff] }
 0x918   : > { %v11328_v4 = vpop.eup %7867  ;;  %4064 = vadd.xlane.f32.xlu1 %v4063_v53  ;;  %7881 = vpow2.f32 %v4021_v33 }
 0x919   : > { %12774 = vst [vmem:[#allocation120_spill] sm:$0xff] %v11328_v4  ;;  %v11330_v51 = vpop.eup %7869  ;;  %v4023_v60 = vmul.f32 1.442695, %v3973_v56  ;;  %v4025_v1 = vmul.f32 1.442695, %v3974_v39  ;;  %v12789_v56 = vld [vmem:[#allocation85_spill] sm:$0xff] }
 0x91a   : > { %12775 = vst [vmem:[#allocation121_spill] sm:$0xff] %v11330_v51  ;;  %v4066_v59 = vadd.f32 %v11330_v51, %v11328_v4  ;;  %v3939_v53 = vpop.xlane.xlu0 %3938 }
 0x91b   : > { %v3975_v63 = vsub.f32 %v12785_v38, %v3939_v53 }
 0x91c   : > { %v11336_v35 = vpop.eup %7871  ;;  %4067 = vadd.xlane.f32.xlu1 %v4066_v59 }
 0x91d   : > { %12778 = vst [vmem:[#allocation68_spill] sm:$0xff] %v11336_v35  ;;  %v11338_v32 = vpop.eup %7873 }
 0x91e   : > { %12779 = vst [vmem:[#allocation69_spill] sm:$0xff] %v11338_v32  ;;  %v3942_v36 = vpop.xlane.xlu1 %3941  ;;  %v4069_v2 = vadd.f32 %v11338_v32, %v11336_v35  ;;  %v3976_v35 = vsub.f32 %v12786_v8, %v3939_v53  ;;  %v12790_v8 = vld [vmem:[#allocation86_spill] sm:$0xff] }
 0x91f   : > { %v3977_v3 = vsub.f32 %v12782_v21, %v3942_v36  ;;  %v3978_v4 = vsub.f32 %v12783_v25, %v3942_v36  ;;  %v4027_v36 = vmul.f32 1.442695, %v3975_v63  ;;  %v12792_v63 = vld [vmem:[#allocation89_spill] sm:$0xff] }
 0x920   : > { %v11346_v51 = vpop.eup %7875  ;;  %4070 = vadd.xlane.f32.xlu1 %v4069_v2  ;;  %v4029_v2 = vmul.f32 1.442695, %v3976_v35 }
 0x921   : > { %12784 = vst [vmem:[#allocation72_spill] sm:$0xff] %v11346_v51  ;;  %v11348_v59 = vpop.eup %7877  ;;  %v4031_v14 = vmul.f32 1.442695, %v3977_v3  ;;  %v4033_v10 = vmul.f32 1.442695, %v3978_v4  ;;  %v12788_v3 = vld [vmem:[#allocation83_spill] sm:$0xff] }
 0x922   : > { %v4072_v52 = vadd.f32 %v11348_v59, %v11346_v51  ;;  %v3945_v25 = vpop.xlane.xlu0 %3944 }
 0x923   : > { %7883 = vpow2.f32 %v4031_v14  ;;  %v3979_v21 = vsub.f32 %v12787_v44, %v3945_v25  ;;  %v3980_v33 = vsub.f32 %v12788_v3, %v3945_v25 }
 0x924   : > { %7885 = vpow2.f32 %v4033_v10  ;;  %4073 = vadd.xlane.f32.xlu1 %v4072_v52  ;;  %v11360_v32 = vpop.eup %7879 }
 0x925   : > { %7887 = vpow2.f32 %v4023_v60  ;;  %v4035_v14 = vmul.f32 1.442695, %v3979_v21  ;;  %v4037_v52 = vmul.f32 1.442695, %v3980_v33  ;;  %v12791_v60 = vld [vmem:[#allocation88_spill] sm:$0xff] }
 0x926   : > { %v3948_v38 = vpop.xlane.xlu1 %3947  ;;  %7889 = vpow2.f32 %v4025_v1 }
 0x927   : > { %v3981_v4 = vsub.f32 %v12789_v56, %v3948_v38  ;;  %v3982_v53 = vsub.f32 %v12790_v8, %v3948_v38  ;;  %7891 = vpow2.f32 %v4027_v36  ;;  %v11362_v38 = vpop.eup %7881 }
 0x928   : > { %7893 = vpow2.f32 %v4029_v2  ;;  %v12793_v2 = vld [vmem:[#allocation92_spill] sm:$0xff] }
 0x929   : > { %v4039_v51 = vmul.f32 1.442695, %v3981_v4  ;;  %v4041_v39 = vmul.f32 1.442695, %v3982_v53 }
 0x92a   : > { %v3951_v10 = vpop.xlane.xlu0 %3950 }
 0x92b   : > { %7895 = vpow2.f32 %v4039_v51  ;;  %v3983_v35 = vsub.f32 %v12791_v60, %v3951_v10  ;;  %v3984_v44 = vsub.f32 %v12792_v63, %v3951_v10  ;;  %v4075_v60 = vadd.f32 %v11362_v38, %v11360_v32 }
 0x92c   : > { %7897 = vpow2.f32 %v4041_v39 }
 0x92d   : > { %v4043_v1 = vmul.f32 1.442695, %v3983_v35  ;;  %7899 = vpow2.f32 %v4035_v14  ;;  %v4045_v25 = vmul.f32 1.442695, %v3984_v44  ;;  %v12795_v14 = vld [vmem:[#allocation94_spill] sm:$0xff] }
 0x92e   : > { %v3954_v3 = vpop.xlane.xlu1 %3953  ;;  %7901 = vpow2.f32 %v4037_v52 }
 0x92f   : > { %v3985_v36 = vsub.f32 %v10942_v7, %v3954_v3  ;;  %v3986_v21 = vsub.f32 %v12793_v2, %v3954_v3  ;;  %7903 = vpow2.f32 %v4043_v1  ;;  %v12796_v7 = vld [vmem:[#allocation95_spill] sm:$0xff] }
 0x930   : > { %v11366_v33 = vpop.eup %7883  ;;  %7905 = vpow2.f32 %v4045_v25 }
 0x931   : > { %12794 = vst [vmem:[#allocation73_spill] sm:$0xff] %v11366_v33  ;;  %v11368_v51 = vpop.eup %7885  ;;  %v4047_v56 = vmul.f32 1.442695, %v3985_v36  ;;  %v4049_v4 = vmul.f32 1.442695, %v3986_v21  ;;  %v12797_v36 = vld [vmem:[#allocation97_spill] sm:$0xff] }
 0x932   : > { %v4583_v8 = vpop.xlane.xlu0 %4582  ;;  %v4084_v53 = vadd.f32 %v11368_v51, %v11366_v33  ;;  %v11372_v39 = vpop.eup %7887  ;;  %v12798_v21 = vld [vmem:[#allocation98_spill] sm:$0xff] }
 0x933   : > { %7907 = vpow2.f32 %v4047_v56  ;;  %v4629_v10 = vsub.f32 %v12795_v14, %v4583_v8  ;;  %v4630_v52 = vsub.f32 %v12796_v7, %v4583_v8  ;;  %v11378_v35 = vpop.eup %7889 }
 0x934   : > { %7909 = vpow2.f32 %v4049_v4  ;;  %4085 = vadd.xlane.f32.xlu1 %v4084_v53  ;;  %v11380_v1 = vpop.eup %7891  ;;  %v4078_v8 = vadd.f32 %v11378_v35, %v11372_v39 }
 0x935   : > { %v4661_v63 = vmul.f32 1.442695, %v4629_v10  ;;  %v4663_v44 = vmul.f32 1.442695, %v4630_v52  ;;  %4076 = vadd.xlane.f32.xlu0 %v4075_v60  ;;  %v11382_v3 = vpop.eup %7893 }
 0x936   : > { %v4586_v25 = vpop.xlane.xlu1 %4585  ;;  %v4081_v33 = vadd.f32 %v11382_v3, %v11380_v1 }
 0x937   : > { %7911 = vpow2.f32 %v4661_v63  ;;  %v4631_v2 = vsub.f32 %v12797_v36, %v4586_v25  ;;  %v4632_v56 = vsub.f32 %v12798_v21, %v4586_v25  ;;  %v12801_v63 = vld [vmem:[#allocation101_spill] sm:$0xff]  ;;  %v12802_v36 = vld [vmem:[#allocation102_spill] sm:$0xff] }
 0x938   : > { %v11388_v14 = vpop.eup %7895  ;;  %7913 = vpow2.f32 %v4663_v44 }
 0x939   : > { %12799 = vst [vmem:[#allocation78_spill] sm:$0xff] %v11388_v14  ;;  %v11390_v4 = vpop.eup %7897  ;;  %v4665_v53 = vmul.f32 1.442695, %v4631_v2  ;;  %v4667_v10 = vmul.f32 1.442695, %v4632_v56  ;;  %4079 = vadd.xlane.f32.xlu0 %v4078_v8 }
 0x93a   : > { %12800 = vst [vmem:[#allocation79_spill] sm:$0xff] %v11390_v4  ;;  %v4589_v7 = vpop.xlane.xlu0 %4588  ;;  %v4090_v52 = vadd.f32 %v11390_v4, %v11388_v14  ;;  %v11394_v60 = vpop.eup %7899 }
 0x93b   : > { %7915 = vpow2.f32 %v4665_v53  ;;  %v4633_v25 = vsub.f32 %v12801_v63, %v4589_v7  ;;  %v4634_v21 = vsub.f32 %v12802_v36, %v4589_v7  ;;  %v11400_v44 = vpop.eup %7901 }
 0x93c   : > { %7917 = vpow2.f32 %v4667_v10  ;;  %4091 = vadd.xlane.f32.xlu1 %v4090_v52  ;;  %v11402_v8 = vpop.eup %7903  ;;  %v4087_v63 = vadd.f32 %v11400_v44, %v11394_v60 }
 0x93d   : > { %v4669_v2 = vmul.f32 1.442695, %v4633_v25  ;;  %v4671_v56 = vmul.f32 1.442695, %v4634_v21  ;;  %4082 = vadd.xlane.f32.xlu0 %v4081_v33  ;;  %v11404_v4 = vpop.eup %7905 }
 0x93e   : > { %v4592_v14 = vpop.xlane.xlu1 %4591 }
 0x93f   : > { %7919 = vpow2.f32 %v4669_v2  ;;  %v4635_v53 = vsub.f32 %v11000_v45, %v4592_v14  ;;  %v4636_v7 = vsub.f32 %v11005_v61, %v4592_v14  ;;  %v4093_v14 = vadd.f32 %v11404_v4, %v11402_v8 }
 0x940   : > { %v11410_v36 = vpop.eup %7907  ;;  %7921 = vpow2.f32 %v4671_v56 }
 0x941   : > { %12803 = vst [vmem:[#allocation75_spill] sm:$0xff] %v11410_v36  ;;  %v11412_v10 = vpop.eup %7909  ;;  %v4673_v52 = vmul.f32 1.442695, %v4635_v53  ;;  %v4675_v33 = vmul.f32 1.442695, %v4636_v7  ;;  %4088 = vadd.xlane.f32.xlu0 %v4087_v63 }
 0x942   : > { %v4595_v25 = vpop.xlane.xlu0 %4594  ;;  %v4096_v21 = vadd.f32 %v11412_v10, %v11410_v36 }
 0x943   : > { %7923 = vpow2.f32 %v4673_v52  ;;  %v4637_v45 = vsub.f32 %v11014_v5, %v4595_v25  ;;  %v4638_v61 = vsub.f32 %v11019_v40, %v4595_v25 }
 0x944   : > { %v11420_v2 = vpop.eup %7911  ;;  %7925 = vpow2.f32 %v4675_v33  ;;  %4097 = vadd.xlane.f32.xlu1 %v4096_v21 }
 0x945   : > { %12804 = vst [vmem:[#allocation76_spill] sm:$0xff] %v11420_v2  ;;  %v11422_v56 = vpop.eup %7913  ;;  %v4677_v53 = vmul.f32 1.442695, %v4637_v45  ;;  %v4679_v7 = vmul.f32 1.442695, %v4638_v61  ;;  %4094 = vadd.xlane.f32.xlu0 %v4093_v14 }
 0x946   : > { %12805 = vst [vmem:[#allocation82_spill] sm:$0xff] %v11422_v56  ;;  %v4598_v63 = vpop.xlane.xlu1 %4597  ;;  %v4725_v52 = vadd.f32 %v11422_v56, %v11420_v2 }
 0x947   : > { %7927 = vpow2.f32 %v4677_v53  ;;  %v4639_v5 = vsub.f32 %v11028_v62, %v4598_v63  ;;  %v4640_v40 = vsub.f32 %v11033_v9, %v4598_v63 }
 0x948   : > { %v11428_v25 = vpop.eup %7915  ;;  %7929 = vpow2.f32 %v4679_v7  ;;  %4726 = vadd.xlane.f32.xlu1 %v4725_v52 }
 0x949   : > { %12806 = vst [vmem:[#allocation83_spill] sm:$0xff] %v11428_v25  ;;  %v11430_v33 = vpop.eup %7917  ;;  %v4681_v21 = vmul.f32 1.442695, %v4639_v5  ;;  %v4683_v36 = vmul.f32 1.442695, %v4640_v40 }
 0x94a   : > { %v4601_v45 = vpop.xlane.xlu0 %4600  ;;  %v4728_v61 = vadd.f32 %v11430_v33, %v11428_v25  ;;  %v12822_v25 = vld [vmem:[#allocation29_spill] sm:$0xff] }
 0x94b   : > { %7931 = vpow2.f32 %v4681_v21  ;;  %v4641_v14 = vsub.f32 %v11042_v6, %v4601_v45  ;;  %v4642_v53 = vsub.f32 %v11047_v30, %v4601_v45 }
 0x94c   : > { %v11436_v62 = vpop.eup %7919  ;;  %7933 = vpow2.f32 %v4683_v36  ;;  %4729 = vadd.xlane.f32.xlu1 %v4728_v61 }
 0x94d   : > { %12807 = vst [vmem:[#allocation85_spill] sm:$0xff] %v11436_v62  ;;  %v11438_v9 = vpop.eup %7921  ;;  %v4685_v7 = vmul.f32 1.442695, %v4641_v14  ;;  %v4687_v63 = vmul.f32 1.442695, %v4642_v53 }
 0x94e   : > { %12808 = vst [vmem:[#allocation86_spill] sm:$0xff] %v11438_v9  ;;  %v4604_v52 = vpop.xlane.xlu1 %4603  ;;  %v4731_v5 = vadd.f32 %v11438_v9, %v11436_v62  ;;  %v12820_v9 = vld [vmem:[#allocation107_spill] sm:$0xff] }
 0x94f   : > { %7935 = vpow2.f32 %v4685_v7  ;;  %v4643_v40 = vsub.f32 %v11056_v58, %v4604_v52  ;;  %v4644_v21 = vsub.f32 %v11061_v26, %v4604_v52 }
 0x950   : > { %v11444_v6 = vpop.eup %7923  ;;  %7937 = vpow2.f32 %v4687_v63  ;;  %4732 = vadd.xlane.f32.xlu1 %v4731_v5 }
 0x951   : > { %12809 = vst [vmem:[#allocation88_spill] sm:$0xff] %v11444_v6  ;;  %v11446_v30 = vpop.eup %7925  ;;  %v4689_v36 = vmul.f32 1.442695, %v4643_v40  ;;  %v4691_v45 = vmul.f32 1.442695, %v4644_v21 }
 0x952   : > { %12810 = vst [vmem:[#allocation89_spill] sm:$0xff] %v11446_v30  ;;  %v3379_v61 = vpop.xlane.xlu1 %3378  ;;  %v4734_v14 = vadd.f32 %v11446_v30, %v11444_v6 }
 0x953   : > { %7939 = vpow2.f32 %v4689_v36 }
 0x954   : > { %v11450_v53 = vpop.eup %7927  ;;  %7941 = vpow2.f32 %v4691_v45  ;;  %4735 = vadd.xlane.f32.xlu0 %v4734_v14 }
 0x955   : > { %12811 = vst [vmem:[#allocation92_spill] sm:$0xff] %v11450_v53  ;;  %v11452_v58 = vpop.eup %7929  ;;  %7943 = vrcp.f32 %v3379_v61 }
 0x956   : > { %12812 = vst [vmem:[#allocation94_spill] sm:$0xff] %v11452_v58  ;;  %v3382_v26 = vpop.xlane.xlu1 %3381  ;;  %v4737_v7 = vadd.f32 %v11452_v58, %v11450_v53 }
 0x957   : > { %7945 = vrcp.f32 %v3382_v26  ;;  %v11474_v26 = vpop.xlane.xlu0 %4606 }
 0x958   : > { %v11456_v63 = vpop.eup %7931  ;;  %4738 = vadd.xlane.f32.xlu1 %v4737_v7 }
 0x959   : > { %12813 = vst [vmem:[#allocation95_spill] sm:$0xff] %v11456_v63  ;;  %v11458_v52 = vpop.eup %7933 }
 0x95a   : > { %12814 = vst [vmem:[#allocation97_spill] sm:$0xff] %v11458_v52  ;;  %v11460_v5 = vpop.xlane.xlu1 %4609  ;;  %v4740_v40 = vadd.f32 %v11458_v52, %v11456_v63 }
 0x95c   : > { %v11464_v21 = vpop.eup %7935  ;;  %4741 = vadd.xlane.f32.xlu0 %v4740_v40  ;;  %v11478_v40 = vpop.xlane.xlu0 %4612 }
 0x95d   : > { %12815 = vst [vmem:[#allocation98_spill] sm:$0xff] %v11464_v21  ;;  %v11466_v36 = vpop.eup %7937 }
 0x95e   : > { %12816 = vst [vmem:[#allocation101_spill] sm:$0xff] %v11466_v36  ;;  %v3385_v45 = vpop.xlane.xlu1 %3384  ;;  %v4743_v61 = vadd.f32 %v11466_v36, %v11464_v21  ;;  %v12819_v36 = vld [vmem:[#allocation104_spill] sm:$0xff] }
 0x95f   : > { %7947 = vrcp.f32 %v3385_v45 }
 0x960   : > { %v11470_v14 = vpop.eup %7939  ;;  %4744 = vadd.xlane.f32.xlu1 %v4743_v61 }
 0x961   : > { %12817 = vst [vmem:[#allocation102_spill] sm:$0xff] %v11470_v14  ;;  %v11472_v7 = vpop.eup %7941 }
 0x962   : > { %12818 = vst [vmem:[#allocation122_spill] sm:$0xff] %v11472_v7  ;;  %v3388_v53 = vpop.xlane.xlu1 %3387  ;;  %v4746_v63 = vadd.f32 %v11472_v7, %v11470_v14  ;;  %v7944_v58 = vpop.eup %7943 }
 0x963   : > { %7949 = vrcp.f32 %v3388_v53  ;;  %v3442_v21 = vmul.f32 %v7944_v58, %v11067_v0  ;;  %v3441_v6 = vmul.f32 %v7944_v58, %v12819_v36  ;;  %v11486_v30 = vpop.xlane.xlu0 %4618  ;;  %v12821_v53 = vld [vmem:[#allocation38_spill] sm:$0xff]  ;;  %v12823_v58 = vld [vmem:[#allocation44_spill] sm:$0xff] }
 0x964   : > { %4747 = vadd.xlane.f32.xlu0 %v4746_v63  ;;  %v7946_v62 = vpop.eup %7945 }
 0x965   : > { %v3444_v61 = vmul.f32 %v7946_v62, %v11087_v28  ;;  %v3443_v2 = vmul.f32 %v7946_v62, %v12820_v9  ;;  %v8136_v62 = vld [vmem:[#allocation3 + $0x40] sm:$0xff]   ;;  %v12824_v9 = vld [vmem:[#allocation28_spill] sm:$0xff] }
 0x966   : > { %v11480_v52 = vpop.xlane.xlu1 %4615 }
 0x967   : > { %v3474_v14 = vpack.c.bf16 %v3444_v61, %v3442_v21  ;;  %v3473_v45 = vpack.c.bf16 %v3443_v2, %v3441_v6 }
 0x969   : > { %3569 = vmatprep.mubr.bf16.mxu1 %v3474_v14 }
 0x96a   : > { %v3391_v7 = vpop.xlane.xlu1 %3390  ;;  %3570 = vmatmul.mubr.bf16.vlgmr.msra.gmra.mxu1 %v3473_v45  ;;  %v11489_v63 = vpop.xlane.xlu0 %4624  ;;  %v12825_v45 = vld [vmem:[#allocation64_spill] sm:$0xff] }
 0x96b   : > { %6948 = vmatpush3.bf16.msra.mxu1 %v12821_v53  ;;  %7951 = vrcp.f32 %v3391_v7  ;;  %v8137_v53 = vld [vmem:[#allocation3] sm:$0xff]  }
 0x96c   : > { %6949 = vmatprep.subr.bf16.mxu1 %v12822_v25  ;;  %v7948_v28 = vpop.eup %7947 }
 0x96d   : > { %v3446_v21 = vmul.f32 %v7948_v28, %v11119_v16  ;;  %v3445_v25 = vmul.f32 %v7948_v28, %v11113_v48  ;;  %v12830_v28 = vld [vmem:[#allocation31_spill] sm:$0xff] }
 0x96e   : > { %v3394_v0 = vpop.xlane.xlu1 %3393 }
 0x96f   : > { %6950 = vmatpush3.bf16.msra.mxu1 %v12823_v58  ;;  %7953 = vrcp.f32 %v3394_v0  ;;  %v12826_v58 = vld [vmem:[#allocation105_spill] sm:$0xff] }
 0x970   : > { %v7950_v56 = vpop.eup %7949  ;;  %6951 = vmatprep.subr.bf16.mxu1 %v12824_v9  ;;  %v12827_v9 = vld [vmem:[#allocation30_spill] sm:$0xff] }
 0x971   : > { %4853 = vrot.lane.b32.xlu1 %v8136_v62, %s8460_s24  ;;  %v3403_v2 = vpop.xlane.xlu0 %3402  ;;  %v3448_v36 = vmul.f32 %v7950_v56, %v11125_v22  ;;  %v3447_v14 = vmul.f32 %v7950_v56, %v11123_v27  ;;  %v4645_v62 = vsub.f32 %v12826_v58, %v11474_v26  ;;  %v12828_v22 = vld [vmem:[#allocation106_spill] sm:$0xff]  ;;  %v12829_v27 = vld [vmem:[#allocation109_spill] sm:$0xff] }
 0x972   : > { %v11495_v6 = vpop.xlane.xlu1 %4621  ;;  %v4646_v48 = vsub.f32 %v12828_v22, %v11474_v26  ;;  %v4647_v56 = vsub.f32 %v12829_v27, %v11460_v5  ;;  %v12836_v27 = vld [vmem:[#allocation37_spill] sm:$0xff] }
 0x973   : > { %v3476_v7 = vpack.c.bf16 %v3448_v36, %v3446_v21  ;;  %v3475_v61 = vpack.c.bf16 %v3447_v14, %v3445_v25  ;;  %6952 = vmatpush3.bf16.msra.mxu1 %v12825_v45  ;;  %v4693_v21 = vmul.f32 1.442695, %v4645_v62  ;;  %v12831_v36 = vld [vmem:[#allocation108_spill] sm:$0xff]  ;;  %v4655_v22 = vsub.f32 %v11205_v15, %v11495_v6 }
 0x974   : > { %6953 = vmatprep.subr.bf16.mxu1 %v12827_v9  ;;  %v4648_v25 = vsub.f32 %v12831_v36, %v11460_v5  ;;  %v12832_v14 = vld [vmem:[#allocation32_spill] sm:$0xff]  ;;  %v4695_v45 = vmul.f32 1.442695, %v4646_v48  ;;  %v4697_v58 = vmul.f32 1.442695, %v4647_v56  ;;  %v12834_v9 = vld [vmem:[#allocation70_spill] sm:$0xff] }
 0x975   : > { %4837 = vrot.lane.b32.xlu1 %v8137_v53, %s8460_s24  ;;  %v3406_v0 = vpop.xlane.xlu0 %3405  ;;  %3577 = vmatprep.mubr.bf16.mxu1 %v3476_v7  ;;  %v8138_v7 = vld [vmem:[#allocation3 + $0x8] sm:$0xff]   ;;  %v12833_v53 = vld [vmem:[#allocation110_spill] sm:$0xff] }
 0x976   : > { %v3397_v16 = vpop.xlane.xlu1 %3396  ;;  %3578 = vmatmul.mubr.bf16.gmra.mxu1 %v3475_v61  ;;  %7955 = vrcp.f32 %v3406_v0  ;;  %v4649_v0 = vsub.f32 %v12833_v53, %v11478_v40  ;;  %v12835_v5 = vld [vmem:[#allocation111_spill] sm:$0xff]  ;;  %v4656_v53 = vsub.f32 %v11196_v47, %v11495_v6 }
 0x977   : > { %6954 = vmatpush3.bf16.msra.mxu1 %v12830_v28  ;;  %7957 = vrcp.f32 %v3397_v16  ;;  %v4699_v16 = vmul.f32 1.442695, %v4648_v25 }
 0x978   : > { %7959 = vrcp.f32 %v3403_v2  ;;  %6955 = vmatprep.subr.bf16.mxu1 %v12832_v14  ;;  %v7952_v26 = vpop.eup %7951  ;;  %v4650_v2 = vsub.f32 %v12835_v5, %v11478_v40  ;;  %v4715_v47 = vmul.f32 1.442695, %v4656_v53 }
 0x979   : > { %v3450_v48 = vmul.f32 %v7952_v26, %v11161_v43  ;;  %v3449_v56 = vmul.f32 %v7952_v26, %v11154_v57  ;;  %v3409_v25 = vpop.xlane.xlu0 %3408  ;;  %v12838_v43 = vld [vmem:[#allocation62_spill] sm:$0xff]  ;;  %v4651_v57 = vsub.f32 %v11159_v12, %v11480_v52  ;;  %v4653_v12 = vsub.f32 %v11136_v31, %v11486_v30 }
 0x97a   : > { %4839 = vrot.lane.b32.xlu0 %v8138_v7, %s8460_s24  ;;  %v3400_v61 = vpop.xlane.xlu1 %3399  ;;  %v12837_v7 = vld [vmem:[#allocation41_spill] sm:$0xff]  ;;  %v4703_v15 = vmul.f32 1.442695, %v4650_v2 }
 0x97b   : > { %7961 = vrcp.f32 %v3400_v61  ;;  %6956 = vmatpush3.bf16.msra.mxu1 %v12834_v9  ;;  %v4713_v9 = vmul.f32 1.442695, %v4655_v22  ;;  %v4705_v5 = vmul.f32 1.442695, %v4651_v57 }
 0x97c   : > { %v7954_v62 = vpop.eup %7953  ;;  %7963 = vpow2.f32 %v4693_v21  ;;  %6957 = vmatprep.subr.bf16.mxu1 %v12836_v27  ;;  %v4701_v21 = vmul.f32 1.442695, %v4649_v0 }
 0x97d   : > { %v3452_v36 = vmul.f32 %v7954_v62, %v11185_v49  ;;  %v3451_v14 = vmul.f32 %v7954_v62, %v11179_v13  ;;  %7965 = vpow2.f32 %v4695_v45  ;;  %v4652_v13 = vsub.f32 %v11152_v55, %v11480_v52  ;;  %v12839_v45 = vld [vmem:[#allocation74_spill] sm:$0xff] }
 0x97e   : > { %v4628_v28 = vpop.xlane.xlu1 %4627  ;;  %7967 = vpow2.f32 %v4697_v58  ;;  %v12840_v58 = vld [vmem:[#allocation67_spill] sm:$0xff] }
 0x97f   : > { %6958 = vmatpush3.bf16.msra.mxu1 %v12837_v7  ;;  %v3478_v40 = vpack.c.bf16 %v3452_v36, %v3450_v48  ;;  %v3477_v61 = vpack.c.bf16 %v3451_v14, %v3449_v56  ;;  %7969 = vpow2.f32 %v4699_v16  ;;  %v4659_v6 = vsub.f32 %v11249_v34, %v4628_v28  ;;  %v12841_v48 = vld [vmem:[#allocation71_spill] sm:$0xff]  ;;  %v12842_v14 = vld [vmem:[#allocation77_spill] sm:$0xff] }
 0x980   : > { %6959 = vmatprep.subr.bf16.mxu1 %v12838_v43  ;;  %7971 = vrcp.f32 %v3409_v25  ;;  %v4660_v55 = vsub.f32 %v11242_v20, %v4628_v28  ;;  %v4707_v2 = vmul.f32 1.442695, %v4652_v13  ;;  %v4654_v20 = vsub.f32 %v11141_v29, %v11486_v30 }
 0x981   : > { %3585 = vmatprep.mubr.bf16.mxu1 %v3478_v40  ;;  %7973 = vpow2.f32 %v4701_v21  ;;  %v3415_v22 = vpop.xlane.xlu0 %3414  ;;  %v4721_v28 = vmul.f32 1.442695, %v4659_v6 }
 0x982   : > { %v3412_v49 = vpop.xlane.xlu1 %3411  ;;  %3586 = vmatmul.mubr.bf16.gmra.mxu1 %v3477_v61  ;;  %v4723_v25 = vmul.f32 1.442695, %v4660_v55  ;;  %v4711_v40 = vmul.f32 1.442695, %v4654_v20  ;;  %v12846_v20 = vld [vmem:[#allocation115_spill] sm:$0xff] }
 0x983   : > { %v7956_v26 = vpop.eup %7955  ;;  %6960 = vmatpush3.bf16.msra.mxu1 %v12839_v45  ;;  %7975 = vrcp.f32 %v3412_v49 }
 0x984   : > { %v7958_v0 = vpop.eup %7957  ;;  %7977 = vpow2.f32 %v4703_v15  ;;  %6961 = vmatprep.subr.bf16.mxu1 %v12840_v58  ;;  %v3460_v27 = vmul.f32 %v7956_v26, %v11217_v41  ;;  %v4658_v15 = vsub.f32 %v11175_v19, %v11489_v63  ;;  %v3459_v49 = vmul.f32 %v7956_v26, %v11215_v24 }
 0x985   : > { %v7960_v16 = vpop.eup %7959  ;;  %7979 = vpow2.f32 %v4713_v9  ;;  %v3454_v34 = vmul.f32 %v7958_v0, %v11209_v37  ;;  %v3453_v56 = vmul.f32 %v7958_v0, %v11200_v42 }
 0x986   : > { %v3418_v62 = vpop.xlane.xlu1 %3417  ;;  %v3458_v21 = vmul.f32 %v7960_v16, %v11198_v54  ;;  %v4657_v54 = vsub.f32 %v11170_v17, %v11489_v63  ;;  %v3457_v45 = vmul.f32 %v7960_v16, %v11191_v18 }
 0x987   : > { %7981 = vrcp.f32 %v3418_v62  ;;  %6962 = vmatpush3.bf16.msra.mxu1 %v12841_v48  ;;  %v12845_v48 = vld [vmem:[#allocation112_spill] sm:$0xff] }
 0x988   : > { %v7962_v52 = vpop.eup %7961  ;;  %7983 = vpow2.f32 %v4715_v47  ;;  %7043 = vmatprep.subr.bf16.mxu1 %v12842_v14  ;;  %v3482_v29 = vpack.c.bf16 %v3460_v27, %v3458_v21  ;;  %v4717_v17 = vmul.f32 1.442695, %v4657_v54  ;;  %v4719_v47 = vmul.f32 1.442695, %v4658_v15  ;;  %v12847_v15 = vld [vmem:[#allocation116_spill] sm:$0xff] }
 0x989   : > { %v3456_v36 = vmul.f32 %v7962_v52, %v11223_v46  ;;  %v3455_v31 = vmul.f32 %v7962_v52, %v11219_v23  ;;  %v11551_v41 = vpop.eup %7963  ;;  %7985 = vrcp.f32 %v3415_v22  ;;  %v4709_v46 = vmul.f32 1.442695, %v4653_v12  ;;  %v3421_v43 = vpop.xlane.xlu0 %3420 }
 0x98a   : > { %7987 = vpow2.f32 %v4705_v5  ;;  %v11553_v42 = vpop.eup %7965  ;;  %v3481_v24 = vpack.c.bf16 %v3459_v49, %v3457_v45  ;;  %v12848_v49 = vld [vmem:[#allocation36_spill] sm:$0xff] }
 0x98b   : > { %v3480_v37 = vpack.c.bf16 %v3456_v36, %v3454_v34  ;;  %v3479_v7 = vpack.c.bf16 %v3455_v31, %v3453_v56  ;;  %7989 = vpow2.f32 %v4707_v2  ;;  %v11555_v30 = vpop.eup %7967  ;;  %v12844_v2 = vld [vmem:[#allocation117_spill] sm:$0xff] }
 0x98c   : > { %7991 = vpow2.f32 %v4721_v28  ;;  %v11559_v61 = vpop.eup %7969 }
 0x98d   : > { %v3424_v23 = vpop.xlane.xlu1 %3423  ;;  %3593 = vmatprep.mubr.bf16.mxu1 %v3480_v37  ;;  %7993 = vpow2.f32 %v4723_v25  ;;  %v7972_v53 = vpop.eup %7971  ;;  %v4752_v18 = vadd.f32 %v11559_v61, %v11555_v30 }
 0x98e   : > { %3594 = vmatmul.mubr.bf16.gmra.mxu1 %v3479_v7  ;;  %7995 = vpow2.f32 %v4709_v46  ;;  %v11564_v9 = vpop.eup %7973  ;;  %v3462_v19 = vmul.f32 %v7972_v53, %v11231_v50  ;;  %v4749_v50 = vadd.f32 %v11553_v42, %v11551_v41  ;;  %v3461_v34 = vmul.f32 %v7972_v53, %v12845_v48  ;;  %v12853_v48 = vld [vmem:[#allocation33_spill] sm:$0xff] }
 0x98f   : > { %3601 = vmatprep.mubr.bf16.mxu1 %v3482_v29  ;;  %7997 = vrcp.f32 %v3424_v23 }
 0x990   : > { %v7976_v13 = vpop.eup %7975  ;;  %7999 = vpow2.f32 %v4711_v40 }
 0x991   : > { %v4053_v57 = vpop.xlane.xlu1 %4052  ;;  %v11567_v0 = vpop.eup %7977  ;;  %8001 = vrcp.f32 %v3421_v43  ;;  %v3464_v63 = vmul.f32 %v7976_v13, %v11251_v11  ;;  %v12843_v11 = vld [vmem:[#allocation113_spill] sm:$0xff] }
 0x992   : > { %v11571_v6 = vpop.eup %7979  ;;  %8003 = vpow2.f32 %v4717_v17  ;;  %v3463_v55 = vmul.f32 %v7976_v13, %v12843_v11  ;;  %v4755_v31 = vadd.f32 %v11567_v0, %v11564_v9  ;;  %v12849_v13 = vld [vmem:[#allocation114_spill] sm:$0xff]  ;;  %v12851_v11 = vld [vmem:[#allocation35_spill] sm:$0xff] }
 0x993   : > { %v3484_v62 = vpack.c.bf16 %v3464_v63, %v3462_v19  ;;  %8005 = vpow2.f32 %v4719_v47  ;;  %v12850_v19 = vld [vmem:[#allocation34_spill] sm:$0xff] }
 0x994   : > { %v7982_v26 = vpop.eup %7981  ;;  %v3483_v21 = vpack.c.bf16 %v3463_v55, %v3461_v34 }
 0x995   : > { %v4056_v58 = vpop.xlane.xlu1 %4055  ;;  %v11573_v12 = vpop.eup %7983  ;;  %v3468_v22 = vmul.f32 %v7982_v26, %v12844_v2  ;;  %v3467_v53 = vmul.f32 %v7982_v26, %v12847_v15  ;;  %v12852_v2 = vld [vmem:[#allocation43_spill] sm:$0xff] }
 0x996   : > { %3602 = vmatmul.mubr.bf16.gmra.mxu1 %v3481_v24  ;;  %v7986_v16 = vpop.eup %7985  ;;  %8007 = vrcp.f32 %v4056_v58  ;;  %v4764_v56 = vadd.f32 %v11573_v12, %v11571_v6 }
 0x997   : > { %3609 = vmatprep.mubr.bf16.mxu1 %v3484_v62  ;;  %v11580_v52 = vpop.eup %7987  ;;  %8009 = vrcp.f32 %v4053_v57  ;;  %v3466_v28 = vmul.f32 %v7986_v16, %v12846_v20  ;;  %v3465_v17 = vmul.f32 %v7986_v16, %v12849_v13 }
 0x998   : > { %v11583_v27 = vpop.eup %7989 }
 0x999   : > { %v4059_v5 = vpop.xlane.xlu1 %4058  ;;  %4753 = vadd.xlane.f32.xlu1 %v4752_v18  ;;  %4750 = vadd.xlane.f32.xlu0 %v4749_v50  ;;  %v11586_v36 = vpop.eup %7991  ;;  %v3486_v7 = vpack.c.bf16 %v3468_v22, %v3466_v28  ;;  %v4758_v40 = vadd.f32 %v11583_v27, %v11580_v52  ;;  %v3485_v58 = vpack.c.bf16 %v3467_v53, %v3465_v17  ;;  %v12857_v53 = vld [vmem:[#allocation39_spill] sm:$0xff] }
 0x99a   : > { %v11593_v14 = vpop.eup %7993 }
 0x99b   : > { %v11595_v25 = vpop.eup %7995  ;;  %v4770_v29 = vadd.f32 %v11593_v14, %v11586_v36 }
 0x99c   : > { %v7998_v46 = vpop.eup %7997 }
 0x99d   : > { %v4062_v37 = vpop.xlane.xlu1 %4061  ;;  %4765 = vadd.xlane.f32.xlu1 %v4764_v56  ;;  %4756 = vadd.xlane.f32.xlu0 %v4755_v31  ;;  %v11597_v23 = vpop.eup %7999  ;;  %v3472_v57 = vmul.f32 %v7998_v46, %v12848_v49  ;;  %v3471_v55 = vmul.f32 %v7998_v46, %v12851_v11  ;;  %v12854_v56 = vld [vmem:[#allocation40_spill] sm:$0xff]  ;;  %v12856_v46 = vld [vmem:[#allocation66_spill] sm:$0xff]  ;;  %v12863_v11 = vld [vmem:[#allocation45_spill] sm:$0xff] }
 0x99e   : > { %3610 = vmatmul.mubr.bf16.gmra.mxu1 %v3483_v21  ;;  %v8002_v54 = vpop.eup %8001  ;;  %8011 = vrcp.f32 %v4062_v37  ;;  %v4761_v47 = vadd.f32 %v11597_v23, %v11595_v25 }
 0x99f   : > { %3617 = vmatprep.mubr.bf16.mxu1 %v3486_v7  ;;  %v11606_v45 = vpop.eup %8003  ;;  %8013 = vrcp.f32 %v4059_v5  ;;  %v3470_v63 = vmul.f32 %v8002_v54, %v12850_v19  ;;  %v3469_v34 = vmul.f32 %v8002_v54, %v12853_v48 }
 0x9a0   : > { %v11611_v24 = vpop.eup %8005 }
 0x9a1   : > { %v4065_v43 = vpop.xlane.xlu1 %4064  ;;  %4771 = vadd.xlane.f32.xlu1 %v4770_v29  ;;  %4759 = vadd.xlane.f32.xlu0 %v4758_v40  ;;  %v3488_v62 = vpack.c.bf16 %v3472_v57, %v3470_v63  ;;  %v4767_v50 = vadd.f32 %v11611_v24, %v11606_v45  ;;  %v3487_v20 = vpack.c.bf16 %v3471_v55, %v3469_v34  ;;  %v12855_v29 = vld [vmem:[#allocation42_spill] sm:$0xff]  ;;  %v12858_v57 = vld [vmem:[#allocation63_spill] sm:$0xff]  ;;  %v12860_v63 = vld [vmem:[#allocation81_spill] sm:$0xff] }
 0x9a2   : > { %v12864_v55 = vld [vmem:[#allocation84_spill] sm:$0xff] }
 0x9a3   : > { %v8008_v18 = vpop.eup %8007 }
 0x9a4   : > { %v8010_v16 = vpop.eup %8009  ;;  %v4118_v22 = vmul.f32 %v8008_v18, %v12852_v2  ;;  %v4117_v40 = vmul.f32 %v8008_v18, %v12855_v29 }
 0x9a5   : > { %v4068_v26 = vpop.xlane.xlu1 %4067  ;;  %4762 = vadd.xlane.f32.xlu0 %v4761_v47  ;;  %v4116_v31 = vmul.f32 %v8010_v16, %v12854_v56  ;;  %v4115_v49 = vmul.f32 %v8010_v16, %v12857_v53  ;;  %v12859_v47 = vld [vmem:[#allocation80_spill] sm:$0xff] }
 0x9a6   : > { %3618 = vmatmul.mubr.bf16.gmra.mxu1 %v3485_v58  ;;  %8015 = vrcp.f32 %v4068_v26  ;;  %v12861_v58 = vld [vmem:[#allocation65_spill] sm:$0xff] }
 0x9a7   : > { %3625 = vmatprep.mubr.bf16.mxu1 %v3488_v62  ;;  %8017 = vrcp.f32 %v4065_v43  ;;  %v4148_v28 = vpack.c.bf16 %v4118_v22, %v4116_v31  ;;  %v4147_v43 = vpack.c.bf16 %v4117_v40, %v4115_v49  ;;  %v12862_v62 = vld [vmem:[#allocation121_spill] sm:$0xff]  ;;  %v12866_v22 = vld [vmem:[#allocation87_spill] sm:$0xff] }
 0x9a8   : > { %v12871_v49 = vld [vmem:[#allocation93_spill] sm:$0xff] }
 0x9a9   : > { %v4071_v5 = vpop.xlane.xlu1 %4070  ;;  %4768 = vadd.xlane.f32.xlu0 %v4767_v50  ;;  %v4856_v50 = vpop.permute.xlu0 %4855 }
 0x9ab   : > { %v8012_v21 = vpop.eup %8011 }
 0x9ac   : > { %v8014_v7 = vpop.eup %8013  ;;  %v4122_v15 = vmul.f32 %v8012_v21, %v12856_v46  ;;  %v4121_v26 = vmul.f32 %v8012_v21, %v12861_v58  ;;  %v12868_v21 = vld [vmem:[#allocation90_spill] sm:$0xff]  ;;  %v12874_v58 = vld [vmem:[#allocation100_spill] sm:$0xff] }
 0x9ad   : > { %v4074_v37 = vpop.xlane.xlu1 %4073  ;;  %v4120_v54 = vmul.f32 %v8014_v7, %v12858_v57  ;;  %v4119_v16 = vmul.f32 %v8014_v7, %v12863_v11  ;;  %v12872_v57 = vld [vmem:[#allocation69_spill] sm:$0xff] }
 0x9ae   : > { %3626 = vmatmul.mubr.bf16.gmra.mxu1 %v3487_v20  ;;  %8019 = vrcp.f32 %v4074_v37  ;;  %v12867_v20 = vld [vmem:[#allocation91_spill] sm:$0xff]  ;;  %v12869_v37 = vld [vmem:[#allocation120_spill] sm:$0xff] }
 0x9af   : > { %4243 = vmatprep.mubr.bf16.mxu1 %v4148_v28  ;;  %8021 = vrcp.f32 %v4071_v5  ;;  %v4150_v13 = vpack.c.bf16 %v4122_v15, %v4120_v54  ;;  %v12865_v5 = vld [vmem:[#allocation119_spill] sm:$0xff]  ;;  %v4149_v48 = vpack.c.bf16 %v4121_v26, %v4119_v16  ;;  %v12870_v15 = vld [vmem:[#allocation118_spill] sm:$0xff] }
 0x9b0   : > { %v12878_v16 = vld [vmem:[#allocation103_spill] sm:$0xff] }
 0x9b3   : > { %v8016_v17 = vpop.eup %8015 }
 0x9b4   : > { %v8018_v19 = vpop.eup %8017  ;;  %v4126_v18 = vmul.f32 %v8016_v17, %v12862_v62  ;;  %v4125_v29 = vmul.f32 %v8016_v17, %v12869_v37 }
 0x9b5   : > { %v4124_v2 = vmul.f32 %v8018_v19, %v12865_v5  ;;  %v4123_v53 = vmul.f32 %v8018_v19, %v12870_v15  ;;  %v12876_v19 = vld [vmem:[#allocation72_spill] sm:$0xff] }
 0x9b6   : > { %4244 = vmatmul.mubr.bf16.vlgmr.msra.gmra.mxu1 %v4147_v43  ;;  %v12873_v43 = vld [vmem:[#allocation96_spill] sm:$0xff] }
 0x9b7   : > { %7044 = vmatpush3.bf16.msra.mxu1 %v12859_v47  ;;  %4251 = vmatprep.mubr.bf16.mxu1 %v4150_v13  ;;  %v4152_v34 = vpack.c.bf16 %v4126_v18, %v4124_v2  ;;  %v4151_v13 = vpack.c.bf16 %v4125_v29, %v4123_v53  ;;  %v12877_v18 = vld [vmem:[#allocation68_spill] sm:$0xff] }
 0x9b8   : > { %7045 = vmatprep.subr.bf16.mxu1 %v12860_v63 }
 0x9bb   : > { %7046 = vmatpush3.bf16.msra.mxu1 %v12864_v55  ;;  %v8020_v56 = vpop.eup %8019 }
 0x9bc   : > { %7047 = vmatprep.subr.bf16.mxu1 %v12866_v22  ;;  %v8022_v28 = vpop.eup %8021  ;;  %v4130_v7 = vmul.f32 %v8020_v56, %v11348_v59  ;;  %v12875_v59 = vld [vmem:[#allocation99_spill] sm:$0xff]  ;;  %v4129_v26 = vmul.f32 %v8020_v56, %v12876_v19 }
 0x9bd   : > { %v4086_v40 = vpop.xlane.xlu1 %4085  ;;  %v4128_v54 = vmul.f32 %v8022_v28, %v12872_v57  ;;  %v4127_v11 = vmul.f32 %v8022_v28, %v12877_v18  ;;  %v12880_v57 = vld [vmem:[#allocation79_spill] sm:$0xff] }
 0x9be   : > { %v4077_v31 = vpop.xlane.xlu0 %4076  ;;  %4252 = vmatmul.mubr.bf16.gmra.mxu1 %v4149_v48 }
 0x9bf   : > { %7048 = vmatpush3.bf16.msra.mxu1 %v12867_v20  ;;  %4259 = vmatprep.mubr.bf16.mxu1 %v4152_v34  ;;  %8023 = vrcp.f32 %v4077_v31  ;;  %v4154_v47 = vpack.c.bf16 %v4130_v7, %v4128_v54  ;;  %v4153_v55 = vpack.c.bf16 %v4129_v26, %v4127_v11 }
 0x9c0   : > { %7049 = vmatprep.subr.bf16.mxu1 %v12868_v21 }
 0x9c2   : > { %v4080_v46 = vpop.xlane.xlu0 %4079 }
 0x9c3   : > { %8025 = vrcp.f32 %v4080_v46  ;;  %7050 = vmatpush3.bf16.msra.mxu1 %v12871_v49 }
 0x9c4   : > { %7051 = vmatprep.subr.bf16.mxu1 %v12873_v43  ;;  %8027 = vrcp.f32 %v4086_v40 }
 0x9c5   : > { %v4092_v17 = vpop.xlane.xlu1 %4091 }
 0x9c6   : > { %v4083_v63 = vpop.xlane.xlu0 %4082  ;;  %4260 = vmatmul.mubr.bf16.gmra.mxu1 %v4151_v13 }
 0x9c7   : > { %8029 = vrcp.f32 %v4083_v63  ;;  %7052 = vmatpush3.bf16.msra.mxu1 %v12874_v58  ;;  %4267 = vmatprep.mubr.bf16.mxu1 %v4154_v47 }
 0x9c8   : > { %7053 = vmatprep.subr.bf16.mxu1 %v12875_v59  ;;  %8031 = vrcp.f32 %v4092_v17 }
 0x9ca   : > { %v4089_v62 = vpop.xlane.xlu0 %4088 }
 0x9cb   : > { %8033 = vrcp.f32 %v4089_v62  ;;  %7054 = vmatpush3.bf16.msra.mxu1 %v12878_v16 }
 0x9cc   : > { %7055 = vmatprep.subr.bf16.mxu1 %v4856_v50  ;;  %v8024_v2 = vpop.eup %8023 }
 0x9cd   : > { %v4098_v5 = vpop.xlane.xlu1 %4097  ;;  %v4132_v31 = vmul.f32 %v8024_v2, %v11362_v38  ;;  %v4131_v21 = vmul.f32 %v8024_v2, %v11360_v32  ;;  %v12879_v32 = vld [vmem:[#allocation73_spill] sm:$0xff] }
 0x9ce   : > { %v4095_v22 = vpop.xlane.xlu0 %4094  ;;  %4268 = vmatmul.mubr.bf16.gmra.mxu1 %v4153_v55  ;;  %8035 = vrcp.f32 %v4098_v5 }
 0x9cf   : > { %8037 = vrcp.f32 %v4095_v22 }
 0x9d0   : > { %v8026_v48 = vpop.eup %8025 }
 0x9d1   : > { %v4727_v34 = vpop.xlane.xlu1 %4726  ;;  %v4134_v56 = vmul.f32 %v8026_v48, %v11378_v35  ;;  %v4133_v20 = vmul.f32 %v8026_v48, %v11372_v39  ;;  %v8028_v28 = vpop.eup %8027 }
 0x9d2   : > { %v4138_v40 = vmul.f32 %v8028_v28, %v11368_v51  ;;  %v4137_v49 = vmul.f32 %v8028_v28, %v12879_v32  ;;  %v12888_v32 = vld [vmem:[#allocation88_spill] sm:$0xff] }
 0x9d3   : > { %v4156_v37 = vpack.c.bf16 %v4134_v56, %v4132_v31  ;;  %v4155_v29 = vpack.c.bf16 %v4133_v20, %v4131_v21  ;;  %v12884_v21 = vld [vmem:[#allocation83_spill] sm:$0xff] }
 0x9d4   : > { %v8030_v50 = vpop.eup %8029 }
 0x9d5   : > { %4275 = vmatprep.mubr.bf16.mxu1 %v4156_v37  ;;  %v4136_v7 = vmul.f32 %v8030_v50, %v11382_v3  ;;  %v4730_v46 = vpop.xlane.xlu1 %4729  ;;  %v8032_v15 = vpop.eup %8031  ;;  %v4135_v35 = vmul.f32 %v8030_v50, %v11380_v1  ;;  %v12885_v50 = vld [vmem:[#allocation89_spill] sm:$0xff] }
 0x9d6   : > { %4276 = vmatmul.mubr.bf16.gmra.mxu1 %v4155_v29  ;;  %8039 = vrcp.f32 %v4730_v46  ;;  %v4142_v54 = vmul.f32 %v8032_v15, %v12880_v57  ;;  %v12887_v46 = vld [vmem:[#allocation86_spill] sm:$0xff]  ;;  %v12889_v57 = vld [vmem:[#allocation97_spill] sm:$0xff] }
 0x9d7   : > { %v4158_v53 = vpack.c.bf16 %v4138_v40, %v4136_v7  ;;  %8041 = vrcp.f32 %v4727_v34  ;;  %v4157_v43 = vpack.c.bf16 %v4137_v49, %v4135_v35  ;;  %v12886_v7 = vld [vmem:[#allocation76_spill] sm:$0xff] }
 0x9d8   : > { %v8034_v38 = vpop.eup %8033 }
 0x9d9   : > { %4283 = vmatprep.mubr.bf16.mxu1 %v4158_v53  ;;  %v4140_v39 = vmul.f32 %v8034_v38, %v11400_v44  ;;  %v4139_v47 = vmul.f32 %v8034_v38, %v11394_v60  ;;  %v4733_v63 = vpop.xlane.xlu1 %4732  ;;  %v12881_v44 = vld [vmem:[#allocation78_spill] sm:$0xff]  ;;  %v12882_v60 = vld [vmem:[#allocation75_spill] sm:$0xff] }
 0x9da   : > { %v4141_v59 = vmul.f32 %v8032_v15, %v12881_v44 }
 0x9db   : > { %v8036_v3 = vpop.eup %8035  ;;  %v4160_v13 = vpack.c.bf16 %v4142_v54, %v4140_v39 }
 0x9dc   : > { %v8038_v51 = vpop.eup %8037  ;;  %v4146_v58 = vmul.f32 %v8036_v3, %v11412_v10  ;;  %v4159_v19 = vpack.c.bf16 %v4141_v59, %v4139_v47  ;;  %v4145_v55 = vmul.f32 %v8036_v3, %v12882_v60  ;;  %v12883_v10 = vld [vmem:[#allocation82_spill] sm:$0xff] }
 0x9dd   : > { %v4736_v17 = vpop.xlane.xlu0 %4735  ;;  %v4144_v1 = vmul.f32 %v8038_v51, %v11404_v4  ;;  %v4143_v16 = vmul.f32 %v8038_v51, %v11402_v8  ;;  %v12893_v59 = vld [vmem:[#allocation122_spill] sm:$0xff] }
 0x9de   : > { %4284 = vmatmul.mubr.bf16.gmra.mxu1 %v4157_v43  ;;  %8043 = vrcp.f32 %v4736_v17  ;;  %v12890_v43 = vld [vmem:[#allocation85_spill] sm:$0xff] }
 0x9df   : > { %4291 = vmatprep.mubr.bf16.mxu1 %v4160_v13  ;;  %v4162_v62 = vpack.c.bf16 %v4146_v58, %v4144_v1  ;;  %8045 = vrcp.f32 %v4733_v63  ;;  %v4161_v48 = vpack.c.bf16 %v4145_v55, %v4143_v16  ;;  %v12891_v13 = vld [vmem:[#allocation94_spill] sm:$0xff]  ;;  %v12892_v58 = vld [vmem:[#allocation95_spill] sm:$0xff] }
 0x9e0   : > { %v12896_v55 = vld [vmem:[#allocation102_spill] sm:$0xff] }
 0x9e1   : > { %v4739_v26 = vpop.xlane.xlu1 %4738 }
 0x9e3   : > { %v8040_v18 = vpop.eup %8039 }
 0x9e4   : > { %v8042_v11 = vpop.eup %8041  ;;  %v4792_v4 = vmul.f32 %v8040_v18, %v11430_v33  ;;  %v4791_v37 = vmul.f32 %v8040_v18, %v12884_v21  ;;  %v12895_v18 = vld [vmem:[#allocation101_spill] sm:$0xff] }
 0x9e5   : > { %v4742_v5 = vpop.xlane.xlu0 %4741  ;;  %v4790_v22 = vmul.f32 %v8042_v11, %v12883_v10  ;;  %v4789_v40 = vmul.f32 %v8042_v11, %v12886_v7 }
 0x9e6   : > { %4292 = vmatmul.mubr.bf16.gmra.mxu1 %v4159_v19  ;;  %8047 = vrcp.f32 %v4742_v5 }
 0x9e7   : > { %4299 = vmatprep.mubr.bf16.mxu1 %v4162_v62  ;;  %v4822_v31 = vpack.c.bf16 %v4792_v4, %v4790_v22  ;;  %8049 = vrcp.f32 %v4739_v26  ;;  %v4821_v53 = vpack.c.bf16 %v4791_v37, %v4789_v40  ;;  %v12894_v26 = vld [vmem:[#allocation92_spill] sm:$0xff] }
 0x9e9   : > { %v4745_v2 = vpop.xlane.xlu1 %4744 }
 0x9eb   : > { %v8044_v20 = vpop.eup %8043 }
 0x9ec   : > { %v8046_v8 = vpop.eup %8045  ;;  %v4796_v33 = vmul.f32 %v8044_v20, %v12885_v50  ;;  %v4795_v49 = vmul.f32 %v8044_v20, %v12888_v32 }
 0x9ed   : > { %v4748_v34 = vpop.xlane.xlu0 %4747  ;;  %v4854_v56 = vpop.permute.xlu1 %4853  ;;  %v4794_v15 = vmul.f32 %v8046_v8, %v12887_v46  ;;  %v4793_v3 = vmul.f32 %v8046_v8, %v12890_v43 }
 0x9ee   : > { %4300 = vmatmul.mubr.bf16.gmra.mxu1 %v4161_v48  ;;  %8051 = vrcp.f32 %v4748_v34 }
 0x9ef   : > { %4917 = vmatprep.mubr.bf16.mxu1 %v4822_v31  ;;  %8053 = vrcp.f32 %v4745_v2  ;;  %v4824_v38 = vpack.c.bf16 %v4796_v33, %v4794_v15  ;;  %v4823_v47 = vpack.c.bf16 %v4795_v49, %v4793_v3  ;;  %v12897_v2 = vld [vmem:[#allocation98_spill] sm:$0xff] }
 0x9f1   : > { %v4840_v28 = vpop.permute.xlu0 %4839  ;;  %v4838_v29 = vpop.permute.xlu1 %4837 }
 0x9f2   : > { %7056 = vmatpush3.bf16.msra.mxu1 %v4840_v28 }
 0x9f3   : > { %7057 = vmatprep.subr.bf16.mxu1 %v4854_v56  ;;  %v8048_v35 = vpop.eup %8047 }
 0x9f4   : > { %v8050_v39 = vpop.eup %8049  ;;  %v4800_v54 = vmul.f32 %v8048_v35, %v12889_v57  ;;  %v4799_v44 = vmul.f32 %v8048_v35, %v12892_v58 }
 0x9f5   : > { %v4798_v51 = vmul.f32 %v8050_v39, %v12891_v13  ;;  %v4797_v62 = vmul.f32 %v8050_v39, %v12894_v26 }
 0x9f6   : > { %7058 = vmatpush3.bf16.msra.mxu1 %v4838_v29 }
 0x9f7   : > { %v4826_v63 = vpack.c.bf16 %v4800_v54, %v4798_v51  ;;  %v4825_v16 = vpack.c.bf16 %v4799_v44, %v4797_v62 }
 0x9f9   : > { %4918 = vmatmul.mubr.bf16.vlgmr.msra.gmra.mxu1 %v4821_v53 }
 0x9fa   : > { %4925 = vmatprep.mubr.bf16.mxu1 %v4824_v38 }
 0x9fb   : > { %v8052_v17 = vpop.eup %8051 }
 0x9fc   : > { %v8054_v1 = vpop.eup %8053  ;;  %v4804_v19 = vmul.f32 %v8052_v17, %v12893_v59  ;;  %v4803_v5 = vmul.f32 %v8052_v17, %v12896_v55 }
 0x9fd   : > { %v4802_v11 = vmul.f32 %v8054_v1, %v12895_v18  ;;  %v4801_v4 = vmul.f32 %v8054_v1, %v12897_v2 }
 0x9ff   : > { %v4828_v60 = vpack.c.bf16 %v4804_v19, %v4802_v11  ;;  %v4827_v10 = vpack.c.bf16 %v4803_v5, %v4801_v4 }
 0xa01   : > { %4926 = vmatmul.mubr.bf16.gmra.mxu1 %v4823_v47 }
 0xa02   : > { %4933 = vmatprep.mubr.bf16.mxu1 %v4826_v63 }
 0xa09   : > { %4934 = vmatmul.mubr.bf16.gmra.mxu1 %v4825_v16 }
 0xa0a   : > { %4941 = vmatprep.mubr.bf16.mxu1 %v4828_v60 }
 0xa11   : > { %4942 = vmatmul.mubr.bf16.gmra.mxu1 %v4827_v10 }
 0xa22   : > { %v4754_v22 = vpop.xlane.xlu1 %4753  ;;  %v4751_v48 = vpop.xlane.xlu0 %4750 }
 0xa23   : > { %8055 = vrcp.f32 %v4754_v22 }
 0xa24   : > { %8057 = vrcp.f32 %v4751_v48 }
 0xa26   : > { %v4757_v34 = vpop.xlane.xlu0 %4756  ;;  %v4766_v31 = vpop.xlane.xlu1 %4765 }
 0xa27   : > { %8059 = vrcp.f32 %v4757_v34 }
 0xa2a   : > { %v4760_v56 = vpop.xlane.xlu0 %4759  ;;  %v6867_v20 = vpop.f32.mrf.mxu1 }
 0xa2b   : > { %8061 = vrcp.f32 %v4760_v56  ;;  %v4772_v33 = vpop.xlane.xlu1 %4771 }
 0xa2c   : > { %8063 = vrcp.f32 %v4766_v31  ;;  %v6868_v28 = vpop.f32.mrf.mxu1 }
 0xa2d   : > { %v6869_v38 = vadd.f32 %v6868_v28, %v6867_v20 }
 0xa2e   : > { %v4763_v8 = vpop.xlane.xlu0 %4762  ;;  %v6870_v37 = vpop.f32.mrf.mxu1 }
 0xa2f   : > { %8065 = vrcp.f32 %v4763_v8 }
 0xa30   : > { %v8056_v21 = vpop.eup %8055  ;;  %v6871_v40 = vpop.f32.mrf.mxu1 }
 0xa31   : > { %v8058_v50 = vpop.eup %8057  ;;  %v4808_v29 = vmul.f32 %v8056_v21, %v11559_v61  ;;  %v4807_v7 = vmul.f32 %v8056_v21, %v11555_v30  ;;  %v6872_v35 = vadd.f32 %v6871_v40, %v6870_v37 }
 0xa32   : > { %v4769_v46 = vpop.xlane.xlu0 %4768  ;;  %v4806_v15 = vmul.f32 %v8058_v50, %v11553_v42  ;;  %v4805_v53 = vmul.f32 %v8058_v50, %v11551_v41 }
 0xa33   : > { %8067 = vrcp.f32 %v4769_v46  ;;  %v3634_v49 = vpack.c.bf16 %v6872_v35, %v6869_v38 }
 0xa34   : > { %8069 = vrcp.f32 %v4772_v33  ;;  %v4830_v39 = vpack.c.bf16 %v4808_v29, %v4806_v15  ;;  %v4829_v32 = vpack.c.bf16 %v4807_v7, %v4805_v53  ;;  %v8060_v57 = vpop.eup %8059 }
 0xa35   : > { %4998 = vrot.lane.b32.xlu0 %v3634_v49, %s8460_s24  ;;  %v4810_v42 = vmul.f32 %v8060_v57, %v11567_v0  ;;  %v4809_v3 = vmul.f32 %v8060_v57, %v11564_v9 }
 0xa36   : > { %4949 = vmatprep.mubr.bf16.mxu1 %v4830_v39  ;;  %v6873_v61 = vpop.f32.mrf.mxu1 }
 0xa37   : > { %4950 = vmatmul.mubr.bf16.gmra.mxu1 %v4829_v32 }
 0xa38   : > { %v8062_v30 = vpop.eup %8061  ;;  %v6874_v54 = vpop.f32.mrf.mxu1 }
 0xa39   : > { %v8064_v43 = vpop.eup %8063  ;;  %v4812_v41 = vmul.f32 %v8062_v30, %v11583_v27  ;;  %v4811_v13 = vmul.f32 %v8062_v30, %v11580_v52  ;;  %v6875_v59 = vadd.f32 %v6874_v54, %v6873_v61 }
 0xa3a   : > { %v6876_v51 = vpop.f32.mrf.mxu1  ;;  %v4816_v44 = vmul.f32 %v8064_v43, %v11573_v12  ;;  %v4815_v18 = vmul.f32 %v8064_v43, %v11571_v6 }
 0xa3b   : > { %v4832_v63 = vpack.c.bf16 %v4812_v41, %v4810_v42  ;;  %v4831_v17 = vpack.c.bf16 %v4811_v13, %v4809_v3 }
 0xa3c   : > { %v8066_v47 = vpop.eup %8065  ;;  %v6877_v1 = vpop.f32.mrf.mxu1 }
 0xa3d   : > { %v4814_v58 = vmul.f32 %v8066_v47, %v11597_v23  ;;  %v6878_v19 = vadd.f32 %v6877_v1, %v6876_v51  ;;  %4957 = vmatprep.mubr.bf16.mxu1 %v4832_v63  ;;  %v4813_v9 = vmul.f32 %v8066_v47, %v11595_v25 }
 0xa3f   : > { %4958 = vmatmul.mubr.bf16.gmra.mxu1 %v4831_v17  ;;  %v4834_v0 = vpack.c.bf16 %v4816_v44, %v4814_v58  ;;  %v3635_v27 = vpack.c.bf16 %v6878_v19, %v6875_v59  ;;  %v4833_v11 = vpack.c.bf16 %v4815_v18, %v4813_v9 }
 0xa40   : > { %v8068_v26 = vpop.eup %8067 }
 0xa41   : > { %v8070_v62 = vpop.eup %8069  ;;  %4965 = vmatprep.mubr.bf16.mxu1 %v4834_v0  ;;  %5000 = vrot.lane.b32.xlu1 %v3635_v27, %s8460_s24  ;;  %v4818_v52 = vmul.f32 %v8068_v26, %v11611_v24  ;;  %v4817_v2 = vmul.f32 %v8068_v26, %v11606_v45 }
 0xa42   : > { %v6879_v23 = vpop.f32.mrf.mxu1  ;;  %v4820_v12 = vmul.f32 %v8070_v62, %v11593_v14  ;;  %v4819_v24 = vmul.f32 %v8070_v62, %v11586_v36 }
 0xa44   : > { %v6880_v16 = vpop.f32.mrf.mxu1  ;;  %v4836_v60 = vpack.c.bf16 %v4820_v12, %v4818_v52  ;;  %v4835_v10 = vpack.c.bf16 %v4819_v24, %v4817_v2 }
 0xa45   : > { %v11692_v55 = vadd.f32 %v6880_v16, %v6879_v23 }
 0xa46   : > { %v6882_v5 = vpop.f32.mrf.mxu1 }
 0xa47   : > { %4966 = vmatmul.mubr.bf16.gmra.mxu1 %v4833_v11 }
 0xa48   : > { %4973 = vmatprep.mubr.bf16.mxu1 %v4836_v60  ;;  %v6883_v25 = vpop.f32.mrf.mxu1 }
 0xa49   : > { %v11695_v4 = vadd.f32 %v6883_v25, %v6882_v5 }
 0xa4b   : > { %v3636_v6 = vpack.c.bf16 %v11695_v4, %v11692_v55 }
 0xa4e   : > { %v6885_v14 = vpop.f32.mrf.mxu1 }
 0xa4f   : > { %4974 = vmatmul.mubr.bf16.gmra.mxu1 %v4835_v10  ;;  %v7607_v10 = vld [vmem:[#allocation10 + $0x38] sm:$0xff]  }
 0xa50   : > { %v6886_v22 = vpop.f32.mrf.mxu1  ;;  %7219 = vmatprep.subr.bf16.mxu0 %v7607_v10 }
 0xa51   : > { %v11700_v48 = vadd.f32 %v6886_v22, %v6885_v14  ;;  %v7608_v14 = vld [vmem:[#allocation10 + $0x30] sm:$0xff]   ;;  %7220 = vmatpush3.bf16.msra.mxu0 %v7607_v10 }
 0xa52   : > { %v6888_v34 = vpop.f32.mrf.mxu1  ;;  %7221 = vmatprep.subr.bf16.mxu0 %v7608_v14 }
 0xa54   : > { %v6889_v31 = vpop.f32.mrf.mxu1 }
 0xa55   : > { %v11702_v56 = vadd.f32 %v6889_v31, %v6888_v34  ;;  %v7609_v31 = vld [vmem:[#allocation10 + $0x28] sm:$0xff]   ;;  %7222 = vmatpush3.bf16.msra.mxu0 %v7608_v14 }
 0xa56   : > { %v6891_v20 = vpop.f32.mrf.mxu1  ;;  %7223 = vmatprep.subr.bf16.mxu0 %v7609_v31 }
 0xa57   : > { %v3637_v45 = vpack.c.bf16 %v11702_v56, %v11700_v48 }
 0xa58   : > { %v6892_v28 = vpop.f32.mrf.mxu1 }
 0xa59   : > { %v11706_v8 = vadd.f32 %v6892_v28, %v6891_v20  ;;  %7224 = vmatpush3.bf16.msra.mxu0 %v7609_v31 }
 0xa5a   : > { %v6894_v36 = vpop.f32.mrf.mxu1 }
 0xa5c   : > { %v6895_v21 = vpop.f32.mrf.mxu1 }
 0xa5d   : > { %v11708_v37 = vadd.f32 %v6895_v21, %v6894_v36  ;;  %v7610_v36 = vld [vmem:[#allocation10 + $0x20] sm:$0xff]  }
 0xa5e   : > { %v6897_v50 = vpop.f32.mrf.mxu1  ;;  %7225 = vmatprep.subr.bf16.mxu0 %v7610_v36 }
 0xa5f   : > { %v3638_v33 = vpack.c.bf16 %v11708_v37, %v11706_v8  ;;  %7226 = vmatpush3.bf16.msra.mxu0 %v7610_v36 }
 0xa60   : > { %v6898_v29 = vpop.f32.mrf.mxu1 }
 0xa61   : > { %v11712_v7 = vadd.f32 %v6898_v29, %v6897_v50  ;;  %v7611_v29 = vld [vmem:[#allocation10 + $0x18] sm:$0xff]  }
 0xa62   : > { %v6900_v40 = vpop.f32.mrf.mxu1  ;;  %7227 = vmatprep.subr.bf16.mxu0 %v7611_v29 }
 0xa63   : > { %7228 = vmatpush3.bf16.msra.mxu0 %v7611_v29 }
 0xa64   : > { %v6901_v46 = vpop.f32.mrf.mxu1 }
 0xa65   : > { %v11714_v15 = vadd.f32 %v6901_v46, %v6900_v40 }
 0xa66   : > { %v6903_v53 = vpop.f32.mrf.mxu1 }
 0xa67   : > { %v3639_v38 = vpack.c.bf16 %v11714_v15, %v11712_v7 }
 0xa68   : > { %v6904_v35 = vpop.f32.mrf.mxu1 }
 0xa69   : > { %v11718_v39 = vadd.f32 %v6904_v35, %v6903_v53  ;;  %v7612_v35 = vld [vmem:[#allocation10 + $0x10] sm:$0xff]  }
 0xa6a   : > { %v6906_v32 = vpop.f32.mrf.mxu1  ;;  %7229 = vmatprep.subr.bf16.mxu0 %v7612_v35 }
 0xa6b   : > { %7230 = vmatpush3.bf16.msra.mxu0 %v7612_v35 }
 0xa6c   : > { %v6907_v49 = vpop.f32.mrf.mxu1 }
 0xa6d   : > { %v11720_v57 = vadd.f32 %v6907_v49, %v6906_v32 }
 0xa6e   : > { %v6909_v61 = vpop.f32.mrf.mxu1 }
 0xa6f   : > { %v3640_v30 = vpack.c.bf16 %v11720_v57, %v11718_v39 }
 0xa70   : > { %v6910_v54 = vpop.f32.mrf.mxu1 }
 0xa71   : > { %v11724_v43 = vadd.f32 %v6910_v54, %v6909_v61 }
 0xa72   : > { %v6912_v42 = vpop.f32.mrf.mxu1 }
 0xa74   : > { %v6913_v41 = vpop.f32.mrf.mxu1 }
 0xa75   : > { %v11726_v3 = vadd.f32 %v6913_v41, %v6912_v42 }
 0xa76   : > { %v6963_v13 = vpop.f32.mrf.mxu1 }
 0xa77   : > { %v3641_v51 = vpack.c.bf16 %v11726_v3, %v11724_v43 }
 0xa78   : > { %v6964_v47 = vpop.f32.mrf.mxu1 }
 0xa79   : > { %v6965_v1 = vadd.f32 %v6964_v47, %v6963_v13 }
 0xa7a   : > { %v6966_v63 = vpop.f32.mrf.mxu1 }
 0xa7c   : > { %v6967_v17 = vpop.f32.mrf.mxu1 }
 0xa7d   : > { %v6968_v58 = vadd.f32 %v6967_v17, %v6966_v63  ;;  %v7613_v17 = vld [vmem:[#allocation10 + $0x8] sm:$0xff]  }
 0xa7e   : > { %v6969_v44 = vpop.f32.mrf.mxu1  ;;  %7231 = vmatprep.subr.bf16.mxu0 %v7613_v17 }
 0xa7f   : > { %v4308_v59 = vpack.c.bf16 %v6968_v58, %v6965_v1  ;;  %7232 = vmatpush3.bf16.msra.mxu0 %v7613_v17 }
 0xa80   : > { %v6970_v19 = vpop.f32.mrf.mxu1 }
 0xa81   : > { %5022 = vrot.lane.b32.xlu1 %v4308_v59, %s8459_s10  ;;  %v6971_v27 = vadd.f32 %v6970_v19, %v6969_v44  ;;  %v7614_v59 = vld [vmem:[#allocation10] sm:$0xff]  }
 0xa82   : > { %v6972_v0 = vpop.f32.mrf.mxu1  ;;  %7233 = vmatprep.subr.bf16.mxu0 %v7614_v59 }
 0xa83   : > { %7234 = vmatpush3.bf16.msra.mxu0 %v7614_v59 }
 0xa84   : > { %v6973_v26 = vpop.f32.mrf.mxu1 }
 0xa85   : > { %v6974_v62 = vadd.f32 %v6973_v26, %v6972_v0 }
 0xa86   : > { %v11731_v9 = vpop.f32.mrf.mxu1 }
 0xa87   : > { %v4309_v52 = vpack.c.bf16 %v6974_v62, %v6971_v27 }
 0xa88   : > { %v11733_v18 = vpop.f32.mrf.mxu1 }
 0xa89   : > { %5024 = vrot.lane.b32.xlu1 %v4309_v52, %s8459_s10 }
 0xa8a   : > { %v11736_v23 = vpop.f32.mrf.mxu1 }
 0xa8c   : > { %v6979_v12 = vpop.f32.mrf.mxu1 }
 0xa8d   : > { %v6980_v31 = vadd.f32 %v6979_v12, %v11736_v23 }
 0xa8e   : > { %v11738_v11 = vpop.f32.mrf.mxu1 }
 0xa90   : > { %v11740_v16 = vpop.f32.mrf.mxu1 }
 0xa92   : > { %v11742_v60 = vpop.f32.mrf.mxu1 }
 0xa94   : > { %v11744_v5 = vpop.f32.mrf.mxu1 }
 0xa95   : > { %v6986_v12 = vadd.f32 %v11744_v5, %v11742_v60 }
 0xa96   : > { %v11746_v2 = vpop.f32.mrf.mxu1 }
 0xa98   : > { %v11748_v25 = vpop.f32.mrf.mxu1 }
 0xa9a   : > { %v11750_v24 = vpop.f32.mrf.mxu1 }
 0xa9c   : > { %v11752_v22 = vpop.f32.mrf.mxu1 }
 0xa9d   : > { %v6992_v5 = vadd.f32 %v11752_v22, %v11750_v24 }
 0xa9e   : > { %v11754_v34 = vpop.f32.mrf.mxu1 }
 0xaa0   : > { %v11756_v20 = vpop.f32.mrf.mxu1 }
 0xaa1   : > { %v6995_v24 = vadd.f32 %v11756_v20, %v11754_v34 }
 0xaa2   : > { %v11758_v28 = vpop.f32.mrf.mxu1 }
 0xaa4   : > { %v11760_v21 = vpop.f32.mrf.mxu1 }
 0xaa6   : > { %v6999_v50 = vpop.f32.mrf.mxu1 }
 0xaa7   : > { %v4999_v43 = vpop.permute.xlu0 %4998 }
 0xaa8   : > { %v7000_v40 = vpop.f32.mrf.mxu1 }
 0xaa9   : > { %v11762_v46 = vadd.f32 %v7000_v40, %v6999_v50  ;;  %v6977_v50 = vadd.f32 %v11733_v18, %v11731_v9  ;;  %v6983_v18 = vadd.f32 %v11740_v16, %v11738_v11  ;;  %v6989_v16 = vadd.f32 %v11748_v25, %v11746_v2 }
 0xaaa   : > { %v7002_v53 = vpop.f32.mrf.mxu1 }
 0xaab   : > { %v4310_v35 = vpack.c.bf16 %v6980_v31, %v6977_v50  ;;  %v4311_v4 = vpack.c.bf16 %v6986_v12, %v6983_v18  ;;  %v4312_v48 = vpack.c.bf16 %v6992_v5, %v6989_v16 }
 0xaac   : > { %v7003_v32 = vpop.f32.mrf.mxu1 }
 0xaad   : > { %v11764_v49 = vadd.f32 %v7003_v32, %v7002_v53 }
 0xaae   : > { %v7005_v61 = vpop.f32.mrf.mxu1 }
 0xaaf   : > { %v4314_v54 = vpack.c.bf16 %v11764_v49, %v11762_v46 }
 0xab0   : > { %v7006_v42 = vpop.f32.mrf.mxu1 }
 0xab1   : > { %v11768_v41 = vadd.f32 %v7006_v42, %v7005_v61 }
 0xab2   : > { %v7008_v13 = vpop.f32.mrf.mxu1 }
 0xab3   : > { %v5001_v31 = vpop.permute.xlu1 %5000 }
 0xab4   : > { %v7009_v47 = vpop.f32.mrf.mxu1 }
 0xab5   : > { %v11770_v63 = vadd.f32 %v7009_v47, %v7008_v13 }
 0xab7   : > { %v4315_v1 = vpack.c.bf16 %v11770_v63, %v11768_v41 }
 0xab9   : > { %v7059_v58 = vpop.f32.mrf.mxu1 }
 0xabb   : > { %v7060_v44 = vpop.f32.mrf.mxu1 }
 0xabc   : > { %v7061_v26 = vadd.f32 %v7060_v44, %v7059_v58 }
 0xabd   : > { %v7062_v19 = vpop.f32.mrf.mxu1 }
 0xabf   : > { %v7063_v0 = vpop.f32.mrf.mxu1 }
 0xac0   : > { %v7064_v27 = vadd.f32 %v7063_v0, %v7062_v19 }
 0xac1   : > { %v7065_v62 = vpop.f32.mrf.mxu1 }
 0xac2   : > { %v4982_v52 = vpack.c.bf16 %v7064_v27, %v7061_v26 }
 0xac3   : > { %v7066_v10 = vpop.f32.mrf.mxu1 }
 0xac4   : > { %5046 = vrot.lane.b32.xlu0 %v4982_v52, %s8458_s11  ;;  %v7067_v29 = vadd.f32 %v7066_v10, %v7065_v62 }
 0xac5   : > { %v7068_v14 = vpop.f32.mrf.mxu1 }
 0xac7   : > { %v7069_v36 = vpop.f32.mrf.mxu1 }
 0xac8   : > { %v7070_v40 = vadd.f32 %v7069_v36, %v7068_v14  ;;  %5002 = vrot.lane.b32.xlu0 %v3636_v6, %s8460_s24  ;;  %v12899_v36 = vld [vmem:[#allocation54_spill] sm:$0xff] }
 0xac9   : > { %v7071_v53 = vpop.f32.mrf.mxu1 }
 0xaca   : > { %v4983_v32 = vpack.c.bf16 %v7070_v40, %v7067_v29 }
 0xacb   : > { %v7072_v61 = vpop.f32.mrf.mxu1 }
 0xacc   : > { %5048 = vrot.lane.b32.xlu1 %v4983_v32, %s8458_s11  ;;  %5026 = vrot.lane.b32.xlu0 %v4310_v35, %s8459_s10  ;;  %v7073_v42 = vadd.f32 %v7072_v61, %v7071_v53  ;;  %v12902_v35 = vld [vmem:[#allocation49_spill] sm:$0xff]  ;;  %v12903_v32 = vld [vmem:[#allocation47_spill] sm:$0xff] }
 0xacd   : > { %v7074_v23 = vpop.f32.mrf.mxu1  ;;  %v12904_v61 = vpack.c.bf16 %v12902_v35, %v12903_v32 }
 0xacf   : > { %v7075_v9 = vpop.f32.mrf.mxu1 }
 0xad0   : > { %v7076_v13 = vadd.f32 %v7075_v9, %v7074_v23  ;;  %5004 = vrot.lane.b32.xlu1 %v3637_v45, %s8460_s24  ;;  %v6998_v45 = vadd.f32 %v11760_v21, %v11758_v28  ;;  %v5067_v23 = vsel %vm12905_vm15, %v12904_v61, %v5001_v31  ;;  %v8139_v61 = vld [vmem:[%s9198_s3] sm:$0xff] }
 0xad1   : > { %v7077_v55 = vpop.f32.mrf.mxu1 }
 0xad2   : > { %v4984_v6 = vpack.c.bf16 %v7076_v13, %v7073_v42  ;;  %v4313_v2 = vpack.c.bf16 %v6998_v45, %v6995_v24 }
 0xad3   : > { %v7078_v47 = vpop.f32.mrf.mxu1 }
 0xad4   : > { %5028 = vrot.lane.b32.xlu1 %v4311_v4, %s8459_s10  ;;  %5050 = vrot.lane.b32.xlu0 %v4984_v6, %s8458_s11  ;;  %v7079_v17 = vadd.f32 %v7078_v47, %v7077_v55  ;;  %v12906_v55 = vld [vmem:[#allocation48_spill] sm:$0xff]  ;;  %v12907_v4 = vld [vmem:[#allocation46_spill] sm:$0xff] }
 0xad5   : > { %v7080_v60 = vpop.f32.mrf.mxu1  ;;  %v12908_v6 = vpack.c.bf16 %v12906_v55, %v12907_v4  ;;  %v8141_v55 = vld [vmem:[%s9198_s3 + $0x8] sm:$0xff] }
 0xad7   : > { %v7081_v11 = vpop.f32.mrf.mxu1 }
 0xad8   : > { %v7082_v58 = vadd.f32 %v7081_v11, %v7080_v60  ;;  %5006 = vrot.lane.b32.xlu0 %v3638_v33, %s8460_s24 }
 0xada   : > { %v4985_v56 = vpack.c.bf16 %v7082_v58, %v7079_v17  ;;  %v12910_v17 = vld [vmem:[#allocation53_spill] sm:$0xff]  ;;  %v12911_v58 = vld [vmem:[#allocation51_spill] sm:$0xff] }
 0xadc   : > { %5052 = vrot.lane.b32.xlu1 %v4985_v56, %s8458_s11  ;;  %5030 = vrot.lane.b32.xlu0 %v4312_v48, %s8459_s10  ;;  %v12912_v48 = vpack.c.bf16 %v12910_v17, %v12911_v58  ;;  %v8143_v58 = vld [vmem:[%s9198_s3 + $0x20] sm:$0xff] }
 0xae0   : > { %5008 = vrot.lane.b32.xlu1 %v3639_v38, %s8460_s24 }
 0xae4   : > { %5032 = vrot.lane.b32.xlu1 %v4313_v2, %s8459_s10 }
 0xaf3   : > { %v5023_v3 = vpop.permute.xlu1 %5022 }
 0xaf7   : > { %v7083_v8 = vpop.f32.mrf.mxu1 }
 0xaf9   : > { %v7084_v37 = vpop.f32.mrf.mxu1 }
 0xafa   : > { %v7085_v22 = vadd.f32 %v7084_v37, %v7083_v8 }
 0xafb   : > { %v7086_v33 = vpop.f32.mrf.mxu1  ;;  %v5025_v40 = vpop.permute.xlu1 %5024 }
 0xafc   : > { %v5090_v12 = vsel %vm5086_vm12, %v5067_v23, %v5025_v40 }
 0xafd   : > { %v7087_v25 = vpop.f32.mrf.mxu1 }
 0xafe   : > { %v7088_v44 = vadd.f32 %v7087_v25, %v7086_v33  ;;  %v12914_v25 = vld [vmem:[#allocation52_spill] sm:$0xff] }
 0xaff   : > { %v7089_v59 = vpop.f32.mrf.mxu1 }
 0xb00   : > { %v4986_v19 = vpack.c.bf16 %v7088_v44, %v7085_v22  ;;  %v12915_v22 = vld [vmem:[#allocation50_spill] sm:$0xff] }
 0xb01   : > { %v7090_v28 = vpop.f32.mrf.mxu1  ;;  %v12916_v44 = vpack.c.bf16 %v12914_v25, %v12915_v22  ;;  %v8146_v25 = vld [vmem:[%s9198_s3 + $0x38] sm:$0xff] }
 0xb02   : > { %5054 = vrot.lane.b32.xlu0 %v4986_v19, %s8458_s11  ;;  %v7091_v21 = vadd.f32 %v7090_v28, %v7089_v59 }
 0xb03   : > { %v7092_v34 = vpop.f32.mrf.mxu1 }
 0xb05   : > { %v7093_v20 = vpop.f32.mrf.mxu1 }
 0xb06   : > { %v7094_v0 = vadd.f32 %v7093_v20, %v7092_v34  ;;  %5010 = vrot.lane.b32.xlu0 %v3640_v30, %s8460_s24 }
 0xb07   : > { %v7095_v7 = vpop.f32.mrf.mxu1 }
 0xb08   : > { %v4987_v15 = vpack.c.bf16 %v7094_v0, %v7091_v21  ;;  %v12918_v0 = vld [vmem:[#allocation57_spill] sm:$0xff] }
 0xb09   : > { %v7096_v38 = vpop.f32.mrf.mxu1 }
 0xb0a   : > { %5034 = vrot.lane.b32.xlu0 %v4314_v54, %s8459_s10  ;;  %5056 = vrot.lane.b32.xlu1 %v4987_v15, %s8458_s11  ;;  %v7097_v62 = vadd.f32 %v7096_v38, %v7095_v7  ;;  %v12919_v7 = vld [vmem:[#allocation56_spill] sm:$0xff] }
 0xb0b   : > { %v7098_v26 = vpop.f32.mrf.mxu1  ;;  %v12920_v15 = vpack.c.bf16 %v12918_v0, %v12919_v7 }
 0xb0d   : > { %v7099_v27 = vpop.f32.mrf.mxu1 }
 0xb0e   : > { %v7100_v52 = vadd.f32 %v7099_v27, %v7098_v26  ;;  %5012 = vrot.lane.b32.xlu1 %v3641_v51, %s8460_s24  ;;  %v12898_v51 = vld [vmem:[#allocation55_spill] sm:$0xff] }
 0xb0f   : > { %v7101_v39 = vpop.f32.mrf.mxu1  ;;  %v12900_v50 = vpack.c.bf16 %v12898_v51, %v12899_v36 }
 0xb10   : > { %v4988_v57 = vpack.c.bf16 %v7100_v52, %v7097_v62 }
 0xb11   : > { %v7102_v30 = vpop.f32.mrf.mxu1  ;;  %v5064_v41 = vsel %vm12901_vm14, %v12900_v50, %v4999_v43  ;;  %v12926_v43 = vld [vmem:[#allocation61_spill] sm:$0xff] }
 0xb12   : > { %5036 = vrot.lane.b32.xlu1 %v4315_v1, %s8459_s10  ;;  %5058 = vrot.lane.b32.xlu0 %v4988_v57, %s8458_s11  ;;  %v7103_v54 = vadd.f32 %v7102_v30, %v7101_v39  ;;  %v5088_v63 = vsel %vm5086_vm12, %v5064_v41, %v5023_v3  ;;  %v12922_v57 = vld [vmem:[#allocation59_spill] sm:$0xff]  ;;  %v12923_v30 = vld [vmem:[#allocation58_spill] sm:$0xff]  ;;  %v12927_v3 = vld [vmem:[#allocation60_spill] sm:$0xff]  ;;  %s8462_s10 = smov [#allocation15]  }
 0xb13   : > { %v7104_v46 = vpop.f32.mrf.mxu1  ;;  %v12928_v51 = vpack.c.bf16 %v12926_v43, %v12927_v3  ;;  %v8152_v3 = vld [vmem:[%s9198_s3 + $0x70] sm:$0xff]  ;;  %s8317_s24 = sshll.u32 %s8462_s10, 4  ;;  %s8318_s24 = int_to_ptr.vmem [resolvable:$false] %s8317_s24 }
 0xb14   : > { %p8320_p5 = scmp.lt.s32.totalorder %s12248_s21, %s8318_s24 }
 0xb15   : > { %v7105_v49 = vpop.f32.mrf.mxu1 }
 0xb16   : > { %v7106_v10 = vadd.f32 %v7105_v49, %v7104_v46  ;;  %v12924_v46 = vpack.c.bf16 %v12922_v57, %v12923_v30 }
 0xb18   : > { %v4989_v14 = vpack.c.bf16 %v7106_v10, %v7103_v54 }
 0xb1a   : > { %5060 = vrot.lane.b32.xlu1 %v4989_v14, %s8458_s11  ;;  %s12934_s11 = sld [smem:[#allocation130_spill]] }
 0xb36   : > { %v5047_v1 = vpop.permute.xlu0 %5046 }
 0xb37   : > { %v5105_v29 = vsel %vm5103_vm13, %v5088_v63, %v5047_v1 }
 0xb38   : > { %7235 = vmatprep.mubr.bf16.mxu0 %v5105_v29  ;;  %v11884_v29 = vld [vmem:[%s12930_s28] ss:$0 sm:$0xff]  ;;  %s6447_s28 = sshll.u32 %s12544_s20, 4 }
 0xb39   : > { %s6088_s2 = sadd.s32 %s6448_s22, %s6447_s28 }
 0xb3a   : > { %v5003_v53 = vpop.permute.xlu0 %5002 }
 0xb3b   : > { %v5070_v47 = vsel %vm12909_vm8, %v12908_v6, %v5003_v53  ;;  %v8142_v6 = vld [vmem:[%s9198_s3 + $0x18] sm:$0xff] }
 0xb3e   : > { %v5049_v9 = vpop.permute.xlu1 %5048  ;;  %v5027_v42 = vpop.permute.xlu0 %5026 }
 0xb3f   : > { %v5108_v18 = vsel %vm5103_vm13, %v5090_v12, %v5049_v9  ;;  %v5092_v60 = vsel %vm5086_vm12, %v5070_v47, %v5027_v42 }
 0xb40   : > { %7236 = vmatmul.mubr.bf16.vlgmr.msra.gmra.mxu0 %v5108_v18  ;;  %v8140_v18 = vld [vmem:[%s9198_s3 + $0x10] sm:$0xff] }
 0xb42   : > { %v5005_v13 = vpop.permute.xlu1 %5004 }
 0xb43   : > { %v5073_v56 = vsel %vm12913_vm9, %v12912_v48, %v5005_v13 }
 0xb46   : > { %v5051_v5 = vpop.permute.xlu0 %5050  ;;  %v5029_v16 = vpop.permute.xlu1 %5028 }
 0xb47   : > { %v5111_v11 = vsel %vm5103_vm13, %v5092_v60, %v5051_v5  ;;  %v5094_v45 = vsel %vm5086_vm12, %v5073_v56, %v5029_v16 }
 0xb48   : > { %7239 = vmatprep.mubr.bf16.mxu0 %v5111_v11 }
 0xb4a   : > { %v5007_v8 = vpop.permute.xlu0 %5006 }
 0xb4b   : > { %v5076_v59 = vsel %vm12917_vm0, %v12916_v44, %v5007_v8 }
 0xb4e   : > { %v5053_v24 = vpop.permute.xlu1 %5052  ;;  %v5031_v37 = vpop.permute.xlu0 %5030 }
 0xb4f   : > { %v5114_v2 = vsel %vm5103_vm13, %v5094_v45, %v5053_v24  ;;  %v5096_v19 = vsel %vm5086_vm12, %v5076_v59, %v5031_v37  ;;  %v8144_v24 = vld [vmem:[%s9198_s3 + $0x30] sm:$0xff]  ;;  %v8145_v37 = vld [vmem:[%s9198_s3 + $0x28] sm:$0xff] }
 0xb50   : > { %7240 = vmatmul.mubr.bf16.gmra.mxu0 %v5114_v2 }
 0xb52   : > { %v5009_v33 = vpop.permute.xlu1 %5008 }
 0xb53   : > { %v5079_v38 = vsel %vm12921_vm10, %v12920_v15, %v5009_v33  ;;  %v8148_v15 = vld [vmem:[%s9198_s3 + $0x50] sm:$0xff] }
 0xb56   : > { %v5033_v20 = vpop.permute.xlu1 %5032 }
 0xb57   : > { %v5098_v26 = vsel %vm5086_vm12, %v5079_v38, %v5033_v20  ;;  %v8147_v20 = vld [vmem:[%s9198_s3 + $0x40] sm:$0xff] }
 0xb74   : > { %v5055_v28 = vpop.permute.xlu0 %5054 }
 0xb75   : > { %v5117_v34 = vsel %vm5103_vm13, %v5096_v19, %v5055_v28 }
 0xb76   : > { %7243 = vmatprep.mubr.bf16.mxu0 %v5117_v34 }
 0xb78   : > { %v5011_v21 = vpop.permute.xlu0 %5010 }
 0xb79   : > { %v5082_v49 = vsel %vm12925_vm11, %v12924_v46, %v5011_v21 }
 0xb7c   : > { %v5057_v27 = vpop.permute.xlu1 %5056  ;;  %v5035_v52 = vpop.permute.xlu0 %5034 }
 0xb7d   : > { %v5120_v62 = vsel %vm5103_vm13, %v5098_v26, %v5057_v27  ;;  %v5100_v54 = vsel %vm5086_vm12, %v5082_v49, %v5035_v52  ;;  %v8149_v27 = vld [vmem:[%s9198_s3 + $0x48] sm:$0xff]  ;;  %v8150_v52 = vld [vmem:[%s9198_s3 + $0x58] sm:$0xff] }
 0xb7e   : > { %7244 = vmatmul.mubr.bf16.gmra.mxu0 %v5120_v62 }
 0xb80   : > { %v5013_v39 = vpop.permute.xlu1 %5012 }
 0xb81   : > { %v5085_v36 = vsel %vm12929_vm1, %v12928_v51, %v5013_v39 }
 0xb84   : > { %v5059_v10 = vpop.permute.xlu0 %5058  ;;  %v5037_v31 = vpop.permute.xlu1 %5036 }
 0xb85   : > { %v5123_v14 = vsel %vm5103_vm13, %v5100_v54, %v5059_v10  ;;  %v5102_v50 = vsel %vm5086_vm12, %v5085_v36, %v5037_v31  ;;  %v8151_v10 = vld [vmem:[%s9198_s3 + $0x60] sm:$0xff] }
 0xb86   : > { %7247 = vmatprep.mubr.bf16.mxu0 %v5123_v14 }
 0xb8c   : > { %v5061_v41 = vpop.permute.xlu1 %5060 }
 0xb8d   : > { %v5126_v63 = vsel %vm5103_vm13, %v5102_v50, %v5061_v41  ;;  %v8153_v50 = vld [vmem:[%s9198_s3 + $0x68] sm:$0xff] }
 0xb8e   : > { %7248 = vmatmul.mubr.bf16.gmra.mxu0 %v5126_v63  ;;  %v8154_v63 = vld [vmem:[%s9198_s3 + $0x78] sm:$0xff]  ;;  %s12254_s3 = scalar_lea.sflag [#allocation6], %s543_s17 }
 0xc00   : > { %v7237_v1 = vpop.f32.mrf.mxu0 }
 0xc01   : > { %v5242_v32 = vadd.f32 %v7237_v1, %v11884_v29 }
 0xc02   : > { %v5233_v40 = vpop.f32.mrf.mxu0 }
 0xc03   : > { %v5234_v53 = vadd.f32 %v11884_v29, %v5233_v40  ;;  %v11894_v42 = vadd.f32 %v8140_v18, %v5242_v32  ;;  %v7615_v40 = vld [vmem:[#allocation12 + $0x70] ss:$8 sps:$4 sm:$0xff]  }
 0xc04   : > { %v7238_v35 = vpop.f32.mrf.mxu0 }
 0xc05   : > { %v11889_v23 = vadd.f32 %v8139_v61, %v5234_v53  ;;  %v5245_v13 = vadd.f32 %v7238_v35, %v11884_v29  ;;  %v7617_v53 = vld [vmem:[#allocation12 + $0x74] ss:$8 sps:$4 sm:$0xff]  }
 0xc06   : > { %v5236_v12 = vpop.f32.mrf.mxu0  ;;  %5650 = vmatprep.subr.bf16.mxu1 %v7617_v53 }
 0xc07   : > { %v5237_v9 = vadd.f32 %v11884_v29, %v5236_v12  ;;  %5314 = vadd.xlane.f32.xlu0 %v11889_v23  ;;  %v11903_v47 = vadd.f32 %v8142_v6, %v5245_v13  ;;  %5651 = vmatpush1.bf16.msra.mxu1 %v7615_v40  ;;  %v8461_v40 = vmov 0  }
 0xc08   : > { %5682 = vmatprep.mubr.bf16.mxu1 %v8461_v40 }
 0xc09   : > { %v11898_v4 = vadd.f32 %v8141_v55, %v5237_v9 }
 0xc0b   : > { %5316 = vadd.xlane.f32.xlu1 %v11898_v4  ;;  %5318 = vadd.xlane.f32.xlu0 %v11894_v42 }
 0xc0f   : > { %5320 = vadd.xlane.f32.xlu0 %v11903_v47 }
 0xc10   : > { %v7241_v60 = vpop.f32.mrf.mxu0 }
 0xc11   : > { %v5258_v17 = vadd.f32 %v7241_v60, %v11884_v29 }
 0xc12   : > { %v5249_v5 = vpop.f32.mrf.mxu0 }
 0xc13   : > { %v5250_v11 = vadd.f32 %v11884_v29, %v5249_v5  ;;  %v11914_v2 = vadd.f32 %v8144_v24, %v5258_v17 }
 0xc14   : > { %v7242_v16 = vpop.f32.mrf.mxu0 }
 0xc15   : > { %v11909_v48 = vadd.f32 %v8143_v58, %v5250_v11  ;;  %v5261_v8 = vadd.f32 %v7242_v16, %v11884_v29 }
 0xc16   : > { %v5252_v56 = vpop.f32.mrf.mxu0 }
 0xc17   : > { %v5253_v45 = vadd.f32 %v11884_v29, %v5252_v56  ;;  %5322 = vadd.xlane.f32.xlu0 %v11909_v48  ;;  %v11923_v22 = vadd.f32 %v8146_v25, %v5261_v8  ;;  %v7620_v25 = vld [vmem:[#allocation12 + $0x64] ss:$8 sps:$4 sm:$0xff]  }
 0xc18   : > { %5652 = vmatprep.subr.bf16.mxu1 %v7620_v25 }
 0xc19   : > { %v11918_v33 = vadd.f32 %v8145_v37, %v5253_v45 }
 0xc1b   : > { %5324 = vadd.xlane.f32.xlu1 %v11918_v33  ;;  %5326 = vadd.xlane.f32.xlu0 %v11914_v2 }
 0xc1f   : > { %5328 = vadd.xlane.f32.xlu1 %v11923_v22 }
 0xc3e   : > { %v7245_v44 = vpop.f32.mrf.mxu0 }
 0xc3f   : > { %v5274_v34 = vadd.f32 %v7245_v44, %v11884_v29 }
 0xc40   : > { %v5265_v59 = vpop.f32.mrf.mxu0 }
 0xc41   : > { %v5266_v19 = vadd.f32 %v11884_v29, %v5265_v59  ;;  %v11934_v38 = vadd.f32 %v8148_v15, %v5274_v34 }
 0xc42   : > { %v7246_v28 = vpop.f32.mrf.mxu0 }
 0xc43   : > { %v11929_v21 = vadd.f32 %v8147_v20, %v5266_v19  ;;  %v5277_v26 = vadd.f32 %v7246_v28, %v11884_v29  ;;  %v7618_v28 = vld [vmem:[#allocation12 + $0x60] ss:$8 sps:$4 sm:$0xff]  }
 0xc44   : > { %v5268_v0 = vpop.f32.mrf.mxu0  ;;  %5653 = vmatpush1.bf16.msra.mxu1 %v7618_v28 }
 0xc45   : > { %v5269_v7 = vadd.f32 %v11884_v29, %v5268_v0  ;;  %5330 = vadd.xlane.f32.xlu0 %v11929_v21  ;;  %v11943_v39 = vadd.f32 %v8150_v52, %v5277_v26  ;;  %v7621_v52 = vld [vmem:[#allocation12 + $0x50] ss:$8 sps:$4 sm:$0xff]  }
 0xc47   : > { %v11938_v62 = vadd.f32 %v8149_v27, %v5269_v7  ;;  %v7623_v7 = vld [vmem:[#allocation12 + $0x54] ss:$8 sps:$4 sm:$0xff]  }
 0xc48   : > { %5654 = vmatprep.subr.bf16.mxu1 %v7623_v7 }
 0xc49   : > { %5332 = vadd.xlane.f32.xlu1 %v11938_v62  ;;  %5334 = vadd.xlane.f32.xlu0 %v11934_v38 }
 0xc4a   : > { %5655 = vmatpush1.bf16.msra.mxu1 %v7621_v52 }
 0xc4d   : > { %5336 = vadd.xlane.f32.xlu1 %v11943_v39 }
 0xc4e   : > { %v7249_v57 = vpop.f32.mrf.mxu0 }
 0xc4f   : > { %v5290_v54 = vadd.f32 %v7249_v57, %v11884_v29 }
 0xc50   : > { %v5281_v30 = vpop.f32.mrf.mxu0 }
 0xc51   : > { %v5282_v46 = vadd.f32 %v11884_v29, %v5281_v30  ;;  %v11954_v51 = vadd.f32 %v8152_v3, %v5290_v54  ;;  %v7626_v30 = vld [vmem:[#allocation12 + $0x44] ss:$8 sps:$4 sm:$0xff]   ;;  %v7629_v54 = vld [vmem:[#allocation12 + $0x34] ss:$8 sps:$4 sm:$0xff]  }
 0xc52   : > { %v7250_v49 = vpop.f32.mrf.mxu0  ;;  %5656 = vmatprep.subr.bf16.mxu1 %v7626_v30  ;;  %v7635_v3 = vld [vmem:[#allocation12 + $0x14] ss:$8 sps:$4 sm:$0xff]  }
 0xc53   : > { %v11949_v14 = vadd.f32 %v8151_v10, %v5282_v46  ;;  %v5293_v36 = vadd.f32 %v7250_v49, %v11884_v29  ;;  %v7624_v49 = vld [vmem:[#allocation12 + $0x40] ss:$8 sps:$4 sm:$0xff]   ;;  %v7627_v10 = vld [vmem:[#allocation12 + $0x30] ss:$8 sps:$4 sm:$0xff]  }
 0xc54   : > { %v5284_v31 = vpop.f32.mrf.mxu0  ;;  %5657 = vmatpush1.bf16.msra.mxu1 %v7624_v49 }
 0xc55   : > { %v5285_v43 = vadd.f32 %v11884_v29, %v5284_v31  ;;  %5338 = vadd.xlane.f32.xlu0 %v11949_v14  ;;  %v11963_v1 = vadd.f32 %v8154_v63, %v5293_v36  ;;  %5658 = vmatprep.subr.bf16.mxu1 %v7629_v54  ;;  %v7632_v31 = vld [vmem:[#allocation12 + $0x24] ss:$8 sps:$4 sm:$0xff]   ;;  %v7633_v36 = vld [vmem:[#allocation12 + $0x10] ss:$8 sps:$4 sm:$0xff]   ;;  %v7636_v63 = vld [vmem:[#allocation12] ss:$8 sps:$4 sm:$0xff]  }
 0xc57   : > { %v11958_v41 = vadd.f32 %v8153_v50, %v5285_v43  ;;  %v7630_v43 = vld [vmem:[#allocation12 + $0x20] ss:$8 sps:$4 sm:$0xff]   ;;  %v7638_v50 = vld [vmem:[#allocation12 + $0x4] ss:$8 sps:$4 sm:$0xff]  }
 0xc58   : > { %5659 = vmatpush1.bf16.msra.mxu1 %v7627_v10  ;;  %v7639_v10 = vld [vmem:[#allocation13 + $0x78] sm:$0xff]  }
 0xc59   : > { %5340 = vadd.xlane.f32.xlu1 %v11958_v41  ;;  %5342 = vadd.xlane.f32.xlu0 %v11954_v51 }
 0xc5a   : > { %5660 = vmatprep.subr.bf16.mxu1 %v7632_v31  ;;  %v12047_v31 = vld [vmem:[#allocation13 + $0x38] sm:$0xff]   ;;  %7123 = vmatprep.subr.bf16.mxu0 %v7639_v10 }
 0xc5b   : > { %7124 = vmatpush3.bf16.msra.mxu0 %v12047_v31 }
 0xc5c   : > { %5661 = vmatpush1.bf16.msra.mxu1 %v7630_v43  ;;  %v12049_v43 = vld [vmem:[#allocation13 + $0x70] sm:$0xff]  }
 0xc5d   : > { %5344 = vadd.xlane.f32.xlu1 %v11963_v1  ;;  %5662 = vmatprep.subr.bf16.mxu1 %v7635_v3  ;;  %v12052_v3 = vld [vmem:[#allocation13 + $0x30] sm:$0xff]  }
 0xc5e   : > { %7125 = vmatprep.subr.bf16.mxu0 %v12049_v43 }
 0xc5f   : > { %7126 = vmatpush3.bf16.msra.mxu0 %v12052_v3 }
 0xc60   : > { %5663 = vmatpush1.bf16.msra.mxu1 %v7633_v36  ;;  %v12055_v36 = vld [vmem:[#allocation13 + $0x68] sm:$0xff]  }
 0xc61   : > { %5664 = vmatprep.subr.bf16.mxu1 %v7638_v50  ;;  %v12058_v50 = vld [vmem:[#allocation13 + $0x28] sm:$0xff]   ;;  %7127 = vmatprep.subr.bf16.mxu0 %v12055_v36 }
 0xc63   : > { %7128 = vmatpush3.bf16.msra.mxu0 %v12058_v50 }
 0xc64   : > { %5665 = vmatpush1.bf16.msra.mxu1 %v7636_v63  ;;  %v12061_v63 = vld [vmem:[#allocation13 + $0x60] sm:$0xff]  }
 0xc65   : > { %7267 = vmatprep.subr.bf16.mxu1 %v7639_v10  ;;  %7129 = vmatprep.subr.bf16.mxu0 %v12061_v63 }
 0xc90   : > { %v5315_v35 = vpop.xlane.xlu0 %5314 }
 0xc91   : > { %v5346_v32 = vmul.f32 0.0078125, %v5315_v35 }
 0xc93   : > { %v11967_v29 = vsub.f32 %v11889_v23, %v5346_v32 }
 0xc94   : > { %v5317_v61 = vpop.xlane.xlu1 %5316  ;;  %v5319_v12 = vpop.xlane.xlu0 %5318 }
 0xc95   : > { %v5347_v9 = vmul.f32 0.0078125, %v5317_v61  ;;  %v5348_v18 = vmul.f32 0.0078125, %v5319_v12  ;;  %v5378_v13 = vmul.f32 %v11967_v29, %v11967_v29 }
 0xc97   : > { %v11972_v55 = vsub.f32 %v11898_v4, %v5347_v9  ;;  %v11975_v6 = vsub.f32 %v11894_v42, %v5348_v18  ;;  %5394 = vadd.xlane.f32.xlu0 %v5378_v13 }
 0xc98   : > { %v5321_v60 = vpop.xlane.xlu0 %5320 }
 0xc99   : > { %v5349_v5 = vmul.f32 0.0078125, %v5321_v60  ;;  %v5379_v11 = vmul.f32 %v11972_v55, %v11972_v55  ;;  %v5380_v16 = vmul.f32 %v11975_v6, %v11975_v6 }
 0xc9b   : > { %v11982_v17 = vsub.f32 %v11903_v47, %v5349_v5  ;;  %5396 = vadd.xlane.f32.xlu1 %v5379_v11  ;;  %5398 = vadd.xlane.f32.xlu0 %v5380_v16 }
 0xc9d   : > { %v5381_v58 = vmul.f32 %v11982_v17, %v11982_v17 }
 0xc9f   : > { %5400 = vadd.xlane.f32.xlu1 %v5381_v58 }
 0xca0   : > { %v5323_v56 = vpop.xlane.xlu0 %5322 }
 0xca1   : > { %v5350_v45 = vmul.f32 0.0078125, %v5323_v56 }
 0xca3   : > { %v11987_v24 = vsub.f32 %v11909_v48, %v5350_v45 }
 0xca4   : > { %v5325_v8 = vpop.xlane.xlu1 %5324  ;;  %v5327_v37 = vpop.xlane.xlu0 %5326 }
 0xca5   : > { %v5351_v44 = vmul.f32 0.0078125, %v5325_v8  ;;  %v5352_v59 = vmul.f32 0.0078125, %v5327_v37  ;;  %v5382_v19 = vmul.f32 %v11987_v24, %v11987_v24 }
 0xca7   : > { %v11992_v34 = vsub.f32 %v11918_v33, %v5351_v44  ;;  %v11995_v20 = vsub.f32 %v11914_v2, %v5352_v59  ;;  %5402 = vadd.xlane.f32.xlu0 %v5382_v19 }
 0xca8   : > { %v5329_v0 = vpop.xlane.xlu1 %5328 }
 0xca9   : > { %v5353_v15 = vmul.f32 0.0078125, %v5329_v0  ;;  %v5383_v26 = vmul.f32 %v11992_v34, %v11992_v34  ;;  %v5384_v27 = vmul.f32 %v11995_v20, %v11995_v20 }
 0xcab   : > { %v12002_v57 = vsub.f32 %v11923_v22, %v5353_v15  ;;  %5404 = vadd.xlane.f32.xlu1 %v5383_v26  ;;  %5406 = vadd.xlane.f32.xlu0 %v5384_v27 }
 0xcad   : > { %v5385_v46 = vmul.f32 %v12002_v57, %v12002_v57 }
 0xcaf   : > { %5408 = vadd.xlane.f32.xlu1 %v5385_v46 }
 0xcce   : > { %v5331_v53 = vpop.xlane.xlu0 %5330 }
 0xccf   : > { %v5354_v35 = vmul.f32 0.0078125, %v5331_v53 }
 0xcd1   : > { %v12008_v32 = vsub.f32 %v11929_v21, %v5354_v35  ;;  %v12064_v35 = vld [vmem:[#allocation13 + $0x20] sm:$0xff]  }
 0xcd2   : > { %v5333_v61 = vpop.xlane.xlu1 %5332  ;;  %v5335_v12 = vpop.xlane.xlu0 %5334  ;;  %7130 = vmatpush3.bf16.msra.mxu0 %v12064_v35 }
 0xcd3   : > { %v5355_v9 = vmul.f32 0.0078125, %v5333_v61  ;;  %v5356_v18 = vmul.f32 0.0078125, %v5335_v12  ;;  %v5386_v13 = vmul.f32 %v12008_v32, %v12008_v32  ;;  %v12067_v12 = vld [vmem:[#allocation13 + $0x58] sm:$0xff]  }
 0xcd4   : > { %7131 = vmatprep.subr.bf16.mxu0 %v12067_v12 }
 0xcd5   : > { %v12013_v60 = vsub.f32 %v11938_v62, %v5355_v9  ;;  %v12016_v5 = vsub.f32 %v11934_v38, %v5356_v18  ;;  %5410 = vadd.xlane.f32.xlu0 %v5386_v13 }
 0xcd6   : > { %v5337_v11 = vpop.xlane.xlu1 %5336 }
 0xcd7   : > { %v5357_v16 = vmul.f32 0.0078125, %v5337_v11  ;;  %v5387_v58 = vmul.f32 %v12013_v60, %v12013_v60  ;;  %v5388_v56 = vmul.f32 %v12016_v5, %v12016_v5  ;;  %v12070_v11 = vld [vmem:[#allocation13 + $0x18] sm:$0xff]  }
 0xcd8   : > { %7132 = vmatpush3.bf16.msra.mxu0 %v12070_v11 }
 0xcd9   : > { %v12023_v45 = vsub.f32 %v11943_v39, %v5357_v16  ;;  %5412 = vadd.xlane.f32.xlu1 %v5387_v58  ;;  %5414 = vadd.xlane.f32.xlu0 %v5388_v56 }
 0xcdb   : > { %v5389_v8 = vmul.f32 %v12023_v45, %v12023_v45 }
 0xcdd   : > { %5416 = vadd.xlane.f32.xlu1 %v5389_v8 }
 0xcde   : > { %v5339_v37 = vpop.xlane.xlu0 %5338 }
 0xcdf   : > { %v5358_v25 = vmul.f32 0.0078125, %v5339_v37 }
 0xce1   : > { %v12028_v44 = vsub.f32 %v11949_v14, %v5358_v25 }
 0xce2   : > { %v5341_v59 = vpop.xlane.xlu1 %5340  ;;  %v5343_v19 = vpop.xlane.xlu0 %5342 }
 0xce3   : > { %v5359_v28 = vmul.f32 0.0078125, %v5341_v59  ;;  %v5360_v0 = vmul.f32 0.0078125, %v5343_v19  ;;  %v5390_v7 = vmul.f32 %v12028_v44, %v12028_v44 }
 0xce5   : > { %v12033_v15 = vsub.f32 %v11958_v41, %v5359_v28  ;;  %v12036_v26 = vsub.f32 %v11954_v51, %v5360_v0  ;;  %5418 = vadd.xlane.f32.xlu0 %v5390_v7  ;;  %v12077_v7 = vld [vmem:[%s12931_s15] ss:$0 sm:$0xff]  ;;  %s6449_s15 = sshll.u32 %s6088_s2, 7 }
 0xce6   : > { %v5345_v27 = vpop.xlane.xlu1 %5344 }
 0xce7   : > { %v5361_v52 = vmul.f32 0.0078125, %v5345_v27  ;;  %v5391_v30 = vmul.f32 %v12033_v15, %v12033_v15  ;;  %v5392_v46 = vmul.f32 %v12036_v26, %v12036_v26 }
 0xce9   : > { %v12043_v49 = vsub.f32 %v11963_v1, %v5361_v52  ;;  %5420 = vadd.xlane.f32.xlu1 %v5391_v30  ;;  %5422 = vadd.xlane.f32.xlu0 %v5392_v46 }
 0xceb   : > { %v5393_v54 = vmul.f32 %v12043_v49, %v12043_v49 }
 0xced   : > { %5424 = vadd.xlane.f32.xlu1 %v5393_v54 }
 0xd20   : > { %v5395_v53 = vpop.xlane.xlu0 %5394 }
 0xd21   : > { %v5426_v61 = vmul.f32 0.0078125, %v5395_v53 }
 0xd23   : > { %v5442_v9 = vadd.f32 1e-05, %v5426_v61 }
 0xd24   : > { %v5397_v18 = vpop.xlane.xlu1 %5396  ;;  %v5399_v13 = vpop.xlane.xlu0 %5398 }
 0xd25   : > { %8071 = vrsqrt.f32 %v5442_v9  ;;  %v5427_v16 = vmul.f32 0.0078125, %v5397_v18  ;;  %v5428_v58 = vmul.f32 0.0078125, %v5399_v13 }
 0xd27   : > { %v5443_v56 = vadd.f32 1e-05, %v5427_v16  ;;  %v5444_v8 = vadd.f32 1e-05, %v5428_v58  ;;  %v12085_v58 = vld [vmem:[%s12932_s13] ss:$0 sm:$0xff] }
 0xd28   : > { %v5401_v37 = vpop.xlane.xlu1 %5400  ;;  %s12938_s13 = sld [smem:[#allocation133_spill]] }
 0xd29   : > { %8073 = vrsqrt.f32 %v5443_v56  ;;  %v5429_v25 = vmul.f32 0.0078125, %v5401_v37 }
 0xd2a   : > { %8075 = vrsqrt.f32 %v5444_v8 }
 0xd2b   : > { %v5445_v59 = vadd.f32 1e-05, %v5429_v25 }
 0xd2d   : > { %8077 = vrsqrt.f32 %v5445_v59 }
 0xd2e   : > { %s12246_s12 = scalar_lea.hbm %s12938_s13, %s6449_s15 }
 0xd30   : > { %v5403_v19 = vpop.xlane.xlu0 %5402 }
 0xd31   : > { %v5430_v28 = vmul.f32 0.0078125, %v5403_v19 }
 0xd32   : > { %v8072_v0 = vpop.eup %8071 }
 0xd33   : > { %v5474_v27 = vmul.f32 %v8072_v0, %v11967_v29  ;;  %v5446_v52 = vadd.f32 1e-05, %v5430_v28 }
 0xd34   : > { %v5405_v30 = vpop.xlane.xlu1 %5404  ;;  %v5407_v46 = vpop.xlane.xlu0 %5406 }
 0xd35   : > { %8079 = vrsqrt.f32 %v5446_v52  ;;  %v5431_v54 = vmul.f32 0.0078125, %v5405_v30  ;;  %v5432_v10 = vmul.f32 0.0078125, %v5407_v46  ;;  %v5496_v61 = vmul.f32 %v12077_v7, %v5474_v27 }
 0xd36   : > { %v8074_v53 = vpop.eup %8073 }
 0xd37   : > { %v8076_v9 = vpop.eup %8075  ;;  %v5475_v18 = vmul.f32 %v8074_v53, %v11972_v55  ;;  %v5447_v13 = vadd.f32 1e-05, %v5431_v54  ;;  %v5448_v16 = vadd.f32 1e-05, %v5432_v10  ;;  %v5518_v25 = vadd.f32 %v12085_v58, %v5496_v61 }
 0xd38   : > { %v5409_v29 = vpop.xlane.xlu1 %5408  ;;  %v5476_v59 = vmul.f32 %v8076_v9, %v11975_v6 }
 0xd39   : > { %v5497_v56 = vmul.f32 %v12077_v7, %v5475_v18  ;;  %8081 = vrsqrt.f32 %v5447_v13  ;;  %v5433_v8 = vmul.f32 0.0078125, %v5409_v29 }
 0xd3a   : > { %v8078_v37 = vpop.eup %8077  ;;  %8083 = vrsqrt.f32 %v5448_v16  ;;  %v5498_v52 = vmul.f32 %v12077_v7, %v5476_v59 }
 0xd3b   : > { %v5449_v19 = vadd.f32 1e-05, %v5433_v8  ;;  %v5519_v55 = vadd.f32 %v12085_v58, %v5497_v56  ;;  %v5477_v28 = vmul.f32 %v8078_v37, %v11982_v17 }
 0xd3c   : > { %v5520_v46 = vadd.f32 %v12085_v58, %v5498_v52 }
 0xd3d   : > { %8085 = vrsqrt.f32 %v5449_v19  ;;  %v5534_v0 = vpack.c.bf16 %v5519_v55, %v5518_v25  ;;  %v5499_v27 = vmul.f32 %v12077_v7, %v5477_v28 }
 0xd3f   : > { %5683 = vmatmul.mubr.bf16.vlgmr.msra.gmra.mxu1 %v5534_v0  ;;  %v5521_v30 = vadd.f32 %v12085_v58, %v5499_v27 }
 0xd40   : > { %5692 = vmatprep.mubr.bf16.mxu1 %v8461_v40  ;;  %7275 = vmatpush3.bf16.msra.mxu1 %v12047_v31 }
 0xd41   : > { %7268 = vmatprep.subr.bf16.mxu1 %v12049_v43  ;;  %v5535_v54 = vpack.c.bf16 %v5521_v30, %v5520_v46 }
 0xd42   : > { %v8080_v6 = vpop.eup %8079 }
 0xd43   : > { %v5478_v17 = vmul.f32 %v8080_v6, %v11987_v24 }
 0xd44   : > { %7276 = vmatpush3.bf16.msra.mxu1 %v12052_v3 }
 0xd45   : > { %7269 = vmatprep.subr.bf16.mxu1 %v12055_v36  ;;  %v5500_v31 = vmul.f32 %v12077_v7, %v5478_v17 }
 0xd46   : > { %v8082_v10 = vpop.eup %8081 }
 0xd47   : > { %5693 = vmatmul.mubr.bf16.gmra.mxu1 %v5535_v54  ;;  %v5479_v53 = vmul.f32 %v8082_v10, %v11992_v34  ;;  %v8084_v61 = vpop.eup %8083  ;;  %v5522_v3 = vadd.f32 %v12085_v58, %v5500_v31 }
 0xd48   : > { %5702 = vmatprep.mubr.bf16.mxu1 %v8461_v40  ;;  %7277 = vmatpush3.bf16.msra.mxu1 %v12058_v50  ;;  %v5480_v9 = vmul.f32 %v8084_v61, %v11995_v20 }
 0xd49   : > { %v5501_v43 = vmul.f32 %v12077_v7, %v5479_v53  ;;  %7270 = vmatprep.subr.bf16.mxu1 %v12061_v63 }
 0xd4a   : > { %v8086_v24 = vpop.eup %8085  ;;  %v5502_v50 = vmul.f32 %v12077_v7, %v5480_v9 }
 0xd4b   : > { %v5523_v36 = vadd.f32 %v12085_v58, %v5501_v43  ;;  %v5481_v34 = vmul.f32 %v8086_v24, %v12002_v57 }
 0xd4c   : > { %7278 = vmatpush3.bf16.msra.mxu1 %v12064_v35  ;;  %v5524_v20 = vadd.f32 %v12085_v58, %v5502_v50 }
 0xd4d   : > { %v5536_v18 = vpack.c.bf16 %v5523_v36, %v5522_v3  ;;  %v5503_v13 = vmul.f32 %v12077_v7, %v5481_v34  ;;  %7271 = vmatprep.subr.bf16.mxu1 %v12067_v12 }
 0xd4f   : > { %5703 = vmatmul.mubr.bf16.gmra.mxu1 %v5536_v18  ;;  %v5525_v63 = vadd.f32 %v12085_v58, %v5503_v13 }
 0xd50   : > { %5712 = vmatprep.mubr.bf16.mxu1 %v8461_v40  ;;  %7279 = vmatpush3.bf16.msra.mxu1 %v12070_v11 }
 0xd51   : > { %v5537_v16 = vpack.c.bf16 %v5525_v63, %v5524_v20 }
 0xd57   : > { %5713 = vmatmul.mubr.bf16.gmra.mxu1 %v5537_v16 }
 0xd58   : > { %5722 = vmatprep.mubr.bf16.mxu1 %v8461_v40 }
 0xd5e   : > { %v5411_v57 = vpop.xlane.xlu0 %5410 }
 0xd5f   : > { %v5434_v35 = vmul.f32 0.0078125, %v5411_v57 }
 0xd61   : > { %v5450_v29 = vadd.f32 1e-05, %v5434_v35 }
 0xd62   : > { %v5413_v56 = vpop.xlane.xlu1 %5412  ;;  %v5415_v12 = vpop.xlane.xlu0 %5414 }
 0xd63   : > { %8087 = vrsqrt.f32 %v5450_v29  ;;  %v5435_v8 = vmul.f32 0.0078125, %v5413_v56  ;;  %v5436_v37 = vmul.f32 0.0078125, %v5415_v12  ;;  %v7649_v56 = vld [vmem:[#allocation13 + $0x50] sm:$0xff]  }
 0xd64   : > { %7133 = vmatprep.subr.bf16.mxu0 %v7649_v56  ;;  %7272 = vmatprep.subr.bf16.mxu1 %v7649_v56 }
 0xd65   : > { %v5451_v25 = vadd.f32 1e-05, %v5435_v8  ;;  %v5452_v59 = vadd.f32 1e-05, %v5436_v37  ;;  %v7650_v8 = vld [vmem:[#allocation13 + $0x10] sm:$0xff]  }
 0xd66   : > { %v5417_v19 = vpop.xlane.xlu1 %5416  ;;  %7134 = vmatpush3.bf16.msra.mxu0 %v7650_v8  ;;  %7280 = vmatpush3.bf16.msra.mxu1 %v7650_v8 }
 0xd67   : > { %8089 = vrsqrt.f32 %v5451_v25  ;;  %v5437_v11 = vmul.f32 0.0078125, %v5417_v19  ;;  %v7651_v19 = vld [vmem:[#allocation13 + $0x48] sm:$0xff]  }
 0xd68   : > { %8091 = vrsqrt.f32 %v5452_v59  ;;  %7135 = vmatprep.subr.bf16.mxu0 %v7651_v19  ;;  %7273 = vmatprep.subr.bf16.mxu1 %v7651_v19 }
 0xd69   : > { %v5453_v55 = vadd.f32 1e-05, %v5437_v11 }
 0xd6b   : > { %8093 = vrsqrt.f32 %v5453_v55 }
 0xd6e   : > { %v5419_v28 = vpop.xlane.xlu0 %5418 }
 0xd6f   : > { %v5438_v0 = vmul.f32 0.0078125, %v5419_v28 }
 0xd70   : > { %v8088_v27 = vpop.eup %8087 }
 0xd71   : > { %v5454_v52 = vadd.f32 1e-05, %v5438_v0  ;;  %v5482_v30 = vmul.f32 %v8088_v27, %v12008_v32 }
 0xd72   : > { %v5421_v6 = vpop.xlane.xlu1 %5420  ;;  %v5423_v46 = vpop.xlane.xlu0 %5422 }
 0xd73   : > { %8095 = vrsqrt.f32 %v5454_v52  ;;  %v5439_v17 = vmul.f32 0.0078125, %v5421_v6  ;;  %v5440_v54 = vmul.f32 0.0078125, %v5423_v46  ;;  %v5504_v53 = vmul.f32 %v12077_v7, %v5482_v30  ;;  %v7653_v52 = vld [vmem:[#allocation13 + $0x40] sm:$0xff]  }
 0xd74   : > { %v8090_v10 = vpop.eup %8089  ;;  %v7654_v46 = vld [vmem:[#allocation13] sm:$0xff]  }
 0xd75   : > { %v8092_v31 = vpop.eup %8091  ;;  %v5455_v61 = vadd.f32 1e-05, %v5439_v17  ;;  %v5456_v43 = vadd.f32 1e-05, %v5440_v54  ;;  %v5483_v24 = vmul.f32 %v8090_v10, %v12013_v60  ;;  %v5526_v32 = vadd.f32 %v12085_v58, %v5504_v53  ;;  %v12933_v10 = vld [vmem:[#allocation26_spill] sm:$0xff] }
 0xd76   : > { %v5425_v3 = vpop.xlane.xlu1 %5424  ;;  %v5484_v18 = vmul.f32 %v8092_v31, %v12016_v5  ;;  %v5566_v53 = vsub.s32 1, %v12933_v10  ;;  %v5558_v31 = vld [vmem:[%s12934_s11] sm:$0x3]  ;;  %s8313_s11 = scalar_lea.vmem %s12248_s21, 2048 }
 0xd77   : > { %8097 = vrsqrt.f32 %v5455_v61  ;;  %v5441_v36 = vmul.f32 0.0078125, %v5425_v3  ;;  %v5505_v9 = vmul.f32 %v12077_v7, %v5483_v24  ;;  %p8314_p1 = scmp.ne.s32.totalorder %s12248_s21, %s8313_s11 }
 0xd78   : > { %v8094_v34 = vpop.eup %8093  ;;  %8099 = vrsqrt.f32 %v5456_v43  ;;  %v5506_v16 = vmul.f32 %v12077_v7, %v5484_v18  ;;  %v12152_v43 = vrot.slane %v5558_v31, %v5566_v53 }
 0xd79   : > { %v5457_v13 = vadd.f32 1e-05, %v5441_v36  ;;  %v5527_v50 = vadd.f32 %v12085_v58, %v5505_v9  ;;  %v5485_v63 = vmul.f32 %v8094_v34, %v12023_v45  ;;  %p8315_p2 = pnand %p8314_p1, %p8718_p13 }
 0xd7a   : > { %v5528_v5 = vadd.f32 %v12085_v58, %v5506_v16 }
 0xd7b   : > { %8101 = vrsqrt.f32 %v5457_v13  ;;  %v5538_v20 = vpack.c.bf16 %v5527_v50, %v5526_v32  ;;  %v5507_v60 = vmul.f32 %v12077_v7, %v5485_v63  ;;  %p8316_p6 = pneg %p8315_p2 }
 0xd7d   : > { %5723 = vmatmul.mubr.bf16.gmra.mxu1 %v5538_v20  ;;  %v5529_v57 = vadd.f32 %v12085_v58, %v5507_v60 }
 0xd7e   : > { %5732 = vmatprep.mubr.bf16.mxu1 %v8461_v40 }
 0xd7f   : > { %v5539_v12 = vpack.c.bf16 %v5529_v57, %v5528_v5 }
 0xd80   : > { %v8096_v35 = vpop.eup %8095 }
 0xd81   : > { %v5486_v29 = vmul.f32 %v8096_v35, %v12028_v44  ;;  %v7652_v44 = vld [vmem:[#allocation13 + $0x8] sm:$0xff]  }
 0xd82   : > { %7136 = vmatpush3.bf16.msra.mxu0 %v7652_v44  ;;  %7281 = vmatpush3.bf16.msra.mxu1 %v7652_v44 }
 0xd83   : > { %v5508_v25 = vmul.f32 %v12077_v7, %v5486_v29  ;;  %7137 = vmatprep.subr.bf16.mxu0 %v7653_v52  ;;  %7274 = vmatprep.subr.bf16.mxu1 %v7653_v52 }
 0xd84   : > { %v8098_v45 = vpop.eup %8097 }
 0xd85   : > { %5733 = vmatmul.mubr.bf16.gmra.mxu1 %v5539_v12  ;;  %v5487_v37 = vmul.f32 %v8098_v45, %v12033_v15  ;;  %v8100_v59 = vpop.eup %8099  ;;  %v5530_v28 = vadd.f32 %v12085_v58, %v5508_v25 }
 0xd86   : > { %5742 = vmatprep.mubr.bf16.mxu1 %v8461_v40  ;;  %v5488_v15 = vmul.f32 %v8100_v59, %v12036_v26  ;;  %7138 = vmatpush3.bf16.msra.mxu0 %v7654_v46 }
 0xd87   : > { %v5509_v11 = vmul.f32 %v12077_v7, %v5487_v37  ;;  %7282 = vmatpush3.bf16.msra.mxu1 %v7654_v46 }
 0xd88   : > { %v8102_v55 = vpop.eup %8101  ;;  %v5510_v17 = vmul.f32 %v12077_v7, %v5488_v15 }
 0xd89   : > { %v5531_v0 = vadd.f32 %v12085_v58, %v5509_v11  ;;  %v5489_v27 = vmul.f32 %v8102_v55, %v12043_v49 }
 0xd8a   : > { %v5532_v49 = vadd.f32 %v12085_v58, %v5510_v17 }
 0xd8b   : > { %v5540_v30 = vpack.c.bf16 %v5531_v0, %v5530_v28  ;;  %v5511_v6 = vmul.f32 %v12077_v7, %v5489_v27  ;;  %v12935_v7 = vld [vmem:[#allocation27_spill] sm:$0xff] }
 0xd8c   : > { %v12155_v24 = vrot.slane %v5558_v31, %v12935_v7 }
 0xd8d   : > { %5743 = vmatmul.mubr.bf16.gmra.mxu1 %v5540_v30  ;;  %v5533_v26 = vadd.f32 %v12085_v58, %v5511_v6 }
 0xd8e   : > { %5752 = vmatprep.mubr.bf16.mxu1 %v8461_v40 }
 0xd8f   : > { %v5541_v54 = vpack.c.bf16 %v5533_v26, %v5532_v49 }
 0xd95   : > { %5753 = vmatmul.mubr.bf16.gmra.mxu1 %v5541_v54 }
 0xdff   : > { %v5684_v61 = vpop.f32.mrf.mxu1 }
 0xe00   : > { %v5685_v9 = vadd.f32 %v5684_v61, %v12155_v24 }
 0xe01   : > { %v5686_v40 = vpop.f32.mrf.mxu1 }
 0xe02   : > { %v5687_v36 = vadd.f32 %v5686_v40, %v12152_v43  ;;  %v5763_v20 = vmax.f32 %v5685_v9, 0.0 }
 0xe03   : > { %v5688_v3 = vpop.f32.mrf.mxu1 }
 0xe04   : > { %v5689_v58 = vadd.f32 %v5688_v3, %v12155_v24  ;;  %v5764_v50 = vmax.f32 %v5687_v36, 0.0 }
 0xe05   : > { %v5690_v34 = vpop.f32.mrf.mxu1 }
 0xe06   : > { %v5691_v32 = vadd.f32 %v5690_v34, %v12152_v43  ;;  %v5765_v18 = vmax.f32 %v5689_v58, 0.0 }
 0xe07   : > { %v5694_v13 = vpop.f32.mrf.mxu1 }
 0xe08   : > { %v5766_v63 = vmax.f32 %v5691_v32, 0.0  ;;  %v5795_v57 = vpack.c.bf16 %v5765_v18, %v5763_v20  ;;  %v5695_v56 = vadd.f32 %v5694_v13, %v12155_v24 }
 0xe09   : > { %v5696_v60 = vpop.f32.mrf.mxu1 }
 0xe0a   : > { %v5796_v16 = vpack.c.bf16 %v5766_v63, %v5764_v50  ;;  %v5697_v5 = vadd.f32 %v5696_v60, %v12152_v43  ;;  %v5767_v19 = vmax.f32 %v5695_v56, 0.0 }
 0xe0b   : > { %v5698_v35 = vpop.f32.mrf.mxu1 }
 0xe0c   : > { %v5699_v29 = vadd.f32 %v5698_v35, %v12155_v24  ;;  %5978 = vmatprep.mubr.bf16.mxu0 %v5796_v16  ;;  %v5768_v25 = vmax.f32 %v5697_v5, 0.0 }
 0xe0d   : > { %v5700_v12 = vpop.f32.mrf.mxu1  ;;  %5979 = vmatmul.mubr.bf16.vlgmr.msra.gmra.mxu0 %v5795_v57 }
 0xe0e   : > { %v5701_v8 = vadd.f32 %v5700_v12, %v12152_v43  ;;  %v5769_v45 = vmax.f32 %v5699_v29, 0.0 }
 0xe0f   : > { %v5704_v37 = vpop.f32.mrf.mxu1 }
 0xe10   : > { %v5770_v59 = vmax.f32 %v5701_v8, 0.0  ;;  %v5797_v55 = vpack.c.bf16 %v5769_v45, %v5767_v19  ;;  %v5705_v27 = vadd.f32 %v5704_v37, %v12155_v24 }
 0xe11   : > { %v5706_v11 = vpop.f32.mrf.mxu1 }
 0xe12   : > { %v5798_v44 = vpack.c.bf16 %v5770_v59, %v5768_v25  ;;  %v5707_v0 = vadd.f32 %v5706_v11, %v12152_v43  ;;  %v5771_v49 = vmax.f32 %v5705_v27, 0.0 }
 0xe13   : > { %v5708_v28 = vpop.f32.mrf.mxu1 }
 0xe14   : > { %v5709_v15 = vadd.f32 %v5708_v28, %v12155_v24  ;;  %5986 = vmatprep.mubr.bf16.mxu0 %v5798_v44  ;;  %v5772_v17 = vmax.f32 %v5707_v0, 0.0 }
 0xe15   : > { %v5710_v52 = vpop.f32.mrf.mxu1  ;;  %5987 = vmatmul.mubr.bf16.gmra.mxu0 %v5797_v55 }
 0xe16   : > { %v5711_v30 = vadd.f32 %v5710_v52, %v12152_v43  ;;  %v5773_v6 = vmax.f32 %v5709_v15, 0.0 }
 0xe17   : > { %v5714_v46 = vpop.f32.mrf.mxu1 }
 0xe18   : > { %v5774_v26 = vmax.f32 %v5711_v30, 0.0  ;;  %v5799_v53 = vpack.c.bf16 %v5773_v6, %v5771_v49  ;;  %v5715_v40 = vadd.f32 %v5714_v46, %v12155_v24 }
 0xe19   : > { %v5716_v54 = vpop.f32.mrf.mxu1 }
 0xe1a   : > { %v5800_v10 = vpack.c.bf16 %v5774_v26, %v5772_v17  ;;  %v5717_v61 = vadd.f32 %v5716_v54, %v12152_v43  ;;  %v5775_v32 = vmax.f32 %v5715_v40, 0.0 }
 0xe1b   : > { %v5718_v31 = vpop.f32.mrf.mxu1 }
 0xe1c   : > { %v5719_v7 = vadd.f32 %v5718_v31, %v12155_v24  ;;  %5994 = vmatprep.mubr.bf16.mxu0 %v5800_v10  ;;  %v5776_v9 = vmax.f32 %v5717_v61, 0.0 }
 0xe1d   : > { %v5720_v3 = vpop.f32.mrf.mxu1  ;;  %5995 = vmatmul.mubr.bf16.gmra.mxu0 %v5799_v53 }
 0xe1e   : > { %v5721_v36 = vadd.f32 %v5720_v3, %v12152_v43  ;;  %v5777_v58 = vmax.f32 %v5719_v7, 0.0 }
 0xe20   : > { %v5778_v34 = vmax.f32 %v5721_v36, 0.0  ;;  %v5801_v13 = vpack.c.bf16 %v5777_v58, %v5775_v32 }
 0xe22   : > { %v5802_v18 = vpack.c.bf16 %v5778_v34, %v5776_v9 }
 0xe24   : > { %6002 = vmatprep.mubr.bf16.mxu0 %v5802_v18 }
 0xe25   : > { %6003 = vmatmul.mubr.bf16.gmra.mxu0 %v5801_v13 }
 0xe3d   : > { %v5724_v50 = vpop.f32.mrf.mxu1 }
 0xe3e   : > { %v5725_v57 = vadd.f32 %v5724_v50, %v12155_v24 }
 0xe3f   : > { %v5726_v63 = vpop.f32.mrf.mxu1 }
 0xe40   : > { %v5727_v60 = vadd.f32 %v5726_v63, %v12152_v43  ;;  %v5779_v45 = vmax.f32 %v5725_v57, 0.0 }
 0xe41   : > { %v5728_v20 = vpop.f32.mrf.mxu1 }
 0xe42   : > { %v5729_v16 = vadd.f32 %v5728_v20, %v12155_v24  ;;  %v5780_v12 = vmax.f32 %v5727_v60, 0.0 }
 0xe43   : > { %v5730_v35 = vpop.f32.mrf.mxu1 }
 0xe44   : > { %v5731_v5 = vadd.f32 %v5730_v35, %v12152_v43  ;;  %v5781_v29 = vmax.f32 %v5729_v16, 0.0 }
 0xe45   : > { %v5734_v56 = vpop.f32.mrf.mxu1 }
 0xe46   : > { %v5782_v8 = vmax.f32 %v5731_v5, 0.0  ;;  %v5803_v59 = vpack.c.bf16 %v5781_v29, %v5779_v45  ;;  %v5735_v55 = vadd.f32 %v5734_v56, %v12155_v24 }
 0xe47   : > { %v5736_v37 = vpop.f32.mrf.mxu1 }
 0xe48   : > { %v5804_v25 = vpack.c.bf16 %v5782_v8, %v5780_v12  ;;  %v5737_v11 = vadd.f32 %v5736_v37, %v12152_v43  ;;  %v5783_v6 = vmax.f32 %v5735_v55, 0.0  ;;  %v12192_v8 = vld [vmem:[%s12936_s23] ss:$0 sm:$0xff]  ;;  %s8319_s23 = scalar_lea.vmem %s8318_s24, 4096 }
 0xe49   : > { %v5738_v19 = vpop.f32.mrf.mxu1  ;;  %p8321_p10 = scmp.lt.s32.totalorder %s8319_s23, %s8313_s11 }
 0xe4a   : > { %v5739_v44 = vadd.f32 %v5738_v19, %v12155_v24  ;;  %6010 = vmatprep.mubr.bf16.mxu0 %v5804_v25  ;;  %v5784_v52 = vmax.f32 %v5737_v11, 0.0 }
 0xe4b   : > { %v5740_v28 = vpop.f32.mrf.mxu1  ;;  %6011 = vmatmul.mubr.bf16.gmra.mxu0 %v5803_v59  ;;  %p8322_p11 = por %p8321_p10, %p8320_p5 }
 0xe4c   : > { %v5741_v0 = vadd.f32 %v5740_v28, %v12152_v43  ;;  %v5785_v15 = vmax.f32 %v5739_v44, 0.0 }
 0xe4d   : > { %v5744_v27 = vpop.f32.mrf.mxu1  ;;  %p8323_p12 = pnand %p8322_p11, %p8316_p6 }
 0xe4e   : > { %v5786_v30 = vmax.f32 %v5741_v0, 0.0  ;;  %v5805_v26 = vpack.c.bf16 %v5785_v15, %v5783_v6  ;;  %v5745_v53 = vadd.f32 %v5744_v27, %v12155_v24 }
 0xe4f   : > { %v5746_v46 = vpop.f32.mrf.mxu1 }
 0xe50   : > { %v5806_v17 = vpack.c.bf16 %v5786_v30, %v5784_v52  ;;  %v5747_v54 = vadd.f32 %v5746_v46, %v12152_v43  ;;  %v5787_v58 = vmax.f32 %v5745_v53, 0.0 }
 0xe51   : > { %v5748_v49 = vpop.f32.mrf.mxu1 }
 0xe52   : > { %v5749_v10 = vadd.f32 %v5748_v49, %v12155_v24  ;;  %6018 = vmatprep.mubr.bf16.mxu0 %v5806_v17  ;;  %v5788_v3 = vmax.f32 %v5747_v54, 0.0 }
 0xe53   : > { %v5750_v31 = vpop.f32.mrf.mxu1  ;;  %6019 = vmatmul.mubr.bf16.gmra.mxu0 %v5805_v26 }
 0xe54   : > { %v5751_v61 = vadd.f32 %v5750_v31, %v12152_v43  ;;  %v5789_v7 = vmax.f32 %v5749_v10, 0.0 }
 0xe55   : > { %v5754_v40 = vpop.f32.mrf.mxu1 }
 0xe56   : > { %v5790_v36 = vmax.f32 %v5751_v61, 0.0  ;;  %v5807_v32 = vpack.c.bf16 %v5789_v7, %v5787_v58  ;;  %v5755_v63 = vadd.f32 %v5754_v40, %v12155_v24 }
 0xe57   : > { %v5756_v9 = vpop.f32.mrf.mxu1 }
 0xe58   : > { %v5808_v34 = vpack.c.bf16 %v5790_v36, %v5788_v3  ;;  %v5757_v13 = vadd.f32 %v5756_v9, %v12152_v43  ;;  %v5791_v5 = vmax.f32 %v5755_v63, 0.0 }
 0xe59   : > { %v5758_v18 = vpop.f32.mrf.mxu1 }
 0xe5a   : > { %v5759_v50 = vadd.f32 %v5758_v18, %v12155_v24  ;;  %6026 = vmatprep.mubr.bf16.mxu1 %v5808_v34  ;;  %v5792_v57 = vmax.f32 %v5757_v13, 0.0 }
 0xe5b   : > { %v5760_v20 = vpop.f32.mrf.mxu1  ;;  %6027 = vmatmul.mubr.bf16.vlgmr.msra.gmra.mxu1 %v5807_v32 }
 0xe5c   : > { %v5761_v60 = vadd.f32 %v5760_v20, %v12152_v43  ;;  %v5793_v16 = vmax.f32 %v5759_v50, 0.0 }
 0xe5e   : > { %v5794_v35 = vmax.f32 %v5761_v60, 0.0  ;;  %v5809_v56 = vpack.c.bf16 %v5793_v16, %v5791_v5 }
 0xe60   : > { %v5810_v29 = vpack.c.bf16 %v5794_v35, %v5792_v57 }
 0xe62   : > { %6034 = vmatprep.mubr.bf16.mxu1 %v5810_v29 }
 0xe63   : > { %6035 = vmatmul.mubr.bf16.gmra.mxu1 %v5809_v56 }
 0xecd   : > { %v7139_v12 = vpop.f32.mrf.mxu0 }
 0xecf   : > { %v7140_v24 = vpop.f32.mrf.mxu0 }
 0xed0   : > { %v7141_v45 = vadd.f32 %v7140_v24, %v7139_v12 }
 0xed1   : > { %v7142_v37 = vpop.f32.mrf.mxu0 }
 0xed2   : > { %v5981_v43 = vadd.f32 %v7141_v45, %v12192_v8 }
 0xed3   : > { %v7143_v25 = vpop.f32.mrf.mxu0 }
 0xed4   : > { %v6043_v59 = vadd.f32 %v5981_v43, %v11889_v23  ;;  %v7144_v19 = vadd.f32 %v7143_v25, %v7142_v37 }
 0xed5   : > { %v7145_v11 = vpop.f32.mrf.mxu0 }
 0xed6   : > { %6059 = vst [vmem:[%s8785_s19] sm:$0xff] %v6043_v59  ;;  %v5984_v44 = vadd.f32 %v7144_v19, %v12192_v8 }
 0xed7   : > { %v7146_v55 = vpop.f32.mrf.mxu0 }
 0xed8   : > { %v6044_v28 = vadd.f32 %v5984_v44, %v11898_v4  ;;  %v7147_v0 = vadd.f32 %v7146_v55, %v7145_v11 }
 0xed9   : > { %v7148_v15 = vpop.f32.mrf.mxu0 }
 0xeda   : > { %6060 = vst [vmem:[%s8785_s19 + $0x8] sm:$0xff] %v6044_v28  ;;  %v5989_v27 = vadd.f32 %v7147_v0, %v12192_v8 }
 0xedb   : > { %v7149_v52 = vpop.f32.mrf.mxu0 }
 0xedc   : > { %v6045_v30 = vadd.f32 %v5989_v27, %v11894_v42  ;;  %v7150_v6 = vadd.f32 %v7149_v52, %v7148_v15 }
 0xedd   : > { %v7151_v23 = vpop.f32.mrf.mxu0 }
 0xede   : > { %6061 = vst [vmem:[%s8785_s19 + $0x10] sm:$0xff] %v6045_v30  ;;  %v5992_v46 = vadd.f32 %v7150_v6, %v12192_v8 }
 0xedf   : > { %v7152_v17 = vpop.f32.mrf.mxu0 }
 0xee0   : > { %v6046_v26 = vadd.f32 %v5992_v46, %v11903_v47  ;;  %v7153_v49 = vadd.f32 %v7152_v17, %v7151_v23 }
 0xee1   : > { %v7154_v4 = vpop.f32.mrf.mxu0 }
 0xee2   : > { %6062 = vst [vmem:[%s8785_s19 + $0x18] sm:$0xff] %v6046_v26  ;;  %v5997_v54 = vadd.f32 %v7153_v49, %v12192_v8 }
 0xee3   : > { %v7155_v10 = vpop.f32.mrf.mxu0 }
 0xee4   : > { %v6047_v53 = vadd.f32 %v5997_v54, %v11909_v48  ;;  %v7156_v31 = vadd.f32 %v7155_v10, %v7154_v4 }
 0xee5   : > { %v7157_v42 = vpop.f32.mrf.mxu0 }
 0xee6   : > { %6063 = vst [vmem:[%s8785_s19 + $0x20] sm:$0xff] %v6047_v53  ;;  %v6000_v61 = vadd.f32 %v7156_v31, %v12192_v8 }
 0xee7   : > { %v7158_v7 = vpop.f32.mrf.mxu0 }
 0xee8   : > { %v6048_v40 = vadd.f32 %v6000_v61, %v11918_v33  ;;  %v7159_v3 = vadd.f32 %v7158_v7, %v7157_v42 }
 0xee9   : > { %v7160_v47 = vpop.f32.mrf.mxu0 }
 0xeea   : > { %6064 = vst [vmem:[%s8785_s19 + $0x28] sm:$0xff] %v6048_v40  ;;  %v6005_v36 = vadd.f32 %v7159_v3, %v12192_v8 }
 0xeeb   : > { %v7161_v58 = vpop.f32.mrf.mxu0 }
 0xeec   : > { %v6049_v9 = vadd.f32 %v6005_v36, %v11914_v2  ;;  %v7162_v34 = vadd.f32 %v7161_v58, %v7160_v47 }
 0xeee   : > { %6065 = vst [vmem:[%s8785_s19 + $0x30] sm:$0xff] %v6049_v9  ;;  %v6008_v48 = vadd.f32 %v7162_v34, %v12192_v8 }
 0xef0   : > { %v6050_v32 = vadd.f32 %v6008_v48, %v11923_v22 }
 0xef2   : > { %6066 = vst [vmem:[%s8785_s19 + $0x38] sm:$0xff] %v6050_v32 }
 0xf0b   : > { %v7163_v18 = vpop.f32.mrf.mxu0 }
 0xf0d   : > { %v7164_v13 = vpop.f32.mrf.mxu0 }
 0xf0e   : > { %v7165_v33 = vadd.f32 %v7164_v13, %v7163_v18 }
 0xf0f   : > { %v7166_v50 = vpop.f32.mrf.mxu0 }
 0xf10   : > { %v6013_v63 = vadd.f32 %v7165_v33, %v12192_v8 }
 0xf11   : > { %v7167_v20 = vpop.f32.mrf.mxu0 }
 0xf12   : > { %v6051_v60 = vadd.f32 %v6013_v63, %v11929_v21  ;;  %v7168_v16 = vadd.f32 %v7167_v20, %v7166_v50 }
 0xf13   : > { %v7169_v2 = vpop.f32.mrf.mxu0 }
 0xf14   : > { %6067 = vst [vmem:[%s8785_s19 + $0x40] sm:$0xff] %v6051_v60  ;;  %v6016_v57 = vadd.f32 %v7168_v16, %v12192_v8 }
 0xf15   : > { %v7170_v35 = vpop.f32.mrf.mxu0 }
 0xf16   : > { %v6052_v22 = vadd.f32 %v6016_v57, %v11938_v62  ;;  %v7171_v5 = vadd.f32 %v7170_v35, %v7169_v2 }
 0xf17   : > { %v7172_v29 = vpop.f32.mrf.mxu0 }
 0xf18   : > { %6068 = vst [vmem:[%s8785_s19 + $0x48] sm:$0xff] %v6052_v22  ;;  %v6021_v56 = vadd.f32 %v7171_v5, %v12192_v8 }
 0xf19   : > { %v7173_v12 = vpop.f32.mrf.mxu0 }
 0xf1a   : > { %v6053_v24 = vadd.f32 %v6021_v56, %v11934_v38  ;;  %v7174_v45 = vadd.f32 %v7173_v12, %v7172_v29 }
 0xf1b   : > { %v7175_v21 = vpop.f32.mrf.mxu1 }
 0xf1c   : > { %6069 = vst [vmem:[%s8785_s19 + $0x50] sm:$0xff] %v6053_v24  ;;  %v6024_v37 = vadd.f32 %v7174_v45, %v12192_v8 }
 0xf1d   : > { %v7176_v43 = vpop.f32.mrf.mxu1 }
 0xf1e   : > { %v6054_v25 = vadd.f32 %v6024_v37, %v11943_v39  ;;  %v7177_v62 = vadd.f32 %v7176_v43, %v7175_v21 }
 0xf1f   : > { %v7178_v59 = vpop.f32.mrf.mxu1 }
 0xf20   : > { %6070 = vst [vmem:[%s8785_s19 + $0x58] sm:$0xff] %v6054_v25  ;;  %v6029_v19 = vadd.f32 %v7177_v62, %v12192_v8 }
 0xf21   : > { %v7179_v11 = vpop.f32.mrf.mxu1 }
 0xf22   : > { %v6055_v44 = vadd.f32 %v6029_v19, %v11949_v14  ;;  %v7180_v38 = vadd.f32 %v7179_v11, %v7178_v59 }
 0xf23   : > { %v7181_v55 = vpop.f32.mrf.mxu1 }
 0xf24   : > { %6071 = vst [vmem:[%s8785_s19 + $0x60] sm:$0xff] %v6055_v44  ;;  %v6032_v28 = vadd.f32 %v7180_v38, %v12192_v8 }
 0xf25   : > { %v7182_v0 = vpop.f32.mrf.mxu1 }
 0xf26   : > { %v6056_v39 = vadd.f32 %v6032_v28, %v11958_v41  ;;  %v7183_v15 = vadd.f32 %v7182_v0, %v7181_v55 }
 0xf27   : > { %v7184_v27 = vpop.f32.mrf.mxu1 }
 0xf28   : > { %6072 = vst [vmem:[%s8785_s19 + $0x68] sm:$0xff] %v6056_v39  ;;  %v6037_v14 = vadd.f32 %v7183_v15, %v12192_v8 }
 0xf29   : > { %v7185_v52 = vpop.f32.mrf.mxu1 }
 0xf2a   : > { %v6057_v30 = vadd.f32 %v6037_v14, %v11954_v51  ;;  %v7186_v6 = vadd.f32 %v7185_v52, %v7184_v27 }
 0xf2c   : > { %6073 = vst [vmem:[%s8785_s19 + $0x70] sm:$0xff] %v6057_v30  ;;  %v6040_v23 = vadd.f32 %v7186_v6, %v12192_v8 }
 0xf2e   : > { %v6058_v41 = vadd.f32 %v6040_v23, %v11963_v1 }
 0xf30   : > { %6074 = vst [vmem:[%s8785_s19 + $0x78] sm:$0xff] %v6058_v41 }
 0xf31   : > { %8326 = shalt.err (!%p8323_p12)
}
 0xf32   : > { %s8327_s17 = scalar_lea.hbm %s12246_s12, 2048  ;;  %s8331_s28 = scalar_lea.hbm %s12938_s13, 8192 }
 0xf33   : > { %p8328_p8 = scmp.ne.s32.totalorder %s12246_s12, %s8327_s17  ;;  %p8332_p7 = scmp.lt.s32.totalorder %s12246_s12, %s12938_s13 }
 0xf34   : > { %p8333_p9 = scmp.lt.s32.totalorder %s8331_s28, %s8327_s17 }
 0xf35   : > { %p8329_p0 = pnand %p8328_p8, %p8718_p13 }
 0xf36   : > { %p8334_p1 = por %p8333_p9, %p8332_p7 }
 0xf37   : > { %p8330_p4 = pneg %p8329_p0 }
 0xf39   : > { %p8335_p2 = pnand %p8334_p1, %p8330_p4 }
 0xf3b   : > { %8338 = shalt.err (!%p8335_p2)
}
 0xf3c   : > { %s8463_s15 = smov 128   ;;  %s8464_s20 = smov 8  }
 0xf3d   : > { %7337 = dma.vmem_to_hbm [thread:$0]  (%p8718_p13), %s12248_s21, 2048, %s12246_s12, %s12254_s3, %s8463_s15, %s8463_s15, %s8464_s20  }
 0xf3e PF: > { %p7374_p6 = scmp.ge.s32.totalorder %s8445_s18, 2  ;;  %s6106_s1 = sand.u32 1, %s8405_s25  }
 0xf3f   : > { %s6107_s11 = scalar_lea.sflag [#allocation6], %s6106_s1 }
 0xf40   : > { %p7360_p5 = pnand %p7374_p6, %p8731_p3 }
 0xf42   : > { %p7361_p10 = pneg %p7360_p5 }
 0xf44   : > { %8400 = dma.done.wait (%p7361_p10), %s6107_s11, 2048  }
 0xf45   : > { %8402 = vsyncadd (%p7361_p10), %s6107_s11, 4294965248  ;;  %s32_s18 = sadd.s32 1, %s8445_s18   ;;  %s12939_s15 = sld [smem:[#allocation23_spill]] }
 0xf46   : > { %p29_p11 = scmp.ge.s32.totalorder %s32_s18, 6   ;;  %s12940_s8 = sld [smem:[#allocation24_spill]] }
 0xf47   : > { %s12941_s17 = sld [smem:[#allocation25_spill]]  ;;  %s12942_s25 = smov %s8409_s26 }
 0xf48   : > { %s12943_s26 = smov %s8413_s27  ;;  %s12944_s27 = smov %s8726_s14 }
 0xf49   : > { %s12945_s28 = smov %s8421_s29  ;;  %s12946_s29 = smov %s8425_s30 }
 0xf4a   : > { %s12947_s30 = smov %s8723_s4  ;;  %s12948_s14 = smov %s8437_s16 }
 0xf4b   :  { %31 = sbr.rel (!%p29_p11) target bundleno = 24 (0x18), region = 142 }
 0xf4c   : > { %s12949_s16 = smov %s12940_s8 }
 0xf50   :  { %6112 = vsyncpa [#allocation5], 1 }
 0xf51   :  { %6114 = vsyncpa [#allocation5 + $0x1], 1 }
 0xf52   :  { %6115 = vsyncpa [#allocation8], 1 }
 0xf53   :  { %6116 = vsyncpa [#allocation11], 1 }
 0xf54   :  { %6117 = vsyncpa [#allocation14], 1 }
 0xf55   :  { %6118 = vsyncpa [#allocation6], 1 }
 0xf56   :  { %6120 = vsyncpa [#allocation6 + $0x1], 1 }

</bundles_post_ra>
